<compile_context>
chip_gen: v5e
topology: v5e:2x2
jax: 0.10.0
libtpu: 0.0.40
codegen_flags: <defaults>
</compile_context>

<pallas_src>
import math
import functools

import jax
import jax.numpy as jnp
from jax import lax
from jax.experimental import pallas as pl
from jax.experimental.pallas import tpu as pltpu


def _vmem_specs(n):
    return [pl.BlockSpec(memory_space=pltpu.MemorySpace.VMEM) for _ in range(n)]


def _sigmoid(x):
    return 1.0 / (1.0 + jnp.exp(-x))


def _layer_norm(x, gamma, beta, eps=1e-5):
    mu = jnp.mean(x, axis=-1, keepdims=True)
    var = jnp.mean((x - mu) ** 2, axis=-1, keepdims=True)
    return (x - mu) * lax.rsqrt(var + eps) * gamma + beta


# ----------------------- fused 3-layer bidirectional LSTM (one kernel) -----------------------

def _bilstm3_kernel(x_ref, w0i_ref, w0h_ref, b0_ref,
                    w1i_ref, w1h_ref, b1_ref,
                    w2i_ref, w2h_ref, b2_ref,
                    out_ref, buf_ref, xp_ref):
    # x_ref: (T, B, D_in); out_ref/buf_ref: (T, B, 2*Hc); xp_ref: (T, B, 8*Hc) scratch.
    T, B, _ = x_ref.shape
    H = out_ref.shape[-1]                 # 2*Hc  (fwd|bwd hidden, lane-dense)
    Hc = H // 2
    G = 4 * H                             # 8*Hc fused gate width (i,f,g,o x fwd|bwd)

    # Lane masks built once (2-D iota; 1-D iota is not supported on TPU).
    lane_g = lax.broadcasted_iota(jnp.int32, (B, G), 1)
    fwd_lanes_g = (lane_g % H) < Hc       # fwd lanes inside the 8*Hc gate vector
    lane_h = lax.broadcasted_iota(jnp.int32, (B, H), 1)
    fwd_lanes_h = lane_h < Hc             # fwd lanes inside the 2*Hc hidden vector

    def run_layer(in_ref, wih_ref, whh_ref, b_ref, o_ref):
        Tn, Bn, Din = in_ref.shape
        # Hoisted input projection for all timesteps & both directions (bf16 MXU,
        # f32 accumulation); combined b_ih+b_hh folded in here, outside the recurrence.
        wih = wih_ref[...]
        xp = jnp.dot(in_ref[...].reshape(Tn * Bn, Din).astype(wih.dtype), wih,
                     preferred_element_type=jnp.float32) + b_ref[...]
        xp_ref[...] = xp.reshape(Tn, Bn, G)

        whh = whh_ref[...]                # (2*Hc, 8*Hc) f32 block-diagonal, hoisted

        def step(t, carry):
            h, c = carry                  # (B, 2*Hc) f32, laid out [h_fwd | h_bwd]
            # fwd gate inputs from x[t], bwd gate inputs from x[T-1-t] (lane select).
            xg = jnp.where(fwd_lanes_g, xp_ref[t], xp_ref[Tn - 1 - t])
            gates = xg + jnp.dot(h, whh, preferred_element_type=jnp.float32)
            i = _sigmoid(gates[:, 0 * H:1 * H])      # PyTorch gate order: i, f, g, o
            f = _sigmoid(gates[:, 1 * H:2 * H])
            g = jnp.tanh(gates[:, 2 * H:3 * H])
            o = _sigmoid(gates[:, 3 * H:4 * H])
            c_new = f * c + i * g
            h_new = o * jnp.tanh(c_new)
            o_ref[t] = h_new                         # lane-dense (B, 2*Hc) store
            return (h_new, c_new)

        zero = jnp.zeros((Bn, H), jnp.float32)
        lax.fori_loop(0, Tn, step, (zero, zero), unroll=True)

        # The bwd half was produced in reversed time order; swap it back in place.
        def unrev(t, carry):
            a = o_ref[t]
            b = o_ref[Tn - 1 - t]
            o_ref[t] = jnp.where(fwd_lanes_h, a, b)
            o_ref[Tn - 1 - t] = jnp.where(fwd_lanes_h, b, a)
            return carry

        lax.fori_loop(0, Tn // 2, unrev, 0, unroll=True)

    # layer 0: x -> out_ref, layer 1: out_ref -> buf_ref, layer 2: buf_ref -> out_ref
    run_layer(x_ref, w0i_ref, w0h_ref, b0_ref, out_ref)
    # TODO(synk): LSTM inter-layer dropout is training-only; inference no-op here.
    run_layer(out_ref, w1i_ref, w1h_ref, b1_ref, buf_ref)
    run_layer(buf_ref, w2i_ref, w2h_ref, b2_ref, out_ref)


def bilstm3(x_tm, lstm_params):
    # x_tm: (T, B, D_in) time-major.  Returns (T, B, H) with [fwd|bwd] hidden per step.
    T, B, _ = x_tm.shape
    Hc = lstm_params[0]["whh"].shape[0] // 2
    H = 2 * Hc
    args = [x_tm]
    for p in lstm_params:
        args += [p["wih"], p["whh"], p["bias"]]
    return pl.pallas_call(
        _bilstm3_kernel,
        out_shape=jax.ShapeDtypeStruct((T, B, H), jnp.float32),
        in_specs=_vmem_specs(len(args)),
        out_specs=pl.BlockSpec(memory_space=pltpu.MemorySpace.VMEM),
        scratch_shapes=[pltpu.VMEM((T, B, H), jnp.float32),        # inter-layer buffer
                        pltpu.VMEM((T, B, 4 * H), jnp.float32)],   # hoisted gate inputs
    )(*args)


# ----------------------- fused Transformer encoder stack (one kernel) ------------------------

def _encoder_stack_kernel(x_ref, wqkv_ref, bqkv_ref, wo_ref, bo_ref,
                          g1_ref, be1_ref, wff1_ref, bff1_ref,
                          wff2_ref, bff2_ref, g2_ref, be2_ref,
                          gf_ref, bf_ref, out_ref, *, nhead):
    # x_ref: (Bb, L, E); self-attention mixes over L for each Bb row (L is the original
    # batch axis N, matching nn.Transformer's seq-first convention on batch-first input).
    Bb, L, E = x_ref.shape
    n_layers = wqkv_ref.shape[0]
    hd = E // nhead
    scale = 1.0 / math.sqrt(hd)

    xf = x_ref[...].reshape(Bb * L, E)                           # f32 activations

    for l in range(n_layers):                                    # static, unrolled
        wqkv = wqkv_ref[l]                                       # bf16 weights (static idx)
        wo, wff1, wff2 = wo_ref[l], wff1_ref[l], wff2_ref[l]

        # ---- multi-head self-attention, heads folded into the leading (batch) axis ----
        qkv = jnp.dot(xf.astype(wqkv.dtype), wqkv,
                      preferred_element_type=jnp.float32) + bqkv_ref[l]   # (Bb*L, 3E)
        q = qkv[:, :E].reshape(Bb, L, E)
        k = qkv[:, E:2 * E].reshape(Bb, L, E)
        v = qkv[:, 2 * E:].reshape(Bb, L, E)
        qh = jnp.concatenate([q[:, :, h * hd:(h + 1) * hd] for h in range(nhead)], axis=0)
        kh = jnp.concatenate([k[:, :, h * hd:(h + 1) * hd] for h in range(nhead)], axis=0)
        vh = jnp.concatenate([v[:, :, h * hd:(h + 1) * hd] for h in range(nhead)], axis=0)
        s = jnp.einsum('bld,bmd->blm', qh, kh,
                       preferred_element_type=jnp.float32) * scale        # (nh*Bb, L, L)
        m = jnp.max(s, axis=-1, keepdims=True)
        e = jnp.exp(s - m)
        p = e * pl.reciprocal(jnp.sum(e, axis=-1, keepdims=True), approx=True)
        a = jnp.einsum('blm,bmd->bld', p, vh,
                       preferred_element_type=jnp.float32)                # (nh*Bb, L, hd)
        attn = jnp.concatenate([a[h * Bb:(h + 1) * Bb] for h in range(nhead)],
                               axis=-1).reshape(Bb * L, E)
        attn = jnp.dot(attn.astype(wo.dtype), wo,
                       preferred_element_type=jnp.float32) + bo_ref[l]
        # TODO(synk): attention/FF dropout is training-only; inference no-op here.
        y = _layer_norm(xf + attn, g1_ref[l], be1_ref[l])        # post-norm, eps=1e-5

        # ---- feed-forward (ReLU) ----
        ff = jnp.maximum(jnp.dot(y.astype(wff1.dtype), wff1,
                                 preferred_element_type=jnp.float32) + bff1_ref[l], 0.0)
        ff = jnp.dot(ff.astype(wff2.dtype), wff2,
                     preferred_element_type=jnp.float32) + bff2_ref[l]
        xf = _layer_norm(y + ff, g2_ref[l], be2_ref[l])

    # final encoder LayerNorm (nn.Transformer always adds one)
    out_ref[...] = _layer_norm(xf, gf_ref[...], bf_ref[...]).reshape(Bb, L, E)


def _replicated_spec(arr):
    nd = arr.ndim
    return pl.BlockSpec(arr.shape, lambda s, _nd=nd: (0,) * _nd)


def encoder_stack(x, enc, final_g, final_b, nhead):
    # x: (S, N, E) — grid over the independent S axis ("parallel" => both TCs on v7x).
    S, L, E = x.shape
    bS = S // 2 if S % 2 == 0 else S
    weights = [enc["wqkv"], enc["bqkv"], enc["wo"], enc["bo"],
               enc["ln1_g"], enc["ln1_b"], enc["wff1"], enc["bff1"],
               enc["wff2"], enc["bff2"], enc["ln2_g"], enc["ln2_b"],
               final_g, final_b]
    kernel = functools.partial(_encoder_stack_kernel, nhead=nhead)
    return pl.pallas_call(
        kernel,
        out_shape=jax.ShapeDtypeStruct((S, L, E), jnp.float32),
        grid=(S // bS,),
        in_specs=[pl.BlockSpec((bS, L, E), lambda s: (s, 0, 0))]
                 + [_replicated_spec(w) for w in weights],
        out_specs=pl.BlockSpec((bS, L, E), lambda s: (s, 0, 0)),
        compiler_params=pltpu.CompilerParams(
            dimension_semantics=("parallel",),
            vmem_limit_bytes=32 * 1024 * 1024),
    )(x, *weights)


# --------------------------- parameter init (deterministic, synthetic) -----------------------

def _combine_bilstm_layer(w_ih_f, w_hh_f, b_f, w_ih_b, w_hh_b, b_b, Hc):
    """Fuse fwd/bwd PyTorch LSTM weights into a gate-major interleaved layout.

    Column layout of the 8*Hc gate axis: [i_f, i_b, f_f, f_b, g_f, g_b, o_f, o_b]
    (each slab Hc wide), so in-kernel gate slices are 2*Hc wide and the fused
    hidden/cell state is laid out as [h_fwd | h_bwd].
    """
    zeros = jnp.zeros((Hc, Hc), jnp.float32)
    wih_cols, whh_cols, b_cols = [], [], []
    for k in range(4):                         # PyTorch gate order i, f, g, o
        rows = slice(k * Hc, (k + 1) * Hc)
        wih_cols += [w_ih_f[rows].T, w_ih_b[rows].T]
        whh_cols.append(jnp.concatenate(
            [jnp.concatenate([w_hh_f[rows].T, zeros], axis=0),
             jnp.concatenate([zeros, w_hh_b[rows].T], axis=0)], axis=1))
        b_cols += [b_f[rows], b_b[rows]]
    wih = jnp.concatenate(wih_cols, axis=1)            # (Din, 8*Hc)
    whh = jnp.concatenate(whh_cols, axis=1)            # (2*Hc, 8*Hc) block-diagonal
    bias = jnp.concatenate(b_cols).reshape(1, 8 * Hc)  # combined b_ih + b_hh
    return dict(wih=wih.astype(jnp.bfloat16), whh=whh, bias=bias)


def init_params(key, input_dim, hidden_size, num_head, n_layers):
    Hc = hidden_size // 2
    E = hidden_size
    ff_dim = hidden_size                         # dim_feedforward == hidden_size
    bound = 1.0 / math.sqrt(Hc)

    def unif(k, shape):
        return jax.random.uniform(k, shape, jnp.float32, -bound, bound)

    lstm = []
    in_sizes = [input_dim, hidden_size, hidden_size]   # 3 LSTM layers, bidirectional
    for l in range(3):
        key, kf1, kf2, kf3, kf4, kb1, kb2, kb3, kb4 = jax.random.split(key, 9)
        w_ih_f = unif(kf1, (4 * Hc, in_sizes[l]))
        w_hh_f = unif(kf2, (4 * Hc, Hc))
        b_f = unif(kf3, (4 * Hc,)) + unif(kf4, (4 * Hc,))
        w_ih_b = unif(kb1, (4 * Hc, in_sizes[l]))
        w_hh_b = unif(kb2, (4 * Hc, Hc))
        b_b = unif(kb3, (4 * Hc,)) + unif(kb4, (4 * Hc,))
        lstm.append(_combine_bilstm_layer(w_ih_f, w_hh_f, b_f, w_ih_b, w_hh_b, b_b, Hc))

    wqkv, bqkv, wo, bo = [], [], [], []
    g1, be1, wff1, bff1, wff2, bff2, g2, be2 = [], [], [], [], [], [], [], []
    for _ in range(n_layers):
        key, k1, k2, k3, k4 = jax.random.split(key, 5)
        wqkv.append((0.1 * jax.random.normal(k1, (3 * E, E), jnp.float32)).T)
        bqkv.append(jnp.zeros((1, 3 * E), jnp.float32))
        wo.append((0.1 * jax.random.normal(k2, (E, E), jnp.float32)).T)
        bo.append(jnp.zeros((1, E), jnp.float32))
        g1.append(jnp.ones((1, E), jnp.float32))
        be1.append(jnp.zeros((1, E), jnp.float32))
        wff1.append((0.1 * jax.random.normal(k3, (ff_dim, E), jnp.float32)).T)
        bff1.append(jnp.zeros((1, ff_dim), jnp.float32))
        wff2.append((0.1 * jax.random.normal(k4, (E, ff_dim), jnp.float32)).T)
        bff2.append(jnp.zeros((1, E), jnp.float32))
        g2.append(jnp.ones((1, E), jnp.float32))
        be2.append(jnp.zeros((1, E), jnp.float32))

    enc = dict(
        wqkv=jnp.stack(wqkv).astype(jnp.bfloat16), bqkv=jnp.stack(bqkv),
        wo=jnp.stack(wo).astype(jnp.bfloat16), bo=jnp.stack(bo),
        ln1_g=jnp.stack(g1), ln1_b=jnp.stack(be1),
        wff1=jnp.stack(wff1).astype(jnp.bfloat16), bff1=jnp.stack(bff1),
        wff2=jnp.stack(wff2).astype(jnp.bfloat16), bff2=jnp.stack(bff2),
        ln2_g=jnp.stack(g2), ln2_b=jnp.stack(be2),
    )
    return {"lstm": lstm, "enc": enc,
            "final_ln_g": jnp.ones((1, E), jnp.float32),
            "final_ln_b": jnp.zeros((1, E), jnp.float32)}


# --------------------------- full forward -----------------------------------------------------

def trfm_seq2seq_forward(src, params, num_head):
    # src: (N, S, input_dim) float32, batch_first LSTM input.
    x_tm = jnp.transpose(src, (1, 0, 2))                 # (S, N, D) time-major, once
    lstm_out = bilstm3(x_tm, params["lstm"])             # (S, N, H); [s, n] == embedded[n, s]
    # PyTorch's encoder is seq-first and gets embedded (N, S, H) directly, so attention
    # mixes over the N axis per S slice — (S, N, H) is exactly the layout the fused
    # encoder kernel expects (attention over axis 1), so no extra transpose is needed.
    enc = encoder_stack(lstm_out, params["enc"],
                        params["final_ln_g"], params["final_ln_b"], num_head)
    hidden = jnp.transpose(enc, (1, 0, 2))               # (N, S, H), matches PyTorch
    loss = jnp.float32(0.0)                              # recons=False branch
    return loss, hidden


if __name__ == "__main__":
    N, S = 2, 8
    input_dim, hidden_size, num_head, n_layers = 16, 32, 4, 2

    key = jax.random.PRNGKey(0)
    kp, kx = jax.random.split(key)
    params = init_params(kp, input_dim, hidden_size, num_head, n_layers)
    src = jax.random.normal(kx, (N, S, input_dim), jnp.float32)

    fwd = jax.jit(functools.partial(trfm_seq2seq_forward, num_head=num_head))
    loss, hidden = fwd(src, params)
    jax.block_until_ready(hidden)

    assert hidden.shape == (N, S, hidden_size)
    assert bool(jnp.all(jnp.isfinite(hidden)))
    print("KERNEL_OK")
</pallas_src>

<mosaic_0001>
module attributes {stable_mosaic.version = 11 : i64} {
  func.func @_encoder_stack_kernel(%arg0: i32, %arg1: memref<4x2x32xf32, #tpu.memory_space<vmem>>, %arg2: memref<2x32x96xbf16, #tpu.memory_space<vmem>>, %arg3: memref<2x1x96xf32, #tpu.memory_space<vmem>>, %arg4: memref<2x32x32xbf16, #tpu.memory_space<vmem>>, %arg5: memref<2x1x32xf32, #tpu.memory_space<vmem>>, %arg6: memref<2x1x32xf32, #tpu.memory_space<vmem>>, %arg7: memref<2x1x32xf32, #tpu.memory_space<vmem>>, %arg8: memref<2x32x32xbf16, #tpu.memory_space<vmem>>, %arg9: memref<2x1x32xf32, #tpu.memory_space<vmem>>, %arg10: memref<2x32x32xbf16, #tpu.memory_space<vmem>>, %arg11: memref<2x1x32xf32, #tpu.memory_space<vmem>>, %arg12: memref<2x1x32xf32, #tpu.memory_space<vmem>>, %arg13: memref<2x1x32xf32, #tpu.memory_space<vmem>>, %arg14: memref<1x32xf32, #tpu.memory_space<vmem>>, %arg15: memref<1x32xf32, #tpu.memory_space<vmem>>, %arg16: memref<4x2x32xf32, #tpu.memory_space<vmem>>) attributes {dimension_semantics = [#tpu.dimension_semantics<parallel>], iteration_bounds = array<i64: 2>, scalar_prefetch = 0 : i64, scratch_operands = 0 : i64, tpu.core_type = #tpu.core_type<tc>, window_params = [{transform_indices = @transform_0, window_bounds = array<i64: 4, 2, 32>}, {pipeline_mode = #tpu.pipeline_mode<synchronous>, transform_indices = @transform_1, window_bounds = array<i64: 2, 32, 96>}, {pipeline_mode = #tpu.pipeline_mode<synchronous>, transform_indices = @transform_2, window_bounds = array<i64: 2, 1, 96>}, {pipeline_mode = #tpu.pipeline_mode<synchronous>, transform_indices = @transform_3, window_bounds = array<i64: 2, 32, 32>}, {pipeline_mode = #tpu.pipeline_mode<synchronous>, transform_indices = @transform_4, window_bounds = array<i64: 2, 1, 32>}, {pipeline_mode = #tpu.pipeline_mode<synchronous>, transform_indices = @transform_5, window_bounds = array<i64: 2, 1, 32>}, {pipeline_mode = #tpu.pipeline_mode<synchronous>, transform_indices = @transform_6, window_bounds = array<i64: 2, 1, 32>}, {pipeline_mode = #tpu.pipeline_mode<synchronous>, transform_indices = @transform_7, window_bounds = array<i64: 2, 32, 32>}, {pipeline_mode = #tpu.pipeline_mode<synchronous>, transform_indices = @transform_8, window_bounds = array<i64: 2, 1, 32>}, {pipeline_mode = #tpu.pipeline_mode<synchronous>, transform_indices = @transform_9, window_bounds = array<i64: 2, 32, 32>}, {pipeline_mode = #tpu.pipeline_mode<synchronous>, transform_indices = @transform_10, window_bounds = array<i64: 2, 1, 32>}, {pipeline_mode = #tpu.pipeline_mode<synchronous>, transform_indices = @transform_11, window_bounds = array<i64: 2, 1, 32>}, {pipeline_mode = #tpu.pipeline_mode<synchronous>, transform_indices = @transform_12, window_bounds = array<i64: 2, 1, 32>}, {pipeline_mode = #tpu.pipeline_mode<synchronous>, transform_indices = @transform_13, window_bounds = array<i64: 1, 32>}, {pipeline_mode = #tpu.pipeline_mode<synchronous>, transform_indices = @transform_14, window_bounds = array<i64: 1, 32>}, {transform_indices = @transform_15, window_bounds = array<i64: 4, 2, 32>}]} {
    %c0 = arith.constant 0 : index
    %c0_0 = arith.constant 0 : index
    %c0_1 = arith.constant 0 : index
    %0 = vector.load %arg1[%c0, %c0_0, %c0_1] : memref<4x2x32xf32, #tpu.memory_space<vmem>>, vector<4x2x32xf32>
    %1 = vector.shape_cast %0 : vector<4x2x32xf32> to vector<8x32xf32>
    %c0_2 = arith.constant 0 : index
    %c0_3 = arith.constant 0 : index
    %c0_4 = arith.constant 0 : index
    %2 = vector.load %arg2[%c0_2, %c0_3, %c0_4] : memref<2x32x96xbf16, #tpu.memory_space<vmem>>, vector<1x32x96xbf16>
    %3 = vector.shape_cast %2 : vector<1x32x96xbf16> to vector<32x96xbf16>
    %c0_5 = arith.constant 0 : index
    %c0_6 = arith.constant 0 : index
    %c0_7 = arith.constant 0 : index
    %4 = vector.load %arg4[%c0_5, %c0_6, %c0_7] : memref<2x32x32xbf16, #tpu.memory_space<vmem>>, vector<1x32x32xbf16>
    %5 = vector.shape_cast %4 : vector<1x32x32xbf16> to vector<32x32xbf16>
    %c0_8 = arith.constant 0 : index
    %c0_9 = arith.constant 0 : index
    %c0_10 = arith.constant 0 : index
    %6 = vector.load %arg8[%c0_8, %c0_9, %c0_10] : memref<2x32x32xbf16, #tpu.memory_space<vmem>>, vector<1x32x32xbf16>
    %7 = vector.shape_cast %6 : vector<1x32x32xbf16> to vector<32x32xbf16>
    %c0_11 = arith.constant 0 : index
    %c0_12 = arith.constant 0 : index
    %c0_13 = arith.constant 0 : index
    %8 = vector.load %arg10[%c0_11, %c0_12, %c0_13] : memref<2x32x32xbf16, #tpu.memory_space<vmem>>, vector<1x32x32xbf16>
    %9 = vector.shape_cast %8 : vector<1x32x32xbf16> to vector<32x32xbf16>
    %10 = arith.truncf %1 : vector<8x32xf32> to vector<8x32xbf16>
    %cst = arith.constant dense<0.000000e+00> : vector<8x96xf32>
    %11 = tpu.matmul %10, %3, %cst {dimension_numbers = #tpu.dot_dimension_numbers<[1], [0], [0], [1], [0, 0, 1, 1], [], []>} : vector<8x32xbf16>, vector<32x96xbf16>, vector<8x96xf32> -> vector<8x96xf32>
    %c0_14 = arith.constant 0 : index
    %c0_15 = arith.constant 0 : index
    %c0_16 = arith.constant 0 : index
    %12 = vector.load %arg3[%c0_14, %c0_15, %c0_16] : memref<2x1x96xf32, #tpu.memory_space<vmem>>, vector<1x1x96xf32>
    %13 = vector.shape_cast %12 : vector<1x1x96xf32> to vector<1x96xf32>
    %14 = vector.broadcast %13 : vector<1x96xf32> to vector<8x96xf32>
    %15 = arith.addf %11, %14 : vector<8x96xf32>
    %16 = vector.extract_strided_slice %15 {offsets = [0, 0], sizes = [8, 32], strides = [1, 1]} : vector<8x96xf32> to vector<8x32xf32>
    %17 = vector.shape_cast %16 : vector<8x32xf32> to vector<4x2x32xf32>
    %18 = vector.extract_strided_slice %15 {offsets = [0, 32], sizes = [8, 32], strides = [1, 1]} : vector<8x96xf32> to vector<8x32xf32>
    %19 = vector.shape_cast %18 : vector<8x32xf32> to vector<4x2x32xf32>
    %20 = vector.extract_strided_slice %15 {offsets = [0, 64], sizes = [8, 32], strides = [1, 1]} : vector<8x96xf32> to vector<8x32xf32>
    %21 = vector.shape_cast %20 : vector<8x32xf32> to vector<4x2x32xf32>
    %22 = vector.extract_strided_slice %17 {offsets = [0, 0, 0], sizes = [4, 2, 8], strides = [1, 1, 1]} : vector<4x2x32xf32> to vector<4x2x8xf32>
    %23 = vector.extract_strided_slice %17 {offsets = [0, 0, 8], sizes = [4, 2, 8], strides = [1, 1, 1]} : vector<4x2x32xf32> to vector<4x2x8xf32>
    %24 = vector.extract_strided_slice %17 {offsets = [0, 0, 16], sizes = [4, 2, 8], strides = [1, 1, 1]} : vector<4x2x32xf32> to vector<4x2x8xf32>
    %25 = vector.extract_strided_slice %17 {offsets = [0, 0, 24], sizes = [4, 2, 8], strides = [1, 1, 1]} : vector<4x2x32xf32> to vector<4x2x8xf32>
    %26 = tpu.concatenate %22, %23, %24, %25 in 0 : vector<4x2x8xf32>, vector<4x2x8xf32>, vector<4x2x8xf32>, vector<4x2x8xf32> -> vector<16x2x8xf32>
    %27 = vector.extract_strided_slice %19 {offsets = [0, 0, 0], sizes = [4, 2, 8], strides = [1, 1, 1]} : vector<4x2x32xf32> to vector<4x2x8xf32>
    %28 = vector.extract_strided_slice %19 {offsets = [0, 0, 8], sizes = [4, 2, 8], strides = [1, 1, 1]} : vector<4x2x32xf32> to vector<4x2x8xf32>
    %29 = vector.extract_strided_slice %19 {offsets = [0, 0, 16], sizes = [4, 2, 8], strides = [1, 1, 1]} : vector<4x2x32xf32> to vector<4x2x8xf32>
    %30 = vector.extract_strided_slice %19 {offsets = [0, 0, 24], sizes = [4, 2, 8], strides = [1, 1, 1]} : vector<4x2x32xf32> to vector<4x2x8xf32>
    %31 = tpu.concatenate %27, %28, %29, %30 in 0 : vector<4x2x8xf32>, vector<4x2x8xf32>, vector<4x2x8xf32>, vector<4x2x8xf32> -> vector<16x2x8xf32>
    %32 = vector.extract_strided_slice %21 {offsets = [0, 0, 0], sizes = [4, 2, 8], strides = [1, 1, 1]} : vector<4x2x32xf32> to vector<4x2x8xf32>
    %33 = vector.extract_strided_slice %21 {offsets = [0, 0, 8], sizes = [4, 2, 8], strides = [1, 1, 1]} : vector<4x2x32xf32> to vector<4x2x8xf32>
    %34 = vector.extract_strided_slice %21 {offsets = [0, 0, 16], sizes = [4, 2, 8], strides = [1, 1, 1]} : vector<4x2x32xf32> to vector<4x2x8xf32>
    %35 = vector.extract_strided_slice %21 {offsets = [0, 0, 24], sizes = [4, 2, 8], strides = [1, 1, 1]} : vector<4x2x32xf32> to vector<4x2x8xf32>
    %36 = tpu.concatenate %32, %33, %34, %35 in 0 : vector<4x2x8xf32>, vector<4x2x8xf32>, vector<4x2x8xf32>, vector<4x2x8xf32> -> vector<16x2x8xf32>
    "tpu.trace_start"() <{level = 10 : i32, message = "bld,bmd->blm"}> : () -> ()
    %cst_17 = arith.constant dense<0.000000e+00> : vector<16x2x2xf32>
    %37 = tpu.matmul %26, %31, %cst_17 {dimension_numbers = #tpu.dot_dimension_numbers<[2], [2], [1], [1], [0, 0, 0, 1, 1, 1], [0], [0]>} : vector<16x2x8xf32>, vector<16x2x8xf32>, vector<16x2x2xf32> -> vector<16x2x2xf32>
    "tpu.trace_stop"() : () -> ()
    %cst_18 = arith.constant 0.353553385 : f32
    %38 = vector.broadcast %cst_18 : f32 to vector<16x2x2xf32>
    %39 = arith.mulf %37, %38 : vector<16x2x2xf32>
    %cst_19 = arith.constant dense<0xFF800000> : vector<16x2xf32>
    %40 = vector.multi_reduction <maximumf>, %39, %cst_19 [2] : vector<16x2x2xf32> to vector<16x2xf32>
    %41 = vector.shape_cast %40 : vector<16x2xf32> to vector<16x2x1xf32>
    %42 = vector.broadcast %41 : vector<16x2x1xf32> to vector<16x2x2xf32>
    %43 = arith.subf %39, %42 : vector<16x2x2xf32>
    %44 = math.exp %43 : vector<16x2x2xf32>
    %cst_20 = arith.constant dense<0.000000e+00> : vector<16x2xf32>
    %45 = vector.multi_reduction <add>, %44, %cst_20 [2] : vector<16x2x2xf32> to vector<16x2xf32>
    %46 = vector.shape_cast %45 : vector<16x2xf32> to vector<16x2x1xf32>
    %47 = tpu.reciprocal %46 {approx = true} : vector<16x2x1xf32> -> vector<16x2x1xf32>
    %48 = vector.broadcast %47 : vector<16x2x1xf32> to vector<16x2x2xf32>
    %49 = arith.mulf %44, %48 : vector<16x2x2xf32>
    "tpu.trace_start"() <{level = 10 : i32, message = "blm,bmd->bld"}> : () -> ()
    %cst_21 = arith.constant dense<0.000000e+00> : vector<16x2x8xf32>
    %50 = tpu.matmul %49, %36, %cst_21 {dimension_numbers = #tpu.dot_dimension_numbers<[2], [1], [1], [2], [0, 0, 0, 1, 1, 2], [0], [0]>} : vector<16x2x2xf32>, vector<16x2x8xf32>, vector<16x2x8xf32> -> vector<16x2x8xf32>
    "tpu.trace_stop"() : () -> ()
    %51 = vector.extract_strided_slice %50 {offsets = [0, 0, 0], sizes = [4, 2, 8], strides = [1, 1, 1]} : vector<16x2x8xf32> to vector<4x2x8xf32>
    %52 = vector.extract_strided_slice %50 {offsets = [4, 0, 0], sizes = [4, 2, 8], strides = [1, 1, 1]} : vector<16x2x8xf32> to vector<4x2x8xf32>
    %53 = vector.extract_strided_slice %50 {offsets = [8, 0, 0], sizes = [4, 2, 8], strides = [1, 1, 1]} : vector<16x2x8xf32> to vector<4x2x8xf32>
    %54 = vector.extract_strided_slice %50 {offsets = [12, 0, 0], sizes = [4, 2, 8], strides = [1, 1, 1]} : vector<16x2x8xf32> to vector<4x2x8xf32>
    %55 = tpu.concatenate %51, %52, %53, %54 in 2 : vector<4x2x8xf32>, vector<4x2x8xf32>, vector<4x2x8xf32>, vector<4x2x8xf32> -> vector<4x2x32xf32>
    %56 = vector.shape_cast %55 : vector<4x2x32xf32> to vector<8x32xf32>
    %57 = arith.truncf %56 : vector<8x32xf32> to vector<8x32xbf16>
    %cst_22 = arith.constant dense<0.000000e+00> : vector<8x32xf32>
    %58 = tpu.matmul %57, %5, %cst_22 {dimension_numbers = #tpu.dot_dimension_numbers<[1], [0], [0], [1], [0, 0, 1, 1], [], []>} : vector<8x32xbf16>, vector<32x32xbf16>, vector<8x32xf32> -> vector<8x32xf32>
    %c0_23 = arith.constant 0 : index
    %c0_24 = arith.constant 0 : index
    %c0_25 = arith.constant 0 : index
    %59 = vector.load %arg5[%c0_23, %c0_24, %c0_25] : memref<2x1x32xf32, #tpu.memory_space<vmem>>, vector<1x1x32xf32>
    %60 = vector.shape_cast %59 : vector<1x1x32xf32> to vector<1x32xf32>
    %61 = vector.broadcast %60 : vector<1x32xf32> to vector<8x32xf32>
    %62 = arith.addf %58, %61 : vector<8x32xf32>
    %63 = arith.addf %1, %62 : vector<8x32xf32>
    %c0_26 = arith.constant 0 : index
    %c0_27 = arith.constant 0 : index
    %c0_28 = arith.constant 0 : index
    %64 = vector.load %arg6[%c0_26, %c0_27, %c0_28] : memref<2x1x32xf32, #tpu.memory_space<vmem>>, vector<1x1x32xf32>
    %65 = vector.shape_cast %64 : vector<1x1x32xf32> to vector<1x32xf32>
    %c0_29 = arith.constant 0 : index
    %c0_30 = arith.constant 0 : index
    %c0_31 = arith.constant 0 : index
    %66 = vector.load %arg7[%c0_29, %c0_30, %c0_31] : memref<2x1x32xf32, #tpu.memory_space<vmem>>, vector<1x1x32xf32>
    %67 = vector.shape_cast %66 : vector<1x1x32xf32> to vector<1x32xf32>
    %cst_32 = arith.constant dense<0.000000e+00> : vector<8xf32>
    %68 = vector.multi_reduction <add>, %63, %cst_32 [1] : vector<8x32xf32> to vector<8xf32>
    %69 = vector.shape_cast %68 : vector<8xf32> to vector<8x1xf32>
    %cst_33 = arith.constant 3.200000e+01 : f32
    %70 = vector.broadcast %cst_33 : f32 to vector<8x1xf32>
    %71 = arith.divf %69, %70 : vector<8x1xf32>
    %72 = vector.broadcast %71 : vector<8x1xf32> to vector<8x32xf32>
    %73 = arith.subf %63, %72 : vector<8x32xf32>
    %74 = arith.mulf %73, %73 : vector<8x32xf32>
    %cst_34 = arith.constant dense<0.000000e+00> : vector<8xf32>
    %75 = vector.multi_reduction <add>, %74, %cst_34 [1] : vector<8x32xf32> to vector<8xf32>
    %76 = vector.shape_cast %75 : vector<8xf32> to vector<8x1xf32>
    %cst_35 = arith.constant 3.200000e+01 : f32
    %77 = vector.broadcast %cst_35 : f32 to vector<8x1xf32>
    %78 = arith.divf %76, %77 : vector<8x1xf32>
    %79 = vector.broadcast %71 : vector<8x1xf32> to vector<8x32xf32>
    %80 = arith.subf %63, %79 : vector<8x32xf32>
    %cst_36 = arith.constant 9.99999974E-6 : f32
    %81 = vector.broadcast %cst_36 : f32 to vector<8x1xf32>
    %82 = arith.addf %78, %81 : vector<8x1xf32>
    %83 = math.rsqrt %82 : vector<8x1xf32>
    %84 = vector.broadcast %83 : vector<8x1xf32> to vector<8x32xf32>
    %85 = arith.mulf %80, %84 : vector<8x32xf32>
    %86 = vector.broadcast %65 : vector<1x32xf32> to vector<8x32xf32>
    %87 = arith.mulf %85, %86 : vector<8x32xf32>
    %88 = vector.broadcast %67 : vector<1x32xf32> to vector<8x32xf32>
    %89 = arith.addf %87, %88 : vector<8x32xf32>
    %90 = arith.truncf %89 : vector<8x32xf32> to vector<8x32xbf16>
    %cst_37 = arith.constant dense<0.000000e+00> : vector<8x32xf32>
    %91 = tpu.matmul %90, %7, %cst_37 {dimension_numbers = #tpu.dot_dimension_numbers<[1], [0], [0], [1], [0, 0, 1, 1], [], []>} : vector<8x32xbf16>, vector<32x32xbf16>, vector<8x32xf32> -> vector<8x32xf32>
    %c0_38 = arith.constant 0 : index
    %c0_39 = arith.constant 0 : index
    %c0_40 = arith.constant 0 : index
    %92 = vector.load %arg9[%c0_38, %c0_39, %c0_40] : memref<2x1x32xf32, #tpu.memory_space<vmem>>, vector<1x1x32xf32>
    %93 = vector.shape_cast %92 : vector<1x1x32xf32> to vector<1x32xf32>
    %94 = vector.broadcast %93 : vector<1x32xf32> to vector<8x32xf32>
    %95 = arith.addf %91, %94 : vector<8x32xf32>
    %cst_41 = arith.constant 0.000000e+00 : f32
    %96 = vector.broadcast %cst_41 : f32 to vector<8x32xf32>
    %97 = arith.maximumf %95, %96 : vector<8x32xf32>
    %98 = arith.truncf %97 : vector<8x32xf32> to vector<8x32xbf16>
    %cst_42 = arith.constant dense<0.000000e+00> : vector<8x32xf32>
    %99 = tpu.matmul %98, %9, %cst_42 {dimension_numbers = #tpu.dot_dimension_numbers<[1], [0], [0], [1], [0, 0, 1, 1], [], []>} : vector<8x32xbf16>, vector<32x32xbf16>, vector<8x32xf32> -> vector<8x32xf32>
    %c0_43 = arith.constant 0 : index
    %c0_44 = arith.constant 0 : index
    %c0_45 = arith.constant 0 : index
    %100 = vector.load %arg11[%c0_43, %c0_44, %c0_45] : memref<2x1x32xf32, #tpu.memory_space<vmem>>, vector<1x1x32xf32>
    %101 = vector.shape_cast %100 : vector<1x1x32xf32> to vector<1x32xf32>
    %102 = vector.broadcast %101 : vector<1x32xf32> to vector<8x32xf32>
    %103 = arith.addf %99, %102 : vector<8x32xf32>
    %104 = arith.addf %89, %103 : vector<8x32xf32>
    %c0_46 = arith.constant 0 : index
    %c0_47 = arith.constant 0 : index
    %c0_48 = arith.constant 0 : index
    %105 = vector.load %arg12[%c0_46, %c0_47, %c0_48] : memref<2x1x32xf32, #tpu.memory_space<vmem>>, vector<1x1x32xf32>
    %106 = vector.shape_cast %105 : vector<1x1x32xf32> to vector<1x32xf32>
    %c0_49 = arith.constant 0 : index
    %c0_50 = arith.constant 0 : index
    %c0_51 = arith.constant 0 : index
    %107 = vector.load %arg13[%c0_49, %c0_50, %c0_51] : memref<2x1x32xf32, #tpu.memory_space<vmem>>, vector<1x1x32xf32>
    %108 = vector.shape_cast %107 : vector<1x1x32xf32> to vector<1x32xf32>
    %cst_52 = arith.constant dense<0.000000e+00> : vector<8xf32>
    %109 = vector.multi_reduction <add>, %104, %cst_52 [1] : vector<8x32xf32> to vector<8xf32>
    %110 = vector.shape_cast %109 : vector<8xf32> to vector<8x1xf32>
    %cst_53 = arith.constant 3.200000e+01 : f32
    %111 = vector.broadcast %cst_53 : f32 to vector<8x1xf32>
    %112 = arith.divf %110, %111 : vector<8x1xf32>
    %113 = vector.broadcast %112 : vector<8x1xf32> to vector<8x32xf32>
    %114 = arith.subf %104, %113 : vector<8x32xf32>
    %115 = arith.mulf %114, %114 : vector<8x32xf32>
    %cst_54 = arith.constant dense<0.000000e+00> : vector<8xf32>
    %116 = vector.multi_reduction <add>, %115, %cst_54 [1] : vector<8x32xf32> to vector<8xf32>
    %117 = vector.shape_cast %116 : vector<8xf32> to vector<8x1xf32>
    %cst_55 = arith.constant 3.200000e+01 : f32
    %118 = vector.broadcast %cst_55 : f32 to vector<8x1xf32>
    %119 = arith.divf %117, %118 : vector<8x1xf32>
    %120 = vector.broadcast %112 : vector<8x1xf32> to vector<8x32xf32>
    %121 = arith.subf %104, %120 : vector<8x32xf32>
    %cst_56 = arith.constant 9.99999974E-6 : f32
    %122 = vector.broadcast %cst_56 : f32 to vector<8x1xf32>
    %123 = arith.addf %119, %122 : vector<8x1xf32>
    %124 = math.rsqrt %123 : vector<8x1xf32>
    %125 = vector.broadcast %124 : vector<8x1xf32> to vector<8x32xf32>
    %126 = arith.mulf %121, %125 : vector<8x32xf32>
    %127 = vector.broadcast %106 : vector<1x32xf32> to vector<8x32xf32>
    %128 = arith.mulf %126, %127 : vector<8x32xf32>
    %129 = vector.broadcast %108 : vector<1x32xf32> to vector<8x32xf32>
    %130 = arith.addf %128, %129 : vector<8x32xf32>
    %c1 = arith.constant 1 : index
    %c0_57 = arith.constant 0 : index
    %c0_58 = arith.constant 0 : index
    %131 = vector.load %arg2[%c1, %c0_57, %c0_58] : memref<2x32x96xbf16, #tpu.memory_space<vmem>>, vector<1x32x96xbf16>
    %132 = vector.shape_cast %131 : vector<1x32x96xbf16> to vector<32x96xbf16>
    %c1_59 = arith.constant 1 : index
    %c0_60 = arith.constant 0 : index
    %c0_61 = arith.constant 0 : index
    %133 = vector.load %arg4[%c1_59, %c0_60, %c0_61] : memref<2x32x32xbf16, #tpu.memory_space<vmem>>, vector<1x32x32xbf16>
    %134 = vector.shape_cast %133 : vector<1x32x32xbf16> to vector<32x32xbf16>
    %c1_62 = arith.constant 1 : index
    %c0_63 = arith.constant 0 : index
    %c0_64 = arith.constant 0 : index
    %135 = vector.load %arg8[%c1_62, %c0_63, %c0_64] : memref<2x32x32xbf16, #tpu.memory_space<vmem>>, vector<1x32x32xbf16>
    %136 = vector.shape_cast %135 : vector<1x32x32xbf16> to vector<32x32xbf16>
    %c1_65 = arith.constant 1 : index
    %c0_66 = arith.constant 0 : index
    %c0_67 = arith.constant 0 : index
    %137 = vector.load %arg10[%c1_65, %c0_66, %c0_67] : memref<2x32x32xbf16, #tpu.memory_space<vmem>>, vector<1x32x32xbf16>
    %138 = vector.shape_cast %137 : vector<1x32x32xbf16> to vector<32x32xbf16>
    %139 = arith.truncf %130 : vector<8x32xf32> to vector<8x32xbf16>
    %cst_68 = arith.constant dense<0.000000e+00> : vector<8x96xf32>
    %140 = tpu.matmul %139, %132, %cst_68 {dimension_numbers = #tpu.dot_dimension_numbers<[1], [0], [0], [1], [0, 0, 1, 1], [], []>} : vector<8x32xbf16>, vector<32x96xbf16>, vector<8x96xf32> -> vector<8x96xf32>
    %c1_69 = arith.constant 1 : index
    %c0_70 = arith.constant 0 : index
    %c0_71 = arith.constant 0 : index
    %141 = vector.load %arg3[%c1_69, %c0_70, %c0_71] : memref<2x1x96xf32, #tpu.memory_space<vmem>>, vector<1x1x96xf32>
    %142 = vector.shape_cast %141 : vector<1x1x96xf32> to vector<1x96xf32>
    %143 = vector.broadcast %142 : vector<1x96xf32> to vector<8x96xf32>
    %144 = arith.addf %140, %143 : vector<8x96xf32>
    %145 = vector.extract_strided_slice %144 {offsets = [0, 0], sizes = [8, 32], strides = [1, 1]} : vector<8x96xf32> to vector<8x32xf32>
    %146 = vector.shape_cast %145 : vector<8x32xf32> to vector<4x2x32xf32>
    %147 = vector.extract_strided_slice %144 {offsets = [0, 32], sizes = [8, 32], strides = [1, 1]} : vector<8x96xf32> to vector<8x32xf32>
    %148 = vector.shape_cast %147 : vector<8x32xf32> to vector<4x2x32xf32>
    %149 = vector.extract_strided_slice %144 {offsets = [0, 64], sizes = [8, 32], strides = [1, 1]} : vector<8x96xf32> to vector<8x32xf32>
    %150 = vector.shape_cast %149 : vector<8x32xf32> to vector<4x2x32xf32>
    %151 = vector.extract_strided_slice %146 {offsets = [0, 0, 0], sizes = [4, 2, 8], strides = [1, 1, 1]} : vector<4x2x32xf32> to vector<4x2x8xf32>
    %152 = vector.extract_strided_slice %146 {offsets = [0, 0, 8], sizes = [4, 2, 8], strides = [1, 1, 1]} : vector<4x2x32xf32> to vector<4x2x8xf32>
    %153 = vector.extract_strided_slice %146 {offsets = [0, 0, 16], sizes = [4, 2, 8], strides = [1, 1, 1]} : vector<4x2x32xf32> to vector<4x2x8xf32>
    %154 = vector.extract_strided_slice %146 {offsets = [0, 0, 24], sizes = [4, 2, 8], strides = [1, 1, 1]} : vector<4x2x32xf32> to vector<4x2x8xf32>
    %155 = tpu.concatenate %151, %152, %153, %154 in 0 : vector<4x2x8xf32>, vector<4x2x8xf32>, vector<4x2x8xf32>, vector<4x2x8xf32> -> vector<16x2x8xf32>
    %156 = vector.extract_strided_slice %148 {offsets = [0, 0, 0], sizes = [4, 2, 8], strides = [1, 1, 1]} : vector<4x2x32xf32> to vector<4x2x8xf32>
    %157 = vector.extract_strided_slice %148 {offsets = [0, 0, 8], sizes = [4, 2, 8], strides = [1, 1, 1]} : vector<4x2x32xf32> to vector<4x2x8xf32>
    %158 = vector.extract_strided_slice %148 {offsets = [0, 0, 16], sizes = [4, 2, 8], strides = [1, 1, 1]} : vector<4x2x32xf32> to vector<4x2x8xf32>
    %159 = vector.extract_strided_slice %148 {offsets = [0, 0, 24], sizes = [4, 2, 8], strides = [1, 1, 1]} : vector<4x2x32xf32> to vector<4x2x8xf32>
    %160 = tpu.concatenate %156, %157, %158, %159 in 0 : vector<4x2x8xf32>, vector<4x2x8xf32>, vector<4x2x8xf32>, vector<4x2x8xf32> -> vector<16x2x8xf32>
    %161 = vector.extract_strided_slice %150 {offsets = [0, 0, 0], sizes = [4, 2, 8], strides = [1, 1, 1]} : vector<4x2x32xf32> to vector<4x2x8xf32>
    %162 = vector.extract_strided_slice %150 {offsets = [0, 0, 8], sizes = [4, 2, 8], strides = [1, 1, 1]} : vector<4x2x32xf32> to vector<4x2x8xf32>
    %163 = vector.extract_strided_slice %150 {offsets = [0, 0, 16], sizes = [4, 2, 8], strides = [1, 1, 1]} : vector<4x2x32xf32> to vector<4x2x8xf32>
    %164 = vector.extract_strided_slice %150 {offsets = [0, 0, 24], sizes = [4, 2, 8], strides = [1, 1, 1]} : vector<4x2x32xf32> to vector<4x2x8xf32>
    %165 = tpu.concatenate %161, %162, %163, %164 in 0 : vector<4x2x8xf32>, vector<4x2x8xf32>, vector<4x2x8xf32>, vector<4x2x8xf32> -> vector<16x2x8xf32>
    "tpu.trace_start"() <{level = 10 : i32, message = "bld,bmd->blm"}> : () -> ()
    %cst_72 = arith.constant dense<0.000000e+00> : vector<16x2x2xf32>
    %166 = tpu.matmul %155, %160, %cst_72 {dimension_numbers = #tpu.dot_dimension_numbers<[2], [2], [1], [1], [0, 0, 0, 1, 1, 1], [0], [0]>} : vector<16x2x8xf32>, vector<16x2x8xf32>, vector<16x2x2xf32> -> vector<16x2x2xf32>
    "tpu.trace_stop"() : () -> ()
    %cst_73 = arith.constant 0.353553385 : f32
    %167 = vector.broadcast %cst_73 : f32 to vector<16x2x2xf32>
    %168 = arith.mulf %166, %167 : vector<16x2x2xf32>
    %cst_74 = arith.constant dense<0xFF800000> : vector<16x2xf32>
    %169 = vector.multi_reduction <maximumf>, %168, %cst_74 [2] : vector<16x2x2xf32> to vector<16x2xf32>
    %170 = vector.shape_cast %169 : vector<16x2xf32> to vector<16x2x1xf32>
    %171 = vector.broadcast %170 : vector<16x2x1xf32> to vector<16x2x2xf32>
    %172 = arith.subf %168, %171 : vector<16x2x2xf32>
    %173 = math.exp %172 : vector<16x2x2xf32>
    %cst_75 = arith.constant dense<0.000000e+00> : vector<16x2xf32>
    %174 = vector.multi_reduction <add>, %173, %cst_75 [2] : vector<16x2x2xf32> to vector<16x2xf32>
    %175 = vector.shape_cast %174 : vector<16x2xf32> to vector<16x2x1xf32>
    %176 = tpu.reciprocal %175 {approx = true} : vector<16x2x1xf32> -> vector<16x2x1xf32>
    %177 = vector.broadcast %176 : vector<16x2x1xf32> to vector<16x2x2xf32>
    %178 = arith.mulf %173, %177 : vector<16x2x2xf32>
    "tpu.trace_start"() <{level = 10 : i32, message = "blm,bmd->bld"}> : () -> ()
    %cst_76 = arith.constant dense<0.000000e+00> : vector<16x2x8xf32>
    %179 = tpu.matmul %178, %165, %cst_76 {dimension_numbers = #tpu.dot_dimension_numbers<[2], [1], [1], [2], [0, 0, 0, 1, 1, 2], [0], [0]>} : vector<16x2x2xf32>, vector<16x2x8xf32>, vector<16x2x8xf32> -> vector<16x2x8xf32>
    "tpu.trace_stop"() : () -> ()
    %180 = vector.extract_strided_slice %179 {offsets = [0, 0, 0], sizes = [4, 2, 8], strides = [1, 1, 1]} : vector<16x2x8xf32> to vector<4x2x8xf32>
    %181 = vector.extract_strided_slice %179 {offsets = [4, 0, 0], sizes = [4, 2, 8], strides = [1, 1, 1]} : vector<16x2x8xf32> to vector<4x2x8xf32>
    %182 = vector.extract_strided_slice %179 {offsets = [8, 0, 0], sizes = [4, 2, 8], strides = [1, 1, 1]} : vector<16x2x8xf32> to vector<4x2x8xf32>
    %183 = vector.extract_strided_slice %179 {offsets = [12, 0, 0], sizes = [4, 2, 8], strides = [1, 1, 1]} : vector<16x2x8xf32> to vector<4x2x8xf32>
    %184 = tpu.concatenate %180, %181, %182, %183 in 2 : vector<4x2x8xf32>, vector<4x2x8xf32>, vector<4x2x8xf32>, vector<4x2x8xf32> -> vector<4x2x32xf32>
    %185 = vector.shape_cast %184 : vector<4x2x32xf32> to vector<8x32xf32>
    %186 = arith.truncf %185 : vector<8x32xf32> to vector<8x32xbf16>
    %cst_77 = arith.constant dense<0.000000e+00> : vector<8x32xf32>
    %187 = tpu.matmul %186, %134, %cst_77 {dimension_numbers = #tpu.dot_dimension_numbers<[1], [0], [0], [1], [0, 0, 1, 1], [], []>} : vector<8x32xbf16>, vector<32x32xbf16>, vector<8x32xf32> -> vector<8x32xf32>
    %c1_78 = arith.constant 1 : index
    %c0_79 = arith.constant 0 : index
    %c0_80 = arith.constant 0 : index
    %188 = vector.load %arg5[%c1_78, %c0_79, %c0_80] : memref<2x1x32xf32, #tpu.memory_space<vmem>>, vector<1x1x32xf32>
    %189 = vector.shape_cast %188 : vector<1x1x32xf32> to vector<1x32xf32>
    %190 = vector.broadcast %189 : vector<1x32xf32> to vector<8x32xf32>
    %191 = arith.addf %187, %190 : vector<8x32xf32>
    %192 = arith.addf %130, %191 : vector<8x32xf32>
    %c1_81 = arith.constant 1 : index
    %c0_82 = arith.constant 0 : index
    %c0_83 = arith.constant 0 : index
    %193 = vector.load %arg6[%c1_81, %c0_82, %c0_83] : memref<2x1x32xf32, #tpu.memory_space<vmem>>, vector<1x1x32xf32>
    %194 = vector.shape_cast %193 : vector<1x1x32xf32> to vector<1x32xf32>
    %c1_84 = arith.constant 1 : index
    %c0_85 = arith.constant 0 : index
    %c0_86 = arith.constant 0 : index
    %195 = vector.load %arg7[%c1_84, %c0_85, %c0_86] : memref<2x1x32xf32, #tpu.memory_space<vmem>>, vector<1x1x32xf32>
    %196 = vector.shape_cast %195 : vector<1x1x32xf32> to vector<1x32xf32>
    %cst_87 = arith.constant dense<0.000000e+00> : vector<8xf32>
    %197 = vector.multi_reduction <add>, %192, %cst_87 [1] : vector<8x32xf32> to vector<8xf32>
    %198 = vector.shape_cast %197 : vector<8xf32> to vector<8x1xf32>
    %cst_88 = arith.constant 3.200000e+01 : f32
    %199 = vector.broadcast %cst_88 : f32 to vector<8x1xf32>
    %200 = arith.divf %198, %199 : vector<8x1xf32>
    %201 = vector.broadcast %200 : vector<8x1xf32> to vector<8x32xf32>
    %202 = arith.subf %192, %201 : vector<8x32xf32>
    %203 = arith.mulf %202, %202 : vector<8x32xf32>
    %cst_89 = arith.constant dense<0.000000e+00> : vector<8xf32>
    %204 = vector.multi_reduction <add>, %203, %cst_89 [1] : vector<8x32xf32> to vector<8xf32>
    %205 = vector.shape_cast %204 : vector<8xf32> to vector<8x1xf32>
    %cst_90 = arith.constant 3.200000e+01 : f32
    %206 = vector.broadcast %cst_90 : f32 to vector<8x1xf32>
    %207 = arith.divf %205, %206 : vector<8x1xf32>
    %208 = vector.broadcast %200 : vector<8x1xf32> to vector<8x32xf32>
    %209 = arith.subf %192, %208 : vector<8x32xf32>
    %cst_91 = arith.constant 9.99999974E-6 : f32
    %210 = vector.broadcast %cst_91 : f32 to vector<8x1xf32>
    %211 = arith.addf %207, %210 : vector<8x1xf32>
    %212 = math.rsqrt %211 : vector<8x1xf32>
    %213 = vector.broadcast %212 : vector<8x1xf32> to vector<8x32xf32>
    %214 = arith.mulf %209, %213 : vector<8x32xf32>
    %215 = vector.broadcast %194 : vector<1x32xf32> to vector<8x32xf32>
    %216 = arith.mulf %214, %215 : vector<8x32xf32>
    %217 = vector.broadcast %196 : vector<1x32xf32> to vector<8x32xf32>
    %218 = arith.addf %216, %217 : vector<8x32xf32>
    %219 = arith.truncf %218 : vector<8x32xf32> to vector<8x32xbf16>
    %cst_92 = arith.constant dense<0.000000e+00> : vector<8x32xf32>
    %220 = tpu.matmul %219, %136, %cst_92 {dimension_numbers = #tpu.dot_dimension_numbers<[1], [0], [0], [1], [0, 0, 1, 1], [], []>} : vector<8x32xbf16>, vector<32x32xbf16>, vector<8x32xf32> -> vector<8x32xf32>
    %c1_93 = arith.constant 1 : index
    %c0_94 = arith.constant 0 : index
    %c0_95 = arith.constant 0 : index
    %221 = vector.load %arg9[%c1_93, %c0_94, %c0_95] : memref<2x1x32xf32, #tpu.memory_space<vmem>>, vector<1x1x32xf32>
    %222 = vector.shape_cast %221 : vector<1x1x32xf32> to vector<1x32xf32>
    %223 = vector.broadcast %222 : vector<1x32xf32> to vector<8x32xf32>
    %224 = arith.addf %220, %223 : vector<8x32xf32>
    %cst_96 = arith.constant 0.000000e+00 : f32
    %225 = vector.broadcast %cst_96 : f32 to vector<8x32xf32>
    %226 = arith.maximumf %224, %225 : vector<8x32xf32>
    %227 = arith.truncf %226 : vector<8x32xf32> to vector<8x32xbf16>
    %cst_97 = arith.constant dense<0.000000e+00> : vector<8x32xf32>
    %228 = tpu.matmul %227, %138, %cst_97 {dimension_numbers = #tpu.dot_dimension_numbers<[1], [0], [0], [1], [0, 0, 1, 1], [], []>} : vector<8x32xbf16>, vector<32x32xbf16>, vector<8x32xf32> -> vector<8x32xf32>
    %c1_98 = arith.constant 1 : index
    %c0_99 = arith.constant 0 : index
    %c0_100 = arith.constant 0 : index
    %229 = vector.load %arg11[%c1_98, %c0_99, %c0_100] : memref<2x1x32xf32, #tpu.memory_space<vmem>>, vector<1x1x32xf32>
    %230 = vector.shape_cast %229 : vector<1x1x32xf32> to vector<1x32xf32>
    %231 = vector.broadcast %230 : vector<1x32xf32> to vector<8x32xf32>
    %232 = arith.addf %228, %231 : vector<8x32xf32>
    %233 = arith.addf %218, %232 : vector<8x32xf32>
    %c1_101 = arith.constant 1 : index
    %c0_102 = arith.constant 0 : index
    %c0_103 = arith.constant 0 : index
    %234 = vector.load %arg12[%c1_101, %c0_102, %c0_103] : memref<2x1x32xf32, #tpu.memory_space<vmem>>, vector<1x1x32xf32>
    %235 = vector.shape_cast %234 : vector<1x1x32xf32> to vector<1x32xf32>
    %c1_104 = arith.constant 1 : index
    %c0_105 = arith.constant 0 : index
    %c0_106 = arith.constant 0 : index
    %236 = vector.load %arg13[%c1_104, %c0_105, %c0_106] : memref<2x1x32xf32, #tpu.memory_space<vmem>>, vector<1x1x32xf32>
    %237 = vector.shape_cast %236 : vector<1x1x32xf32> to vector<1x32xf32>
    %cst_107 = arith.constant dense<0.000000e+00> : vector<8xf32>
    %238 = vector.multi_reduction <add>, %233, %cst_107 [1] : vector<8x32xf32> to vector<8xf32>
    %239 = vector.shape_cast %238 : vector<8xf32> to vector<8x1xf32>
    %cst_108 = arith.constant 3.200000e+01 : f32
    %240 = vector.broadcast %cst_108 : f32 to vector<8x1xf32>
    %241 = arith.divf %239, %240 : vector<8x1xf32>
    %242 = vector.broadcast %241 : vector<8x1xf32> to vector<8x32xf32>
    %243 = arith.subf %233, %242 : vector<8x32xf32>
    %244 = arith.mulf %243, %243 : vector<8x32xf32>
    %cst_109 = arith.constant dense<0.000000e+00> : vector<8xf32>
    %245 = vector.multi_reduction <add>, %244, %cst_109 [1] : vector<8x32xf32> to vector<8xf32>
    %246 = vector.shape_cast %245 : vector<8xf32> to vector<8x1xf32>
    %cst_110 = arith.constant 3.200000e+01 : f32
    %247 = vector.broadcast %cst_110 : f32 to vector<8x1xf32>
    %248 = arith.divf %246, %247 : vector<8x1xf32>
    %249 = vector.broadcast %241 : vector<8x1xf32> to vector<8x32xf32>
    %250 = arith.subf %233, %249 : vector<8x32xf32>
    %cst_111 = arith.constant 9.99999974E-6 : f32
    %251 = vector.broadcast %cst_111 : f32 to vector<8x1xf32>
    %252 = arith.addf %248, %251 : vector<8x1xf32>
    %253 = math.rsqrt %252 : vector<8x1xf32>
    %254 = vector.broadcast %253 : vector<8x1xf32> to vector<8x32xf32>
    %255 = arith.mulf %250, %254 : vector<8x32xf32>
    %256 = vector.broadcast %235 : vector<1x32xf32> to vector<8x32xf32>
    %257 = arith.mulf %255, %256 : vector<8x32xf32>
    %258 = vector.broadcast %237 : vector<1x32xf32> to vector<8x32xf32>
    %259 = arith.addf %257, %258 : vector<8x32xf32>
    %c0_112 = arith.constant 0 : index
    %c0_113 = arith.constant 0 : index
    %260 = vector.load %arg14[%c0_112, %c0_113] : memref<1x32xf32, #tpu.memory_space<vmem>>, vector<1x32xf32>
    %c0_114 = arith.constant 0 : index
    %c0_115 = arith.constant 0 : index
    %261 = vector.load %arg15[%c0_114, %c0_115] : memref<1x32xf32, #tpu.memory_space<vmem>>, vector<1x32xf32>
    %cst_116 = arith.constant dense<0.000000e+00> : vector<8xf32>
    %262 = vector.multi_reduction <add>, %259, %cst_116 [1] : vector<8x32xf32> to vector<8xf32>
    %263 = vector.shape_cast %262 : vector<8xf32> to vector<8x1xf32>
    %cst_117 = arith.constant 3.200000e+01 : f32
    %264 = vector.broadcast %cst_117 : f32 to vector<8x1xf32>
    %265 = arith.divf %263, %264 : vector<8x1xf32>
    %266 = vector.broadcast %265 : vector<8x1xf32> to vector<8x32xf32>
    %267 = arith.subf %259, %266 : vector<8x32xf32>
    %268 = arith.mulf %267, %267 : vector<8x32xf32>
    %cst_118 = arith.constant dense<0.000000e+00> : vector<8xf32>
    %269 = vector.multi_reduction <add>, %268, %cst_118 [1] : vector<8x32xf32> to vector<8xf32>
    %270 = vector.shape_cast %269 : vector<8xf32> to vector<8x1xf32>
    %cst_119 = arith.constant 3.200000e+01 : f32
    %271 = vector.broadcast %cst_119 : f32 to vector<8x1xf32>
    %272 = arith.divf %270, %271 : vector<8x1xf32>
    %273 = vector.broadcast %265 : vector<8x1xf32> to vector<8x32xf32>
    %274 = arith.subf %259, %273 : vector<8x32xf32>
    %cst_120 = arith.constant 9.99999974E-6 : f32
    %275 = vector.broadcast %cst_120 : f32 to vector<8x1xf32>
    %276 = arith.addf %272, %275 : vector<8x1xf32>
    %277 = math.rsqrt %276 : vector<8x1xf32>
    %278 = vector.broadcast %277 : vector<8x1xf32> to vector<8x32xf32>
    %279 = arith.mulf %274, %278 : vector<8x32xf32>
    %280 = vector.broadcast %260 : vector<1x32xf32> to vector<8x32xf32>
    %281 = arith.mulf %279, %280 : vector<8x32xf32>
    %282 = vector.broadcast %261 : vector<1x32xf32> to vector<8x32xf32>
    %283 = arith.addf %281, %282 : vector<8x32xf32>
    %284 = vector.shape_cast %283 : vector<8x32xf32> to vector<4x2x32xf32>
    %c0_121 = arith.constant 0 : index
    %c0_122 = arith.constant 0 : index
    %c0_123 = arith.constant 0 : index
    %285 = vector.load %arg16[%c0_121, %c0_122, %c0_123] : memref<4x2x32xf32, #tpu.memory_space<vmem>>, vector<4x2x32xf32>
    tpu.vector_store %arg16[%c0_121, %c0_122, %c0_123], %284 {strides = array<i32>} : memref<4x2x32xf32, #tpu.memory_space<vmem>>, vector<4x2x32xf32>,
    return
  }
  func.func @transform_0(%arg0: i32) -> (i32, i32, i32) {
    %c0_i32 = arith.constant 0 : i32
    %c0_i32_0 = arith.constant 0 : i32
    %c0_i32_1 = arith.constant 0 : i32
    return %arg0, %c0_i32, %c0_i32_0 : i32, i32, i32
  }
  func.func @transform_1(%arg0: i32) -> (i32, i32, i32) {
    %c0_i32 = arith.constant 0 : i32
    %c0_i32_0 = arith.constant 0 : i32
    %c0_i32_1 = arith.constant 0 : i32
    %c0_i32_2 = arith.constant 0 : i32
    return %c0_i32, %c0_i32_0, %c0_i32_1 : i32, i32, i32
  }
  func.func @transform_2(%arg0: i32) -> (i32, i32, i32) {
    %c0_i32 = arith.constant 0 : i32
    %c0_i32_0 = arith.constant 0 : i32
    %c0_i32_1 = arith.constant 0 : i32
    %c0_i32_2 = arith.constant 0 : i32
    return %c0_i32, %c0_i32_0, %c0_i32_1 : i32, i32, i32
  }
  func.func @transform_3(%arg0: i32) -> (i32, i32, i32) {
    %c0_i32 = arith.constant 0 : i32
    %c0_i32_0 = arith.constant 0 : i32
    %c0_i32_1 = arith.constant 0 : i32
    %c0_i32_2 = arith.constant 0 : i32
    return %c0_i32, %c0_i32_0, %c0_i32_1 : i32, i32, i32
  }
  func.func @transform_4(%arg0: i32) -> (i32, i32, i32) {
    %c0_i32 = arith.constant 0 : i32
    %c0_i32_0 = arith.constant 0 : i32
    %c0_i32_1 = arith.constant 0 : i32
    %c0_i32_2 = arith.constant 0 : i32
    return %c0_i32, %c0_i32_0, %c0_i32_1 : i32, i32, i32
  }
  func.func @transform_5(%arg0: i32) -> (i32, i32, i32) {
    %c0_i32 = arith.constant 0 : i32
    %c0_i32_0 = arith.constant 0 : i32
    %c0_i32_1 = arith.constant 0 : i32
    %c0_i32_2 = arith.constant 0 : i32
    return %c0_i32, %c0_i32_0, %c0_i32_1 : i32, i32, i32
  }
  func.func @transform_6(%arg0: i32) -> (i32, i32, i32) {
    %c0_i32 = arith.constant 0 : i32
    %c0_i32_0 = arith.constant 0 : i32
    %c0_i32_1 = arith.constant 0 : i32
    %c0_i32_2 = arith.constant 0 : i32
    return %c0_i32, %c0_i32_0, %c0_i32_1 : i32, i32, i32
  }
  func.func @transform_7(%arg0: i32) -> (i32, i32, i32) {
    %c0_i32 = arith.constant 0 : i32
    %c0_i32_0 = arith.constant 0 : i32
    %c0_i32_1 = arith.constant 0 : i32
    %c0_i32_2 = arith.constant 0 : i32
    return %c0_i32, %c0_i32_0, %c0_i32_1 : i32, i32, i32
  }
  func.func @transform_8(%arg0: i32) -> (i32, i32, i32) {
    %c0_i32 = arith.constant 0 : i32
    %c0_i32_0 = arith.constant 0 : i32
    %c0_i32_1 = arith.constant 0 : i32
    %c0_i32_2 = arith.constant 0 : i32
    return %c0_i32, %c0_i32_0, %c0_i32_1 : i32, i32, i32
  }
  func.func @transform_9(%arg0: i32) -> (i32, i32, i32) {
    %c0_i32 = arith.constant 0 : i32
    %c0_i32_0 = arith.constant 0 : i32
    %c0_i32_1 = arith.constant 0 : i32
    %c0_i32_2 = arith.constant 0 : i32
    return %c0_i32, %c0_i32_0, %c0_i32_1 : i32, i32, i32
  }
  func.func @transform_10(%arg0: i32) -> (i32, i32, i32) {
    %c0_i32 = arith.constant 0 : i32
    %c0_i32_0 = arith.constant 0 : i32
    %c0_i32_1 = arith.constant 0 : i32
    %c0_i32_2 = arith.constant 0 : i32
    return %c0_i32, %c0_i32_0, %c0_i32_1 : i32, i32, i32
  }
  func.func @transform_11(%arg0: i32) -> (i32, i32, i32) {
    %c0_i32 = arith.constant 0 : i32
    %c0_i32_0 = arith.constant 0 : i32
    %c0_i32_1 = arith.constant 0 : i32
    %c0_i32_2 = arith.constant 0 : i32
    return %c0_i32, %c0_i32_0, %c0_i32_1 : i32, i32, i32
  }
  func.func @transform_12(%arg0: i32) -> (i32, i32, i32) {
    %c0_i32 = arith.constant 0 : i32
    %c0_i32_0 = arith.constant 0 : i32
    %c0_i32_1 = arith.constant 0 : i32
    %c0_i32_2 = arith.constant 0 : i32
    return %c0_i32, %c0_i32_0, %c0_i32_1 : i32, i32, i32
  }
  func.func @transform_13(%arg0: i32) -> (i32, i32) {
    %c0_i32 = arith.constant 0 : i32
    %c0_i32_0 = arith.constant 0 : i32
    %c0_i32_1 = arith.constant 0 : i32
    return %c0_i32, %c0_i32_0 : i32, i32
  }
  func.func @transform_14(%arg0: i32) -> (i32, i32) {
    %c0_i32 = arith.constant 0 : i32
    %c0_i32_0 = arith.constant 0 : i32
    %c0_i32_1 = arith.constant 0 : i32
    return %c0_i32, %c0_i32_0 : i32, i32
  }
  func.func @transform_15(%arg0: i32) -> (i32, i32, i32) {
    %c0_i32 = arith.constant 0 : i32
    %c0_i32_0 = arith.constant 0 : i32
    %c0_i32_1 = arith.constant 0 : i32
    return %arg0, %c0_i32, %c0_i32_0 : i32, i32, i32
  }
}

module attributes {stable_mosaic.version = 11 : i64} {
  func.func @_bilstm3_kernel(%arg0: memref<8x2x16xf32, #tpu.memory_space<vmem>>, %arg1: memref<16x128xbf16, #tpu.memory_space<vmem>>, %arg2: memref<32x128xf32, #tpu.memory_space<vmem>>, %arg3: memref<1x128xf32, #tpu.memory_space<vmem>>, %arg4: memref<32x128xbf16, #tpu.memory_space<vmem>>, %arg5: memref<32x128xf32, #tpu.memory_space<vmem>>, %arg6: memref<1x128xf32, #tpu.memory_space<vmem>>, %arg7: memref<32x128xbf16, #tpu.memory_space<vmem>>, %arg8: memref<32x128xf32, #tpu.memory_space<vmem>>, %arg9: memref<1x128xf32, #tpu.memory_space<vmem>>, %arg10: memref<8x2x32xf32, #tpu.memory_space<vmem>>, %arg11: memref<8x2x32xf32, #tpu.memory_space<vmem>>, %arg12: memref<8x2x128xf32, #tpu.memory_space<vmem>>) attributes {dimension_semantics = [], scalar_prefetch = 0 : i64, scratch_operands = 2 : i64, tpu.core_type = #tpu.core_type<tc>} {
    %0 = tpu.iota {dimensions = array<i32: 1>} : vector<2x128xi32>
    %c32_i32 = arith.constant 32 : i32
    %c0_i32 = arith.constant 0 : i32
    %1 = arith.cmpi eq, %c32_i32, %c0_i32 : i32
    %c1_i32 = arith.constant 1 : i32
    %2 = arith.select %1, %c1_i32, %c32_i32 : i32
    %3 = vector.broadcast %2 : i32 to vector<2x128xi32>
    %4 = arith.remsi %0, %3 : vector<2x128xi32>
    %c0_i32_0 = arith.constant 0 : i32
    %5 = vector.broadcast %c0_i32_0 : i32 to vector<2x128xi32>
    %6 = arith.cmpi ne, %4, %5 : vector<2x128xi32>
    %c0_i32_1 = arith.constant 0 : i32
    %7 = vector.broadcast %c0_i32_1 : i32 to vector<2x128xi32>
    %8 = arith.cmpi slt, %4, %7 : vector<2x128xi32>
    %c0_i32_2 = arith.constant 0 : i32
    %9 = arith.cmpi slt, %2, %c0_i32_2 : i32
    %10 = vector.broadcast %9 : i1 to vector<2x128xi1>
    %11 = vector.broadcast %10 : vector<2x128xi1> to vector<2x128xi1>
    %12 = arith.xori %8, %11 : vector<2x128xi1>
    %13 = arith.andi %12, %6 : vector<2x128xi1>
    %14 = vector.broadcast %2 : i32 to vector<2x128xi32>
    %15 = arith.addi %4, %14 : vector<2x128xi32>
    %16 = arith.select %13, %15, %4 : vector<2x128xi1>, vector<2x128xi32>
    %c16_i32 = arith.constant 16 : i32
    %17 = vector.broadcast %c16_i32 : i32 to vector<2x128xi32>
    %18 = arith.cmpi slt, %16, %17 : vector<2x128xi32>
    %19 = tpu.iota {dimensions = array<i32: 1>} : vector<2x32xi32>
    %c16_i32_3 = arith.constant 16 : i32
    %20 = vector.broadcast %c16_i32_3 : i32 to vector<2x32xi32>
    %21 = arith.cmpi slt, %19, %20 : vector<2x32xi32>
    %c0 = arith.constant 0 : index
    %c0_4 = arith.constant 0 : index
    %22 = vector.load %arg1[%c0, %c0_4] : memref<16x128xbf16, #tpu.memory_space<vmem>>, vector<16x128xbf16>
    %c0_5 = arith.constant 0 : index
    %c0_6 = arith.constant 0 : index
    %c0_7 = arith.constant 0 : index
    %23 = vector.load %arg0[%c0_5, %c0_6, %c0_7] : memref<8x2x16xf32, #tpu.memory_space<vmem>>, vector<8x2x16xf32>
    %24 = vector.shape_cast %23 : vector<8x2x16xf32> to vector<16x16xf32>
    %25 = arith.truncf %24 : vector<16x16xf32> to vector<16x16xbf16>
    %cst = arith.constant dense<0.000000e+00> : vector<16x128xf32>
    %26 = tpu.matmul %25, %22, %cst {dimension_numbers = #tpu.dot_dimension_numbers<[1], [0], [0], [1], [0, 0, 1, 1], [], []>} : vector<16x16xbf16>, vector<16x128xbf16>, vector<16x128xf32> -> vector<16x128xf32>
    %c0_8 = arith.constant 0 : index
    %c0_9 = arith.constant 0 : index
    %27 = vector.load %arg3[%c0_8, %c0_9] : memref<1x128xf32, #tpu.memory_space<vmem>>, vector<1x128xf32>
    %28 = vector.broadcast %27 : vector<1x128xf32> to vector<16x128xf32>
    %29 = arith.addf %26, %28 : vector<16x128xf32>
    %30 = vector.shape_cast %29 : vector<16x128xf32> to vector<8x2x128xf32>
    %c0_10 = arith.constant 0 : index
    %c0_11 = arith.constant 0 : index
    %c0_12 = arith.constant 0 : index
    %31 = vector.load %arg12[%c0_10, %c0_11, %c0_12] : memref<8x2x128xf32, #tpu.memory_space<vmem>>, vector<8x2x128xf32>
    tpu.vector_store %arg12[%c0_10, %c0_11, %c0_12], %30 {strides = array<i32>} : memref<8x2x128xf32, #tpu.memory_space<vmem>>, vector<8x2x128xf32>,
    %c0_13 = arith.constant 0 : index
    %c0_14 = arith.constant 0 : index
    %32 = vector.load %arg2[%c0_13, %c0_14] : memref<32x128xf32, #tpu.memory_space<vmem>>, vector<32x128xf32>
    %cst_15 = arith.constant 0.000000e+00 : f32
    %33 = vector.broadcast %cst_15 : f32 to vector<2x32xf32>
    %c0_i32_16 = arith.constant 0 : i32
    %34 = arith.index_cast %c0_i32_16 : i32 to index
    %c0_17 = arith.constant 0 : index
    %c0_18 = arith.constant 0 : index
    %35 = vector.load %arg12[%34, %c0_17, %c0_18] : memref<8x2x128xf32, #tpu.memory_space<vmem>>, vector<1x2x128xf32>
    %36 = vector.shape_cast %35 : vector<1x2x128xf32> to vector<2x128xf32>
    %c7_i32 = arith.constant 7 : i32
    %37 = arith.subi %c7_i32, %c0_i32_16 : i32
    %38 = arith.index_cast %37 : i32 to index
    %c0_19 = arith.constant 0 : index
    %c0_20 = arith.constant 0 : index
    %39 = vector.load %arg12[%38, %c0_19, %c0_20] : memref<8x2x128xf32, #tpu.memory_space<vmem>>, vector<1x2x128xf32>
    %40 = vector.shape_cast %39 : vector<1x2x128xf32> to vector<2x128xf32>
    %41 = arith.select %18, %36, %40 : vector<2x128xi1>, vector<2x128xf32>
    %cst_21 = arith.constant dense<0.000000e+00> : vector<2x128xf32>
    %42 = tpu.matmul %33, %32, %cst_21 {dimension_numbers = #tpu.dot_dimension_numbers<[1], [0], [0], [1], [0, 0, 1, 1], [], []>} : vector<2x32xf32>, vector<32x128xf32>, vector<2x128xf32> -> vector<2x128xf32>
    %43 = arith.addf %41, %42 : vector<2x128xf32>
    %44 = vector.extract_strided_slice %43 {offsets = [0, 0], sizes = [2, 32], strides = [1, 1]} : vector<2x128xf32> to vector<2x32xf32>
    %cst_22 = arith.constant 0.000000e+00 : f32
    %45 = vector.broadcast %cst_22 : f32 to vector<2x32xf32>
    %46 = arith.subf %45, %44 : vector<2x32xf32>
    %47 = math.exp %46 : vector<2x32xf32>
    %cst_23 = arith.constant 1.000000e+00 : f32
    %48 = vector.broadcast %cst_23 : f32 to vector<2x32xf32>
    %49 = arith.addf %48, %47 : vector<2x32xf32>
    %cst_24 = arith.constant 1.000000e+00 : f32
    %50 = vector.broadcast %cst_24 : f32 to vector<2x32xf32>
    %51 = arith.divf %50, %49 : vector<2x32xf32>
    %52 = vector.extract_strided_slice %43 {offsets = [0, 32], sizes = [2, 32], strides = [1, 1]} : vector<2x128xf32> to vector<2x32xf32>
    %cst_25 = arith.constant 0.000000e+00 : f32
    %53 = vector.broadcast %cst_25 : f32 to vector<2x32xf32>
    %54 = arith.subf %53, %52 : vector<2x32xf32>
    %55 = math.exp %54 : vector<2x32xf32>
    %cst_26 = arith.constant 1.000000e+00 : f32
    %56 = vector.broadcast %cst_26 : f32 to vector<2x32xf32>
    %57 = arith.addf %56, %55 : vector<2x32xf32>
    %cst_27 = arith.constant 1.000000e+00 : f32
    %58 = vector.broadcast %cst_27 : f32 to vector<2x32xf32>
    %59 = arith.divf %58, %57 : vector<2x32xf32>
    %60 = vector.extract_strided_slice %43 {offsets = [0, 64], sizes = [2, 32], strides = [1, 1]} : vector<2x128xf32> to vector<2x32xf32>
    %61 = math.tanh %60 : vector<2x32xf32>
    %62 = vector.extract_strided_slice %43 {offsets = [0, 96], sizes = [2, 32], strides = [1, 1]} : vector<2x128xf32> to vector<2x32xf32>
    %cst_28 = arith.constant 0.000000e+00 : f32
    %63 = vector.broadcast %cst_28 : f32 to vector<2x32xf32>
    %64 = arith.subf %63, %62 : vector<2x32xf32>
    %65 = math.exp %64 : vector<2x32xf32>
    %cst_29 = arith.constant 1.000000e+00 : f32
    %66 = vector.broadcast %cst_29 : f32 to vector<2x32xf32>
    %67 = arith.addf %66, %65 : vector<2x32xf32>
    %cst_30 = arith.constant 1.000000e+00 : f32
    %68 = vector.broadcast %cst_30 : f32 to vector<2x32xf32>
    %69 = arith.divf %68, %67 : vector<2x32xf32>
    %70 = arith.mulf %59, %33 : vector<2x32xf32>
    %71 = arith.mulf %51, %61 : vector<2x32xf32>
    %72 = arith.addf %70, %71 : vector<2x32xf32>
    %73 = math.tanh %72 : vector<2x32xf32>
    %74 = arith.mulf %69, %73 : vector<2x32xf32>
    %75 = arith.index_cast %c0_i32_16 : i32 to index
    %c0_31 = arith.constant 0 : index
    %c0_32 = arith.constant 0 : index
    %76 = vector.load %arg10[%75, %c0_31, %c0_32] : memref<8x2x32xf32, #tpu.memory_space<vmem>>, vector<1x2x32xf32>
    %77 = vector.shape_cast %76 : vector<1x2x32xf32> to vector<2x32xf32>
    %78 = vector.shape_cast %74 : vector<2x32xf32> to vector<1x2x32xf32>
    tpu.vector_store %arg10[%75, %c0_31, %c0_32], %78 {strides = array<i32>} : memref<8x2x32xf32, #tpu.memory_space<vmem>>, vector<1x2x32xf32>,
    %c1_i32_33 = arith.constant 1 : i32
    %79 = arith.index_cast %c1_i32_33 : i32 to index
    %c0_34 = arith.constant 0 : index
    %c0_35 = arith.constant 0 : index
    %80 = vector.load %arg12[%79, %c0_34, %c0_35] : memref<8x2x128xf32, #tpu.memory_space<vmem>>, vector<1x2x128xf32>
    %81 = vector.shape_cast %80 : vector<1x2x128xf32> to vector<2x128xf32>
    %c7_i32_36 = arith.constant 7 : i32
    %82 = arith.subi %c7_i32_36, %c1_i32_33 : i32
    %83 = arith.index_cast %82 : i32 to index
    %c0_37 = arith.constant 0 : index
    %c0_38 = arith.constant 0 : index
    %84 = vector.load %arg12[%83, %c0_37, %c0_38] : memref<8x2x128xf32, #tpu.memory_space<vmem>>, vector<1x2x128xf32>
    %85 = vector.shape_cast %84 : vector<1x2x128xf32> to vector<2x128xf32>
    %86 = arith.select %18, %81, %85 : vector<2x128xi1>, vector<2x128xf32>
    %cst_39 = arith.constant dense<0.000000e+00> : vector<2x128xf32>
    %87 = tpu.matmul %74, %32, %cst_39 {dimension_numbers = #tpu.dot_dimension_numbers<[1], [0], [0], [1], [0, 0, 1, 1], [], []>} : vector<2x32xf32>, vector<32x128xf32>, vector<2x128xf32> -> vector<2x128xf32>
    %88 = arith.addf %86, %87 : vector<2x128xf32>
    %89 = vector.extract_strided_slice %88 {offsets = [0, 0], sizes = [2, 32], strides = [1, 1]} : vector<2x128xf32> to vector<2x32xf32>
    %cst_40 = arith.constant 0.000000e+00 : f32
    %90 = vector.broadcast %cst_40 : f32 to vector<2x32xf32>
    %91 = arith.subf %90, %89 : vector<2x32xf32>
    %92 = math.exp %91 : vector<2x32xf32>
    %cst_41 = arith.constant 1.000000e+00 : f32
    %93 = vector.broadcast %cst_41 : f32 to vector<2x32xf32>
    %94 = arith.addf %93, %92 : vector<2x32xf32>
    %cst_42 = arith.constant 1.000000e+00 : f32
    %95 = vector.broadcast %cst_42 : f32 to vector<2x32xf32>
    %96 = arith.divf %95, %94 : vector<2x32xf32>
    %97 = vector.extract_strided_slice %88 {offsets = [0, 32], sizes = [2, 32], strides = [1, 1]} : vector<2x128xf32> to vector<2x32xf32>
    %cst_43 = arith.constant 0.000000e+00 : f32
    %98 = vector.broadcast %cst_43 : f32 to vector<2x32xf32>
    %99 = arith.subf %98, %97 : vector<2x32xf32>
    %100 = math.exp %99 : vector<2x32xf32>
    %cst_44 = arith.constant 1.000000e+00 : f32
    %101 = vector.broadcast %cst_44 : f32 to vector<2x32xf32>
    %102 = arith.addf %101, %100 : vector<2x32xf32>
    %cst_45 = arith.constant 1.000000e+00 : f32
    %103 = vector.broadcast %cst_45 : f32 to vector<2x32xf32>
    %104 = arith.divf %103, %102 : vector<2x32xf32>
    %105 = vector.extract_strided_slice %88 {offsets = [0, 64], sizes = [2, 32], strides = [1, 1]} : vector<2x128xf32> to vector<2x32xf32>
    %106 = math.tanh %105 : vector<2x32xf32>
    %107 = vector.extract_strided_slice %88 {offsets = [0, 96], sizes = [2, 32], strides = [1, 1]} : vector<2x128xf32> to vector<2x32xf32>
    %cst_46 = arith.constant 0.000000e+00 : f32
    %108 = vector.broadcast %cst_46 : f32 to vector<2x32xf32>
    %109 = arith.subf %108, %107 : vector<2x32xf32>
    %110 = math.exp %109 : vector<2x32xf32>
    %cst_47 = arith.constant 1.000000e+00 : f32
    %111 = vector.broadcast %cst_47 : f32 to vector<2x32xf32>
    %112 = arith.addf %111, %110 : vector<2x32xf32>
    %cst_48 = arith.constant 1.000000e+00 : f32
    %113 = vector.broadcast %cst_48 : f32 to vector<2x32xf32>
    %114 = arith.divf %113, %112 : vector<2x32xf32>
    %115 = arith.mulf %104, %72 : vector<2x32xf32>
    %116 = arith.mulf %96, %106 : vector<2x32xf32>
    %117 = arith.addf %115, %116 : vector<2x32xf32>
    %118 = math.tanh %117 : vector<2x32xf32>
    %119 = arith.mulf %114, %118 : vector<2x32xf32>
    %120 = arith.index_cast %c1_i32_33 : i32 to index
    %c0_49 = arith.constant 0 : index
    %c0_50 = arith.constant 0 : index
    %121 = vector.load %arg10[%120, %c0_49, %c0_50] : memref<8x2x32xf32, #tpu.memory_space<vmem>>, vector<1x2x32xf32>
    %122 = vector.shape_cast %121 : vector<1x2x32xf32> to vector<2x32xf32>
    %123 = vector.shape_cast %119 : vector<2x32xf32> to vector<1x2x32xf32>
    tpu.vector_store %arg10[%120, %c0_49, %c0_50], %123 {strides = array<i32>} : memref<8x2x32xf32, #tpu.memory_space<vmem>>, vector<1x2x32xf32>,
    %c2_i32 = arith.constant 2 : i32
    %124 = arith.index_cast %c2_i32 : i32 to index
    %c0_51 = arith.constant 0 : index
    %c0_52 = arith.constant 0 : index
    %125 = vector.load %arg12[%124, %c0_51, %c0_52] : memref<8x2x128xf32, #tpu.memory_space<vmem>>, vector<1x2x128xf32>
    %126 = vector.shape_cast %125 : vector<1x2x128xf32> to vector<2x128xf32>
    %c7_i32_53 = arith.constant 7 : i32
    %127 = arith.subi %c7_i32_53, %c2_i32 : i32
    %128 = arith.index_cast %127 : i32 to index
    %c0_54 = arith.constant 0 : index
    %c0_55 = arith.constant 0 : index
    %129 = vector.load %arg12[%128, %c0_54, %c0_55] : memref<8x2x128xf32, #tpu.memory_space<vmem>>, vector<1x2x128xf32>
    %130 = vector.shape_cast %129 : vector<1x2x128xf32> to vector<2x128xf32>
    %131 = arith.select %18, %126, %130 : vector<2x128xi1>, vector<2x128xf32>
    %cst_56 = arith.constant dense<0.000000e+00> : vector<2x128xf32>
    %132 = tpu.matmul %119, %32, %cst_56 {dimension_numbers = #tpu.dot_dimension_numbers<[1], [0], [0], [1], [0, 0, 1, 1], [], []>} : vector<2x32xf32>, vector<32x128xf32>, vector<2x128xf32> -> vector<2x128xf32>
    %133 = arith.addf %131, %132 : vector<2x128xf32>
    %134 = vector.extract_strided_slice %133 {offsets = [0, 0], sizes = [2, 32], strides = [1, 1]} : vector<2x128xf32> to vector<2x32xf32>
    %cst_57 = arith.constant 0.000000e+00 : f32
    %135 = vector.broadcast %cst_57 : f32 to vector<2x32xf32>
    %136 = arith.subf %135, %134 : vector<2x32xf32>
    %137 = math.exp %136 : vector<2x32xf32>
    %cst_58 = arith.constant 1.000000e+00 : f32
    %138 = vector.broadcast %cst_58 : f32 to vector<2x32xf32>
    %139 = arith.addf %138, %137 : vector<2x32xf32>
    %cst_59 = arith.constant 1.000000e+00 : f32
    %140 = vector.broadcast %cst_59 : f32 to vector<2x32xf32>
    %141 = arith.divf %140, %139 : vector<2x32xf32>
    %142 = vector.extract_strided_slice %133 {offsets = [0, 32], sizes = [2, 32], strides = [1, 1]} : vector<2x128xf32> to vector<2x32xf32>
    %cst_60 = arith.constant 0.000000e+00 : f32
    %143 = vector.broadcast %cst_60 : f32 to vector<2x32xf32>
    %144 = arith.subf %143, %142 : vector<2x32xf32>
    %145 = math.exp %144 : vector<2x32xf32>
    %cst_61 = arith.constant 1.000000e+00 : f32
    %146 = vector.broadcast %cst_61 : f32 to vector<2x32xf32>
    %147 = arith.addf %146, %145 : vector<2x32xf32>
    %cst_62 = arith.constant 1.000000e+00 : f32
    %148 = vector.broadcast %cst_62 : f32 to vector<2x32xf32>
    %149 = arith.divf %148, %147 : vector<2x32xf32>
    %150 = vector.extract_strided_slice %133 {offsets = [0, 64], sizes = [2, 32], strides = [1, 1]} : vector<2x128xf32> to vector<2x32xf32>
    %151 = math.tanh %150 : vector<2x32xf32>
    %152 = vector.extract_strided_slice %133 {offsets = [0, 96], sizes = [2, 32], strides = [1, 1]} : vector<2x128xf32> to vector<2x32xf32>
    %cst_63 = arith.constant 0.000000e+00 : f32
    %153 = vector.broadcast %cst_63 : f32 to vector<2x32xf32>
    %154 = arith.subf %153, %152 : vector<2x32xf32>
    %155 = math.exp %154 : vector<2x32xf32>
    %cst_64 = arith.constant 1.000000e+00 : f32
    %156 = vector.broadcast %cst_64 : f32 to vector<2x32xf32>
    %157 = arith.addf %156, %155 : vector<2x32xf32>
    %cst_65 = arith.constant 1.000000e+00 : f32
    %158 = vector.broadcast %cst_65 : f32 to vector<2x32xf32>
    %159 = arith.divf %158, %157 : vector<2x32xf32>
    %160 = arith.mulf %149, %117 : vector<2x32xf32>
    %161 = arith.mulf %141, %151 : vector<2x32xf32>
    %162 = arith.addf %160, %161 : vector<2x32xf32>
    %163 = math.tanh %162 : vector<2x32xf32>
    %164 = arith.mulf %159, %163 : vector<2x32xf32>
    %165 = arith.index_cast %c2_i32 : i32 to index
    %c0_66 = arith.constant 0 : index
    %c0_67 = arith.constant 0 : index
    %166 = vector.load %arg10[%165, %c0_66, %c0_67] : memref<8x2x32xf32, #tpu.memory_space<vmem>>, vector<1x2x32xf32>
    %167 = vector.shape_cast %166 : vector<1x2x32xf32> to vector<2x32xf32>
    %168 = vector.shape_cast %164 : vector<2x32xf32> to vector<1x2x32xf32>
    tpu.vector_store %arg10[%165, %c0_66, %c0_67], %168 {strides = array<i32>} : memref<8x2x32xf32, #tpu.memory_space<vmem>>, vector<1x2x32xf32>,
    %c3_i32 = arith.constant 3 : i32
    %169 = arith.index_cast %c3_i32 : i32 to index
    %c0_68 = arith.constant 0 : index
    %c0_69 = arith.constant 0 : index
    %170 = vector.load %arg12[%169, %c0_68, %c0_69] : memref<8x2x128xf32, #tpu.memory_space<vmem>>, vector<1x2x128xf32>
    %171 = vector.shape_cast %170 : vector<1x2x128xf32> to vector<2x128xf32>
    %c7_i32_70 = arith.constant 7 : i32
    %172 = arith.subi %c7_i32_70, %c3_i32 : i32
    %173 = arith.index_cast %172 : i32 to index
    %c0_71 = arith.constant 0 : index
    %c0_72 = arith.constant 0 : index
    %174 = vector.load %arg12[%173, %c0_71, %c0_72] : memref<8x2x128xf32, #tpu.memory_space<vmem>>, vector<1x2x128xf32>
    %175 = vector.shape_cast %174 : vector<1x2x128xf32> to vector<2x128xf32>
    %176 = arith.select %18, %171, %175 : vector<2x128xi1>, vector<2x128xf32>
    %cst_73 = arith.constant dense<0.000000e+00> : vector<2x128xf32>
    %177 = tpu.matmul %164, %32, %cst_73 {dimension_numbers = #tpu.dot_dimension_numbers<[1], [0], [0], [1], [0, 0, 1, 1], [], []>} : vector<2x32xf32>, vector<32x128xf32>, vector<2x128xf32> -> vector<2x128xf32>
    %178 = arith.addf %176, %177 : vector<2x128xf32>
    %179 = vector.extract_strided_slice %178 {offsets = [0, 0], sizes = [2, 32], strides = [1, 1]} : vector<2x128xf32> to vector<2x32xf32>
    %cst_74 = arith.constant 0.000000e+00 : f32
    %180 = vector.broadcast %cst_74 : f32 to vector<2x32xf32>
    %181 = arith.subf %180, %179 : vector<2x32xf32>
    %182 = math.exp %181 : vector<2x32xf32>
    %cst_75 = arith.constant 1.000000e+00 : f32
    %183 = vector.broadcast %cst_75 : f32 to vector<2x32xf32>
    %184 = arith.addf %183, %182 : vector<2x32xf32>
    %cst_76 = arith.constant 1.000000e+00 : f32
    %185 = vector.broadcast %cst_76 : f32 to vector<2x32xf32>
    %186 = arith.divf %185, %184 : vector<2x32xf32>
    %187 = vector.extract_strided_slice %178 {offsets = [0, 32], sizes = [2, 32], strides = [1, 1]} : vector<2x128xf32> to vector<2x32xf32>
    %cst_77 = arith.constant 0.000000e+00 : f32
    %188 = vector.broadcast %cst_77 : f32 to vector<2x32xf32>
    %189 = arith.subf %188, %187 : vector<2x32xf32>
    %190 = math.exp %189 : vector<2x32xf32>
    %cst_78 = arith.constant 1.000000e+00 : f32
    %191 = vector.broadcast %cst_78 : f32 to vector<2x32xf32>
    %192 = arith.addf %191, %190 : vector<2x32xf32>
    %cst_79 = arith.constant 1.000000e+00 : f32
    %193 = vector.broadcast %cst_79 : f32 to vector<2x32xf32>
    %194 = arith.divf %193, %192 : vector<2x32xf32>
    %195 = vector.extract_strided_slice %178 {offsets = [0, 64], sizes = [2, 32], strides = [1, 1]} : vector<2x128xf32> to vector<2x32xf32>
    %196 = math.tanh %195 : vector<2x32xf32>
    %197 = vector.extract_strided_slice %178 {offsets = [0, 96], sizes = [2, 32], strides = [1, 1]} : vector<2x128xf32> to vector<2x32xf32>
    %cst_80 = arith.constant 0.000000e+00 : f32
    %198 = vector.broadcast %cst_80 : f32 to vector<2x32xf32>
    %199 = arith.subf %198, %197 : vector<2x32xf32>
    %200 = math.exp %199 : vector<2x32xf32>
    %cst_81 = arith.constant 1.000000e+00 : f32
    %201 = vector.broadcast %cst_81 : f32 to vector<2x32xf32>
    %202 = arith.addf %201, %200 : vector<2x32xf32>
    %cst_82 = arith.constant 1.000000e+00 : f32
    %203 = vector.broadcast %cst_82 : f32 to vector<2x32xf32>
    %204 = arith.divf %203, %202 : vector<2x32xf32>
    %205 = arith.mulf %194, %162 : vector<2x32xf32>
    %206 = arith.mulf %186, %196 : vector<2x32xf32>
    %207 = arith.addf %205, %206 : vector<2x32xf32>
    %208 = math.tanh %207 : vector<2x32xf32>
    %209 = arith.mulf %204, %208 : vector<2x32xf32>
    %210 = arith.index_cast %c3_i32 : i32 to index
    %c0_83 = arith.constant 0 : index
    %c0_84 = arith.constant 0 : index
    %211 = vector.load %arg10[%210, %c0_83, %c0_84] : memref<8x2x32xf32, #tpu.memory_space<vmem>>, vector<1x2x32xf32>
    %212 = vector.shape_cast %211 : vector<1x2x32xf32> to vector<2x32xf32>
    %213 = vector.shape_cast %209 : vector<2x32xf32> to vector<1x2x32xf32>
    tpu.vector_store %arg10[%210, %c0_83, %c0_84], %213 {strides = array<i32>} : memref<8x2x32xf32, #tpu.memory_space<vmem>>, vector<1x2x32xf32>,
    %c4_i32 = arith.constant 4 : i32
    %214 = arith.index_cast %c4_i32 : i32 to index
    %c0_85 = arith.constant 0 : index
    %c0_86 = arith.constant 0 : index
    %215 = vector.load %arg12[%214, %c0_85, %c0_86] : memref<8x2x128xf32, #tpu.memory_space<vmem>>, vector<1x2x128xf32>
    %216 = vector.shape_cast %215 : vector<1x2x128xf32> to vector<2x128xf32>
    %c7_i32_87 = arith.constant 7 : i32
    %217 = arith.subi %c7_i32_87, %c4_i32 : i32
    %218 = arith.index_cast %217 : i32 to index
    %c0_88 = arith.constant 0 : index
    %c0_89 = arith.constant 0 : index
    %219 = vector.load %arg12[%218, %c0_88, %c0_89] : memref<8x2x128xf32, #tpu.memory_space<vmem>>, vector<1x2x128xf32>
    %220 = vector.shape_cast %219 : vector<1x2x128xf32> to vector<2x128xf32>
    %221 = arith.select %18, %216, %220 : vector<2x128xi1>, vector<2x128xf32>
    %cst_90 = arith.constant dense<0.000000e+00> : vector<2x128xf32>
    %222 = tpu.matmul %209, %32, %cst_90 {dimension_numbers = #tpu.dot_dimension_numbers<[1], [0], [0], [1], [0, 0, 1, 1], [], []>} : vector<2x32xf32>, vector<32x128xf32>, vector<2x128xf32> -> vector<2x128xf32>
    %223 = arith.addf %221, %222 : vector<2x128xf32>
    %224 = vector.extract_strided_slice %223 {offsets = [0, 0], sizes = [2, 32], strides = [1, 1]} : vector<2x128xf32> to vector<2x32xf32>
    %cst_91 = arith.constant 0.000000e+00 : f32
    %225 = vector.broadcast %cst_91 : f32 to vector<2x32xf32>
    %226 = arith.subf %225, %224 : vector<2x32xf32>
    %227 = math.exp %226 : vector<2x32xf32>
    %cst_92 = arith.constant 1.000000e+00 : f32
    %228 = vector.broadcast %cst_92 : f32 to vector<2x32xf32>
    %229 = arith.addf %228, %227 : vector<2x32xf32>
    %cst_93 = arith.constant 1.000000e+00 : f32
    %230 = vector.broadcast %cst_93 : f32 to vector<2x32xf32>
    %231 = arith.divf %230, %229 : vector<2x32xf32>
    %232 = vector.extract_strided_slice %223 {offsets = [0, 32], sizes = [2, 32], strides = [1, 1]} : vector<2x128xf32> to vector<2x32xf32>
    %cst_94 = arith.constant 0.000000e+00 : f32
    %233 = vector.broadcast %cst_94 : f32 to vector<2x32xf32>
    %234 = arith.subf %233, %232 : vector<2x32xf32>
    %235 = math.exp %234 : vector<2x32xf32>
    %cst_95 = arith.constant 1.000000e+00 : f32
    %236 = vector.broadcast %cst_95 : f32 to vector<2x32xf32>
    %237 = arith.addf %236, %235 : vector<2x32xf32>
    %cst_96 = arith.constant 1.000000e+00 : f32
    %238 = vector.broadcast %cst_96 : f32 to vector<2x32xf32>
    %239 = arith.divf %238, %237 : vector<2x32xf32>
    %240 = vector.extract_strided_slice %223 {offsets = [0, 64], sizes = [2, 32], strides = [1, 1]} : vector<2x128xf32> to vector<2x32xf32>
    %241 = math.tanh %240 : vector<2x32xf32>
    %242 = vector.extract_strided_slice %223 {offsets = [0, 96], sizes = [2, 32], strides = [1, 1]} : vector<2x128xf32> to vector<2x32xf32>
    %cst_97 = arith.constant 0.000000e+00 : f32
    %243 = vector.broadcast %cst_97 : f32 to vector<2x32xf32>
    %244 = arith.subf %243, %242 : vector<2x32xf32>
    %245 = math.exp %244 : vector<2x32xf32>
    %cst_98 = arith.constant 1.000000e+00 : f32
    %246 = vector.broadcast %cst_98 : f32 to vector<2x32xf32>
    %247 = arith.addf %246, %245 : vector<2x32xf32>
    %cst_99 = arith.constant 1.000000e+00 : f32
    %248 = vector.broadcast %cst_99 : f32 to vector<2x32xf32>
    %249 = arith.divf %248, %247 : vector<2x32xf32>
    %250 = arith.mulf %239, %207 : vector<2x32xf32>
    %251 = arith.mulf %231, %241 : vector<2x32xf32>
    %252 = arith.addf %250, %251 : vector<2x32xf32>
    %253 = math.tanh %252 : vector<2x32xf32>
    %254 = arith.mulf %249, %253 : vector<2x32xf32>
    %255 = arith.index_cast %c4_i32 : i32 to index
    %c0_100 = arith.constant 0 : index
    %c0_101 = arith.constant 0 : index
    %256 = vector.load %arg10[%255, %c0_100, %c0_101] : memref<8x2x32xf32, #tpu.memory_space<vmem>>, vector<1x2x32xf32>
    %257 = vector.shape_cast %256 : vector<1x2x32xf32> to vector<2x32xf32>
    %258 = vector.shape_cast %254 : vector<2x32xf32> to vector<1x2x32xf32>
    tpu.vector_store %arg10[%255, %c0_100, %c0_101], %258 {strides = array<i32>} : memref<8x2x32xf32, #tpu.memory_space<vmem>>, vector<1x2x32xf32>,
    %c5_i32 = arith.constant 5 : i32
    %259 = arith.index_cast %c5_i32 : i32 to index
    %c0_102 = arith.constant 0 : index
    %c0_103 = arith.constant 0 : index
    %260 = vector.load %arg12[%259, %c0_102, %c0_103] : memref<8x2x128xf32, #tpu.memory_space<vmem>>, vector<1x2x128xf32>
    %261 = vector.shape_cast %260 : vector<1x2x128xf32> to vector<2x128xf32>
    %c7_i32_104 = arith.constant 7 : i32
    %262 = arith.subi %c7_i32_104, %c5_i32 : i32
    %263 = arith.index_cast %262 : i32 to index
    %c0_105 = arith.constant 0 : index
    %c0_106 = arith.constant 0 : index
    %264 = vector.load %arg12[%263, %c0_105, %c0_106] : memref<8x2x128xf32, #tpu.memory_space<vmem>>, vector<1x2x128xf32>
    %265 = vector.shape_cast %264 : vector<1x2x128xf32> to vector<2x128xf32>
    %266 = arith.select %18, %261, %265 : vector<2x128xi1>, vector<2x128xf32>
    %cst_107 = arith.constant dense<0.000000e+00> : vector<2x128xf32>
    %267 = tpu.matmul %254, %32, %cst_107 {dimension_numbers = #tpu.dot_dimension_numbers<[1], [0], [0], [1], [0, 0, 1, 1], [], []>} : vector<2x32xf32>, vector<32x128xf32>, vector<2x128xf32> -> vector<2x128xf32>
    %268 = arith.addf %266, %267 : vector<2x128xf32>
    %269 = vector.extract_strided_slice %268 {offsets = [0, 0], sizes = [2, 32], strides = [1, 1]} : vector<2x128xf32> to vector<2x32xf32>
    %cst_108 = arith.constant 0.000000e+00 : f32
    %270 = vector.broadcast %cst_108 : f32 to vector<2x32xf32>
    %271 = arith.subf %270, %269 : vector<2x32xf32>
    %272 = math.exp %271 : vector<2x32xf32>
    %cst_109 = arith.constant 1.000000e+00 : f32
    %273 = vector.broadcast %cst_109 : f32 to vector<2x32xf32>
    %274 = arith.addf %273, %272 : vector<2x32xf32>
    %cst_110 = arith.constant 1.000000e+00 : f32
    %275 = vector.broadcast %cst_110 : f32 to vector<2x32xf32>
    %276 = arith.divf %275, %274 : vector<2x32xf32>
    %277 = vector.extract_strided_slice %268 {offsets = [0, 32], sizes = [2, 32], strides = [1, 1]} : vector<2x128xf32> to vector<2x32xf32>
    %cst_111 = arith.constant 0.000000e+00 : f32
    %278 = vector.broadcast %cst_111 : f32 to vector<2x32xf32>
    %279 = arith.subf %278, %277 : vector<2x32xf32>
    %280 = math.exp %279 : vector<2x32xf32>
    %cst_112 = arith.constant 1.000000e+00 : f32
    %281 = vector.broadcast %cst_112 : f32 to vector<2x32xf32>
    %282 = arith.addf %281, %280 : vector<2x32xf32>
    %cst_113 = arith.constant 1.000000e+00 : f32
    %283 = vector.broadcast %cst_113 : f32 to vector<2x32xf32>
    %284 = arith.divf %283, %282 : vector<2x32xf32>
    %285 = vector.extract_strided_slice %268 {offsets = [0, 64], sizes = [2, 32], strides = [1, 1]} : vector<2x128xf32> to vector<2x32xf32>
    %286 = math.tanh %285 : vector<2x32xf32>
    %287 = vector.extract_strided_slice %268 {offsets = [0, 96], sizes = [2, 32], strides = [1, 1]} : vector<2x128xf32> to vector<2x32xf32>
    %cst_114 = arith.constant 0.000000e+00 : f32
    %288 = vector.broadcast %cst_114 : f32 to vector<2x32xf32>
    %289 = arith.subf %288, %287 : vector<2x32xf32>
    %290 = math.exp %289 : vector<2x32xf32>
    %cst_115 = arith.constant 1.000000e+00 : f32
    %291 = vector.broadcast %cst_115 : f32 to vector<2x32xf32>
    %292 = arith.addf %291, %290 : vector<2x32xf32>
    %cst_116 = arith.constant 1.000000e+00 : f32
    %293 = vector.broadcast %cst_116 : f32 to vector<2x32xf32>
    %294 = arith.divf %293, %292 : vector<2x32xf32>
    %295 = arith.mulf %284, %252 : vector<2x32xf32>
    %296 = arith.mulf %276, %286 : vector<2x32xf32>
    %297 = arith.addf %295, %296 : vector<2x32xf32>
    %298 = math.tanh %297 : vector<2x32xf32>
    %299 = arith.mulf %294, %298 : vector<2x32xf32>
    %300 = arith.index_cast %c5_i32 : i32 to index
    %c0_117 = arith.constant 0 : index
    %c0_118 = arith.constant 0 : index
    %301 = vector.load %arg10[%300, %c0_117, %c0_118] : memref<8x2x32xf32, #tpu.memory_space<vmem>>, vector<1x2x32xf32>
    %302 = vector.shape_cast %301 : vector<1x2x32xf32> to vector<2x32xf32>
    %303 = vector.shape_cast %299 : vector<2x32xf32> to vector<1x2x32xf32>
    tpu.vector_store %arg10[%300, %c0_117, %c0_118], %303 {strides = array<i32>} : memref<8x2x32xf32, #tpu.memory_space<vmem>>, vector<1x2x32xf32>,
    %c6_i32 = arith.constant 6 : i32
    %304 = arith.index_cast %c6_i32 : i32 to index
    %c0_119 = arith.constant 0 : index
    %c0_120 = arith.constant 0 : index
    %305 = vector.load %arg12[%304, %c0_119, %c0_120] : memref<8x2x128xf32, #tpu.memory_space<vmem>>, vector<1x2x128xf32>
    %306 = vector.shape_cast %305 : vector<1x2x128xf32> to vector<2x128xf32>
    %c7_i32_121 = arith.constant 7 : i32
    %307 = arith.subi %c7_i32_121, %c6_i32 : i32
    %308 = arith.index_cast %307 : i32 to index
    %c0_122 = arith.constant 0 : index
    %c0_123 = arith.constant 0 : index
    %309 = vector.load %arg12[%308, %c0_122, %c0_123] : memref<8x2x128xf32, #tpu.memory_space<vmem>>, vector<1x2x128xf32>
    %310 = vector.shape_cast %309 : vector<1x2x128xf32> to vector<2x128xf32>
    %311 = arith.select %18, %306, %310 : vector<2x128xi1>, vector<2x128xf32>
    %cst_124 = arith.constant dense<0.000000e+00> : vector<2x128xf32>
    %312 = tpu.matmul %299, %32, %cst_124 {dimension_numbers = #tpu.dot_dimension_numbers<[1], [0], [0], [1], [0, 0, 1, 1], [], []>} : vector<2x32xf32>, vector<32x128xf32>, vector<2x128xf32> -> vector<2x128xf32>
    %313 = arith.addf %311, %312 : vector<2x128xf32>
    %314 = vector.extract_strided_slice %313 {offsets = [0, 0], sizes = [2, 32], strides = [1, 1]} : vector<2x128xf32> to vector<2x32xf32>
    %cst_125 = arith.constant 0.000000e+00 : f32
    %315 = vector.broadcast %cst_125 : f32 to vector<2x32xf32>
    %316 = arith.subf %315, %314 : vector<2x32xf32>
    %317 = math.exp %316 : vector<2x32xf32>
    %cst_126 = arith.constant 1.000000e+00 : f32
    %318 = vector.broadcast %cst_126 : f32 to vector<2x32xf32>
    %319 = arith.addf %318, %317 : vector<2x32xf32>
    %cst_127 = arith.constant 1.000000e+00 : f32
    %320 = vector.broadcast %cst_127 : f32 to vector<2x32xf32>
    %321 = arith.divf %320, %319 : vector<2x32xf32>
    %322 = vector.extract_strided_slice %313 {offsets = [0, 32], sizes = [2, 32], strides = [1, 1]} : vector<2x128xf32> to vector<2x32xf32>
    %cst_128 = arith.constant 0.000000e+00 : f32
    %323 = vector.broadcast %cst_128 : f32 to vector<2x32xf32>
    %324 = arith.subf %323, %322 : vector<2x32xf32>
    %325 = math.exp %324 : vector<2x32xf32>
    %cst_129 = arith.constant 1.000000e+00 : f32
    %326 = vector.broadcast %cst_129 : f32 to vector<2x32xf32>
    %327 = arith.addf %326, %325 : vector<2x32xf32>
    %cst_130 = arith.constant 1.000000e+00 : f32
    %328 = vector.broadcast %cst_130 : f32 to vector<2x32xf32>
    %329 = arith.divf %328, %327 : vector<2x32xf32>
    %330 = vector.extract_strided_slice %313 {offsets = [0, 64], sizes = [2, 32], strides = [1, 1]} : vector<2x128xf32> to vector<2x32xf32>
    %331 = math.tanh %330 : vector<2x32xf32>
    %332 = vector.extract_strided_slice %313 {offsets = [0, 96], sizes = [2, 32], strides = [1, 1]} : vector<2x128xf32> to vector<2x32xf32>
    %cst_131 = arith.constant 0.000000e+00 : f32
    %333 = vector.broadcast %cst_131 : f32 to vector<2x32xf32>
    %334 = arith.subf %333, %332 : vector<2x32xf32>
    %335 = math.exp %334 : vector<2x32xf32>
    %cst_132 = arith.constant 1.000000e+00 : f32
    %336 = vector.broadcast %cst_132 : f32 to vector<2x32xf32>
    %337 = arith.addf %336, %335 : vector<2x32xf32>
    %cst_133 = arith.constant 1.000000e+00 : f32
    %338 = vector.broadcast %cst_133 : f32 to vector<2x32xf32>
    %339 = arith.divf %338, %337 : vector<2x32xf32>
    %340 = arith.mulf %329, %297 : vector<2x32xf32>
    %341 = arith.mulf %321, %331 : vector<2x32xf32>
    %342 = arith.addf %340, %341 : vector<2x32xf32>
    %343 = math.tanh %342 : vector<2x32xf32>
    %344 = arith.mulf %339, %343 : vector<2x32xf32>
    %345 = arith.index_cast %c6_i32 : i32 to index
    %c0_134 = arith.constant 0 : index
    %c0_135 = arith.constant 0 : index
    %346 = vector.load %arg10[%345, %c0_134, %c0_135] : memref<8x2x32xf32, #tpu.memory_space<vmem>>, vector<1x2x32xf32>
    %347 = vector.shape_cast %346 : vector<1x2x32xf32> to vector<2x32xf32>
    %348 = vector.shape_cast %344 : vector<2x32xf32> to vector<1x2x32xf32>
    tpu.vector_store %arg10[%345, %c0_134, %c0_135], %348 {strides = array<i32>} : memref<8x2x32xf32, #tpu.memory_space<vmem>>, vector<1x2x32xf32>,
    %c7_i32_136 = arith.constant 7 : i32
    %349 = arith.index_cast %c7_i32_136 : i32 to index
    %c0_137 = arith.constant 0 : index
    %c0_138 = arith.constant 0 : index
    %350 = vector.load %arg12[%349, %c0_137, %c0_138] : memref<8x2x128xf32, #tpu.memory_space<vmem>>, vector<1x2x128xf32>
    %351 = vector.shape_cast %350 : vector<1x2x128xf32> to vector<2x128xf32>
    %c7_i32_139 = arith.constant 7 : i32
    %352 = arith.subi %c7_i32_139, %c7_i32_136 : i32
    %353 = arith.index_cast %352 : i32 to index
    %c0_140 = arith.constant 0 : index
    %c0_141 = arith.constant 0 : index
    %354 = vector.load %arg12[%353, %c0_140, %c0_141] : memref<8x2x128xf32, #tpu.memory_space<vmem>>, vector<1x2x128xf32>
    %355 = vector.shape_cast %354 : vector<1x2x128xf32> to vector<2x128xf32>
    %356 = arith.select %18, %351, %355 : vector<2x128xi1>, vector<2x128xf32>
    %cst_142 = arith.constant dense<0.000000e+00> : vector<2x128xf32>
    %357 = tpu.matmul %344, %32, %cst_142 {dimension_numbers = #tpu.dot_dimension_numbers<[1], [0], [0], [1], [0, 0, 1, 1], [], []>} : vector<2x32xf32>, vector<32x128xf32>, vector<2x128xf32> -> vector<2x128xf32>
    %358 = arith.addf %356, %357 : vector<2x128xf32>
    %359 = vector.extract_strided_slice %358 {offsets = [0, 0], sizes = [2, 32], strides = [1, 1]} : vector<2x128xf32> to vector<2x32xf32>
    %cst_143 = arith.constant 0.000000e+00 : f32
    %360 = vector.broadcast %cst_143 : f32 to vector<2x32xf32>
    %361 = arith.subf %360, %359 : vector<2x32xf32>
    %362 = math.exp %361 : vector<2x32xf32>
    %cst_144 = arith.constant 1.000000e+00 : f32
    %363 = vector.broadcast %cst_144 : f32 to vector<2x32xf32>
    %364 = arith.addf %363, %362 : vector<2x32xf32>
    %cst_145 = arith.constant 1.000000e+00 : f32
    %365 = vector.broadcast %cst_145 : f32 to vector<2x32xf32>
    %366 = arith.divf %365, %364 : vector<2x32xf32>
    %367 = vector.extract_strided_slice %358 {offsets = [0, 32], sizes = [2, 32], strides = [1, 1]} : vector<2x128xf32> to vector<2x32xf32>
    %cst_146 = arith.constant 0.000000e+00 : f32
    %368 = vector.broadcast %cst_146 : f32 to vector<2x32xf32>
    %369 = arith.subf %368, %367 : vector<2x32xf32>
    %370 = math.exp %369 : vector<2x32xf32>
    %cst_147 = arith.constant 1.000000e+00 : f32
    %371 = vector.broadcast %cst_147 : f32 to vector<2x32xf32>
    %372 = arith.addf %371, %370 : vector<2x32xf32>
    %cst_148 = arith.constant 1.000000e+00 : f32
    %373 = vector.broadcast %cst_148 : f32 to vector<2x32xf32>
    %374 = arith.divf %373, %372 : vector<2x32xf32>
    %375 = vector.extract_strided_slice %358 {offsets = [0, 64], sizes = [2, 32], strides = [1, 1]} : vector<2x128xf32> to vector<2x32xf32>
    %376 = math.tanh %375 : vector<2x32xf32>
    %377 = vector.extract_strided_slice %358 {offsets = [0, 96], sizes = [2, 32], strides = [1, 1]} : vector<2x128xf32> to vector<2x32xf32>
    %cst_149 = arith.constant 0.000000e+00 : f32
    %378 = vector.broadcast %cst_149 : f32 to vector<2x32xf32>
    %379 = arith.subf %378, %377 : vector<2x32xf32>
    %380 = math.exp %379 : vector<2x32xf32>
    %cst_150 = arith.constant 1.000000e+00 : f32
    %381 = vector.broadcast %cst_150 : f32 to vector<2x32xf32>
    %382 = arith.addf %381, %380 : vector<2x32xf32>
    %cst_151 = arith.constant 1.000000e+00 : f32
    %383 = vector.broadcast %cst_151 : f32 to vector<2x32xf32>
    %384 = arith.divf %383, %382 : vector<2x32xf32>
    %385 = arith.mulf %374, %342 : vector<2x32xf32>
    %386 = arith.mulf %366, %376 : vector<2x32xf32>
    %387 = arith.addf %385, %386 : vector<2x32xf32>
    %388 = math.tanh %387 : vector<2x32xf32>
    %389 = arith.mulf %384, %388 : vector<2x32xf32>
    %390 = arith.index_cast %c7_i32_136 : i32 to index
    %c0_152 = arith.constant 0 : index
    %c0_153 = arith.constant 0 : index
    %391 = vector.load %arg10[%390, %c0_152, %c0_153] : memref<8x2x32xf32, #tpu.memory_space<vmem>>, vector<1x2x32xf32>
    %392 = vector.shape_cast %391 : vector<1x2x32xf32> to vector<2x32xf32>
    %393 = vector.shape_cast %389 : vector<2x32xf32> to vector<1x2x32xf32>
    tpu.vector_store %arg10[%390, %c0_152, %c0_153], %393 {strides = array<i32>} : memref<8x2x32xf32, #tpu.memory_space<vmem>>, vector<1x2x32xf32>,
    %c8_i32 = arith.constant 8 : i32
    %c0_i32_154 = arith.constant 0 : i32
    %394 = arith.index_cast %c0_i32_154 : i32 to index
    %c0_155 = arith.constant 0 : index
    %c0_156 = arith.constant 0 : index
    %395 = vector.load %arg10[%394, %c0_155, %c0_156] : memref<8x2x32xf32, #tpu.memory_space<vmem>>, vector<1x2x32xf32>
    %396 = vector.shape_cast %395 : vector<1x2x32xf32> to vector<2x32xf32>
    %c7_i32_157 = arith.constant 7 : i32
    %397 = arith.subi %c7_i32_157, %c0_i32_154 : i32
    %398 = arith.index_cast %397 : i32 to index
    %c0_158 = arith.constant 0 : index
    %c0_159 = arith.constant 0 : index
    %399 = vector.load %arg10[%398, %c0_158, %c0_159] : memref<8x2x32xf32, #tpu.memory_space<vmem>>, vector<1x2x32xf32>
    %400 = vector.shape_cast %399 : vector<1x2x32xf32> to vector<2x32xf32>
    %401 = arith.select %21, %396, %400 : vector<2x32xi1>, vector<2x32xf32>
    %402 = arith.index_cast %c0_i32_154 : i32 to index
    %c0_160 = arith.constant 0 : index
    %c0_161 = arith.constant 0 : index
    %403 = vector.load %arg10[%402, %c0_160, %c0_161] : memref<8x2x32xf32, #tpu.memory_space<vmem>>, vector<1x2x32xf32>
    %404 = vector.shape_cast %403 : vector<1x2x32xf32> to vector<2x32xf32>
    %405 = vector.shape_cast %401 : vector<2x32xf32> to vector<1x2x32xf32>
    tpu.vector_store %arg10[%402, %c0_160, %c0_161], %405 {strides = array<i32>} : memref<8x2x32xf32, #tpu.memory_space<vmem>>, vector<1x2x32xf32>,
    %406 = arith.select %21, %400, %396 : vector<2x32xi1>, vector<2x32xf32>
    %c7_i32_162 = arith.constant 7 : i32
    %407 = arith.subi %c7_i32_162, %c0_i32_154 : i32
    %408 = arith.index_cast %407 : i32 to index
    %c0_163 = arith.constant 0 : index
    %c0_164 = arith.constant 0 : index
    %409 = vector.load %arg10[%408, %c0_163, %c0_164] : memref<8x2x32xf32, #tpu.memory_space<vmem>>, vector<1x2x32xf32>
    %410 = vector.shape_cast %409 : vector<1x2x32xf32> to vector<2x32xf32>
    %411 = vector.shape_cast %406 : vector<2x32xf32> to vector<1x2x32xf32>
    tpu.vector_store %arg10[%408, %c0_163, %c0_164], %411 {strides = array<i32>} : memref<8x2x32xf32, #tpu.memory_space<vmem>>, vector<1x2x32xf32>,
    %c1_i32_165 = arith.constant 1 : i32
    %412 = arith.index_cast %c1_i32_165 : i32 to index
    %c0_166 = arith.constant 0 : index
    %c0_167 = arith.constant 0 : index
    %413 = vector.load %arg10[%412, %c0_166, %c0_167] : memref<8x2x32xf32, #tpu.memory_space<vmem>>, vector<1x2x32xf32>
    %414 = vector.shape_cast %413 : vector<1x2x32xf32> to vector<2x32xf32>
    %c7_i32_168 = arith.constant 7 : i32
    %415 = arith.subi %c7_i32_168, %c1_i32_165 : i32
    %416 = arith.index_cast %415 : i32 to index
    %c0_169 = arith.constant 0 : index
    %c0_170 = arith.constant 0 : index
    %417 = vector.load %arg10[%416, %c0_169, %c0_170] : memref<8x2x32xf32, #tpu.memory_space<vmem>>, vector<1x2x32xf32>
    %418 = vector.shape_cast %417 : vector<1x2x32xf32> to vector<2x32xf32>
    %419 = arith.select %21, %414, %418 : vector<2x32xi1>, vector<2x32xf32>
    %420 = arith.index_cast %c1_i32_165 : i32 to index
    %c0_171 = arith.constant 0 : index
    %c0_172 = arith.constant 0 : index
    %421 = vector.load %arg10[%420, %c0_171, %c0_172] : memref<8x2x32xf32, #tpu.memory_space<vmem>>, vector<1x2x32xf32>
    %422 = vector.shape_cast %421 : vector<1x2x32xf32> to vector<2x32xf32>
    %423 = vector.shape_cast %419 : vector<2x32xf32> to vector<1x2x32xf32>
    tpu.vector_store %arg10[%420, %c0_171, %c0_172], %423 {strides = array<i32>} : memref<8x2x32xf32, #tpu.memory_space<vmem>>, vector<1x2x32xf32>,
    %424 = arith.select %21, %418, %414 : vector<2x32xi1>, vector<2x32xf32>
    %c7_i32_173 = arith.constant 7 : i32
    %425 = arith.subi %c7_i32_173, %c1_i32_165 : i32
    %426 = arith.index_cast %425 : i32 to index
    %c0_174 = arith.constant 0 : index
    %c0_175 = arith.constant 0 : index
    %427 = vector.load %arg10[%426, %c0_174, %c0_175] : memref<8x2x32xf32, #tpu.memory_space<vmem>>, vector<1x2x32xf32>
    %428 = vector.shape_cast %427 : vector<1x2x32xf32> to vector<2x32xf32>
    %429 = vector.shape_cast %424 : vector<2x32xf32> to vector<1x2x32xf32>
    tpu.vector_store %arg10[%426, %c0_174, %c0_175], %429 {strides = array<i32>} : memref<8x2x32xf32, #tpu.memory_space<vmem>>, vector<1x2x32xf32>,
    %c2_i32_176 = arith.constant 2 : i32
    %430 = arith.index_cast %c2_i32_176 : i32 to index
    %c0_177 = arith.constant 0 : index
    %c0_178 = arith.constant 0 : index
    %431 = vector.load %arg10[%430, %c0_177, %c0_178] : memref<8x2x32xf32, #tpu.memory_space<vmem>>, vector<1x2x32xf32>
    %432 = vector.shape_cast %431 : vector<1x2x32xf32> to vector<2x32xf32>
    %c7_i32_179 = arith.constant 7 : i32
    %433 = arith.subi %c7_i32_179, %c2_i32_176 : i32
    %434 = arith.index_cast %433 : i32 to index
    %c0_180 = arith.constant 0 : index
    %c0_181 = arith.constant 0 : index
    %435 = vector.load %arg10[%434, %c0_180, %c0_181] : memref<8x2x32xf32, #tpu.memory_space<vmem>>, vector<1x2x32xf32>
    %436 = vector.shape_cast %435 : vector<1x2x32xf32> to vector<2x32xf32>
    %437 = arith.select %21, %432, %436 : vector<2x32xi1>, vector<2x32xf32>
    %438 = arith.index_cast %c2_i32_176 : i32 to index
    %c0_182 = arith.constant 0 : index
    %c0_183 = arith.constant 0 : index
    %439 = vector.load %arg10[%438, %c0_182, %c0_183] : memref<8x2x32xf32, #tpu.memory_space<vmem>>, vector<1x2x32xf32>
    %440 = vector.shape_cast %439 : vector<1x2x32xf32> to vector<2x32xf32>
    %441 = vector.shape_cast %437 : vector<2x32xf32> to vector<1x2x32xf32>
    tpu.vector_store %arg10[%438, %c0_182, %c0_183], %441 {strides = array<i32>} : memref<8x2x32xf32, #tpu.memory_space<vmem>>, vector<1x2x32xf32>,
    %442 = arith.select %21, %436, %432 : vector<2x32xi1>, vector<2x32xf32>
    %c7_i32_184 = arith.constant 7 : i32
    %443 = arith.subi %c7_i32_184, %c2_i32_176 : i32
    %444 = arith.index_cast %443 : i32 to index
    %c0_185 = arith.constant 0 : index
    %c0_186 = arith.constant 0 : index
    %445 = vector.load %arg10[%444, %c0_185, %c0_186] : memref<8x2x32xf32, #tpu.memory_space<vmem>>, vector<1x2x32xf32>
    %446 = vector.shape_cast %445 : vector<1x2x32xf32> to vector<2x32xf32>
    %447 = vector.shape_cast %442 : vector<2x32xf32> to vector<1x2x32xf32>
    tpu.vector_store %arg10[%444, %c0_185, %c0_186], %447 {strides = array<i32>} : memref<8x2x32xf32, #tpu.memory_space<vmem>>, vector<1x2x32xf32>,
    %c3_i32_187 = arith.constant 3 : i32
    %448 = arith.index_cast %c3_i32_187 : i32 to index
    %c0_188 = arith.constant 0 : index
    %c0_189 = arith.constant 0 : index
    %449 = vector.load %arg10[%448, %c0_188, %c0_189] : memref<8x2x32xf32, #tpu.memory_space<vmem>>, vector<1x2x32xf32>
    %450 = vector.shape_cast %449 : vector<1x2x32xf32> to vector<2x32xf32>
    %c7_i32_190 = arith.constant 7 : i32
    %451 = arith.subi %c7_i32_190, %c3_i32_187 : i32
    %452 = arith.index_cast %451 : i32 to index
    %c0_191 = arith.constant 0 : index
    %c0_192 = arith.constant 0 : index
    %453 = vector.load %arg10[%452, %c0_191, %c0_192] : memref<8x2x32xf32, #tpu.memory_space<vmem>>, vector<1x2x32xf32>
    %454 = vector.shape_cast %453 : vector<1x2x32xf32> to vector<2x32xf32>
    %455 = arith.select %21, %450, %454 : vector<2x32xi1>, vector<2x32xf32>
    %456 = arith.index_cast %c3_i32_187 : i32 to index
    %c0_193 = arith.constant 0 : index
    %c0_194 = arith.constant 0 : index
    %457 = vector.load %arg10[%456, %c0_193, %c0_194] : memref<8x2x32xf32, #tpu.memory_space<vmem>>, vector<1x2x32xf32>
    %458 = vector.shape_cast %457 : vector<1x2x32xf32> to vector<2x32xf32>
    %459 = vector.shape_cast %455 : vector<2x32xf32> to vector<1x2x32xf32>
    tpu.vector_store %arg10[%456, %c0_193, %c0_194], %459 {strides = array<i32>} : memref<8x2x32xf32, #tpu.memory_space<vmem>>, vector<1x2x32xf32>,
    %460 = arith.select %21, %454, %450 : vector<2x32xi1>, vector<2x32xf32>
    %c7_i32_195 = arith.constant 7 : i32
    %461 = arith.subi %c7_i32_195, %c3_i32_187 : i32
    %462 = arith.index_cast %461 : i32 to index
    %c0_196 = arith.constant 0 : index
    %c0_197 = arith.constant 0 : index
    %463 = vector.load %arg10[%462, %c0_196, %c0_197] : memref<8x2x32xf32, #tpu.memory_space<vmem>>, vector<1x2x32xf32>
    %464 = vector.shape_cast %463 : vector<1x2x32xf32> to vector<2x32xf32>
    %465 = vector.shape_cast %460 : vector<2x32xf32> to vector<1x2x32xf32>
    tpu.vector_store %arg10[%462, %c0_196, %c0_197], %465 {strides = array<i32>} : memref<8x2x32xf32, #tpu.memory_space<vmem>>, vector<1x2x32xf32>,
    %c4_i32_198 = arith.constant 4 : i32
    %c0_199 = arith.constant 0 : index
    %c0_200 = arith.constant 0 : index
    %466 = vector.load %arg4[%c0_199, %c0_200] : memref<32x128xbf16, #tpu.memory_space<vmem>>, vector<32x128xbf16>
    %c0_201 = arith.constant 0 : index
    %c0_202 = arith.constant 0 : index
    %c0_203 = arith.constant 0 : index
    %467 = vector.load %arg10[%c0_201, %c0_202, %c0_203] : memref<8x2x32xf32, #tpu.memory_space<vmem>>, vector<8x2x32xf32>
    %468 = vector.shape_cast %467 : vector<8x2x32xf32> to vector<16x32xf32>
    %469 = arith.truncf %468 : vector<16x32xf32> to vector<16x32xbf16>
    %cst_204 = arith.constant dense<0.000000e+00> : vector<16x128xf32>
    %470 = tpu.matmul %469, %466, %cst_204 {dimension_numbers = #tpu.dot_dimension_numbers<[1], [0], [0], [1], [0, 0, 1, 1], [], []>} : vector<16x32xbf16>, vector<32x128xbf16>, vector<16x128xf32> -> vector<16x128xf32>
    %c0_205 = arith.constant 0 : index
    %c0_206 = arith.constant 0 : index
    %471 = vector.load %arg6[%c0_205, %c0_206] : memref<1x128xf32, #tpu.memory_space<vmem>>, vector<1x128xf32>
    %472 = vector.broadcast %471 : vector<1x128xf32> to vector<16x128xf32>
    %473 = arith.addf %470, %472 : vector<16x128xf32>
    %474 = vector.shape_cast %473 : vector<16x128xf32> to vector<8x2x128xf32>
    %c0_207 = arith.constant 0 : index
    %c0_208 = arith.constant 0 : index
    %c0_209 = arith.constant 0 : index
    %475 = vector.load %arg12[%c0_207, %c0_208, %c0_209] : memref<8x2x128xf32, #tpu.memory_space<vmem>>, vector<8x2x128xf32>
    tpu.vector_store %arg12[%c0_207, %c0_208, %c0_209], %474 {strides = array<i32>} : memref<8x2x128xf32, #tpu.memory_space<vmem>>, vector<8x2x128xf32>,
    %c0_210 = arith.constant 0 : index
    %c0_211 = arith.constant 0 : index
    %476 = vector.load %arg5[%c0_210, %c0_211] : memref<32x128xf32, #tpu.memory_space<vmem>>, vector<32x128xf32>
    %cst_212 = arith.constant 0.000000e+00 : f32
    %477 = vector.broadcast %cst_212 : f32 to vector<2x32xf32>
    %c0_i32_213 = arith.constant 0 : i32
    %478 = arith.index_cast %c0_i32_213 : i32 to index
    %c0_214 = arith.constant 0 : index
    %c0_215 = arith.constant 0 : index
    %479 = vector.load %arg12[%478, %c0_214, %c0_215] : memref<8x2x128xf32, #tpu.memory_space<vmem>>, vector<1x2x128xf32>
    %480 = vector.shape_cast %479 : vector<1x2x128xf32> to vector<2x128xf32>
    %c7_i32_216 = arith.constant 7 : i32
    %481 = arith.subi %c7_i32_216, %c0_i32_213 : i32
    %482 = arith.index_cast %481 : i32 to index
    %c0_217 = arith.constant 0 : index
    %c0_218 = arith.constant 0 : index
    %483 = vector.load %arg12[%482, %c0_217, %c0_218] : memref<8x2x128xf32, #tpu.memory_space<vmem>>, vector<1x2x128xf32>
    %484 = vector.shape_cast %483 : vector<1x2x128xf32> to vector<2x128xf32>
    %485 = arith.select %18, %480, %484 : vector<2x128xi1>, vector<2x128xf32>
    %cst_219 = arith.constant dense<0.000000e+00> : vector<2x128xf32>
    %486 = tpu.matmul %477, %476, %cst_219 {dimension_numbers = #tpu.dot_dimension_numbers<[1], [0], [0], [1], [0, 0, 1, 1], [], []>} : vector<2x32xf32>, vector<32x128xf32>, vector<2x128xf32> -> vector<2x128xf32>
    %487 = arith.addf %485, %486 : vector<2x128xf32>
    %488 = vector.extract_strided_slice %487 {offsets = [0, 0], sizes = [2, 32], strides = [1, 1]} : vector<2x128xf32> to vector<2x32xf32>
    %cst_220 = arith.constant 0.000000e+00 : f32
    %489 = vector.broadcast %cst_220 : f32 to vector<2x32xf32>
    %490 = arith.subf %489, %488 : vector<2x32xf32>
    %491 = math.exp %490 : vector<2x32xf32>
    %cst_221 = arith.constant 1.000000e+00 : f32
    %492 = vector.broadcast %cst_221 : f32 to vector<2x32xf32>
    %493 = arith.addf %492, %491 : vector<2x32xf32>
    %cst_222 = arith.constant 1.000000e+00 : f32
    %494 = vector.broadcast %cst_222 : f32 to vector<2x32xf32>
    %495 = arith.divf %494, %493 : vector<2x32xf32>
    %496 = vector.extract_strided_slice %487 {offsets = [0, 32], sizes = [2, 32], strides = [1, 1]} : vector<2x128xf32> to vector<2x32xf32>
    %cst_223 = arith.constant 0.000000e+00 : f32
    %497 = vector.broadcast %cst_223 : f32 to vector<2x32xf32>
    %498 = arith.subf %497, %496 : vector<2x32xf32>
    %499 = math.exp %498 : vector<2x32xf32>
    %cst_224 = arith.constant 1.000000e+00 : f32
    %500 = vector.broadcast %cst_224 : f32 to vector<2x32xf32>
    %501 = arith.addf %500, %499 : vector<2x32xf32>
    %cst_225 = arith.constant 1.000000e+00 : f32
    %502 = vector.broadcast %cst_225 : f32 to vector<2x32xf32>
    %503 = arith.divf %502, %501 : vector<2x32xf32>
    %504 = vector.extract_strided_slice %487 {offsets = [0, 64], sizes = [2, 32], strides = [1, 1]} : vector<2x128xf32> to vector<2x32xf32>
    %505 = math.tanh %504 : vector<2x32xf32>
    %506 = vector.extract_strided_slice %487 {offsets = [0, 96], sizes = [2, 32], strides = [1, 1]} : vector<2x128xf32> to vector<2x32xf32>
    %cst_226 = arith.constant 0.000000e+00 : f32
    %507 = vector.broadcast %cst_226 : f32 to vector<2x32xf32>
    %508 = arith.subf %507, %506 : vector<2x32xf32>
    %509 = math.exp %508 : vector<2x32xf32>
    %cst_227 = arith.constant 1.000000e+00 : f32
    %510 = vector.broadcast %cst_227 : f32 to vector<2x32xf32>
    %511 = arith.addf %510, %509 : vector<2x32xf32>
    %cst_228 = arith.constant 1.000000e+00 : f32
    %512 = vector.broadcast %cst_228 : f32 to vector<2x32xf32>
    %513 = arith.divf %512, %511 : vector<2x32xf32>
    %514 = arith.mulf %503, %477 : vector<2x32xf32>
    %515 = arith.mulf %495, %505 : vector<2x32xf32>
    %516 = arith.addf %514, %515 : vector<2x32xf32>
    %517 = math.tanh %516 : vector<2x32xf32>
    %518 = arith.mulf %513, %517 : vector<2x32xf32>
    %519 = arith.index_cast %c0_i32_213 : i32 to index
    %c0_229 = arith.constant 0 : index
    %c0_230 = arith.constant 0 : index
    %520 = vector.load %arg11[%519, %c0_229, %c0_230] : memref<8x2x32xf32, #tpu.memory_space<vmem>>, vector<1x2x32xf32>
    %521 = vector.shape_cast %520 : vector<1x2x32xf32> to vector<2x32xf32>
    %522 = vector.shape_cast %518 : vector<2x32xf32> to vector<1x2x32xf32>
    tpu.vector_store %arg11[%519, %c0_229, %c0_230], %522 {strides = array<i32>} : memref<8x2x32xf32, #tpu.memory_space<vmem>>, vector<1x2x32xf32>,
    %c1_i32_231 = arith.constant 1 : i32
    %523 = arith.index_cast %c1_i32_231 : i32 to index
    %c0_232 = arith.constant 0 : index
    %c0_233 = arith.constant 0 : index
    %524 = vector.load %arg12[%523, %c0_232, %c0_233] : memref<8x2x128xf32, #tpu.memory_space<vmem>>, vector<1x2x128xf32>
    %525 = vector.shape_cast %524 : vector<1x2x128xf32> to vector<2x128xf32>
    %c7_i32_234 = arith.constant 7 : i32
    %526 = arith.subi %c7_i32_234, %c1_i32_231 : i32
    %527 = arith.index_cast %526 : i32 to index
    %c0_235 = arith.constant 0 : index
    %c0_236 = arith.constant 0 : index
    %528 = vector.load %arg12[%527, %c0_235, %c0_236] : memref<8x2x128xf32, #tpu.memory_space<vmem>>, vector<1x2x128xf32>
    %529 = vector.shape_cast %528 : vector<1x2x128xf32> to vector<2x128xf32>
    %530 = arith.select %18, %525, %529 : vector<2x128xi1>, vector<2x128xf32>
    %cst_237 = arith.constant dense<0.000000e+00> : vector<2x128xf32>
    %531 = tpu.matmul %518, %476, %cst_237 {dimension_numbers = #tpu.dot_dimension_numbers<[1], [0], [0], [1], [0, 0, 1, 1], [], []>} : vector<2x32xf32>, vector<32x128xf32>, vector<2x128xf32> -> vector<2x128xf32>
    %532 = arith.addf %530, %531 : vector<2x128xf32>
    %533 = vector.extract_strided_slice %532 {offsets = [0, 0], sizes = [2, 32], strides = [1, 1]} : vector<2x128xf32> to vector<2x32xf32>
    %cst_238 = arith.constant 0.000000e+00 : f32
    %534 = vector.broadcast %cst_238 : f32 to vector<2x32xf32>
    %535 = arith.subf %534, %533 : vector<2x32xf32>
    %536 = math.exp %535 : vector<2x32xf32>
    %cst_239 = arith.constant 1.000000e+00 : f32
    %537 = vector.broadcast %cst_239 : f32 to vector<2x32xf32>
    %538 = arith.addf %537, %536 : vector<2x32xf32>
    %cst_240 = arith.constant 1.000000e+00 : f32
    %539 = vector.broadcast %cst_240 : f32 to vector<2x32xf32>
    %540 = arith.divf %539, %538 : vector<2x32xf32>
    %541 = vector.extract_strided_slice %532 {offsets = [0, 32], sizes = [2, 32], strides = [1, 1]} : vector<2x128xf32> to vector<2x32xf32>
    %cst_241 = arith.constant 0.000000e+00 : f32
    %542 = vector.broadcast %cst_241 : f32 to vector<2x32xf32>
    %543 = arith.subf %542, %541 : vector<2x32xf32>
    %544 = math.exp %543 : vector<2x32xf32>
    %cst_242 = arith.constant 1.000000e+00 : f32
    %545 = vector.broadcast %cst_242 : f32 to vector<2x32xf32>
    %546 = arith.addf %545, %544 : vector<2x32xf32>
    %cst_243 = arith.constant 1.000000e+00 : f32
    %547 = vector.broadcast %cst_243 : f32 to vector<2x32xf32>
    %548 = arith.divf %547, %546 : vector<2x32xf32>
    %549 = vector.extract_strided_slice %532 {offsets = [0, 64], sizes = [2, 32], strides = [1, 1]} : vector<2x128xf32> to vector<2x32xf32>
    %550 = math.tanh %549 : vector<2x32xf32>
    %551 = vector.extract_strided_slice %532 {offsets = [0, 96], sizes = [2, 32], strides = [1, 1]} : vector<2x128xf32> to vector<2x32xf32>
    %cst_244 = arith.constant 0.000000e+00 : f32
    %552 = vector.broadcast %cst_244 : f32 to vector<2x32xf32>
    %553 = arith.subf %552, %551 : vector<2x32xf32>
    %554 = math.exp %553 : vector<2x32xf32>
    %cst_245 = arith.constant 1.000000e+00 : f32
    %555 = vector.broadcast %cst_245 : f32 to vector<2x32xf32>
    %556 = arith.addf %555, %554 : vector<2x32xf32>
    %cst_246 = arith.constant 1.000000e+00 : f32
    %557 = vector.broadcast %cst_246 : f32 to vector<2x32xf32>
    %558 = arith.divf %557, %556 : vector<2x32xf32>
    %559 = arith.mulf %548, %516 : vector<2x32xf32>
    %560 = arith.mulf %540, %550 : vector<2x32xf32>
    %561 = arith.addf %559, %560 : vector<2x32xf32>
    %562 = math.tanh %561 : vector<2x32xf32>
    %563 = arith.mulf %558, %562 : vector<2x32xf32>
    %564 = arith.index_cast %c1_i32_231 : i32 to index
    %c0_247 = arith.constant 0 : index
    %c0_248 = arith.constant 0 : index
    %565 = vector.load %arg11[%564, %c0_247, %c0_248] : memref<8x2x32xf32, #tpu.memory_space<vmem>>, vector<1x2x32xf32>
    %566 = vector.shape_cast %565 : vector<1x2x32xf32> to vector<2x32xf32>
    %567 = vector.shape_cast %563 : vector<2x32xf32> to vector<1x2x32xf32>
    tpu.vector_store %arg11[%564, %c0_247, %c0_248], %567 {strides = array<i32>} : memref<8x2x32xf32, #tpu.memory_space<vmem>>, vector<1x2x32xf32>,
    %c2_i32_249 = arith.constant 2 : i32
    %568 = arith.index_cast %c2_i32_249 : i32 to index
    %c0_250 = arith.constant 0 : index
    %c0_251 = arith.constant 0 : index
    %569 = vector.load %arg12[%568, %c0_250, %c0_251] : memref<8x2x128xf32, #tpu.memory_space<vmem>>, vector<1x2x128xf32>
    %570 = vector.shape_cast %569 : vector<1x2x128xf32> to vector<2x128xf32>
    %c7_i32_252 = arith.constant 7 : i32
    %571 = arith.subi %c7_i32_252, %c2_i32_249 : i32
    %572 = arith.index_cast %571 : i32 to index
    %c0_253 = arith.constant 0 : index
    %c0_254 = arith.constant 0 : index
    %573 = vector.load %arg12[%572, %c0_253, %c0_254] : memref<8x2x128xf32, #tpu.memory_space<vmem>>, vector<1x2x128xf32>
    %574 = vector.shape_cast %573 : vector<1x2x128xf32> to vector<2x128xf32>
    %575 = arith.select %18, %570, %574 : vector<2x128xi1>, vector<2x128xf32>
    %cst_255 = arith.constant dense<0.000000e+00> : vector<2x128xf32>
    %576 = tpu.matmul %563, %476, %cst_255 {dimension_numbers = #tpu.dot_dimension_numbers<[1], [0], [0], [1], [0, 0, 1, 1], [], []>} : vector<2x32xf32>, vector<32x128xf32>, vector<2x128xf32> -> vector<2x128xf32>
    %577 = arith.addf %575, %576 : vector<2x128xf32>
    %578 = vector.extract_strided_slice %577 {offsets = [0, 0], sizes = [2, 32], strides = [1, 1]} : vector<2x128xf32> to vector<2x32xf32>
    %cst_256 = arith.constant 0.000000e+00 : f32
    %579 = vector.broadcast %cst_256 : f32 to vector<2x32xf32>
    %580 = arith.subf %579, %578 : vector<2x32xf32>
    %581 = math.exp %580 : vector<2x32xf32>
    %cst_257 = arith.constant 1.000000e+00 : f32
    %582 = vector.broadcast %cst_257 : f32 to vector<2x32xf32>
    %583 = arith.addf %582, %581 : vector<2x32xf32>
    %cst_258 = arith.constant 1.000000e+00 : f32
    %584 = vector.broadcast %cst_258 : f32 to vector<2x32xf32>
    %585 = arith.divf %584, %583 : vector<2x32xf32>
    %586 = vector.extract_strided_slice %577 {offsets = [0, 32], sizes = [2, 32], strides = [1, 1]} : vector<2x128xf32> to vector<2x32xf32>
    %cst_259 = arith.constant 0.000000e+00 : f32
    %587 = vector.broadcast %cst_259 : f32 to vector<2x32xf32>
    %588 = arith.subf %587, %586 : vector<2x32xf32>
    %589 = math.exp %588 : vector<2x32xf32>
    %cst_260 = arith.constant 1.000000e+00 : f32
    %590 = vector.broadcast %cst_260 : f32 to vector<2x32xf32>
    %591 = arith.addf %590, %589 : vector<2x32xf32>
    %cst_261 = arith.constant 1.000000e+00 : f32
    %592 = vector.broadcast %cst_261 : f32 to vector<2x32xf32>
    %593 = arith.divf %592, %591 : vector<2x32xf32>
    %594 = vector.extract_strided_slice %577 {offsets = [0, 64], sizes = [2, 32], strides = [1, 1]} : vector<2x128xf32> to vector<2x32xf32>
    %595 = math.tanh %594 : vector<2x32xf32>
    %596 = vector.extract_strided_slice %577 {offsets = [0, 96], sizes = [2, 32], strides = [1, 1]} : vector<2x128xf32> to vector<2x32xf32>
    %cst_262 = arith.constant 0.000000e+00 : f32
    %597 = vector.broadcast %cst_262 : f32 to vector<2x32xf32>
    %598 = arith.subf %597, %596 : vector<2x32xf32>
    %599 = math.exp %598 : vector<2x32xf32>
    %cst_263 = arith.constant 1.000000e+00 : f32
    %600 = vector.broadcast %cst_263 : f32 to vector<2x32xf32>
    %601 = arith.addf %600, %599 : vector<2x32xf32>
    %cst_264 = arith.constant 1.000000e+00 : f32
    %602 = vector.broadcast %cst_264 : f32 to vector<2x32xf32>
    %603 = arith.divf %602, %601 : vector<2x32xf32>
    %604 = arith.mulf %593, %561 : vector<2x32xf32>
    %605 = arith.mulf %585, %595 : vector<2x32xf32>
    %606 = arith.addf %604, %605 : vector<2x32xf32>
    %607 = math.tanh %606 : vector<2x32xf32>
    %608 = arith.mulf %603, %607 : vector<2x32xf32>
    %609 = arith.index_cast %c2_i32_249 : i32 to index
    %c0_265 = arith.constant 0 : index
    %c0_266 = arith.constant 0 : index
    %610 = vector.load %arg11[%609, %c0_265, %c0_266] : memref<8x2x32xf32, #tpu.memory_space<vmem>>, vector<1x2x32xf32>
    %611 = vector.shape_cast %610 : vector<1x2x32xf32> to vector<2x32xf32>
    %612 = vector.shape_cast %608 : vector<2x32xf32> to vector<1x2x32xf32>
    tpu.vector_store %arg11[%609, %c0_265, %c0_266], %612 {strides = array<i32>} : memref<8x2x32xf32, #tpu.memory_space<vmem>>, vector<1x2x32xf32>,
    %c3_i32_267 = arith.constant 3 : i32
    %613 = arith.index_cast %c3_i32_267 : i32 to index
    %c0_268 = arith.constant 0 : index
    %c0_269 = arith.constant 0 : index
    %614 = vector.load %arg12[%613, %c0_268, %c0_269] : memref<8x2x128xf32, #tpu.memory_space<vmem>>, vector<1x2x128xf32>
    %615 = vector.shape_cast %614 : vector<1x2x128xf32> to vector<2x128xf32>
    %c7_i32_270 = arith.constant 7 : i32
    %616 = arith.subi %c7_i32_270, %c3_i32_267 : i32
    %617 = arith.index_cast %616 : i32 to index
    %c0_271 = arith.constant 0 : index
    %c0_272 = arith.constant 0 : index
    %618 = vector.load %arg12[%617, %c0_271, %c0_272] : memref<8x2x128xf32, #tpu.memory_space<vmem>>, vector<1x2x128xf32>
    %619 = vector.shape_cast %618 : vector<1x2x128xf32> to vector<2x128xf32>
    %620 = arith.select %18, %615, %619 : vector<2x128xi1>, vector<2x128xf32>
    %cst_273 = arith.constant dense<0.000000e+00> : vector<2x128xf32>
    %621 = tpu.matmul %608, %476, %cst_273 {dimension_numbers = #tpu.dot_dimension_numbers<[1], [0], [0], [1], [0, 0, 1, 1], [], []>} : vector<2x32xf32>, vector<32x128xf32>, vector<2x128xf32> -> vector<2x128xf32>
    %622 = arith.addf %620, %621 : vector<2x128xf32>
    %623 = vector.extract_strided_slice %622 {offsets = [0, 0], sizes = [2, 32], strides = [1, 1]} : vector<2x128xf32> to vector<2x32xf32>
    %cst_274 = arith.constant 0.000000e+00 : f32
    %624 = vector.broadcast %cst_274 : f32 to vector<2x32xf32>
    %625 = arith.subf %624, %623 : vector<2x32xf32>
    %626 = math.exp %625 : vector<2x32xf32>
    %cst_275 = arith.constant 1.000000e+00 : f32
    %627 = vector.broadcast %cst_275 : f32 to vector<2x32xf32>
    %628 = arith.addf %627, %626 : vector<2x32xf32>
    %cst_276 = arith.constant 1.000000e+00 : f32
    %629 = vector.broadcast %cst_276 : f32 to vector<2x32xf32>
    %630 = arith.divf %629, %628 : vector<2x32xf32>
    %631 = vector.extract_strided_slice %622 {offsets = [0, 32], sizes = [2, 32], strides = [1, 1]} : vector<2x128xf32> to vector<2x32xf32>
    %cst_277 = arith.constant 0.000000e+00 : f32
    %632 = vector.broadcast %cst_277 : f32 to vector<2x32xf32>
    %633 = arith.subf %632, %631 : vector<2x32xf32>
    %634 = math.exp %633 : vector<2x32xf32>
    %cst_278 = arith.constant 1.000000e+00 : f32
    %635 = vector.broadcast %cst_278 : f32 to vector<2x32xf32>
    %636 = arith.addf %635, %634 : vector<2x32xf32>
    %cst_279 = arith.constant 1.000000e+00 : f32
    %637 = vector.broadcast %cst_279 : f32 to vector<2x32xf32>
    %638 = arith.divf %637, %636 : vector<2x32xf32>
    %639 = vector.extract_strided_slice %622 {offsets = [0, 64], sizes = [2, 32], strides = [1, 1]} : vector<2x128xf32> to vector<2x32xf32>
    %640 = math.tanh %639 : vector<2x32xf32>
    %641 = vector.extract_strided_slice %622 {offsets = [0, 96], sizes = [2, 32], strides = [1, 1]} : vector<2x128xf32> to vector<2x32xf32>
    %cst_280 = arith.constant 0.000000e+00 : f32
    %642 = vector.broadcast %cst_280 : f32 to vector<2x32xf32>
    %643 = arith.subf %642, %641 : vector<2x32xf32>
    %644 = math.exp %643 : vector<2x32xf32>
    %cst_281 = arith.constant 1.000000e+00 : f32
    %645 = vector.broadcast %cst_281 : f32 to vector<2x32xf32>
    %646 = arith.addf %645, %644 : vector<2x32xf32>
    %cst_282 = arith.constant 1.000000e+00 : f32
    %647 = vector.broadcast %cst_282 : f32 to vector<2x32xf32>
    %648 = arith.divf %647, %646 : vector<2x32xf32>
    %649 = arith.mulf %638, %606 : vector<2x32xf32>
    %650 = arith.mulf %630, %640 : vector<2x32xf32>
    %651 = arith.addf %649, %650 : vector<2x32xf32>
    %652 = math.tanh %651 : vector<2x32xf32>
    %653 = arith.mulf %648, %652 : vector<2x32xf32>
    %654 = arith.index_cast %c3_i32_267 : i32 to index
    %c0_283 = arith.constant 0 : index
    %c0_284 = arith.constant 0 : index
    %655 = vector.load %arg11[%654, %c0_283, %c0_284] : memref<8x2x32xf32, #tpu.memory_space<vmem>>, vector<1x2x32xf32>
    %656 = vector.shape_cast %655 : vector<1x2x32xf32> to vector<2x32xf32>
    %657 = vector.shape_cast %653 : vector<2x32xf32> to vector<1x2x32xf32>
    tpu.vector_store %arg11[%654, %c0_283, %c0_284], %657 {strides = array<i32>} : memref<8x2x32xf32, #tpu.memory_space<vmem>>, vector<1x2x32xf32>,
    %c4_i32_285 = arith.constant 4 : i32
    %658 = arith.index_cast %c4_i32_285 : i32 to index
    %c0_286 = arith.constant 0 : index
    %c0_287 = arith.constant 0 : index
    %659 = vector.load %arg12[%658, %c0_286, %c0_287] : memref<8x2x128xf32, #tpu.memory_space<vmem>>, vector<1x2x128xf32>
    %660 = vector.shape_cast %659 : vector<1x2x128xf32> to vector<2x128xf32>
    %c7_i32_288 = arith.constant 7 : i32
    %661 = arith.subi %c7_i32_288, %c4_i32_285 : i32
    %662 = arith.index_cast %661 : i32 to index
    %c0_289 = arith.constant 0 : index
    %c0_290 = arith.constant 0 : index
    %663 = vector.load %arg12[%662, %c0_289, %c0_290] : memref<8x2x128xf32, #tpu.memory_space<vmem>>, vector<1x2x128xf32>
    %664 = vector.shape_cast %663 : vector<1x2x128xf32> to vector<2x128xf32>
    %665 = arith.select %18, %660, %664 : vector<2x128xi1>, vector<2x128xf32>
    %cst_291 = arith.constant dense<0.000000e+00> : vector<2x128xf32>
    %666 = tpu.matmul %653, %476, %cst_291 {dimension_numbers = #tpu.dot_dimension_numbers<[1], [0], [0], [1], [0, 0, 1, 1], [], []>} : vector<2x32xf32>, vector<32x128xf32>, vector<2x128xf32> -> vector<2x128xf32>
    %667 = arith.addf %665, %666 : vector<2x128xf32>
    %668 = vector.extract_strided_slice %667 {offsets = [0, 0], sizes = [2, 32], strides = [1, 1]} : vector<2x128xf32> to vector<2x32xf32>
    %cst_292 = arith.constant 0.000000e+00 : f32
    %669 = vector.broadcast %cst_292 : f32 to vector<2x32xf32>
    %670 = arith.subf %669, %668 : vector<2x32xf32>
    %671 = math.exp %670 : vector<2x32xf32>
    %cst_293 = arith.constant 1.000000e+00 : f32
    %672 = vector.broadcast %cst_293 : f32 to vector<2x32xf32>
    %673 = arith.addf %672, %671 : vector<2x32xf32>
    %cst_294 = arith.constant 1.000000e+00 : f32
    %674 = vector.broadcast %cst_294 : f32 to vector<2x32xf32>
    %675 = arith.divf %674, %673 : vector<2x32xf32>
    %676 = vector.extract_strided_slice %667 {offsets = [0, 32], sizes = [2, 32], strides = [1, 1]} : vector<2x128xf32> to vector<2x32xf32>
    %cst_295 = arith.constant 0.000000e+00 : f32
    %677 = vector.broadcast %cst_295 : f32 to vector<2x32xf32>
    %678 = arith.subf %677, %676 : vector<2x32xf32>
    %679 = math.exp %678 : vector<2x32xf32>
    %cst_296 = arith.constant 1.000000e+00 : f32
    %680 = vector.broadcast %cst_296 : f32 to vector<2x32xf32>
    %681 = arith.addf %680, %679 : vector<2x32xf32>
    %cst_297 = arith.constant 1.000000e+00 : f32
    %682 = vector.broadcast %cst_297 : f32 to vector<2x32xf32>
    %683 = arith.divf %682, %681 : vector<2x32xf32>
    %684 = vector.extract_strided_slice %667 {offsets = [0, 64], sizes = [2, 32], strides = [1, 1]} : vector<2x128xf32> to vector<2x32xf32>
    %685 = math.tanh %684 : vector<2x32xf32>
    %686 = vector.extract_strided_slice %667 {offsets = [0, 96], sizes = [2, 32], strides = [1, 1]} : vector<2x128xf32> to vector<2x32xf32>
    %cst_298 = arith.constant 0.000000e+00 : f32
    %687 = vector.broadcast %cst_298 : f32 to vector<2x32xf32>
    %688 = arith.subf %687, %686 : vector<2x32xf32>
    %689 = math.exp %688 : vector<2x32xf32>
    %cst_299 = arith.constant 1.000000e+00 : f32
    %690 = vector.broadcast %cst_299 : f32 to vector<2x32xf32>
    %691 = arith.addf %690, %689 : vector<2x32xf32>
    %cst_300 = arith.constant 1.000000e+00 : f32
    %692 = vector.broadcast %cst_300 : f32 to vector<2x32xf32>
    %693 = arith.divf %692, %691 : vector<2x32xf32>
    %694 = arith.mulf %683, %651 : vector<2x32xf32>
    %695 = arith.mulf %675, %685 : vector<2x32xf32>
    %696 = arith.addf %694, %695 : vector<2x32xf32>
    %697 = math.tanh %696 : vector<2x32xf32>
    %698 = arith.mulf %693, %697 : vector<2x32xf32>
    %699 = arith.index_cast %c4_i32_285 : i32 to index
    %c0_301 = arith.constant 0 : index
    %c0_302 = arith.constant 0 : index
    %700 = vector.load %arg11[%699, %c0_301, %c0_302] : memref<8x2x32xf32, #tpu.memory_space<vmem>>, vector<1x2x32xf32>
    %701 = vector.shape_cast %700 : vector<1x2x32xf32> to vector<2x32xf32>
    %702 = vector.shape_cast %698 : vector<2x32xf32> to vector<1x2x32xf32>
    tpu.vector_store %arg11[%699, %c0_301, %c0_302], %702 {strides = array<i32>} : memref<8x2x32xf32, #tpu.memory_space<vmem>>, vector<1x2x32xf32>,
    %c5_i32_303 = arith.constant 5 : i32
    %703 = arith.index_cast %c5_i32_303 : i32 to index
    %c0_304 = arith.constant 0 : index
    %c0_305 = arith.constant 0 : index
    %704 = vector.load %arg12[%703, %c0_304, %c0_305] : memref<8x2x128xf32, #tpu.memory_space<vmem>>, vector<1x2x128xf32>
    %705 = vector.shape_cast %704 : vector<1x2x128xf32> to vector<2x128xf32>
    %c7_i32_306 = arith.constant 7 : i32
    %706 = arith.subi %c7_i32_306, %c5_i32_303 : i32
    %707 = arith.index_cast %706 : i32 to index
    %c0_307 = arith.constant 0 : index
    %c0_308 = arith.constant 0 : index
    %708 = vector.load %arg12[%707, %c0_307, %c0_308] : memref<8x2x128xf32, #tpu.memory_space<vmem>>, vector<1x2x128xf32>
    %709 = vector.shape_cast %708 : vector<1x2x128xf32> to vector<2x128xf32>
    %710 = arith.select %18, %705, %709 : vector<2x128xi1>, vector<2x128xf32>
    %cst_309 = arith.constant dense<0.000000e+00> : vector<2x128xf32>
    %711 = tpu.matmul %698, %476, %cst_309 {dimension_numbers = #tpu.dot_dimension_numbers<[1], [0], [0], [1], [0, 0, 1, 1], [], []>} : vector<2x32xf32>, vector<32x128xf32>, vector<2x128xf32> -> vector<2x128xf32>
    %712 = arith.addf %710, %711 : vector<2x128xf32>
    %713 = vector.extract_strided_slice %712 {offsets = [0, 0], sizes = [2, 32], strides = [1, 1]} : vector<2x128xf32> to vector<2x32xf32>
    %cst_310 = arith.constant 0.000000e+00 : f32
    %714 = vector.broadcast %cst_310 : f32 to vector<2x32xf32>
    %715 = arith.subf %714, %713 : vector<2x32xf32>
    %716 = math.exp %715 : vector<2x32xf32>
    %cst_311 = arith.constant 1.000000e+00 : f32
    %717 = vector.broadcast %cst_311 : f32 to vector<2x32xf32>
    %718 = arith.addf %717, %716 : vector<2x32xf32>
    %cst_312 = arith.constant 1.000000e+00 : f32
    %719 = vector.broadcast %cst_312 : f32 to vector<2x32xf32>
    %720 = arith.divf %719, %718 : vector<2x32xf32>
    %721 = vector.extract_strided_slice %712 {offsets = [0, 32], sizes = [2, 32], strides = [1, 1]} : vector<2x128xf32> to vector<2x32xf32>
    %cst_313 = arith.constant 0.000000e+00 : f32
    %722 = vector.broadcast %cst_313 : f32 to vector<2x32xf32>
    %723 = arith.subf %722, %721 : vector<2x32xf32>
    %724 = math.exp %723 : vector<2x32xf32>
    %cst_314 = arith.constant 1.000000e+00 : f32
    %725 = vector.broadcast %cst_314 : f32 to vector<2x32xf32>
    %726 = arith.addf %725, %724 : vector<2x32xf32>
    %cst_315 = arith.constant 1.000000e+00 : f32
    %727 = vector.broadcast %cst_315 : f32 to vector<2x32xf32>
    %728 = arith.divf %727, %726 : vector<2x32xf32>
    %729 = vector.extract_strided_slice %712 {offsets = [0, 64], sizes = [2, 32], strides = [1, 1]} : vector<2x128xf32> to vector<2x32xf32>
    %730 = math.tanh %729 : vector<2x32xf32>
    %731 = vector.extract_strided_slice %712 {offsets = [0, 96], sizes = [2, 32], strides = [1, 1]} : vector<2x128xf32> to vector<2x32xf32>
    %cst_316 = arith.constant 0.000000e+00 : f32
    %732 = vector.broadcast %cst_316 : f32 to vector<2x32xf32>
    %733 = arith.subf %732, %731 : vector<2x32xf32>
    %734 = math.exp %733 : vector<2x32xf32>
    %cst_317 = arith.constant 1.000000e+00 : f32
    %735 = vector.broadcast %cst_317 : f32 to vector<2x32xf32>
    %736 = arith.addf %735, %734 : vector<2x32xf32>
    %cst_318 = arith.constant 1.000000e+00 : f32
    %737 = vector.broadcast %cst_318 : f32 to vector<2x32xf32>
    %738 = arith.divf %737, %736 : vector<2x32xf32>
    %739 = arith.mulf %728, %696 : vector<2x32xf32>
    %740 = arith.mulf %720, %730 : vector<2x32xf32>
    %741 = arith.addf %739, %740 : vector<2x32xf32>
    %742 = math.tanh %741 : vector<2x32xf32>
    %743 = arith.mulf %738, %742 : vector<2x32xf32>
    %744 = arith.index_cast %c5_i32_303 : i32 to index
    %c0_319 = arith.constant 0 : index
    %c0_320 = arith.constant 0 : index
    %745 = vector.load %arg11[%744, %c0_319, %c0_320] : memref<8x2x32xf32, #tpu.memory_space<vmem>>, vector<1x2x32xf32>
    %746 = vector.shape_cast %745 : vector<1x2x32xf32> to vector<2x32xf32>
    %747 = vector.shape_cast %743 : vector<2x32xf32> to vector<1x2x32xf32>
    tpu.vector_store %arg11[%744, %c0_319, %c0_320], %747 {strides = array<i32>} : memref<8x2x32xf32, #tpu.memory_space<vmem>>, vector<1x2x32xf32>,
    %c6_i32_321 = arith.constant 6 : i32
    %748 = arith.index_cast %c6_i32_321 : i32 to index
    %c0_322 = arith.constant 0 : index
    %c0_323 = arith.constant 0 : index
    %749 = vector.load %arg12[%748, %c0_322, %c0_323] : memref<8x2x128xf32, #tpu.memory_space<vmem>>, vector<1x2x128xf32>
    %750 = vector.shape_cast %749 : vector<1x2x128xf32> to vector<2x128xf32>
    %c7_i32_324 = arith.constant 7 : i32
    %751 = arith.subi %c7_i32_324, %c6_i32_321 : i32
    %752 = arith.index_cast %751 : i32 to index
    %c0_325 = arith.constant 0 : index
    %c0_326 = arith.constant 0 : index
    %753 = vector.load %arg12[%752, %c0_325, %c0_326] : memref<8x2x128xf32, #tpu.memory_space<vmem>>, vector<1x2x128xf32>
    %754 = vector.shape_cast %753 : vector<1x2x128xf32> to vector<2x128xf32>
    %755 = arith.select %18, %750, %754 : vector<2x128xi1>, vector<2x128xf32>
    %cst_327 = arith.constant dense<0.000000e+00> : vector<2x128xf32>
    %756 = tpu.matmul %743, %476, %cst_327 {dimension_numbers = #tpu.dot_dimension_numbers<[1], [0], [0], [1], [0, 0, 1, 1], [], []>} : vector<2x32xf32>, vector<32x128xf32>, vector<2x128xf32> -> vector<2x128xf32>
    %757 = arith.addf %755, %756 : vector<2x128xf32>
    %758 = vector.extract_strided_slice %757 {offsets = [0, 0], sizes = [2, 32], strides = [1, 1]} : vector<2x128xf32> to vector<2x32xf32>
    %cst_328 = arith.constant 0.000000e+00 : f32
    %759 = vector.broadcast %cst_328 : f32 to vector<2x32xf32>
    %760 = arith.subf %759, %758 : vector<2x32xf32>
    %761 = math.exp %760 : vector<2x32xf32>
    %cst_329 = arith.constant 1.000000e+00 : f32
    %762 = vector.broadcast %cst_329 : f32 to vector<2x32xf32>
    %763 = arith.addf %762, %761 : vector<2x32xf32>
    %cst_330 = arith.constant 1.000000e+00 : f32
    %764 = vector.broadcast %cst_330 : f32 to vector<2x32xf32>
    %765 = arith.divf %764, %763 : vector<2x32xf32>
    %766 = vector.extract_strided_slice %757 {offsets = [0, 32], sizes = [2, 32], strides = [1, 1]} : vector<2x128xf32> to vector<2x32xf32>
    %cst_331 = arith.constant 0.000000e+00 : f32
    %767 = vector.broadcast %cst_331 : f32 to vector<2x32xf32>
    %768 = arith.subf %767, %766 : vector<2x32xf32>
    %769 = math.exp %768 : vector<2x32xf32>
    %cst_332 = arith.constant 1.000000e+00 : f32
    %770 = vector.broadcast %cst_332 : f32 to vector<2x32xf32>
    %771 = arith.addf %770, %769 : vector<2x32xf32>
    %cst_333 = arith.constant 1.000000e+00 : f32
    %772 = vector.broadcast %cst_333 : f32 to vector<2x32xf32>
    %773 = arith.divf %772, %771 : vector<2x32xf32>
    %774 = vector.extract_strided_slice %757 {offsets = [0, 64], sizes = [2, 32], strides = [1, 1]} : vector<2x128xf32> to vector<2x32xf32>
    %775 = math.tanh %774 : vector<2x32xf32>
    %776 = vector.extract_strided_slice %757 {offsets = [0, 96], sizes = [2, 32], strides = [1, 1]} : vector<2x128xf32> to vector<2x32xf32>
    %cst_334 = arith.constant 0.000000e+00 : f32
    %777 = vector.broadcast %cst_334 : f32 to vector<2x32xf32>
    %778 = arith.subf %777, %776 : vector<2x32xf32>
    %779 = math.exp %778 : vector<2x32xf32>
    %cst_335 = arith.constant 1.000000e+00 : f32
    %780 = vector.broadcast %cst_335 : f32 to vector<2x32xf32>
    %781 = arith.addf %780, %779 : vector<2x32xf32>
    %cst_336 = arith.constant 1.000000e+00 : f32
    %782 = vector.broadcast %cst_336 : f32 to vector<2x32xf32>
    %783 = arith.divf %782, %781 : vector<2x32xf32>
    %784 = arith.mulf %773, %741 : vector<2x32xf32>
    %785 = arith.mulf %765, %775 : vector<2x32xf32>
    %786 = arith.addf %784, %785 : vector<2x32xf32>
    %787 = math.tanh %786 : vector<2x32xf32>
    %788 = arith.mulf %783, %787 : vector<2x32xf32>
    %789 = arith.index_cast %c6_i32_321 : i32 to index
    %c0_337 = arith.constant 0 : index
    %c0_338 = arith.constant 0 : index
    %790 = vector.load %arg11[%789, %c0_337, %c0_338] : memref<8x2x32xf32, #tpu.memory_space<vmem>>, vector<1x2x32xf32>
    %791 = vector.shape_cast %790 : vector<1x2x32xf32> to vector<2x32xf32>
    %792 = vector.shape_cast %788 : vector<2x32xf32> to vector<1x2x32xf32>
    tpu.vector_store %arg11[%789, %c0_337, %c0_338], %792 {strides = array<i32>} : memref<8x2x32xf32, #tpu.memory_space<vmem>>, vector<1x2x32xf32>,
    %c7_i32_339 = arith.constant 7 : i32
    %793 = arith.index_cast %c7_i32_339 : i32 to index
    %c0_340 = arith.constant 0 : index
    %c0_341 = arith.constant 0 : index
    %794 = vector.load %arg12[%793, %c0_340, %c0_341] : memref<8x2x128xf32, #tpu.memory_space<vmem>>, vector<1x2x128xf32>
    %795 = vector.shape_cast %794 : vector<1x2x128xf32> to vector<2x128xf32>
    %c7_i32_342 = arith.constant 7 : i32
    %796 = arith.subi %c7_i32_342, %c7_i32_339 : i32
    %797 = arith.index_cast %796 : i32 to index
    %c0_343 = arith.constant 0 : index
    %c0_344 = arith.constant 0 : index
    %798 = vector.load %arg12[%797, %c0_343, %c0_344] : memref<8x2x128xf32, #tpu.memory_space<vmem>>, vector<1x2x128xf32>
    %799 = vector.shape_cast %798 : vector<1x2x128xf32> to vector<2x128xf32>
    %800 = arith.select %18, %795, %799 : vector<2x128xi1>, vector<2x128xf32>
    %cst_345 = arith.constant dense<0.000000e+00> : vector<2x128xf32>
    %801 = tpu.matmul %788, %476, %cst_345 {dimension_numbers = #tpu.dot_dimension_numbers<[1], [0], [0], [1], [0, 0, 1, 1], [], []>} : vector<2x32xf32>, vector<32x128xf32>, vector<2x128xf32> -> vector<2x128xf32>
    %802 = arith.addf %800, %801 : vector<2x128xf32>
    %803 = vector.extract_strided_slice %802 {offsets = [0, 0], sizes = [2, 32], strides = [1, 1]} : vector<2x128xf32> to vector<2x32xf32>
    %cst_346 = arith.constant 0.000000e+00 : f32
    %804 = vector.broadcast %cst_346 : f32 to vector<2x32xf32>
    %805 = arith.subf %804, %803 : vector<2x32xf32>
    %806 = math.exp %805 : vector<2x32xf32>
    %cst_347 = arith.constant 1.000000e+00 : f32
    %807 = vector.broadcast %cst_347 : f32 to vector<2x32xf32>
    %808 = arith.addf %807, %806 : vector<2x32xf32>
    %cst_348 = arith.constant 1.000000e+00 : f32
    %809 = vector.broadcast %cst_348 : f32 to vector<2x32xf32>
    %810 = arith.divf %809, %808 : vector<2x32xf32>
    %811 = vector.extract_strided_slice %802 {offsets = [0, 32], sizes = [2, 32], strides = [1, 1]} : vector<2x128xf32> to vector<2x32xf32>
    %cst_349 = arith.constant 0.000000e+00 : f32
    %812 = vector.broadcast %cst_349 : f32 to vector<2x32xf32>
    %813 = arith.subf %812, %811 : vector<2x32xf32>
    %814 = math.exp %813 : vector<2x32xf32>
    %cst_350 = arith.constant 1.000000e+00 : f32
    %815 = vector.broadcast %cst_350 : f32 to vector<2x32xf32>
    %816 = arith.addf %815, %814 : vector<2x32xf32>
    %cst_351 = arith.constant 1.000000e+00 : f32
    %817 = vector.broadcast %cst_351 : f32 to vector<2x32xf32>
    %818 = arith.divf %817, %816 : vector<2x32xf32>
    %819 = vector.extract_strided_slice %802 {offsets = [0, 64], sizes = [2, 32], strides = [1, 1]} : vector<2x128xf32> to vector<2x32xf32>
    %820 = math.tanh %819 : vector<2x32xf32>
    %821 = vector.extract_strided_slice %802 {offsets = [0, 96], sizes = [2, 32], strides = [1, 1]} : vector<2x128xf32> to vector<2x32xf32>
    %cst_352 = arith.constant 0.000000e+00 : f32
    %822 = vector.broadcast %cst_352 : f32 to vector<2x32xf32>
    %823 = arith.subf %822, %821 : vector<2x32xf32>
    %824 = math.exp %823 : vector<2x32xf32>
    %cst_353 = arith.constant 1.000000e+00 : f32
    %825 = vector.broadcast %cst_353 : f32 to vector<2x32xf32>
    %826 = arith.addf %825, %824 : vector<2x32xf32>
    %cst_354 = arith.constant 1.000000e+00 : f32
    %827 = vector.broadcast %cst_354 : f32 to vector<2x32xf32>
    %828 = arith.divf %827, %826 : vector<2x32xf32>
    %829 = arith.mulf %818, %786 : vector<2x32xf32>
    %830 = arith.mulf %810, %820 : vector<2x32xf32>
    %831 = arith.addf %829, %830 : vector<2x32xf32>
    %832 = math.tanh %831 : vector<2x32xf32>
    %833 = arith.mulf %828, %832 : vector<2x32xf32>
    %834 = arith.index_cast %c7_i32_339 : i32 to index
    %c0_355 = arith.constant 0 : index
    %c0_356 = arith.constant 0 : index
    %835 = vector.load %arg11[%834, %c0_355, %c0_356] : memref<8x2x32xf32, #tpu.memory_space<vmem>>, vector<1x2x32xf32>
    %836 = vector.shape_cast %835 : vector<1x2x32xf32> to vector<2x32xf32>
    %837 = vector.shape_cast %833 : vector<2x32xf32> to vector<1x2x32xf32>
    tpu.vector_store %arg11[%834, %c0_355, %c0_356], %837 {strides = array<i32>} : memref<8x2x32xf32, #tpu.memory_space<vmem>>, vector<1x2x32xf32>,
    %c8_i32_357 = arith.constant 8 : i32
    %c0_i32_358 = arith.constant 0 : i32
    %838 = arith.index_cast %c0_i32_358 : i32 to index
    %c0_359 = arith.constant 0 : index
    %c0_360 = arith.constant 0 : index
    %839 = vector.load %arg11[%838, %c0_359, %c0_360] : memref<8x2x32xf32, #tpu.memory_space<vmem>>, vector<1x2x32xf32>
    %840 = vector.shape_cast %839 : vector<1x2x32xf32> to vector<2x32xf32>
    %c7_i32_361 = arith.constant 7 : i32
    %841 = arith.subi %c7_i32_361, %c0_i32_358 : i32
    %842 = arith.index_cast %841 : i32 to index
    %c0_362 = arith.constant 0 : index
    %c0_363 = arith.constant 0 : index
    %843 = vector.load %arg11[%842, %c0_362, %c0_363] : memref<8x2x32xf32, #tpu.memory_space<vmem>>, vector<1x2x32xf32>
    %844 = vector.shape_cast %843 : vector<1x2x32xf32> to vector<2x32xf32>
    %845 = arith.select %21, %840, %844 : vector<2x32xi1>, vector<2x32xf32>
    %846 = arith.index_cast %c0_i32_358 : i32 to index
    %c0_364 = arith.constant 0 : index
    %c0_365 = arith.constant 0 : index
    %847 = vector.load %arg11[%846, %c0_364, %c0_365] : memref<8x2x32xf32, #tpu.memory_space<vmem>>, vector<1x2x32xf32>
    %848 = vector.shape_cast %847 : vector<1x2x32xf32> to vector<2x32xf32>
    %849 = vector.shape_cast %845 : vector<2x32xf32> to vector<1x2x32xf32>
    tpu.vector_store %arg11[%846, %c0_364, %c0_365], %849 {strides = array<i32>} : memref<8x2x32xf32, #tpu.memory_space<vmem>>, vector<1x2x32xf32>,
    %850 = arith.select %21, %844, %840 : vector<2x32xi1>, vector<2x32xf32>
    %c7_i32_366 = arith.constant 7 : i32
    %851 = arith.subi %c7_i32_366, %c0_i32_358 : i32
    %852 = arith.index_cast %851 : i32 to index
    %c0_367 = arith.constant 0 : index
    %c0_368 = arith.constant 0 : index
    %853 = vector.load %arg11[%852, %c0_367, %c0_368] : memref<8x2x32xf32, #tpu.memory_space<vmem>>, vector<1x2x32xf32>
    %854 = vector.shape_cast %853 : vector<1x2x32xf32> to vector<2x32xf32>
    %855 = vector.shape_cast %850 : vector<2x32xf32> to vector<1x2x32xf32>
    tpu.vector_store %arg11[%852, %c0_367, %c0_368], %855 {strides = array<i32>} : memref<8x2x32xf32, #tpu.memory_space<vmem>>, vector<1x2x32xf32>,
    %c1_i32_369 = arith.constant 1 : i32
    %856 = arith.index_cast %c1_i32_369 : i32 to index
    %c0_370 = arith.constant 0 : index
    %c0_371 = arith.constant 0 : index
    %857 = vector.load %arg11[%856, %c0_370, %c0_371] : memref<8x2x32xf32, #tpu.memory_space<vmem>>, vector<1x2x32xf32>
    %858 = vector.shape_cast %857 : vector<1x2x32xf32> to vector<2x32xf32>
    %c7_i32_372 = arith.constant 7 : i32
    %859 = arith.subi %c7_i32_372, %c1_i32_369 : i32
    %860 = arith.index_cast %859 : i32 to index
    %c0_373 = arith.constant 0 : index
    %c0_374 = arith.constant 0 : index
    %861 = vector.load %arg11[%860, %c0_373, %c0_374] : memref<8x2x32xf32, #tpu.memory_space<vmem>>, vector<1x2x32xf32>
    %862 = vector.shape_cast %861 : vector<1x2x32xf32> to vector<2x32xf32>
    %863 = arith.select %21, %858, %862 : vector<2x32xi1>, vector<2x32xf32>
    %864 = arith.index_cast %c1_i32_369 : i32 to index
    %c0_375 = arith.constant 0 : index
    %c0_376 = arith.constant 0 : index
    %865 = vector.load %arg11[%864, %c0_375, %c0_376] : memref<8x2x32xf32, #tpu.memory_space<vmem>>, vector<1x2x32xf32>
    %866 = vector.shape_cast %865 : vector<1x2x32xf32> to vector<2x32xf32>
    %867 = vector.shape_cast %863 : vector<2x32xf32> to vector<1x2x32xf32>
    tpu.vector_store %arg11[%864, %c0_375, %c0_376], %867 {strides = array<i32>} : memref<8x2x32xf32, #tpu.memory_space<vmem>>, vector<1x2x32xf32>,
    %868 = arith.select %21, %862, %858 : vector<2x32xi1>, vector<2x32xf32>
    %c7_i32_377 = arith.constant 7 : i32
    %869 = arith.subi %c7_i32_377, %c1_i32_369 : i32
    %870 = arith.index_cast %869 : i32 to index
    %c0_378 = arith.constant 0 : index
    %c0_379 = arith.constant 0 : index
    %871 = vector.load %arg11[%870, %c0_378, %c0_379] : memref<8x2x32xf32, #tpu.memory_space<vmem>>, vector<1x2x32xf32>
    %872 = vector.shape_cast %871 : vector<1x2x32xf32> to vector<2x32xf32>
    %873 = vector.shape_cast %868 : vector<2x32xf32> to vector<1x2x32xf32>
    tpu.vector_store %arg11[%870, %c0_378, %c0_379], %873 {strides = array<i32>} : memref<8x2x32xf32, #tpu.memory_space<vmem>>, vector<1x2x32xf32>,
    %c2_i32_380 = arith.constant 2 : i32
    %874 = arith.index_cast %c2_i32_380 : i32 to index
    %c0_381 = arith.constant 0 : index
    %c0_382 = arith.constant 0 : index
    %875 = vector.load %arg11[%874, %c0_381, %c0_382] : memref<8x2x32xf32, #tpu.memory_space<vmem>>, vector<1x2x32xf32>
    %876 = vector.shape_cast %875 : vector<1x2x32xf32> to vector<2x32xf32>
    %c7_i32_383 = arith.constant 7 : i32
    %877 = arith.subi %c7_i32_383, %c2_i32_380 : i32
    %878 = arith.index_cast %877 : i32 to index
    %c0_384 = arith.constant 0 : index
    %c0_385 = arith.constant 0 : index
    %879 = vector.load %arg11[%878, %c0_384, %c0_385] : memref<8x2x32xf32, #tpu.memory_space<vmem>>, vector<1x2x32xf32>
    %880 = vector.shape_cast %879 : vector<1x2x32xf32> to vector<2x32xf32>
    %881 = arith.select %21, %876, %880 : vector<2x32xi1>, vector<2x32xf32>
    %882 = arith.index_cast %c2_i32_380 : i32 to index
    %c0_386 = arith.constant 0 : index
    %c0_387 = arith.constant 0 : index
    %883 = vector.load %arg11[%882, %c0_386, %c0_387] : memref<8x2x32xf32, #tpu.memory_space<vmem>>, vector<1x2x32xf32>
    %884 = vector.shape_cast %883 : vector<1x2x32xf32> to vector<2x32xf32>
    %885 = vector.shape_cast %881 : vector<2x32xf32> to vector<1x2x32xf32>
    tpu.vector_store %arg11[%882, %c0_386, %c0_387], %885 {strides = array<i32>} : memref<8x2x32xf32, #tpu.memory_space<vmem>>, vector<1x2x32xf32>,
    %886 = arith.select %21, %880, %876 : vector<2x32xi1>, vector<2x32xf32>
    %c7_i32_388 = arith.constant 7 : i32
    %887 = arith.subi %c7_i32_388, %c2_i32_380 : i32
    %888 = arith.index_cast %887 : i32 to index
    %c0_389 = arith.constant 0 : index
    %c0_390 = arith.constant 0 : index
    %889 = vector.load %arg11[%888, %c0_389, %c0_390] : memref<8x2x32xf32, #tpu.memory_space<vmem>>, vector<1x2x32xf32>
    %890 = vector.shape_cast %889 : vector<1x2x32xf32> to vector<2x32xf32>
    %891 = vector.shape_cast %886 : vector<2x32xf32> to vector<1x2x32xf32>
    tpu.vector_store %arg11[%888, %c0_389, %c0_390], %891 {strides = array<i32>} : memref<8x2x32xf32, #tpu.memory_space<vmem>>, vector<1x2x32xf32>,
    %c3_i32_391 = arith.constant 3 : i32
    %892 = arith.index_cast %c3_i32_391 : i32 to index
    %c0_392 = arith.constant 0 : index
    %c0_393 = arith.constant 0 : index
    %893 = vector.load %arg11[%892, %c0_392, %c0_393] : memref<8x2x32xf32, #tpu.memory_space<vmem>>, vector<1x2x32xf32>
    %894 = vector.shape_cast %893 : vector<1x2x32xf32> to vector<2x32xf32>
    %c7_i32_394 = arith.constant 7 : i32
    %895 = arith.subi %c7_i32_394, %c3_i32_391 : i32
    %896 = arith.index_cast %895 : i32 to index
    %c0_395 = arith.constant 0 : index
    %c0_396 = arith.constant 0 : index
    %897 = vector.load %arg11[%896, %c0_395, %c0_396] : memref<8x2x32xf32, #tpu.memory_space<vmem>>, vector<1x2x32xf32>
    %898 = vector.shape_cast %897 : vector<1x2x32xf32> to vector<2x32xf32>
    %899 = arith.select %21, %894, %898 : vector<2x32xi1>, vector<2x32xf32>
    %900 = arith.index_cast %c3_i32_391 : i32 to index
    %c0_397 = arith.constant 0 : index
    %c0_398 = arith.constant 0 : index
    %901 = vector.load %arg11[%900, %c0_397, %c0_398] : memref<8x2x32xf32, #tpu.memory_space<vmem>>, vector<1x2x32xf32>
    %902 = vector.shape_cast %901 : vector<1x2x32xf32> to vector<2x32xf32>
    %903 = vector.shape_cast %899 : vector<2x32xf32> to vector<1x2x32xf32>
    tpu.vector_store %arg11[%900, %c0_397, %c0_398], %903 {strides = array<i32>} : memref<8x2x32xf32, #tpu.memory_space<vmem>>, vector<1x2x32xf32>,
    %904 = arith.select %21, %898, %894 : vector<2x32xi1>, vector<2x32xf32>
    %c7_i32_399 = arith.constant 7 : i32
    %905 = arith.subi %c7_i32_399, %c3_i32_391 : i32
    %906 = arith.index_cast %905 : i32 to index
    %c0_400 = arith.constant 0 : index
    %c0_401 = arith.constant 0 : index
    %907 = vector.load %arg11[%906, %c0_400, %c0_401] : memref<8x2x32xf32, #tpu.memory_space<vmem>>, vector<1x2x32xf32>
    %908 = vector.shape_cast %907 : vector<1x2x32xf32> to vector<2x32xf32>
    %909 = vector.shape_cast %904 : vector<2x32xf32> to vector<1x2x32xf32>
    tpu.vector_store %arg11[%906, %c0_400, %c0_401], %909 {strides = array<i32>} : memref<8x2x32xf32, #tpu.memory_space<vmem>>, vector<1x2x32xf32>,
    %c4_i32_402 = arith.constant 4 : i32
    %c0_403 = arith.constant 0 : index
    %c0_404 = arith.constant 0 : index
    %910 = vector.load %arg7[%c0_403, %c0_404] : memref<32x128xbf16, #tpu.memory_space<vmem>>, vector<32x128xbf16>
    %c0_405 = arith.constant 0 : index
    %c0_406 = arith.constant 0 : index
    %c0_407 = arith.constant 0 : index
    %911 = vector.load %arg11[%c0_405, %c0_406, %c0_407] : memref<8x2x32xf32, #tpu.memory_space<vmem>>, vector<8x2x32xf32>
    %912 = vector.shape_cast %911 : vector<8x2x32xf32> to vector<16x32xf32>
    %913 = arith.truncf %912 : vector<16x32xf32> to vector<16x32xbf16>
    %cst_408 = arith.constant dense<0.000000e+00> : vector<16x128xf32>
    %914 = tpu.matmul %913, %910, %cst_408 {dimension_numbers = #tpu.dot_dimension_numbers<[1], [0], [0], [1], [0, 0, 1, 1], [], []>} : vector<16x32xbf16>, vector<32x128xbf16>, vector<16x128xf32> -> vector<16x128xf32>
    %c0_409 = arith.constant 0 : index
    %c0_410 = arith.constant 0 : index
    %915 = vector.load %arg9[%c0_409, %c0_410] : memref<1x128xf32, #tpu.memory_space<vmem>>, vector<1x128xf32>
    %916 = vector.broadcast %915 : vector<1x128xf32> to vector<16x128xf32>
    %917 = arith.addf %914, %916 : vector<16x128xf32>
    %918 = vector.shape_cast %917 : vector<16x128xf32> to vector<8x2x128xf32>
    %c0_411 = arith.constant 0 : index
    %c0_412 = arith.constant 0 : index
    %c0_413 = arith.constant 0 : index
    %919 = vector.load %arg12[%c0_411, %c0_412, %c0_413] : memref<8x2x128xf32, #tpu.memory_space<vmem>>, vector<8x2x128xf32>
    tpu.vector_store %arg12[%c0_411, %c0_412, %c0_413], %918 {strides = array<i32>} : memref<8x2x128xf32, #tpu.memory_space<vmem>>, vector<8x2x128xf32>,
    %c0_414 = arith.constant 0 : index
    %c0_415 = arith.constant 0 : index
    %920 = vector.load %arg8[%c0_414, %c0_415] : memref<32x128xf32, #tpu.memory_space<vmem>>, vector<32x128xf32>
    %cst_416 = arith.constant 0.000000e+00 : f32
    %921 = vector.broadcast %cst_416 : f32 to vector<2x32xf32>
    %c0_i32_417 = arith.constant 0 : i32
    %922 = arith.index_cast %c0_i32_417 : i32 to index
    %c0_418 = arith.constant 0 : index
    %c0_419 = arith.constant 0 : index
    %923 = vector.load %arg12[%922, %c0_418, %c0_419] : memref<8x2x128xf32, #tpu.memory_space<vmem>>, vector<1x2x128xf32>
    %924 = vector.shape_cast %923 : vector<1x2x128xf32> to vector<2x128xf32>
    %c7_i32_420 = arith.constant 7 : i32
    %925 = arith.subi %c7_i32_420, %c0_i32_417 : i32
    %926 = arith.index_cast %925 : i32 to index
    %c0_421 = arith.constant 0 : index
    %c0_422 = arith.constant 0 : index
    %927 = vector.load %arg12[%926, %c0_421, %c0_422] : memref<8x2x128xf32, #tpu.memory_space<vmem>>, vector<1x2x128xf32>
    %928 = vector.shape_cast %927 : vector<1x2x128xf32> to vector<2x128xf32>
    %929 = arith.select %18, %924, %928 : vector<2x128xi1>, vector<2x128xf32>
    %cst_423 = arith.constant dense<0.000000e+00> : vector<2x128xf32>
    %930 = tpu.matmul %921, %920, %cst_423 {dimension_numbers = #tpu.dot_dimension_numbers<[1], [0], [0], [1], [0, 0, 1, 1], [], []>} : vector<2x32xf32>, vector<32x128xf32>, vector<2x128xf32> -> vector<2x128xf32>
    %931 = arith.addf %929, %930 : vector<2x128xf32>
    %932 = vector.extract_strided_slice %931 {offsets = [0, 0], sizes = [2, 32], strides = [1, 1]} : vector<2x128xf32> to vector<2x32xf32>
    %cst_424 = arith.constant 0.000000e+00 : f32
    %933 = vector.broadcast %cst_424 : f32 to vector<2x32xf32>
    %934 = arith.subf %933, %932 : vector<2x32xf32>
    %935 = math.exp %934 : vector<2x32xf32>
    %cst_425 = arith.constant 1.000000e+00 : f32
    %936 = vector.broadcast %cst_425 : f32 to vector<2x32xf32>
    %937 = arith.addf %936, %935 : vector<2x32xf32>
    %cst_426 = arith.constant 1.000000e+00 : f32
    %938 = vector.broadcast %cst_426 : f32 to vector<2x32xf32>
    %939 = arith.divf %938, %937 : vector<2x32xf32>
    %940 = vector.extract_strided_slice %931 {offsets = [0, 32], sizes = [2, 32], strides = [1, 1]} : vector<2x128xf32> to vector<2x32xf32>
    %cst_427 = arith.constant 0.000000e+00 : f32
    %941 = vector.broadcast %cst_427 : f32 to vector<2x32xf32>
    %942 = arith.subf %941, %940 : vector<2x32xf32>
    %943 = math.exp %942 : vector<2x32xf32>
    %cst_428 = arith.constant 1.000000e+00 : f32
    %944 = vector.broadcast %cst_428 : f32 to vector<2x32xf32>
    %945 = arith.addf %944, %943 : vector<2x32xf32>
    %cst_429 = arith.constant 1.000000e+00 : f32
    %946 = vector.broadcast %cst_429 : f32 to vector<2x32xf32>
    %947 = arith.divf %946, %945 : vector<2x32xf32>
    %948 = vector.extract_strided_slice %931 {offsets = [0, 64], sizes = [2, 32], strides = [1, 1]} : vector<2x128xf32> to vector<2x32xf32>
    %949 = math.tanh %948 : vector<2x32xf32>
    %950 = vector.extract_strided_slice %931 {offsets = [0, 96], sizes = [2, 32], strides = [1, 1]} : vector<2x128xf32> to vector<2x32xf32>
    %cst_430 = arith.constant 0.000000e+00 : f32
    %951 = vector.broadcast %cst_430 : f32 to vector<2x32xf32>
    %952 = arith.subf %951, %950 : vector<2x32xf32>
    %953 = math.exp %952 : vector<2x32xf32>
    %cst_431 = arith.constant 1.000000e+00 : f32
    %954 = vector.broadcast %cst_431 : f32 to vector<2x32xf32>
    %955 = arith.addf %954, %953 : vector<2x32xf32>
    %cst_432 = arith.constant 1.000000e+00 : f32
    %956 = vector.broadcast %cst_432 : f32 to vector<2x32xf32>
    %957 = arith.divf %956, %955 : vector<2x32xf32>
    %958 = arith.mulf %947, %921 : vector<2x32xf32>
    %959 = arith.mulf %939, %949 : vector<2x32xf32>
    %960 = arith.addf %958, %959 : vector<2x32xf32>
    %961 = math.tanh %960 : vector<2x32xf32>
    %962 = arith.mulf %957, %961 : vector<2x32xf32>
    %963 = arith.index_cast %c0_i32_417 : i32 to index
    %c0_433 = arith.constant 0 : index
    %c0_434 = arith.constant 0 : index
    %964 = vector.load %arg10[%963, %c0_433, %c0_434] : memref<8x2x32xf32, #tpu.memory_space<vmem>>, vector<1x2x32xf32>
    %965 = vector.shape_cast %964 : vector<1x2x32xf32> to vector<2x32xf32>
    %966 = vector.shape_cast %962 : vector<2x32xf32> to vector<1x2x32xf32>
    tpu.vector_store %arg10[%963, %c0_433, %c0_434], %966 {strides = array<i32>} : memref<8x2x32xf32, #tpu.memory_space<vmem>>, vector<1x2x32xf32>,
    %c1_i32_435 = arith.constant 1 : i32
    %967 = arith.index_cast %c1_i32_435 : i32 to index
    %c0_436 = arith.constant 0 : index
    %c0_437 = arith.constant 0 : index
    %968 = vector.load %arg12[%967, %c0_436, %c0_437] : memref<8x2x128xf32, #tpu.memory_space<vmem>>, vector<1x2x128xf32>
    %969 = vector.shape_cast %968 : vector<1x2x128xf32> to vector<2x128xf32>
    %c7_i32_438 = arith.constant 7 : i32
    %970 = arith.subi %c7_i32_438, %c1_i32_435 : i32
    %971 = arith.index_cast %970 : i32 to index
    %c0_439 = arith.constant 0 : index
    %c0_440 = arith.constant 0 : index
    %972 = vector.load %arg12[%971, %c0_439, %c0_440] : memref<8x2x128xf32, #tpu.memory_space<vmem>>, vector<1x2x128xf32>
    %973 = vector.shape_cast %972 : vector<1x2x128xf32> to vector<2x128xf32>
    %974 = arith.select %18, %969, %973 : vector<2x128xi1>, vector<2x128xf32>
    %cst_441 = arith.constant dense<0.000000e+00> : vector<2x128xf32>
    %975 = tpu.matmul %962, %920, %cst_441 {dimension_numbers = #tpu.dot_dimension_numbers<[1], [0], [0], [1], [0, 0, 1, 1], [], []>} : vector<2x32xf32>, vector<32x128xf32>, vector<2x128xf32> -> vector<2x128xf32>
    %976 = arith.addf %974, %975 : vector<2x128xf32>
    %977 = vector.extract_strided_slice %976 {offsets = [0, 0], sizes = [2, 32], strides = [1, 1]} : vector<2x128xf32> to vector<2x32xf32>
    %cst_442 = arith.constant 0.000000e+00 : f32
    %978 = vector.broadcast %cst_442 : f32 to vector<2x32xf32>
    %979 = arith.subf %978, %977 : vector<2x32xf32>
    %980 = math.exp %979 : vector<2x32xf32>
    %cst_443 = arith.constant 1.000000e+00 : f32
    %981 = vector.broadcast %cst_443 : f32 to vector<2x32xf32>
    %982 = arith.addf %981, %980 : vector<2x32xf32>
    %cst_444 = arith.constant 1.000000e+00 : f32
    %983 = vector.broadcast %cst_444 : f32 to vector<2x32xf32>
    %984 = arith.divf %983, %982 : vector<2x32xf32>
    %985 = vector.extract_strided_slice %976 {offsets = [0, 32], sizes = [2, 32], strides = [1, 1]} : vector<2x128xf32> to vector<2x32xf32>
    %cst_445 = arith.constant 0.000000e+00 : f32
    %986 = vector.broadcast %cst_445 : f32 to vector<2x32xf32>
    %987 = arith.subf %986, %985 : vector<2x32xf32>
    %988 = math.exp %987 : vector<2x32xf32>
    %cst_446 = arith.constant 1.000000e+00 : f32
    %989 = vector.broadcast %cst_446 : f32 to vector<2x32xf32>
    %990 = arith.addf %989, %988 : vector<2x32xf32>
    %cst_447 = arith.constant 1.000000e+00 : f32
    %991 = vector.broadcast %cst_447 : f32 to vector<2x32xf32>
    %992 = arith.divf %991, %990 : vector<2x32xf32>
    %993 = vector.extract_strided_slice %976 {offsets = [0, 64], sizes = [2, 32], strides = [1, 1]} : vector<2x128xf32> to vector<2x32xf32>
    %994 = math.tanh %993 : vector<2x32xf32>
    %995 = vector.extract_strided_slice %976 {offsets = [0, 96], sizes = [2, 32], strides = [1, 1]} : vector<2x128xf32> to vector<2x32xf32>
    %cst_448 = arith.constant 0.000000e+00 : f32
    %996 = vector.broadcast %cst_448 : f32 to vector<2x32xf32>
    %997 = arith.subf %996, %995 : vector<2x32xf32>
    %998 = math.exp %997 : vector<2x32xf32>
    %cst_449 = arith.constant 1.000000e+00 : f32
    %999 = vector.broadcast %cst_449 : f32 to vector<2x32xf32>
    %1000 = arith.addf %999, %998 : vector<2x32xf32>
    %cst_450 = arith.constant 1.000000e+00 : f32
    %1001 = vector.broadcast %cst_450 : f32 to vector<2x32xf32>
    %1002 = arith.divf %1001, %1000 : vector<2x32xf32>
    %1003 = arith.mulf %992, %960 : vector<2x32xf32>
    %1004 = arith.mulf %984, %994 : vector<2x32xf32>
    %1005 = arith.addf %1003, %1004 : vector<2x32xf32>
    %1006 = math.tanh %1005 : vector<2x32xf32>
    %1007 = arith.mulf %1002, %1006 : vector<2x32xf32>
    %1008 = arith.index_cast %c1_i32_435 : i32 to index
    %c0_451 = arith.constant 0 : index
    %c0_452 = arith.constant 0 : index
    %1009 = vector.load %arg10[%1008, %c0_451, %c0_452] : memref<8x2x32xf32, #tpu.memory_space<vmem>>, vector<1x2x32xf32>
    %1010 = vector.shape_cast %1009 : vector<1x2x32xf32> to vector<2x32xf32>
    %1011 = vector.shape_cast %1007 : vector<2x32xf32> to vector<1x2x32xf32>
    tpu.vector_store %arg10[%1008, %c0_451, %c0_452], %1011 {strides = array<i32>} : memref<8x2x32xf32, #tpu.memory_space<vmem>>, vector<1x2x32xf32>,
    %c2_i32_453 = arith.constant 2 : i32
    %1012 = arith.index_cast %c2_i32_453 : i32 to index
    %c0_454 = arith.constant 0 : index
    %c0_455 = arith.constant 0 : index
    %1013 = vector.load %arg12[%1012, %c0_454, %c0_455] : memref<8x2x128xf32, #tpu.memory_space<vmem>>, vector<1x2x128xf32>
    %1014 = vector.shape_cast %1013 : vector<1x2x128xf32> to vector<2x128xf32>
    %c7_i32_456 = arith.constant 7 : i32
    %1015 = arith.subi %c7_i32_456, %c2_i32_453 : i32
    %1016 = arith.index_cast %1015 : i32 to index
    %c0_457 = arith.constant 0 : index
    %c0_458 = arith.constant 0 : index
    %1017 = vector.load %arg12[%1016, %c0_457, %c0_458] : memref<8x2x128xf32, #tpu.memory_space<vmem>>, vector<1x2x128xf32>
    %1018 = vector.shape_cast %1017 : vector<1x2x128xf32> to vector<2x128xf32>
    %1019 = arith.select %18, %1014, %1018 : vector<2x128xi1>, vector<2x128xf32>
    %cst_459 = arith.constant dense<0.000000e+00> : vector<2x128xf32>
    %1020 = tpu.matmul %1007, %920, %cst_459 {dimension_numbers = #tpu.dot_dimension_numbers<[1], [0], [0], [1], [0, 0, 1, 1], [], []>} : vector<2x32xf32>, vector<32x128xf32>, vector<2x128xf32> -> vector<2x128xf32>
    %1021 = arith.addf %1019, %1020 : vector<2x128xf32>
    %1022 = vector.extract_strided_slice %1021 {offsets = [0, 0], sizes = [2, 32], strides = [1, 1]} : vector<2x128xf32> to vector<2x32xf32>
    %cst_460 = arith.constant 0.000000e+00 : f32
    %1023 = vector.broadcast %cst_460 : f32 to vector<2x32xf32>
    %1024 = arith.subf %1023, %1022 : vector<2x32xf32>
    %1025 = math.exp %1024 : vector<2x32xf32>
    %cst_461 = arith.constant 1.000000e+00 : f32
    %1026 = vector.broadcast %cst_461 : f32 to vector<2x32xf32>
    %1027 = arith.addf %1026, %1025 : vector<2x32xf32>
    %cst_462 = arith.constant 1.000000e+00 : f32
    %1028 = vector.broadcast %cst_462 : f32 to vector<2x32xf32>
    %1029 = arith.divf %1028, %1027 : vector<2x32xf32>
    %1030 = vector.extract_strided_slice %1021 {offsets = [0, 32], sizes = [2, 32], strides = [1, 1]} : vector<2x128xf32> to vector<2x32xf32>
    %cst_463 = arith.constant 0.000000e+00 : f32
    %1031 = vector.broadcast %cst_463 : f32 to vector<2x32xf32>
    %1032 = arith.subf %1031, %1030 : vector<2x32xf32>
    %1033 = math.exp %1032 : vector<2x32xf32>
    %cst_464 = arith.constant 1.000000e+00 : f32
    %1034 = vector.broadcast %cst_464 : f32 to vector<2x32xf32>
    %1035 = arith.addf %1034, %1033 : vector<2x32xf32>
    %cst_465 = arith.constant 1.000000e+00 : f32
    %1036 = vector.broadcast %cst_465 : f32 to vector<2x32xf32>
    %1037 = arith.divf %1036, %1035 : vector<2x32xf32>
    %1038 = vector.extract_strided_slice %1021 {offsets = [0, 64], sizes = [2, 32], strides = [1, 1]} : vector<2x128xf32> to vector<2x32xf32>
    %1039 = math.tanh %1038 : vector<2x32xf32>
    %1040 = vector.extract_strided_slice %1021 {offsets = [0, 96], sizes = [2, 32], strides = [1, 1]} : vector<2x128xf32> to vector<2x32xf32>
    %cst_466 = arith.constant 0.000000e+00 : f32
    %1041 = vector.broadcast %cst_466 : f32 to vector<2x32xf32>
    %1042 = arith.subf %1041, %1040 : vector<2x32xf32>
    %1043 = math.exp %1042 : vector<2x32xf32>
    %cst_467 = arith.constant 1.000000e+00 : f32
    %1044 = vector.broadcast %cst_467 : f32 to vector<2x32xf32>
    %1045 = arith.addf %1044, %1043 : vector<2x32xf32>
    %cst_468 = arith.constant 1.000000e+00 : f32
    %1046 = vector.broadcast %cst_468 : f32 to vector<2x32xf32>
    %1047 = arith.divf %1046, %1045 : vector<2x32xf32>
    %1048 = arith.mulf %1037, %1005 : vector<2x32xf32>
    %1049 = arith.mulf %1029, %1039 : vector<2x32xf32>
    %1050 = arith.addf %1048, %1049 : vector<2x32xf32>
    %1051 = math.tanh %1050 : vector<2x32xf32>
    %1052 = arith.mulf %1047, %1051 : vector<2x32xf32>
    %1053 = arith.index_cast %c2_i32_453 : i32 to index
    %c0_469 = arith.constant 0 : index
    %c0_470 = arith.constant 0 : index
    %1054 = vector.load %arg10[%1053, %c0_469, %c0_470] : memref<8x2x32xf32, #tpu.memory_space<vmem>>, vector<1x2x32xf32>
    %1055 = vector.shape_cast %1054 : vector<1x2x32xf32> to vector<2x32xf32>
    %1056 = vector.shape_cast %1052 : vector<2x32xf32> to vector<1x2x32xf32>
    tpu.vector_store %arg10[%1053, %c0_469, %c0_470], %1056 {strides = array<i32>} : memref<8x2x32xf32, #tpu.memory_space<vmem>>, vector<1x2x32xf32>,
    %c3_i32_471 = arith.constant 3 : i32
    %1057 = arith.index_cast %c3_i32_471 : i32 to index
    %c0_472 = arith.constant 0 : index
    %c0_473 = arith.constant 0 : index
    %1058 = vector.load %arg12[%1057, %c0_472, %c0_473] : memref<8x2x128xf32, #tpu.memory_space<vmem>>, vector<1x2x128xf32>
    %1059 = vector.shape_cast %1058 : vector<1x2x128xf32> to vector<2x128xf32>
    %c7_i32_474 = arith.constant 7 : i32
    %1060 = arith.subi %c7_i32_474, %c3_i32_471 : i32
    %1061 = arith.index_cast %1060 : i32 to index
    %c0_475 = arith.constant 0 : index
    %c0_476 = arith.constant 0 : index
    %1062 = vector.load %arg12[%1061, %c0_475, %c0_476] : memref<8x2x128xf32, #tpu.memory_space<vmem>>, vector<1x2x128xf32>
    %1063 = vector.shape_cast %1062 : vector<1x2x128xf32> to vector<2x128xf32>
    %1064 = arith.select %18, %1059, %1063 : vector<2x128xi1>, vector<2x128xf32>
    %cst_477 = arith.constant dense<0.000000e+00> : vector<2x128xf32>
    %1065 = tpu.matmul %1052, %920, %cst_477 {dimension_numbers = #tpu.dot_dimension_numbers<[1], [0], [0], [1], [0, 0, 1, 1], [], []>} : vector<2x32xf32>, vector<32x128xf32>, vector<2x128xf32> -> vector<2x128xf32>
    %1066 = arith.addf %1064, %1065 : vector<2x128xf32>
    %1067 = vector.extract_strided_slice %1066 {offsets = [0, 0], sizes = [2, 32], strides = [1, 1]} : vector<2x128xf32> to vector<2x32xf32>
    %cst_478 = arith.constant 0.000000e+00 : f32
    %1068 = vector.broadcast %cst_478 : f32 to vector<2x32xf32>
    %1069 = arith.subf %1068, %1067 : vector<2x32xf32>
    %1070 = math.exp %1069 : vector<2x32xf32>
    %cst_479 = arith.constant 1.000000e+00 : f32
    %1071 = vector.broadcast %cst_479 : f32 to vector<2x32xf32>
    %1072 = arith.addf %1071, %1070 : vector<2x32xf32>
    %cst_480 = arith.constant 1.000000e+00 : f32
    %1073 = vector.broadcast %cst_480 : f32 to vector<2x32xf32>
    %1074 = arith.divf %1073, %1072 : vector<2x32xf32>
    %1075 = vector.extract_strided_slice %1066 {offsets = [0, 32], sizes = [2, 32], strides = [1, 1]} : vector<2x128xf32> to vector<2x32xf32>
    %cst_481 = arith.constant 0.000000e+00 : f32
    %1076 = vector.broadcast %cst_481 : f32 to vector<2x32xf32>
    %1077 = arith.subf %1076, %1075 : vector<2x32xf32>
    %1078 = math.exp %1077 : vector<2x32xf32>
    %cst_482 = arith.constant 1.000000e+00 : f32
    %1079 = vector.broadcast %cst_482 : f32 to vector<2x32xf32>
    %1080 = arith.addf %1079, %1078 : vector<2x32xf32>
    %cst_483 = arith.constant 1.000000e+00 : f32
    %1081 = vector.broadcast %cst_483 : f32 to vector<2x32xf32>
    %1082 = arith.divf %1081, %1080 : vector<2x32xf32>
    %1083 = vector.extract_strided_slice %1066 {offsets = [0, 64], sizes = [2, 32], strides = [1, 1]} : vector<2x128xf32> to vector<2x32xf32>
    %1084 = math.tanh %1083 : vector<2x32xf32>
    %1085 = vector.extract_strided_slice %1066 {offsets = [0, 96], sizes = [2, 32], strides = [1, 1]} : vector<2x128xf32> to vector<2x32xf32>
    %cst_484 = arith.constant 0.000000e+00 : f32
    %1086 = vector.broadcast %cst_484 : f32 to vector<2x32xf32>
    %1087 = arith.subf %1086, %1085 : vector<2x32xf32>
    %1088 = math.exp %1087 : vector<2x32xf32>
    %cst_485 = arith.constant 1.000000e+00 : f32
    %1089 = vector.broadcast %cst_485 : f32 to vector<2x32xf32>
    %1090 = arith.addf %1089, %1088 : vector<2x32xf32>
    %cst_486 = arith.constant 1.000000e+00 : f32
    %1091 = vector.broadcast %cst_486 : f32 to vector<2x32xf32>
    %1092 = arith.divf %1091, %1090 : vector<2x32xf32>
    %1093 = arith.mulf %1082, %1050 : vector<2x32xf32>
    %1094 = arith.mulf %1074, %1084 : vector<2x32xf32>
    %1095 = arith.addf %1093, %1094 : vector<2x32xf32>
    %1096 = math.tanh %1095 : vector<2x32xf32>
    %1097 = arith.mulf %1092, %1096 : vector<2x32xf32>
    %1098 = arith.index_cast %c3_i32_471 : i32 to index
    %c0_487 = arith.constant 0 : index
    %c0_488 = arith.constant 0 : index
    %1099 = vector.load %arg10[%1098, %c0_487, %c0_488] : memref<8x2x32xf32, #tpu.memory_space<vmem>>, vector<1x2x32xf32>
    %1100 = vector.shape_cast %1099 : vector<1x2x32xf32> to vector<2x32xf32>
    %1101 = vector.shape_cast %1097 : vector<2x32xf32> to vector<1x2x32xf32>
    tpu.vector_store %arg10[%1098, %c0_487, %c0_488], %1101 {strides = array<i32>} : memref<8x2x32xf32, #tpu.memory_space<vmem>>, vector<1x2x32xf32>,
    %c4_i32_489 = arith.constant 4 : i32
    %1102 = arith.index_cast %c4_i32_489 : i32 to index
    %c0_490 = arith.constant 0 : index
    %c0_491 = arith.constant 0 : index
    %1103 = vector.load %arg12[%1102, %c0_490, %c0_491] : memref<8x2x128xf32, #tpu.memory_space<vmem>>, vector<1x2x128xf32>
    %1104 = vector.shape_cast %1103 : vector<1x2x128xf32> to vector<2x128xf32>
    %c7_i32_492 = arith.constant 7 : i32
    %1105 = arith.subi %c7_i32_492, %c4_i32_489 : i32
    %1106 = arith.index_cast %1105 : i32 to index
    %c0_493 = arith.constant 0 : index
    %c0_494 = arith.constant 0 : index
    %1107 = vector.load %arg12[%1106, %c0_493, %c0_494] : memref<8x2x128xf32, #tpu.memory_space<vmem>>, vector<1x2x128xf32>
    %1108 = vector.shape_cast %1107 : vector<1x2x128xf32> to vector<2x128xf32>
    %1109 = arith.select %18, %1104, %1108 : vector<2x128xi1>, vector<2x128xf32>
    %cst_495 = arith.constant dense<0.000000e+00> : vector<2x128xf32>
    %1110 = tpu.matmul %1097, %920, %cst_495 {dimension_numbers = #tpu.dot_dimension_numbers<[1], [0], [0], [1], [0, 0, 1, 1], [], []>} : vector<2x32xf32>, vector<32x128xf32>, vector<2x128xf32> -> vector<2x128xf32>
    %1111 = arith.addf %1109, %1110 : vector<2x128xf32>
    %1112 = vector.extract_strided_slice %1111 {offsets = [0, 0], sizes = [2, 32], strides = [1, 1]} : vector<2x128xf32> to vector<2x32xf32>
    %cst_496 = arith.constant 0.000000e+00 : f32
    %1113 = vector.broadcast %cst_496 : f32 to vector<2x32xf32>
    %1114 = arith.subf %1113, %1112 : vector<2x32xf32>
    %1115 = math.exp %1114 : vector<2x32xf32>
    %cst_497 = arith.constant 1.000000e+00 : f32
    %1116 = vector.broadcast %cst_497 : f32 to vector<2x32xf32>
    %1117 = arith.addf %1116, %1115 : vector<2x32xf32>
    %cst_498 = arith.constant 1.000000e+00 : f32
    %1118 = vector.broadcast %cst_498 : f32 to vector<2x32xf32>
    %1119 = arith.divf %1118, %1117 : vector<2x32xf32>
    %1120 = vector.extract_strided_slice %1111 {offsets = [0, 32], sizes = [2, 32], strides = [1, 1]} : vector<2x128xf32> to vector<2x32xf32>
    %cst_499 = arith.constant 0.000000e+00 : f32
    %1121 = vector.broadcast %cst_499 : f32 to vector<2x32xf32>
    %1122 = arith.subf %1121, %1120 : vector<2x32xf32>
    %1123 = math.exp %1122 : vector<2x32xf32>
    %cst_500 = arith.constant 1.000000e+00 : f32
    %1124 = vector.broadcast %cst_500 : f32 to vector<2x32xf32>
    %1125 = arith.addf %1124, %1123 : vector<2x32xf32>
    %cst_501 = arith.constant 1.000000e+00 : f32
    %1126 = vector.broadcast %cst_501 : f32 to vector<2x32xf32>
    %1127 = arith.divf %1126, %1125 : vector<2x32xf32>
    %1128 = vector.extract_strided_slice %1111 {offsets = [0, 64], sizes = [2, 32], strides = [1, 1]} : vector<2x128xf32> to vector<2x32xf32>
    %1129 = math.tanh %1128 : vector<2x32xf32>
    %1130 = vector.extract_strided_slice %1111 {offsets = [0, 96], sizes = [2, 32], strides = [1, 1]} : vector<2x128xf32> to vector<2x32xf32>
    %cst_502 = arith.constant 0.000000e+00 : f32
    %1131 = vector.broadcast %cst_502 : f32 to vector<2x32xf32>
    %1132 = arith.subf %1131, %1130 : vector<2x32xf32>
    %1133 = math.exp %1132 : vector<2x32xf32>
    %cst_503 = arith.constant 1.000000e+00 : f32
    %1134 = vector.broadcast %cst_503 : f32 to vector<2x32xf32>
    %1135 = arith.addf %1134, %1133 : vector<2x32xf32>
    %cst_504 = arith.constant 1.000000e+00 : f32
    %1136 = vector.broadcast %cst_504 : f32 to vector<2x32xf32>
    %1137 = arith.divf %1136, %1135 : vector<2x32xf32>
    %1138 = arith.mulf %1127, %1095 : vector<2x32xf32>
    %1139 = arith.mulf %1119, %1129 : vector<2x32xf32>
    %1140 = arith.addf %1138, %1139 : vector<2x32xf32>
    %1141 = math.tanh %1140 : vector<2x32xf32>
    %1142 = arith.mulf %1137, %1141 : vector<2x32xf32>
    %1143 = arith.index_cast %c4_i32_489 : i32 to index
    %c0_505 = arith.constant 0 : index
    %c0_506 = arith.constant 0 : index
    %1144 = vector.load %arg10[%1143, %c0_505, %c0_506] : memref<8x2x32xf32, #tpu.memory_space<vmem>>, vector<1x2x32xf32>
    %1145 = vector.shape_cast %1144 : vector<1x2x32xf32> to vector<2x32xf32>
    %1146 = vector.shape_cast %1142 : vector<2x32xf32> to vector<1x2x32xf32>
    tpu.vector_store %arg10[%1143, %c0_505, %c0_506], %1146 {strides = array<i32>} : memref<8x2x32xf32, #tpu.memory_space<vmem>>, vector<1x2x32xf32>,
    %c5_i32_507 = arith.constant 5 : i32
    %1147 = arith.index_cast %c5_i32_507 : i32 to index
    %c0_508 = arith.constant 0 : index
    %c0_509 = arith.constant 0 : index
    %1148 = vector.load %arg12[%1147, %c0_508, %c0_509] : memref<8x2x128xf32, #tpu.memory_space<vmem>>, vector<1x2x128xf32>
    %1149 = vector.shape_cast %1148 : vector<1x2x128xf32> to vector<2x128xf32>
    %c7_i32_510 = arith.constant 7 : i32
    %1150 = arith.subi %c7_i32_510, %c5_i32_507 : i32
    %1151 = arith.index_cast %1150 : i32 to index
    %c0_511 = arith.constant 0 : index
    %c0_512 = arith.constant 0 : index
    %1152 = vector.load %arg12[%1151, %c0_511, %c0_512] : memref<8x2x128xf32, #tpu.memory_space<vmem>>, vector<1x2x128xf32>
    %1153 = vector.shape_cast %1152 : vector<1x2x128xf32> to vector<2x128xf32>
    %1154 = arith.select %18, %1149, %1153 : vector<2x128xi1>, vector<2x128xf32>
    %cst_513 = arith.constant dense<0.000000e+00> : vector<2x128xf32>
    %1155 = tpu.matmul %1142, %920, %cst_513 {dimension_numbers = #tpu.dot_dimension_numbers<[1], [0], [0], [1], [0, 0, 1, 1], [], []>} : vector<2x32xf32>, vector<32x128xf32>, vector<2x128xf32> -> vector<2x128xf32>
    %1156 = arith.addf %1154, %1155 : vector<2x128xf32>
    %1157 = vector.extract_strided_slice %1156 {offsets = [0, 0], sizes = [2, 32], strides = [1, 1]} : vector<2x128xf32> to vector<2x32xf32>
    %cst_514 = arith.constant 0.000000e+00 : f32
    %1158 = vector.broadcast %cst_514 : f32 to vector<2x32xf32>
    %1159 = arith.subf %1158, %1157 : vector<2x32xf32>
    %1160 = math.exp %1159 : vector<2x32xf32>
    %cst_515 = arith.constant 1.000000e+00 : f32
    %1161 = vector.broadcast %cst_515 : f32 to vector<2x32xf32>
    %1162 = arith.addf %1161, %1160 : vector<2x32xf32>
    %cst_516 = arith.constant 1.000000e+00 : f32
    %1163 = vector.broadcast %cst_516 : f32 to vector<2x32xf32>
    %1164 = arith.divf %1163, %1162 : vector<2x32xf32>
    %1165 = vector.extract_strided_slice %1156 {offsets = [0, 32], sizes = [2, 32], strides = [1, 1]} : vector<2x128xf32> to vector<2x32xf32>
    %cst_517 = arith.constant 0.000000e+00 : f32
    %1166 = vector.broadcast %cst_517 : f32 to vector<2x32xf32>
    %1167 = arith.subf %1166, %1165 : vector<2x32xf32>
    %1168 = math.exp %1167 : vector<2x32xf32>
    %cst_518 = arith.constant 1.000000e+00 : f32
    %1169 = vector.broadcast %cst_518 : f32 to vector<2x32xf32>
    %1170 = arith.addf %1169, %1168 : vector<2x32xf32>
    %cst_519 = arith.constant 1.000000e+00 : f32
    %1171 = vector.broadcast %cst_519 : f32 to vector<2x32xf32>
    %1172 = arith.divf %1171, %1170 : vector<2x32xf32>
    %1173 = vector.extract_strided_slice %1156 {offsets = [0, 64], sizes = [2, 32], strides = [1, 1]} : vector<2x128xf32> to vector<2x32xf32>
    %1174 = math.tanh %1173 : vector<2x32xf32>
    %1175 = vector.extract_strided_slice %1156 {offsets = [0, 96], sizes = [2, 32], strides = [1, 1]} : vector<2x128xf32> to vector<2x32xf32>
    %cst_520 = arith.constant 0.000000e+00 : f32
    %1176 = vector.broadcast %cst_520 : f32 to vector<2x32xf32>
    %1177 = arith.subf %1176, %1175 : vector<2x32xf32>
    %1178 = math.exp %1177 : vector<2x32xf32>
    %cst_521 = arith.constant 1.000000e+00 : f32
    %1179 = vector.broadcast %cst_521 : f32 to vector<2x32xf32>
    %1180 = arith.addf %1179, %1178 : vector<2x32xf32>
    %cst_522 = arith.constant 1.000000e+00 : f32
    %1181 = vector.broadcast %cst_522 : f32 to vector<2x32xf32>
    %1182 = arith.divf %1181, %1180 : vector<2x32xf32>
    %1183 = arith.mulf %1172, %1140 : vector<2x32xf32>
    %1184 = arith.mulf %1164, %1174 : vector<2x32xf32>
    %1185 = arith.addf %1183, %1184 : vector<2x32xf32>
    %1186 = math.tanh %1185 : vector<2x32xf32>
    %1187 = arith.mulf %1182, %1186 : vector<2x32xf32>
    %1188 = arith.index_cast %c5_i32_507 : i32 to index
    %c0_523 = arith.constant 0 : index
    %c0_524 = arith.constant 0 : index
    %1189 = vector.load %arg10[%1188, %c0_523, %c0_524] : memref<8x2x32xf32, #tpu.memory_space<vmem>>, vector<1x2x32xf32>
    %1190 = vector.shape_cast %1189 : vector<1x2x32xf32> to vector<2x32xf32>
    %1191 = vector.shape_cast %1187 : vector<2x32xf32> to vector<1x2x32xf32>
    tpu.vector_store %arg10[%1188, %c0_523, %c0_524], %1191 {strides = array<i32>} : memref<8x2x32xf32, #tpu.memory_space<vmem>>, vector<1x2x32xf32>,
    %c6_i32_525 = arith.constant 6 : i32
    %1192 = arith.index_cast %c6_i32_525 : i32 to index
    %c0_526 = arith.constant 0 : index
    %c0_527 = arith.constant 0 : index
    %1193 = vector.load %arg12[%1192, %c0_526, %c0_527] : memref<8x2x128xf32, #tpu.memory_space<vmem>>, vector<1x2x128xf32>
    %1194 = vector.shape_cast %1193 : vector<1x2x128xf32> to vector<2x128xf32>
    %c7_i32_528 = arith.constant 7 : i32
    %1195 = arith.subi %c7_i32_528, %c6_i32_525 : i32
    %1196 = arith.index_cast %1195 : i32 to index
    %c0_529 = arith.constant 0 : index
    %c0_530 = arith.constant 0 : index
    %1197 = vector.load %arg12[%1196, %c0_529, %c0_530] : memref<8x2x128xf32, #tpu.memory_space<vmem>>, vector<1x2x128xf32>
    %1198 = vector.shape_cast %1197 : vector<1x2x128xf32> to vector<2x128xf32>
    %1199 = arith.select %18, %1194, %1198 : vector<2x128xi1>, vector<2x128xf32>
    %cst_531 = arith.constant dense<0.000000e+00> : vector<2x128xf32>
    %1200 = tpu.matmul %1187, %920, %cst_531 {dimension_numbers = #tpu.dot_dimension_numbers<[1], [0], [0], [1], [0, 0, 1, 1], [], []>} : vector<2x32xf32>, vector<32x128xf32>, vector<2x128xf32> -> vector<2x128xf32>
    %1201 = arith.addf %1199, %1200 : vector<2x128xf32>
    %1202 = vector.extract_strided_slice %1201 {offsets = [0, 0], sizes = [2, 32], strides = [1, 1]} : vector<2x128xf32> to vector<2x32xf32>
    %cst_532 = arith.constant 0.000000e+00 : f32
    %1203 = vector.broadcast %cst_532 : f32 to vector<2x32xf32>
    %1204 = arith.subf %1203, %1202 : vector<2x32xf32>
    %1205 = math.exp %1204 : vector<2x32xf32>
    %cst_533 = arith.constant 1.000000e+00 : f32
    %1206 = vector.broadcast %cst_533 : f32 to vector<2x32xf32>
    %1207 = arith.addf %1206, %1205 : vector<2x32xf32>
    %cst_534 = arith.constant 1.000000e+00 : f32
    %1208 = vector.broadcast %cst_534 : f32 to vector<2x32xf32>
    %1209 = arith.divf %1208, %1207 : vector<2x32xf32>
    %1210 = vector.extract_strided_slice %1201 {offsets = [0, 32], sizes = [2, 32], strides = [1, 1]} : vector<2x128xf32> to vector<2x32xf32>
    %cst_535 = arith.constant 0.000000e+00 : f32
    %1211 = vector.broadcast %cst_535 : f32 to vector<2x32xf32>
    %1212 = arith.subf %1211, %1210 : vector<2x32xf32>
    %1213 = math.exp %1212 : vector<2x32xf32>
    %cst_536 = arith.constant 1.000000e+00 : f32
    %1214 = vector.broadcast %cst_536 : f32 to vector<2x32xf32>
    %1215 = arith.addf %1214, %1213 : vector<2x32xf32>
    %cst_537 = arith.constant 1.000000e+00 : f32
    %1216 = vector.broadcast %cst_537 : f32 to vector<2x32xf32>
    %1217 = arith.divf %1216, %1215 : vector<2x32xf32>
    %1218 = vector.extract_strided_slice %1201 {offsets = [0, 64], sizes = [2, 32], strides = [1, 1]} : vector<2x128xf32> to vector<2x32xf32>
    %1219 = math.tanh %1218 : vector<2x32xf32>
    %1220 = vector.extract_strided_slice %1201 {offsets = [0, 96], sizes = [2, 32], strides = [1, 1]} : vector<2x128xf32> to vector<2x32xf32>
    %cst_538 = arith.constant 0.000000e+00 : f32
    %1221 = vector.broadcast %cst_538 : f32 to vector<2x32xf32>
    %1222 = arith.subf %1221, %1220 : vector<2x32xf32>
    %1223 = math.exp %1222 : vector<2x32xf32>
    %cst_539 = arith.constant 1.000000e+00 : f32
    %1224 = vector.broadcast %cst_539 : f32 to vector<2x32xf32>
    %1225 = arith.addf %1224, %1223 : vector<2x32xf32>
    %cst_540 = arith.constant 1.000000e+00 : f32
    %1226 = vector.broadcast %cst_540 : f32 to vector<2x32xf32>
    %1227 = arith.divf %1226, %1225 : vector<2x32xf32>
    %1228 = arith.mulf %1217, %1185 : vector<2x32xf32>
    %1229 = arith.mulf %1209, %1219 : vector<2x32xf32>
    %1230 = arith.addf %1228, %1229 : vector<2x32xf32>
    %1231 = math.tanh %1230 : vector<2x32xf32>
    %1232 = arith.mulf %1227, %1231 : vector<2x32xf32>
    %1233 = arith.index_cast %c6_i32_525 : i32 to index
    %c0_541 = arith.constant 0 : index
    %c0_542 = arith.constant 0 : index
    %1234 = vector.load %arg10[%1233, %c0_541, %c0_542] : memref<8x2x32xf32, #tpu.memory_space<vmem>>, vector<1x2x32xf32>
    %1235 = vector.shape_cast %1234 : vector<1x2x32xf32> to vector<2x32xf32>
    %1236 = vector.shape_cast %1232 : vector<2x32xf32> to vector<1x2x32xf32>
    tpu.vector_store %arg10[%1233, %c0_541, %c0_542], %1236 {strides = array<i32>} : memref<8x2x32xf32, #tpu.memory_space<vmem>>, vector<1x2x32xf32>,
    %c7_i32_543 = arith.constant 7 : i32
    %1237 = arith.index_cast %c7_i32_543 : i32 to index
    %c0_544 = arith.constant 0 : index
    %c0_545 = arith.constant 0 : index
    %1238 = vector.load %arg12[%1237, %c0_544, %c0_545] : memref<8x2x128xf32, #tpu.memory_space<vmem>>, vector<1x2x128xf32>
    %1239 = vector.shape_cast %1238 : vector<1x2x128xf32> to vector<2x128xf32>
    %c7_i32_546 = arith.constant 7 : i32
    %1240 = arith.subi %c7_i32_546, %c7_i32_543 : i32
    %1241 = arith.index_cast %1240 : i32 to index
    %c0_547 = arith.constant 0 : index
    %c0_548 = arith.constant 0 : index
    %1242 = vector.load %arg12[%1241, %c0_547, %c0_548] : memref<8x2x128xf32, #tpu.memory_space<vmem>>, vector<1x2x128xf32>
    %1243 = vector.shape_cast %1242 : vector<1x2x128xf32> to vector<2x128xf32>
    %1244 = arith.select %18, %1239, %1243 : vector<2x128xi1>, vector<2x128xf32>
    %cst_549 = arith.constant dense<0.000000e+00> : vector<2x128xf32>
    %1245 = tpu.matmul %1232, %920, %cst_549 {dimension_numbers = #tpu.dot_dimension_numbers<[1], [0], [0], [1], [0, 0, 1, 1], [], []>} : vector<2x32xf32>, vector<32x128xf32>, vector<2x128xf32> -> vector<2x128xf32>
    %1246 = arith.addf %1244, %1245 : vector<2x128xf32>
    %1247 = vector.extract_strided_slice %1246 {offsets = [0, 0], sizes = [2, 32], strides = [1, 1]} : vector<2x128xf32> to vector<2x32xf32>
    %cst_550 = arith.constant 0.000000e+00 : f32
    %1248 = vector.broadcast %cst_550 : f32 to vector<2x32xf32>
    %1249 = arith.subf %1248, %1247 : vector<2x32xf32>
    %1250 = math.exp %1249 : vector<2x32xf32>
    %cst_551 = arith.constant 1.000000e+00 : f32
    %1251 = vector.broadcast %cst_551 : f32 to vector<2x32xf32>
    %1252 = arith.addf %1251, %1250 : vector<2x32xf32>
    %cst_552 = arith.constant 1.000000e+00 : f32
    %1253 = vector.broadcast %cst_552 : f32 to vector<2x32xf32>
    %1254 = arith.divf %1253, %1252 : vector<2x32xf32>
    %1255 = vector.extract_strided_slice %1246 {offsets = [0, 32], sizes = [2, 32], strides = [1, 1]} : vector<2x128xf32> to vector<2x32xf32>
    %cst_553 = arith.constant 0.000000e+00 : f32
    %1256 = vector.broadcast %cst_553 : f32 to vector<2x32xf32>
    %1257 = arith.subf %1256, %1255 : vector<2x32xf32>
    %1258 = math.exp %1257 : vector<2x32xf32>
    %cst_554 = arith.constant 1.000000e+00 : f32
    %1259 = vector.broadcast %cst_554 : f32 to vector<2x32xf32>
    %1260 = arith.addf %1259, %1258 : vector<2x32xf32>
    %cst_555 = arith.constant 1.000000e+00 : f32
    %1261 = vector.broadcast %cst_555 : f32 to vector<2x32xf32>
    %1262 = arith.divf %1261, %1260 : vector<2x32xf32>
    %1263 = vector.extract_strided_slice %1246 {offsets = [0, 64], sizes = [2, 32], strides = [1, 1]} : vector<2x128xf32> to vector<2x32xf32>
    %1264 = math.tanh %1263 : vector<2x32xf32>
    %1265 = vector.extract_strided_slice %1246 {offsets = [0, 96], sizes = [2, 32], strides = [1, 1]} : vector<2x128xf32> to vector<2x32xf32>
    %cst_556 = arith.constant 0.000000e+00 : f32
    %1266 = vector.broadcast %cst_556 : f32 to vector<2x32xf32>
    %1267 = arith.subf %1266, %1265 : vector<2x32xf32>
    %1268 = math.exp %1267 : vector<2x32xf32>
    %cst_557 = arith.constant 1.000000e+00 : f32
    %1269 = vector.broadcast %cst_557 : f32 to vector<2x32xf32>
    %1270 = arith.addf %1269, %1268 : vector<2x32xf32>
    %cst_558 = arith.constant 1.000000e+00 : f32
    %1271 = vector.broadcast %cst_558 : f32 to vector<2x32xf32>
    %1272 = arith.divf %1271, %1270 : vector<2x32xf32>
    %1273 = arith.mulf %1262, %1230 : vector<2x32xf32>
    %1274 = arith.mulf %1254, %1264 : vector<2x32xf32>
    %1275 = arith.addf %1273, %1274 : vector<2x32xf32>
    %1276 = math.tanh %1275 : vector<2x32xf32>
    %1277 = arith.mulf %1272, %1276 : vector<2x32xf32>
    %1278 = arith.index_cast %c7_i32_543 : i32 to index
    %c0_559 = arith.constant 0 : index
    %c0_560 = arith.constant 0 : index
    %1279 = vector.load %arg10[%1278, %c0_559, %c0_560] : memref<8x2x32xf32, #tpu.memory_space<vmem>>, vector<1x2x32xf32>
    %1280 = vector.shape_cast %1279 : vector<1x2x32xf32> to vector<2x32xf32>
    %1281 = vector.shape_cast %1277 : vector<2x32xf32> to vector<1x2x32xf32>
    tpu.vector_store %arg10[%1278, %c0_559, %c0_560], %1281 {strides = array<i32>} : memref<8x2x32xf32, #tpu.memory_space<vmem>>, vector<1x2x32xf32>,
    %c8_i32_561 = arith.constant 8 : i32
    %c0_i32_562 = arith.constant 0 : i32
    %1282 = arith.index_cast %c0_i32_562 : i32 to index
    %c0_563 = arith.constant 0 : index
    %c0_564 = arith.constant 0 : index
    %1283 = vector.load %arg10[%1282, %c0_563, %c0_564] : memref<8x2x32xf32, #tpu.memory_space<vmem>>, vector<1x2x32xf32>
    %1284 = vector.shape_cast %1283 : vector<1x2x32xf32> to vector<2x32xf32>
    %c7_i32_565 = arith.constant 7 : i32
    %1285 = arith.subi %c7_i32_565, %c0_i32_562 : i32
    %1286 = arith.index_cast %1285 : i32 to index
    %c0_566 = arith.constant 0 : index
    %c0_567 = arith.constant 0 : index
    %1287 = vector.load %arg10[%1286, %c0_566, %c0_567] : memref<8x2x32xf32, #tpu.memory_space<vmem>>, vector<1x2x32xf32>
    %1288 = vector.shape_cast %1287 : vector<1x2x32xf32> to vector<2x32xf32>
    %1289 = arith.select %21, %1284, %1288 : vector<2x32xi1>, vector<2x32xf32>
    %1290 = arith.index_cast %c0_i32_562 : i32 to index
    %c0_568 = arith.constant 0 : index
    %c0_569 = arith.constant 0 : index
    %1291 = vector.load %arg10[%1290, %c0_568, %c0_569] : memref<8x2x32xf32, #tpu.memory_space<vmem>>, vector<1x2x32xf32>
    %1292 = vector.shape_cast %1291 : vector<1x2x32xf32> to vector<2x32xf32>
    %1293 = vector.shape_cast %1289 : vector<2x32xf32> to vector<1x2x32xf32>
    tpu.vector_store %arg10[%1290, %c0_568, %c0_569], %1293 {strides = array<i32>} : memref<8x2x32xf32, #tpu.memory_space<vmem>>, vector<1x2x32xf32>,
    %1294 = arith.select %21, %1288, %1284 : vector<2x32xi1>, vector<2x32xf32>
    %c7_i32_570 = arith.constant 7 : i32
    %1295 = arith.subi %c7_i32_570, %c0_i32_562 : i32
    %1296 = arith.index_cast %1295 : i32 to index
    %c0_571 = arith.constant 0 : index
    %c0_572 = arith.constant 0 : index
    %1297 = vector.load %arg10[%1296, %c0_571, %c0_572] : memref<8x2x32xf32, #tpu.memory_space<vmem>>, vector<1x2x32xf32>
    %1298 = vector.shape_cast %1297 : vector<1x2x32xf32> to vector<2x32xf32>
    %1299 = vector.shape_cast %1294 : vector<2x32xf32> to vector<1x2x32xf32>
    tpu.vector_store %arg10[%1296, %c0_571, %c0_572], %1299 {strides = array<i32>} : memref<8x2x32xf32, #tpu.memory_space<vmem>>, vector<1x2x32xf32>,
    %c1_i32_573 = arith.constant 1 : i32
    %1300 = arith.index_cast %c1_i32_573 : i32 to index
    %c0_574 = arith.constant 0 : index
    %c0_575 = arith.constant 0 : index
    %1301 = vector.load %arg10[%1300, %c0_574, %c0_575] : memref<8x2x32xf32, #tpu.memory_space<vmem>>, vector<1x2x32xf32>
    %1302 = vector.shape_cast %1301 : vector<1x2x32xf32> to vector<2x32xf32>
    %c7_i32_576 = arith.constant 7 : i32
    %1303 = arith.subi %c7_i32_576, %c1_i32_573 : i32
    %1304 = arith.index_cast %1303 : i32 to index
    %c0_577 = arith.constant 0 : index
    %c0_578 = arith.constant 0 : index
    %1305 = vector.load %arg10[%1304, %c0_577, %c0_578] : memref<8x2x32xf32, #tpu.memory_space<vmem>>, vector<1x2x32xf32>
    %1306 = vector.shape_cast %1305 : vector<1x2x32xf32> to vector<2x32xf32>
    %1307 = arith.select %21, %1302, %1306 : vector<2x32xi1>, vector<2x32xf32>
    %1308 = arith.index_cast %c1_i32_573 : i32 to index
    %c0_579 = arith.constant 0 : index
    %c0_580 = arith.constant 0 : index
    %1309 = vector.load %arg10[%1308, %c0_579, %c0_580] : memref<8x2x32xf32, #tpu.memory_space<vmem>>, vector<1x2x32xf32>
    %1310 = vector.shape_cast %1309 : vector<1x2x32xf32> to vector<2x32xf32>
    %1311 = vector.shape_cast %1307 : vector<2x32xf32> to vector<1x2x32xf32>
    tpu.vector_store %arg10[%1308, %c0_579, %c0_580], %1311 {strides = array<i32>} : memref<8x2x32xf32, #tpu.memory_space<vmem>>, vector<1x2x32xf32>,
    %1312 = arith.select %21, %1306, %1302 : vector<2x32xi1>, vector<2x32xf32>
    %c7_i32_581 = arith.constant 7 : i32
    %1313 = arith.subi %c7_i32_581, %c1_i32_573 : i32
    %1314 = arith.index_cast %1313 : i32 to index
    %c0_582 = arith.constant 0 : index
    %c0_583 = arith.constant 0 : index
    %1315 = vector.load %arg10[%1314, %c0_582, %c0_583] : memref<8x2x32xf32, #tpu.memory_space<vmem>>, vector<1x2x32xf32>
    %1316 = vector.shape_cast %1315 : vector<1x2x32xf32> to vector<2x32xf32>
    %1317 = vector.shape_cast %1312 : vector<2x32xf32> to vector<1x2x32xf32>
    tpu.vector_store %arg10[%1314, %c0_582, %c0_583], %1317 {strides = array<i32>} : memref<8x2x32xf32, #tpu.memory_space<vmem>>, vector<1x2x32xf32>,
    %c2_i32_584 = arith.constant 2 : i32
    %1318 = arith.index_cast %c2_i32_584 : i32 to index
    %c0_585 = arith.constant 0 : index
    %c0_586 = arith.constant 0 : index
    %1319 = vector.load %arg10[%1318, %c0_585, %c0_586] : memref<8x2x32xf32, #tpu.memory_space<vmem>>, vector<1x2x32xf32>
    %1320 = vector.shape_cast %1319 : vector<1x2x32xf32> to vector<2x32xf32>
    %c7_i32_587 = arith.constant 7 : i32
    %1321 = arith.subi %c7_i32_587, %c2_i32_584 : i32
    %1322 = arith.index_cast %1321 : i32 to index
    %c0_588 = arith.constant 0 : index
    %c0_589 = arith.constant 0 : index
    %1323 = vector.load %arg10[%1322, %c0_588, %c0_589] : memref<8x2x32xf32, #tpu.memory_space<vmem>>, vector<1x2x32xf32>
    %1324 = vector.shape_cast %1323 : vector<1x2x32xf32> to vector<2x32xf32>
    %1325 = arith.select %21, %1320, %1324 : vector<2x32xi1>, vector<2x32xf32>
    %1326 = arith.index_cast %c2_i32_584 : i32 to index
    %c0_590 = arith.constant 0 : index
    %c0_591 = arith.constant 0 : index
    %1327 = vector.load %arg10[%1326, %c0_590, %c0_591] : memref<8x2x32xf32, #tpu.memory_space<vmem>>, vector<1x2x32xf32>
    %1328 = vector.shape_cast %1327 : vector<1x2x32xf32> to vector<2x32xf32>
    %1329 = vector.shape_cast %1325 : vector<2x32xf32> to vector<1x2x32xf32>
    tpu.vector_store %arg10[%1326, %c0_590, %c0_591], %1329 {strides = array<i32>} : memref<8x2x32xf32, #tpu.memory_space<vmem>>, vector<1x2x32xf32>,
    %1330 = arith.select %21, %1324, %1320 : vector<2x32xi1>, vector<2x32xf32>
    %c7_i32_592 = arith.constant 7 : i32
    %1331 = arith.subi %c7_i32_592, %c2_i32_584 : i32
    %1332 = arith.index_cast %1331 : i32 to index
    %c0_593 = arith.constant 0 : index
    %c0_594 = arith.constant 0 : index
    %1333 = vector.load %arg10[%1332, %c0_593, %c0_594] : memref<8x2x32xf32, #tpu.memory_space<vmem>>, vector<1x2x32xf32>
    %1334 = vector.shape_cast %1333 : vector<1x2x32xf32> to vector<2x32xf32>
    %1335 = vector.shape_cast %1330 : vector<2x32xf32> to vector<1x2x32xf32>
    tpu.vector_store %arg10[%1332, %c0_593, %c0_594], %1335 {strides = array<i32>} : memref<8x2x32xf32, #tpu.memory_space<vmem>>, vector<1x2x32xf32>,
    %c3_i32_595 = arith.constant 3 : i32
    %1336 = arith.index_cast %c3_i32_595 : i32 to index
    %c0_596 = arith.constant 0 : index
    %c0_597 = arith.constant 0 : index
    %1337 = vector.load %arg10[%1336, %c0_596, %c0_597] : memref<8x2x32xf32, #tpu.memory_space<vmem>>, vector<1x2x32xf32>
    %1338 = vector.shape_cast %1337 : vector<1x2x32xf32> to vector<2x32xf32>
    %c7_i32_598 = arith.constant 7 : i32
    %1339 = arith.subi %c7_i32_598, %c3_i32_595 : i32
    %1340 = arith.index_cast %1339 : i32 to index
    %c0_599 = arith.constant 0 : index
    %c0_600 = arith.constant 0 : index
    %1341 = vector.load %arg10[%1340, %c0_599, %c0_600] : memref<8x2x32xf32, #tpu.memory_space<vmem>>, vector<1x2x32xf32>
    %1342 = vector.shape_cast %1341 : vector<1x2x32xf32> to vector<2x32xf32>
    %1343 = arith.select %21, %1338, %1342 : vector<2x32xi1>, vector<2x32xf32>
    %1344 = arith.index_cast %c3_i32_595 : i32 to index
    %c0_601 = arith.constant 0 : index
    %c0_602 = arith.constant 0 : index
    %1345 = vector.load %arg10[%1344, %c0_601, %c0_602] : memref<8x2x32xf32, #tpu.memory_space<vmem>>, vector<1x2x32xf32>
    %1346 = vector.shape_cast %1345 : vector<1x2x32xf32> to vector<2x32xf32>
    %1347 = vector.shape_cast %1343 : vector<2x32xf32> to vector<1x2x32xf32>
    tpu.vector_store %arg10[%1344, %c0_601, %c0_602], %1347 {strides = array<i32>} : memref<8x2x32xf32, #tpu.memory_space<vmem>>, vector<1x2x32xf32>,
    %1348 = arith.select %21, %1342, %1338 : vector<2x32xi1>, vector<2x32xf32>
    %c7_i32_603 = arith.constant 7 : i32
    %1349 = arith.subi %c7_i32_603, %c3_i32_595 : i32
    %1350 = arith.index_cast %1349 : i32 to index
    %c0_604 = arith.constant 0 : index
    %c0_605 = arith.constant 0 : index
    %1351 = vector.load %arg10[%1350, %c0_604, %c0_605] : memref<8x2x32xf32, #tpu.memory_space<vmem>>, vector<1x2x32xf32>
    %1352 = vector.shape_cast %1351 : vector<1x2x32xf32> to vector<2x32xf32>
    %1353 = vector.shape_cast %1348 : vector<2x32xf32> to vector<1x2x32xf32>
    tpu.vector_store %arg10[%1350, %c0_604, %c0_605], %1353 {strides = array<i32>} : memref<8x2x32xf32, #tpu.memory_space<vmem>>, vector<1x2x32xf32>,
    %c4_i32_606 = arith.constant 4 : i32
    return
  }
}

</mosaic_0001>

<bundles_post_ra>
// kernel: trfm_seq2seq_forward.2
= control target key start
LH: loop header
LB: loop body
LE: loop exit
PB: predicated region body
PF: predicated region fallthrough
CT: control target
= control target key end

     0   :  { %15 = vsyncpa [#allocation5], 0  ;;  %s3233_s0 = inlined_call_operand.vmem [shape: f32[8,2,16], index: 0, kind: input, shape index: {}]   ;;  %s3234_s1 = inlined_call_operand.hbm [shape: bf16[16,128], index: 1, kind: input, shape index: {}]   ;;  %s3235_s2 = inlined_call_operand.vmem [shape: f32[32,128], index: 2, kind: input, shape index: {}]   ;;  %s3236_s3 = inlined_call_operand.vmem [shape: f32[1,128], index: 3, kind: input, shape index: {}]   ;;  %s3237_s4 = inlined_call_operand.hbm [shape: bf16[32,128], index: 4, kind: input, shape index: {}]   ;;  %s3238_s5 = inlined_call_operand.hbm [shape: f32[32,128], index: 5, kind: input, shape index: {}]   ;;  %s3239_s6 = inlined_call_operand.hbm [shape: f32[1,128], index: 6, kind: input, shape index: {}]   ;;  %s3240_s7 = inlined_call_operand.hbm [shape: bf16[32,128], index: 7, kind: input, shape index: {}]   ;;  %s3241_s8 = inlined_call_operand.hbm [shape: f32[32,128], index: 8, kind: input, shape index: {}]   ;;  %s3242_s9 = inlined_call_operand.hbm [shape: f32[1,128], index: 9, kind: input, shape index: {}]   ;;  %s3243_s10 = inlined_call_operand.vmem [shape: f32[8,2,32], index: 10, kind: output, shape index: {}]  }
   0x1   :  { %16 = vsyncpa [#allocation7], 0 }
   0x2   :  { %17 = vsyncpa [#allocation10], 0 }
   0x3   :  { %18 = vsyncpa [#allocation13], 0  ;;  %s42_s15 = sshll.u32 %s3237_s4, 4  ;;  %s2654_s16 = smov [#allocation6]   ;;  %s43_s15 = int_to_ptr.hbm [resolvable:$true] %s42_s15 }
   0x4   :  { %s44_s17 = sshll.u32 %s2654_s16, 4  ;;  %s69_s20 = sshll.u32 %s3239_s6, 4  ;;  %s45_s17 = int_to_ptr.vmem [resolvable:$true] %s44_s17  ;;  %s70_s20 = int_to_ptr.hbm [resolvable:$true] %s69_s20 }
   0x5   :  { %s2655_s21 = smov 64   ;;  %s2656_s22 = smov 4  }
   0x6   :  { %50 = dma.hbm_to_vmem [thread:$0]  %s43_s15, 256, %s45_s17, [#allocation7], %s2655_s21, %s2655_s21, %s2656_s22  }
   0x7   :  { %s2657_s23 = smov [#allocation9]   ;;  %s92_s26 = sshll.u32 %s3241_s8, 4  ;;  %s93_s26 = int_to_ptr.hbm [resolvable:$true] %s92_s26 }
   0x8   :  { %s71_s24 = sshll.u32 %s2657_s23, 4  ;;  %s2658_s27 = smov [#allocation12]   ;;  %s72_s24 = int_to_ptr.vmem [resolvable:$true] %s71_s24 }
   0x9   :  { %74 = dma.hbm_to_vmem [thread:$0]  %s70_s20, 16, %s72_s24, [#allocation10]  }
   0xa   :  { %s94_s28 = sshll.u32 %s2658_s27, 4  ;;  %s25_s30 = sshll.u32 %s3234_s1, 4  ;;  %s95_s28 = int_to_ptr.vmem [resolvable:$true] %s94_s28  ;;  %s26_s30 = int_to_ptr.hbm [resolvable:$true] %s25_s30 }
   0xb   :  { %s2659_s11 = smov 128   ;;  %s2660_s12 = smov 8  }
   0xc   :  { %100 = dma.hbm_to_vmem [thread:$0]  %s93_s26, 512, %s95_s28, [#allocation13], %s2659_s11, %s2659_s11, %s2660_s12  }
   0xd   :  { %s2661_s13 = smov [#allocation4]   ;;  %s55_s17 = sshll.u32 %s3238_s5, 4  ;;  %s56_s17 = int_to_ptr.hbm [resolvable:$true] %s55_s17 }
   0xe   :  { %s27_s14 = sshll.u32 %s2661_s13, 4  ;;  %s79_s1 = sshll.u32 %s3240_s7, 4  ;;  %s28_s14 = int_to_ptr.vmem [resolvable:$true] %s27_s14  ;;  %s80_s1 = int_to_ptr.hbm [resolvable:$true] %s79_s1 }
   0xf   :  { %33 = dma.hbm_to_vmem [thread:$0]  %s26_s30, 128, %s28_s14, [#allocation5], %s2655_s21, %s2655_s21, %s2656_s22  }
  0x10   :  { %s2662_s19 = smov [#allocation8]   ;;  %s2663_s23 = smov [#allocation11]  }
  0x11   :  { %s57_s20 = sshll.u32 %s2662_s19, 4  ;;  %s81_s24 = sshll.u32 %s2663_s23, 4  ;;  %s58_s20 = int_to_ptr.vmem [resolvable:$true] %s57_s20  ;;  %s82_s24 = int_to_ptr.vmem [resolvable:$true] %s81_s24 }
  0x12   :  { %63 = dma.hbm_to_vmem [thread:$0]  %s56_s17, 512, %s58_s20, [#allocation7], %s2659_s11, %s2659_s11, %s2660_s12  }
  0x13   :  { %s106_s5 = sshll.u32 %s3242_s9, 4  ;;  %s2664_s26 = smov [#allocation14]   ;;  %s107_s5 = int_to_ptr.hbm [resolvable:$true] %s106_s5 }
  0x14   :  { %87 = dma.hbm_to_vmem [thread:$0]  %s80_s1, 256, %s82_s24, [#allocation10], %s2655_s21, %s2655_s21, %s2656_s22  }
  0x15   :  { %s108_s27 = sshll.u32 %s2664_s26, 4  ;;  %s109_s27 = int_to_ptr.vmem [resolvable:$true] %s108_s27 }
  0x16   :  { %111 = dma.hbm_to_vmem [thread:$0]  %s107_s5, 16, %s109_s27, [#allocation13]  }
  0x17   :  { %2646 = dma.done.wait [#allocation5], 128  }
  0x18   :  { %2647 = vsyncadd [#allocation5], 4294967168 }
  0x19   :  { %2648 = dma.done.wait [#allocation7], 768  }
  0x1a   :  { %2649 = vsyncadd [#allocation7], 4294966528 }
  0x1b   :  { %2650 = dma.done.wait [#allocation10], 272  }
  0x1c   :  { %2651 = vsyncadd [#allocation10], 4294967024 }
  0x1d   :  { %2652 = dma.done.wait [#allocation13], 528  }
  0x1e   :  { %2653 = vsyncadd [#allocation13], 4294966768  ;;  %v2265_v0 = vld [vmem:[#allocation4] sm:$0xff]  ;;  %v159_v1 = vld [vmem:[%s3233_s0] sm:$0x3]  ;;  %v2665_v13 = vmov 0.0   ;;  %v141_v25 = vlaneseq }
  0x1f   :  { %v160_v2 = vld [vmem:[%s3233_s0 + $0x2] sm:$0x3]  ;;  %216 = vmatpush.bf16.msra.mxu0 %v2265_v0  ;;  %v161_v3 = vld [vmem:[%s3233_s0 + $0x4] sm:$0x3]  ;;  %v162_v4 = vld [vmem:[%s3233_s0 + $0x6] sm:$0x3] }
  0x20   :  { %v163_v5 = vld [vmem:[%s3233_s0 + $0x8] sm:$0x3]  ;;  %175 = vst [vmem:[#allocation1] ss:$4 sm:$0xff] %v159_v1  ;;  %v248_v6 = vld [vmem:[%s3235_s2 + $0x18] sm:$0xff]  ;;  %v247_v7 = vld [vmem:[%s3235_s2 + $0x10] sm:$0xff] }
  0x21   :  { %v164_v8 = vld [vmem:[%s3233_s0 + $0xa] sm:$0x3]  ;;  %177 = vst [vmem:[#allocation1 + $0x1] ss:$4 sm:$0xff] %v160_v2  ;;  %269 = vmatpush.msra.mxu1 %v248_v6  ;;  %340 = vmatpush.msra.mxu2 %v248_v6  ;;  %v165_v10 = vld [vmem:[%s3233_s0 + $0xc] sm:$0x3] }
  0x22   :  { %179 = vst [vmem:[#allocation1 + $0x2] ss:$4 sm:$0xff] %v161_v3  ;;  %v246_v9 = vld [vmem:[%s3235_s2 + $0x8] sm:$0xff]  ;;  %411 = vmatpush.msra.mxu3 %v248_v6  ;;  %v245_v12 = vld [vmem:[%s3235_s2] sm:$0xff]  ;;  %vm205_vm0 = vcmask 130048   ;;  %v2792_v29 = vand.u32 127, %v141_v25 }
  0x23   :  { %689 = vmatpush.msrb.mxu0 %v248_v6  ;;  %181 = vst [vmem:[#allocation1 + $0x3] ss:$4 sm:$0xff] %v162_v4  ;;  %270 = vmatpush.msra.mxu1 %v247_v7  ;;  %v166_v11 = vld [vmem:[%s3233_s0 + $0xe] sm:$0x3]  ;;  %v2283_v17 = vld [vmem:[%s3236_s3] ss:$0 sm:$0xff] }
  0x24   :  { %341 = vmatpush.msra.mxu2 %v247_v7  ;;  %183 = vst [vmem:[#allocation1 + $0x20] ss:$4 sm:$0xff] %v163_v5  ;;  %412 = vmatpush.msra.mxu3 %v247_v7  ;;  %v147_v30 = vand.u32 31, %v2792_v29  ;;  %s2666_s3 = smov 32   ;;  %vm319_vm6 = vcmask 254976   ;;  %vm253_vm7 = vcmask 261120  }
  0x25   :  { %690 = vmatpush.msrb.mxu0 %v247_v7  ;;  %185 = vst [vmem:[#allocation1 + $0x21] ss:$4 sm:$0xff] %v164_v8  ;;  %271 = vmatpush.msra.mxu1 %v246_v9 }
  0x26   :  { %342 = vmatpush.msra.mxu2 %v246_v9  ;;  %187 = vst [vmem:[#allocation1 + $0x22] ss:$4 sm:$0xff] %v165_v10  ;;  %413 = vmatpush.msra.mxu3 %v246_v9  ;;  %vm2795_vm1 = vcmp.lt.s32.totalorder %v147_v30, 16 }
  0x27   :  { %691 = vmatpush.msrb.mxu0 %v246_v9  ;;  %189 = vst [vmem:[#allocation1 + $0x23] ss:$4 sm:$0xff] %v166_v11  ;;  %272 = vmatpush.msra.mxu1 %v245_v12 }
  0x28   :  { %343 = vmatpush.msra.mxu2 %v245_v12  ;;  %273 = vmatmul.f32.vlgmr.msra.gmra.mxu1 %v2665_v13 }
  0x29   :  { %414 = vmatpush.msra.mxu3 %v245_v12  ;;  %482 = vmatpush.msrb.mxu1 %v248_v6 }
  0x2a   :  { %551 = vmatpush.msrb.mxu2 %v248_v6  ;;  %692 = vmatpush.msrb.mxu0 %v245_v12  ;;  %v190_v14 = vld.sshfl [vmem:[#allocation1] sm:$0xff pattern:$0x73625140] }
  0x2b   :  { %620 = vmatpush.msrb.mxu3 %v248_v6  ;;  %483 = vmatpush.msrb.mxu1 %v247_v7 }
  0x2c   :  { %552 = vmatpush.msrb.mxu2 %v247_v7 }
  0x2d   :  { %621 = vmatpush.msrb.mxu3 %v247_v7  ;;  %484 = vmatpush.msrb.mxu1 %v246_v9 }
  0x2e   :  { %553 = vmatpush.msrb.mxu2 %v246_v9  ;;  %v191_v15 = vld.sshfl [vmem:[#allocation1 + $0x20] sm:$0xff pattern:$0x73625140] }
  0x2f   :  { %622 = vmatpush.msrb.mxu3 %v246_v9  ;;  %v194_v16 = vpack.c.bf16 %v191_v15, %v190_v14  ;;  %485 = vmatpush.msrb.mxu1 %v245_v12 }
  0x30   :  { %554 = vmatpush.msrb.mxu2 %v245_v12 }
  0x31   :  { %623 = vmatpush.msrb.mxu3 %v245_v12  ;;  %758 = vmatpush.msra.mxu1 %v248_v6 }
  0x32   :  { %2183 = vmatmul.msk.bf16.vlgmr.msra.gmra.mxu0 %vm205_vm0, %v194_v16 }
  0x33   :  { %759 = vmatpush.msra.mxu1 %v247_v7 }
  0x35   :  { %760 = vmatpush.msra.mxu1 %v246_v9 }
  0x37   :  { %761 = vmatpush.msra.mxu1 %v245_v12 }
  0xa5   :  { %v274_v31 = vpop.f32.mrf.mxu1 }
  0xaf   :  { %v218_v18 = vpop.f32.mrf.mxu0 }
  0xb0   :  { %v219_v19 = vadd.f32 %v2283_v17, %v218_v18 }
  0xb2   :  { %v225_v20 = vrot.slane %v219_v19, 2  ;;  %v226_v21 = vrot.slane %v219_v19, 4  ;;  %v227_v22 = vrot.slane %v219_v19, 6  ;;  %237 = vst [vmem:[#allocation3] sm:$0x3] %v219_v19 }
  0xb4   :  { %238 = vst [vmem:[#allocation3 + $0x2] sm:$0x3] %v225_v20 }
  0xb5   :  { %239 = vst [vmem:[#allocation3 + $0x4] sm:$0x3] %v226_v21 }
  0xb6   :  { %240 = vst [vmem:[#allocation3 + $0x6] sm:$0x3] %v227_v22 }
  0xb7   :  { %v220_v23 = vpop.f32.mrf.mxu0 }
  0xb8   :  { %v221_v24 = vadd.f32 %v2283_v17, %v220_v23 }
  0xb9   :  { %v249_v33 = vld [vmem:[#allocation3] sm:$0x3] }
  0xba   :  { %v228_v26 = vrot.slane %v221_v24, 2  ;;  %v229_v27 = vrot.slane %v221_v24, 4  ;;  %v230_v28 = vrot.slane %v221_v24, 6  ;;  %241 = vst [vmem:[#allocation3 + $0x8] sm:$0x3] %v221_v24 }
  0xbb   :  { %v322_v62 = vld [vmem:[#allocation3 + $0x2] sm:$0x3] }
  0xbc   :  { %242 = vst [vmem:[#allocation3 + $0xa] sm:$0x3] %v228_v26 }
  0xbd   :  { %243 = vst [vmem:[#allocation3 + $0xc] sm:$0x3] %v229_v27 }
  0xbe   :  { %244 = vst [vmem:[#allocation3 + $0xe] sm:$0x3] %v230_v28  ;;  %v393_v28 = vld [vmem:[#allocation3 + $0x4] sm:$0x3] }
  0xc3   :  { %v395_v27 = vld [vmem:[#allocation3 + $0xa] sm:$0x3] }
  0xc4   :  { %v324_v61 = vld [vmem:[#allocation3 + $0xc] sm:$0x3]  ;;  %v396_v30 = vsel %vm2795_vm1, %v393_v28, %v395_v27 }
  0xc5   :  { %v251_v34 = vld [vmem:[#allocation3 + $0xe] sm:$0x3]  ;;  %v325_v63 = vsel %vm2795_vm1, %v322_v62, %v324_v61 }
  0xc6   :  { %v252_v35 = vsel %vm2795_vm1, %v249_v33, %v251_v34 }
  0xc7   :  { %v277_v36 = vadd.f32 %v274_v31, %v252_v35 }
  0xc9   :  { %2286 = vtanh.f32 %v277_v36  ;;  %v278_v38 = vsub.f32 0.0, %v277_v36 }
  0xcb   :  { %v279_v39 = vmul.f32 1.442695, %v278_v38 }
  0xcd   :  { %2288 = vpow2.f32 %v279_v39 }
  0xcf   :  { %v2287_v37 = vpop.eup %2286 }
  0xd0   :  { %300 = vrot.lane.b32.xlu0 %v2287_v37, %s2655_s21 }
  0xd3   :  { %v2289_v40 = vpop.eup %2288 }
  0xd4   :  { %v281_v41 = vadd.f32 1.0, %v2289_v40 }
  0xd6   :  { %2290 = vrcp.f32 %v281_v41  ;;  %v293_v47 = vand.u32 2147483648, %v281_v41  ;;  %vm287_vm3 = vweird.f32 %v281_v41  ;;  %v291_v48 = vand.u32 2147483647, %v281_v41 }
  0xd8   :  { %v294_v50 = vor.u32 1.1754944e-38, %v293_v47  ;;  %vm292_vm5 = vcmp.eq.f32.partialorder %v291_v48, 8.507059e+37 }
  0xdc   :  { %v2291_v42 = vpop.eup %2290 }
  0xdd   :  { %v283_v43 = vmul.f32 %v2291_v42, %v281_v41  ;;  %vm288_vm2 = vweird.f32 %v2291_v42 }
  0xde   :  { %vm289_vm4 = vmor %vm287_vm3, %vm288_vm2 }
  0xdf   :  { %v284_v44 = vsub.f32 1.0, %v283_v43 }
  0xe1   :  { %v285_v45 = vmul.f32 %v2291_v42, %v284_v44 }
  0xe3   :  { %v286_v46 = vadd.f32 %v2291_v42, %v285_v45 }
  0xe5   :  { %v290_v49 = vsel %vm289_vm4, %v2291_v42, %v286_v46 }
  0xe6   :  { %v295_v52 = vsel %vm292_vm5, %v294_v50, %v290_v49 }
  0xe7   :  { %v298_v54 = vmul.f32 0.0, %v295_v52 }
 0x142   :  { %v301_v51 = vpop.permute.xlu0 %300 }
 0x143   :  { %v303_v53 = vmul.f32 %v301_v51, %v295_v52 }
 0x145   :  { %305 = vrot.lane.b32.xlu0 %v303_v53, %s2666_s3 }
 0x1b7   :  { %v306_v55 = vpop.permute.xlu0 %305 }
 0x1b8   :  { %v308_v56 = vadd.f32 %v306_v55, %v298_v54 }
 0x1ba   :  { %2292 = vtanh.f32 %v308_v56 }
 0x1c0   :  { %v2293_v57 = vpop.eup %2292 }
 0x1c1   :  { %311 = vrot.lane.b32.xlu1 %v2293_v57, %s2655_s21 }
 0x233   :  { %v312_v58 = vpop.permute.xlu1 %311 }
 0x234   :  { %v314_v59 = vmul.f32 %v312_v58, %v295_v52  ;;  %v466_v58 = vld [vmem:[#allocation3 + $0x8] sm:$0x3] }
 0x236   :  { %316 = vrot.lane.b32.xlu1 %v314_v59, %s2666_s3  ;;  %v464_v59 = vld [vmem:[#allocation3 + $0x6] sm:$0x3] }
 0x2a8   :  { %v317_v60 = vpop.permute.xlu1 %316 }
 0x2a9   :  { %320 = vst.msk [vmem:[%s3243_s10] sm:$0x3] %vm319_vm6, %v317_v60  ;;  %2184 = vmatmul.msk.f32.vlgmr.msra.gmra.mxu2 %vm253_vm7, %v317_v60  ;;  %v467_v60 = vsel %vm2795_vm1, %v464_v59, %v466_v58 }
 0x32c   :  { %v345_v0 = vpop.f32.mrf.mxu2 }
 0x32d   :  { %v348_v1 = vadd.f32 %v345_v0, %v325_v63 }
 0x32f   :  { %2294 = vtanh.f32 %v348_v1  ;;  %v349_v3 = vsub.f32 0.0, %v348_v1 }
 0x331   :  { %v350_v4 = vmul.f32 1.442695, %v349_v3 }
 0x333   :  { %2296 = vpow2.f32 %v350_v4 }
 0x335   :  { %v2295_v2 = vpop.eup %2294 }
 0x336   :  { %371 = vrot.lane.b32.xlu2 %v2295_v2, %s2655_s21 }
 0x339   :  { %v2297_v5 = vpop.eup %2296 }
 0x33a   :  { %v352_v6 = vadd.f32 1.0, %v2297_v5 }
 0x33c   :  { %2298 = vrcp.f32 %v352_v6  ;;  %v364_v12 = vand.u32 2147483648, %v352_v6  ;;  %vm358_vm9 = vweird.f32 %v352_v6  ;;  %v362_v14 = vand.u32 2147483647, %v352_v6 }
 0x33e   :  { %v365_v16 = vor.u32 1.1754944e-38, %v364_v12  ;;  %vm363_vm11 = vcmp.eq.f32.partialorder %v362_v14, 8.507059e+37 }
 0x342   :  { %v2299_v7 = vpop.eup %2298 }
 0x343   :  { %v354_v8 = vmul.f32 %v2299_v7, %v352_v6  ;;  %vm359_vm8 = vweird.f32 %v2299_v7 }
 0x344   :  { %vm360_vm10 = vmor %vm358_vm9, %vm359_vm8 }
 0x345   :  { %v355_v9 = vsub.f32 1.0, %v354_v8 }
 0x347   :  { %v356_v10 = vmul.f32 %v2299_v7, %v355_v9 }
 0x349   :  { %v357_v11 = vadd.f32 %v2299_v7, %v356_v10 }
 0x34b   :  { %v361_v15 = vsel %vm360_vm10, %v2299_v7, %v357_v11 }
 0x34c   :  { %v366_v18 = vsel %vm363_vm11, %v365_v16, %v361_v15  ;;  %vm156_vm11 = vcmp.lt.s32.totalorder %v2792_v29, 16 }
 0x34d   :  { %v369_v20 = vmul.f32 %v366_v18, %v308_v56 }
 0x390   :  { %v372_v17 = vpop.permute.xlu2 %371 }
 0x391   :  { %v374_v19 = vmul.f32 %v372_v17, %v366_v18 }
 0x393   :  { %376 = vrot.lane.b32.xlu2 %v374_v19, %s2666_s3 }
 0x3ed   :  { %v377_v21 = vpop.permute.xlu2 %376 }
 0x3ee   :  { %v379_v22 = vadd.f32 %v377_v21, %v369_v20 }
 0x3f0   :  { %2300 = vtanh.f32 %v379_v22 }
 0x3f6   :  { %v2301_v23 = vpop.eup %2300 }
 0x3f7   :  { %382 = vrot.lane.b32.xlu0 %v2301_v23, %s2655_s21 }
 0x469   :  { %v383_v24 = vpop.permute.xlu0 %382 }
 0x46a   :  { %v385_v25 = vmul.f32 %v383_v24, %v366_v18  ;;  %v534_v24 = vld [vmem:[#allocation3 + $0x8] sm:$0x3] }
 0x46c   :  { %387 = vrot.lane.b32.xlu1 %v385_v25, %s2666_s3  ;;  %v535_v25 = vld [vmem:[#allocation3 + $0x6] sm:$0x3] }
 0x4de   :  { %v388_v26 = vpop.permute.xlu1 %387 }
 0x4df   :  { %2185 = vst.msk [vmem:[%s3243_s10 + $0x2] sm:$0x3] %vm319_vm6, %v388_v26  ;;  %2186 = vmatmul.msk.f32.vlgmr.msra.gmra.mxu3 %vm253_vm7, %v388_v26  ;;  %v536_v26 = vsel %vm2795_vm1, %v534_v24, %v535_v25 }
 0x562   :  { %v416_v31 = vpop.f32.mrf.mxu3 }
 0x563   :  { %v419_v33 = vadd.f32 %v416_v31, %v396_v30 }
 0x565   :  { %2302 = vtanh.f32 %v419_v33  ;;  %v420_v35 = vsub.f32 0.0, %v419_v33 }
 0x567   :  { %v421_v36 = vmul.f32 1.442695, %v420_v35 }
 0x569   :  { %2304 = vpow2.f32 %v421_v36 }
 0x56b   :  { %v2303_v34 = vpop.eup %2302 }
 0x56c   :  { %442 = vrot.lane.b32.xlu2 %v2303_v34, %s2655_s21 }
 0x56f   :  { %v2305_v37 = vpop.eup %2304 }
 0x570   :  { %v423_v38 = vadd.f32 1.0, %v2305_v37 }
 0x572   :  { %2306 = vrcp.f32 %v423_v38  ;;  %v435_v44 = vand.u32 2147483648, %v423_v38  ;;  %vm429_vm13 = vweird.f32 %v423_v38  ;;  %v433_v45 = vand.u32 2147483647, %v423_v38 }
 0x574   :  { %v436_v47 = vor.u32 1.1754944e-38, %v435_v44  ;;  %vm434_vm15 = vcmp.eq.f32.partialorder %v433_v45, 8.507059e+37 }
 0x578   :  { %v2307_v39 = vpop.eup %2306 }
 0x579   :  { %v425_v40 = vmul.f32 %v2307_v39, %v423_v38  ;;  %vm430_vm12 = vweird.f32 %v2307_v39 }
 0x57a   :  { %vm431_vm14 = vmor %vm429_vm13, %vm430_vm12 }
 0x57b   :  { %v426_v41 = vsub.f32 1.0, %v425_v40 }
 0x57d   :  { %v427_v42 = vmul.f32 %v2307_v39, %v426_v41 }
 0x57f   :  { %v428_v43 = vadd.f32 %v2307_v39, %v427_v42 }
 0x581   :  { %v432_v46 = vsel %vm431_vm14, %v2307_v39, %v428_v43 }
 0x582   :  { %v437_v49 = vsel %vm434_vm15, %v436_v47, %v432_v46 }
 0x583   :  { %v440_v51 = vmul.f32 %v437_v49, %v379_v22 }
 0x5c6   :  { %v443_v48 = vpop.permute.xlu2 %442 }
 0x5c7   :  { %v445_v50 = vmul.f32 %v443_v48, %v437_v49 }
 0x5c9   :  { %447 = vrot.lane.b32.xlu0 %v445_v50, %s2666_s3 }
 0x63b   :  { %v448_v52 = vpop.permute.xlu0 %447 }
 0x63c   :  { %v450_v53 = vadd.f32 %v448_v52, %v440_v51 }
 0x63e   :  { %2308 = vtanh.f32 %v450_v53 }
 0x644   :  { %v2309_v54 = vpop.eup %2308 }
 0x645   :  { %453 = vrot.lane.b32.xlu1 %v2309_v54, %s2655_s21 }
 0x6b7   :  { %v454_v55 = vpop.permute.xlu1 %453 }
 0x6b8   :  { %v456_v56 = vmul.f32 %v454_v55, %v437_v49 }
 0x6ba   :  { %458 = vrot.lane.b32.xlu2 %v456_v56, %s2666_s3 }
 0x714   :  { %v459_v57 = vpop.permute.xlu2 %458 }
 0x715   :  { %2187 = vst.msk [vmem:[%s3243_s10 + $0x4] sm:$0x3] %vm319_vm6, %v459_v57  ;;  %2188 = vmatmul.msk.f32.vlgmr.msrb.gmra.mxu1 %vm253_vm7, %v459_v57 }
 0x792   :  { %v487_v61 = vpop.f32.mrf.mxu1 }
 0x793   :  { %v490_v62 = vadd.f32 %v487_v61, %v467_v60  ;;  %v603_v61 = vld [vmem:[#allocation3 + $0xa] sm:$0x3] }
 0x795   :  { %2310 = vtanh.f32 %v490_v62  ;;  %v491_v0 = vsub.f32 0.0, %v490_v62  ;;  %v604_v62 = vld [vmem:[#allocation3 + $0x4] sm:$0x3] }
 0x797   :  { %v492_v1 = vmul.f32 1.442695, %v491_v0 }
 0x799   :  { %2312 = vpow2.f32 %v492_v1 }
 0x79b   :  { %v2311_v63 = vpop.eup %2310 }
 0x79c   :  { %513 = vrot.lane.b32.xlu0 %v2311_v63, %s2655_s21  ;;  %v605_v63 = vsel %vm2795_vm1, %v603_v61, %v604_v62 }
 0x79f   :  { %v2313_v2 = vpop.eup %2312 }
 0x7a0   :  { %v494_v3 = vadd.f32 1.0, %v2313_v2 }
 0x7a2   :  { %2314 = vrcp.f32 %v494_v3  ;;  %v506_v9 = vand.u32 2147483648, %v494_v3  ;;  %vm500_vm2 = vweird.f32 %v494_v3  ;;  %v504_v10 = vand.u32 2147483647, %v494_v3 }
 0x7a4   :  { %v507_v12 = vor.u32 1.1754944e-38, %v506_v9  ;;  %vm505_vm4 = vcmp.eq.f32.partialorder %v504_v10, 8.507059e+37 }
 0x7a8   :  { %v2315_v4 = vpop.eup %2314 }
 0x7a9   :  { %v496_v5 = vmul.f32 %v2315_v4, %v494_v3  ;;  %vm501_vm0 = vweird.f32 %v2315_v4 }
 0x7aa   :  { %vm502_vm3 = vmor %vm500_vm2, %vm501_vm0 }
 0x7ab   :  { %v497_v6 = vsub.f32 1.0, %v496_v5 }
 0x7ad   :  { %v498_v7 = vmul.f32 %v2315_v4, %v497_v6 }
 0x7af   :  { %v499_v8 = vadd.f32 %v2315_v4, %v498_v7 }
 0x7b1   :  { %v503_v11 = vsel %vm502_vm3, %v2315_v4, %v499_v8 }
 0x7b2   :  { %v508_v15 = vsel %vm505_vm4, %v507_v12, %v503_v11 }
 0x7b3   :  { %v511_v17 = vmul.f32 %v508_v15, %v450_v53 }
 0x80e   :  { %v514_v14 = vpop.permute.xlu0 %513 }
 0x80f   :  { %v516_v16 = vmul.f32 %v514_v14, %v508_v15 }
 0x811   :  { %518 = vrot.lane.b32.xlu1 %v516_v16, %s2666_s3 }
 0x883   :  { %v519_v18 = vpop.permute.xlu1 %518 }
 0x884   :  { %v521_v19 = vadd.f32 %v519_v18, %v511_v17 }
 0x886   :  { %2316 = vtanh.f32 %v521_v19 }
 0x88c   :  { %v2317_v20 = vpop.eup %2316 }
 0x88d   :  { %524 = vrot.lane.b32.xlu2 %v2317_v20, %s2655_s21 }
 0x8e7   :  { %v525_v21 = vpop.permute.xlu2 %524 }
 0x8e8   :  { %v527_v22 = vmul.f32 %v525_v21, %v508_v15 }
 0x8ea   :  { %529 = vrot.lane.b32.xlu0 %v527_v22, %s2666_s3 }
 0x95c   :  { %v530_v23 = vpop.permute.xlu0 %529 }
 0x95d   :  { %2189 = vst.msk [vmem:[%s3243_s10 + $0x6] sm:$0x3] %vm319_vm6, %v530_v23  ;;  %2190 = vmatmul.msk.f32.vlgmr.msrb.gmra.mxu2 %vm253_vm7, %v530_v23 }
 0x964   :  { %v2208_v55 = vld [vmem:[%s3243_s10 + $0x6] sm:$0x3] }
 0x9e0   :  { %v556_v27 = vpop.f32.mrf.mxu2 }
 0x9e1   :  { %v559_v28 = vadd.f32 %v556_v27, %v536_v26  ;;  %v2204_v27 = vld [vmem:[%s3243_s10 + $0x4] sm:$0x3] }
 0x9e3   :  { %2318 = vtanh.f32 %v559_v28  ;;  %v560_v31 = vsub.f32 0.0, %v559_v28 }
 0x9e5   :  { %v561_v33 = vmul.f32 1.442695, %v560_v31 }
 0x9e7   :  { %2320 = vpow2.f32 %v561_v33 }
 0x9e9   :  { %v2319_v30 = vpop.eup %2318 }
 0x9ea   :  { %582 = vrot.lane.b32.xlu1 %v2319_v30, %s2655_s21 }
 0x9ed   :  { %v2321_v34 = vpop.eup %2320 }
 0x9ee   :  { %v563_v35 = vadd.f32 1.0, %v2321_v34 }
 0x9f0   :  { %2322 = vrcp.f32 %v563_v35  ;;  %v575_v41 = vand.u32 2147483648, %v563_v35  ;;  %vm569_vm8 = vweird.f32 %v563_v35  ;;  %v573_v42 = vand.u32 2147483647, %v563_v35 }
 0x9f2   :  { %v576_v44 = vor.u32 1.1754944e-38, %v575_v41  ;;  %vm574_vm10 = vcmp.eq.f32.partialorder %v573_v42, 8.507059e+37 }
 0x9f6   :  { %v2323_v36 = vpop.eup %2322 }
 0x9f7   :  { %v565_v37 = vmul.f32 %v2323_v36, %v563_v35  ;;  %vm570_vm5 = vweird.f32 %v2323_v36  ;;  %v672_v35 = vld [vmem:[#allocation3 + $0xc] sm:$0x3] }
 0x9f8   :  { %vm571_vm9 = vmor %vm569_vm8, %vm570_vm5 }
 0x9f9   :  { %v566_v38 = vsub.f32 1.0, %v565_v37 }
 0x9fb   :  { %v567_v39 = vmul.f32 %v2323_v36, %v566_v38 }
 0x9fd   :  { %v568_v40 = vadd.f32 %v2323_v36, %v567_v39 }
 0x9ff   :  { %v572_v43 = vsel %vm571_vm9, %v2323_v36, %v568_v40  ;;  %v673_v36 = vld [vmem:[#allocation3 + $0x2] sm:$0x3] }
 0xa00   :  { %v577_v46 = vsel %vm574_vm10, %v576_v44, %v572_v43  ;;  %v674_v37 = vsel %vm2795_vm1, %v672_v35, %v673_v36 }
 0xa01   :  { %v580_v48 = vmul.f32 %v577_v46, %v521_v19 }
 0xa5c   :  { %v583_v45 = vpop.permute.xlu1 %582 }
 0xa5d   :  { %v585_v47 = vmul.f32 %v583_v45, %v577_v46 }
 0xa5f   :  { %587 = vrot.lane.b32.xlu2 %v585_v47, %s2666_s3 }
 0xab9   :  { %v588_v49 = vpop.permute.xlu2 %587 }
 0xaba   :  { %v590_v50 = vadd.f32 %v588_v49, %v580_v48 }
 0xabc   :  { %2324 = vtanh.f32 %v590_v50 }
 0xac2   :  { %v2325_v51 = vpop.eup %2324 }
 0xac3   :  { %593 = vrot.lane.b32.xlu0 %v2325_v51, %s2655_s21 }
 0xb35   :  { %v594_v52 = vpop.permute.xlu0 %593 }
 0xb36   :  { %v596_v53 = vmul.f32 %v594_v52, %v577_v46 }
 0xb38   :  { %598 = vrot.lane.b32.xlu1 %v596_v53, %s2666_s3 }
 0xbaa   :  { %v599_v54 = vpop.permute.xlu1 %598 }
 0xbab   :  { %2191 = vst.msk [vmem:[%s3243_s10 + $0x8] sm:$0x3] %vm319_vm6, %v599_v54  ;;  %2192 = vmatmul.msk.f32.vlgmr.msrb.gmra.mxu3 %vm253_vm7, %v599_v54 }
 0xbb2   :  { %v2209_v56 = vld [vmem:[%s3243_s10 + $0x8] sm:$0x3] }
 0xbb3   :  { %v830_v57 = vsel %vm156_vm11, %v2208_v55, %v2209_v56  ;;  %v832_v58 = vsel %vm156_vm11, %v2209_v56, %v2208_v55 }
 0xbb4   :  { %2210 = vst.msk [vmem:[%s3243_s10 + $0x6] sm:$0x3] %vm319_vm6, %v830_v57 }
 0xbb5   :  { %2211 = vst.msk [vmem:[%s3243_s10 + $0x8] sm:$0x3] %vm319_vm6, %v832_v58 }
 0xbbb   :  { %v841_v59 = vld [vmem:[%s3243_s10 + $0x6] sm:$0x3] }
 0xbbc   :  { %v842_v60 = vld [vmem:[%s3243_s10 + $0x8] sm:$0x3]  ;;  %860 = vst [vmem:[#allocation1 + $0x3] ss:$4 sm:$0xff] %v841_v59 }
 0xbbd   :  { %862 = vst [vmem:[#allocation1 + $0x20] ss:$4 sm:$0xff] %v842_v60 }
 0xc2e   :  { %v625_v0 = vpop.f32.mrf.mxu3 }
 0xc2f   :  { %v628_v1 = vadd.f32 %v625_v0, %v605_v63  ;;  %v2200_v0 = vld [vmem:[%s3243_s10 + $0x2] sm:$0x3] }
 0xc31   :  { %2326 = vtanh.f32 %v628_v1  ;;  %v629_v3 = vsub.f32 0.0, %v628_v1 }
 0xc33   :  { %v630_v4 = vmul.f32 1.442695, %v629_v3 }
 0xc35   :  { %2328 = vpow2.f32 %v630_v4 }
 0xc37   :  { %v2327_v2 = vpop.eup %2326 }
 0xc38   :  { %651 = vrot.lane.b32.xlu2 %v2327_v2, %s2655_s21 }
 0xc3b   :  { %v2329_v5 = vpop.eup %2328 }
 0xc3c   :  { %v632_v6 = vadd.f32 1.0, %v2329_v5 }
 0xc3e   :  { %2330 = vrcp.f32 %v632_v6  ;;  %v644_v12 = vand.u32 2147483648, %v632_v6  ;;  %vm638_vm13 = vweird.f32 %v632_v6  ;;  %v642_v14 = vand.u32 2147483647, %v632_v6 }
 0xc40   :  { %v645_v16 = vor.u32 1.1754944e-38, %v644_v12  ;;  %vm643_vm15 = vcmp.eq.f32.partialorder %v642_v14, 8.507059e+37 }
 0xc44   :  { %v2331_v7 = vpop.eup %2330 }
 0xc45   :  { %v634_v8 = vmul.f32 %v2331_v7, %v632_v6  ;;  %vm639_vm12 = vweird.f32 %v2331_v7  ;;  %v741_v6 = vld [vmem:[#allocation3 + $0xe] sm:$0x3] }
 0xc46   :  { %vm640_vm14 = vmor %vm638_vm13, %vm639_vm12 }
 0xc47   :  { %v635_v9 = vsub.f32 1.0, %v634_v8 }
 0xc49   :  { %v636_v10 = vmul.f32 %v2331_v7, %v635_v9 }
 0xc4b   :  { %v637_v11 = vadd.f32 %v2331_v7, %v636_v10 }
 0xc4d   :  { %v641_v15 = vsel %vm640_vm14, %v2331_v7, %v637_v11  ;;  %v742_v7 = vld [vmem:[#allocation3] sm:$0x3] }
 0xc4e   :  { %v646_v18 = vsel %vm643_vm15, %v645_v16, %v641_v15  ;;  %v743_v8 = vsel %vm2795_vm1, %v741_v6, %v742_v7 }
 0xc4f   :  { %v649_v20 = vmul.f32 %v646_v18, %v590_v50 }
 0xc92   :  { %v652_v17 = vpop.permute.xlu2 %651 }
 0xc93   :  { %v654_v19 = vmul.f32 %v652_v17, %v646_v18 }
 0xc95   :  { %656 = vrot.lane.b32.xlu0 %v654_v19, %s2666_s3 }
 0xd07   :  { %v657_v21 = vpop.permute.xlu0 %656 }
 0xd08   :  { %v659_v22 = vadd.f32 %v657_v21, %v649_v20 }
 0xd0a   :  { %2332 = vtanh.f32 %v659_v22 }
 0xd10   :  { %v2333_v23 = vpop.eup %2332 }
 0xd11   :  { %662 = vrot.lane.b32.xlu1 %v2333_v23, %s2655_s21 }
 0xd83   :  { %v663_v24 = vpop.permute.xlu1 %662 }
 0xd84   :  { %v665_v25 = vmul.f32 %v663_v24, %v646_v18 }
 0xd86   :  { %667 = vrot.lane.b32.xlu2 %v665_v25, %s2666_s3 }
 0xde0   :  { %v668_v26 = vpop.permute.xlu2 %667 }
 0xde1   :  { %2193 = vst.msk [vmem:[%s3243_s10 + $0xa] sm:$0x3] %vm319_vm6, %v668_v26  ;;  %2194 = vmatmul.msk.f32.vlgmr.msrb.gmra.mxu0 %vm253_vm7, %v668_v26 }
 0xde8   :  { %v2205_v28 = vld [vmem:[%s3243_s10 + $0xa] sm:$0x3] }
 0xde9   :  { %v824_v30 = vsel %vm156_vm11, %v2204_v27, %v2205_v28  ;;  %v826_v31 = vsel %vm156_vm11, %v2205_v28, %v2204_v27 }
 0xdea   :  { %2206 = vst.msk [vmem:[%s3243_s10 + $0x4] sm:$0x3] %vm319_vm6, %v824_v30 }
 0xdeb   :  { %2207 = vst.msk [vmem:[%s3243_s10 + $0xa] sm:$0x3] %vm319_vm6, %v826_v31 }
 0xdf1   :  { %v840_v33 = vld [vmem:[%s3243_s10 + $0x4] sm:$0x3] }
 0xdf2   :  { %v843_v34 = vld [vmem:[%s3243_s10 + $0xa] sm:$0x3]  ;;  %858 = vst [vmem:[#allocation1 + $0x2] ss:$4 sm:$0xff] %v840_v33 }
 0xdf3   :  { %864 = vst [vmem:[#allocation1 + $0x21] ss:$4 sm:$0xff] %v843_v34 }
 0xe5e   :  { %v694_v38 = vpop.f32.mrf.mxu0 }
 0xe5f   :  { %v697_v39 = vadd.f32 %v694_v38, %v674_v37  ;;  %v2267_v37 = vld [vmem:[#allocation6 + $0x8] sm:$0xff]  ;;  %v2266_v38 = vld [vmem:[#allocation6] sm:$0xff] }
 0xe60   :  { %899 = vmatpush.bf16.msra.mxu2 %v2267_v37 }
 0xe61   :  { %2334 = vtanh.f32 %v697_v39  ;;  %v698_v41 = vsub.f32 0.0, %v697_v39  ;;  %v932_v39 = vld [vmem:[#allocation8 + $0x18] sm:$0xff] }
 0xe62   :  { %948 = vmatpush.msra.mxu3 %v932_v39  ;;  %1016 = vmatpush.msra.mxu0 %v932_v39 }
 0xe63   :  { %v699_v42 = vmul.f32 1.442695, %v698_v41  ;;  %v930_v41 = vld [vmem:[#allocation8 + $0x8] sm:$0xff]  ;;  %1085 = vmatpush.msrb.mxu1 %v932_v39 }
 0xe64   :  { %900 = vmatpush.bf16.msra.mxu2 %v2266_v38 }
 0xe65   :  { %2336 = vpow2.f32 %v699_v42 }
 0xe67   :  { %v2335_v40 = vpop.eup %2334 }
 0xe68   :  { %720 = vrot.lane.b32.xlu0 %v2335_v40, %s2655_s21  ;;  %v931_v40 = vld [vmem:[#allocation8 + $0x10] sm:$0xff]  ;;  %1361 = vmatpush.msrb.mxu2 %v932_v39 }
 0xe69   :  { %949 = vmatpush.msra.mxu3 %v931_v40  ;;  %1017 = vmatpush.msra.mxu0 %v931_v40 }
 0xe6a   :  { %1086 = vmatpush.msrb.mxu1 %v931_v40  ;;  %1362 = vmatpush.msrb.mxu2 %v931_v40 }
 0xe6b   :  { %v2337_v43 = vpop.eup %2336  ;;  %950 = vmatpush.msra.mxu3 %v930_v41  ;;  %1018 = vmatpush.msra.mxu0 %v930_v41 }
 0xe6c   :  { %v701_v44 = vadd.f32 1.0, %v2337_v43  ;;  %v929_v43 = vld [vmem:[#allocation8] sm:$0xff]  ;;  %1087 = vmatpush.msrb.mxu1 %v930_v41  ;;  %1363 = vmatpush.msrb.mxu2 %v930_v41 }
 0xe6d   :  { %951 = vmatpush.msra.mxu3 %v929_v43  ;;  %1019 = vmatpush.msra.mxu0 %v929_v43 }
 0xe6e   :  { %2338 = vrcp.f32 %v701_v44  ;;  %v713_v50 = vand.u32 2147483648, %v701_v44  ;;  %vm707_vm2 = vweird.f32 %v701_v44  ;;  %v711_v51 = vand.u32 2147483647, %v701_v44  ;;  %952 = vmatmul.f32.vlgmr.msra.gmra.mxu3 %v2665_v13  ;;  %1088 = vmatpush.msrb.mxu1 %v929_v43 }
 0xe6f   :  { %1154 = vmatpush.msrb.mxu3 %v932_v39  ;;  %1223 = vmatpush.msrb.mxu0 %v932_v39 }
 0xe70   :  { %v714_v53 = vor.u32 1.1754944e-38, %v713_v50  ;;  %vm712_vm4 = vcmp.eq.f32.partialorder %v711_v51, 8.507059e+37  ;;  %1364 = vmatpush.msrb.mxu2 %v929_v43 }
 0xe71   :  { %1155 = vmatpush.msrb.mxu3 %v931_v40  ;;  %1224 = vmatpush.msrb.mxu0 %v931_v40 }
 0xe73   :  { %1156 = vmatpush.msrb.mxu3 %v930_v41  ;;  %1225 = vmatpush.msrb.mxu0 %v930_v41 }
 0xe74   :  { %v2339_v45 = vpop.eup %2338 }
 0xe75   :  { %v703_v46 = vmul.f32 %v2339_v45, %v701_v44  ;;  %vm708_vm0 = vweird.f32 %v2339_v45  ;;  %v810_v44 = vld [vmem:[%s3243_s10] sm:$0x3]  ;;  %1157 = vmatpush.msrb.mxu3 %v929_v43  ;;  %1226 = vmatpush.msrb.mxu0 %v929_v43 }
 0xe76   :  { %vm709_vm3 = vmor %vm707_vm2, %vm708_vm0 }
 0xe77   :  { %v704_v47 = vsub.f32 1.0, %v703_v46  ;;  %1430 = vmatpush.msra.mxu3 %v932_v39 }
 0xe79   :  { %v705_v48 = vmul.f32 %v2339_v45, %v704_v47  ;;  %1431 = vmatpush.msra.mxu3 %v931_v40 }
 0xe7b   :  { %v706_v49 = vadd.f32 %v2339_v45, %v705_v48  ;;  %1432 = vmatpush.msra.mxu3 %v930_v41 }
 0xe7d   :  { %v710_v52 = vsel %vm709_vm3, %v2339_v45, %v706_v49  ;;  %1433 = vmatpush.msra.mxu3 %v929_v43 }
 0xe7e   :  { %v715_v55 = vsel %vm712_vm4, %v714_v53, %v710_v52  ;;  %v2284_v53 = vld [vmem:[#allocation9] ss:$0 sm:$0xff] }
 0xe7f   :  { %v718_v57 = vmul.f32 %v715_v55, %v659_v22 }
 0xeda   :  { %v721_v54 = vpop.permute.xlu0 %720 }
 0xedb   :  { %v723_v56 = vmul.f32 %v721_v54, %v715_v55 }
 0xedd   :  { %725 = vrot.lane.b32.xlu1 %v723_v56, %s2666_s3 }
 0xf4f   :  { %v726_v58 = vpop.permute.xlu1 %725 }
 0xf50   :  { %v728_v59 = vadd.f32 %v726_v58, %v718_v57 }
 0xf52   :  { %2340 = vtanh.f32 %v728_v59 }
 0xf58   :  { %v2341_v60 = vpop.eup %2340 }
 0xf59   :  { %731 = vrot.lane.b32.xlu2 %v2341_v60, %s2655_s21 }
 0xfb3   :  { %v732_v61 = vpop.permute.xlu2 %731 }
 0xfb4   :  { %v734_v62 = vmul.f32 %v732_v61, %v715_v55 }
 0xfb6   :  { %736 = vrot.lane.b32.xlu0 %v734_v62, %s2666_s3 }
0x1028   :  { %v737_v63 = vpop.permute.xlu0 %736 }
0x1029   :  { %2195 = vst.msk [vmem:[%s3243_s10 + $0xc] sm:$0x3] %vm319_vm6, %v737_v63  ;;  %2196 = vmatmul.msk.f32.vlgmr.msra.gmra.mxu1 %vm253_vm7, %v737_v63 }
0x102a   :  { %1292 = vmatpush.msra.mxu1 %v932_v39 }
0x102c   :  { %1293 = vmatpush.msra.mxu1 %v931_v40 }
0x102e   :  { %1294 = vmatpush.msra.mxu1 %v930_v41 }
0x1030   :  { %v2201_v1 = vld [vmem:[%s3243_s10 + $0xc] sm:$0x3]  ;;  %1295 = vmatpush.msra.mxu1 %v929_v43 }
0x1031   :  { %v818_v2 = vsel %vm156_vm11, %v2200_v0, %v2201_v1  ;;  %v820_v3 = vsel %vm156_vm11, %v2201_v1, %v2200_v0  ;;  %v953_v0 = vpop.f32.mrf.mxu3 }
0x1032   :  { %2202 = vst.msk [vmem:[%s3243_s10 + $0x2] sm:$0x3] %vm319_vm6, %v818_v2 }
0x1033   :  { %2203 = vst.msk [vmem:[%s3243_s10 + $0xc] sm:$0x3] %vm319_vm6, %v820_v3 }
0x1039   :  { %v839_v4 = vld [vmem:[%s3243_s10 + $0x2] sm:$0x3] }
0x103a   :  { %v844_v5 = vld [vmem:[%s3243_s10 + $0xc] sm:$0x3]  ;;  %856 = vst [vmem:[#allocation1 + $0x1] ss:$4 sm:$0xff] %v839_v4 }
0x103b   :  { %866 = vst [vmem:[#allocation1 + $0x22] ss:$4 sm:$0xff] %v844_v5 }
0x10a6   :  { %v763_v9 = vpop.f32.mrf.mxu1 }
0x10a7   :  { %v766_v10 = vadd.f32 %v763_v9, %v743_v8 }
0x10a9   :  { %2342 = vtanh.f32 %v766_v10  ;;  %v767_v12 = vsub.f32 0.0, %v766_v10 }
0x10ab   :  { %v768_v14 = vmul.f32 1.442695, %v767_v12 }
0x10ad   :  { %2344 = vpow2.f32 %v768_v14 }
0x10af   :  { %v2343_v11 = vpop.eup %2342 }
0x10b0   :  { %789 = vrot.lane.b32.xlu1 %v2343_v11, %s2655_s21 }
0x10b3   :  { %v2345_v15 = vpop.eup %2344 }
0x10b4   :  { %v770_v16 = vadd.f32 1.0, %v2345_v15 }
0x10b6   :  { %2346 = vrcp.f32 %v770_v16  ;;  %v782_v22 = vand.u32 2147483648, %v770_v16  ;;  %vm776_vm8 = vweird.f32 %v770_v16  ;;  %v780_v23 = vand.u32 2147483647, %v770_v16 }
0x10b8   :  { %v783_v25 = vor.u32 1.1754944e-38, %v782_v22  ;;  %vm781_vm10 = vcmp.eq.f32.partialorder %v780_v23, 8.507059e+37 }
0x10bc   :  { %v2347_v17 = vpop.eup %2346 }
0x10bd   :  { %v772_v18 = vmul.f32 %v2347_v17, %v770_v16  ;;  %vm777_vm5 = vweird.f32 %v2347_v17 }
0x10be   :  { %vm778_vm9 = vmor %vm776_vm8, %vm777_vm5 }
0x10bf   :  { %v773_v19 = vsub.f32 1.0, %v772_v18 }
0x10c1   :  { %v774_v20 = vmul.f32 %v2347_v17, %v773_v19 }
0x10c3   :  { %v775_v21 = vadd.f32 %v2347_v17, %v774_v20 }
0x10c5   :  { %v779_v24 = vsel %vm778_vm9, %v2347_v17, %v775_v21 }
0x10c6   :  { %v784_v27 = vsel %vm781_vm10, %v783_v25, %v779_v24 }
0x10c7   :  { %v787_v30 = vmul.f32 %v784_v27, %v728_v59 }
0x1122   :  { %v790_v26 = vpop.permute.xlu1 %789 }
0x1123   :  { %v792_v28 = vmul.f32 %v790_v26, %v784_v27 }
0x1125   :  { %794 = vrot.lane.b32.xlu2 %v792_v28, %s2666_s3 }
0x117f   :  { %v795_v31 = vpop.permute.xlu2 %794 }
0x1180   :  { %v797_v33 = vadd.f32 %v795_v31, %v787_v30 }
0x1182   :  { %2348 = vtanh.f32 %v797_v33 }
0x1188   :  { %v2349_v34 = vpop.eup %2348 }
0x1189   :  { %800 = vrot.lane.b32.xlu0 %v2349_v34, %s2655_s21 }
0x11fb   :  { %v801_v35 = vpop.permute.xlu0 %800 }
0x11fc   :  { %v803_v36 = vmul.f32 %v801_v35, %v784_v27 }
0x11fe   :  { %805 = vrot.lane.b32.xlu1 %v803_v36, %s2666_s3 }
0x1270   :  { %v806_v42 = vpop.permute.xlu1 %805 }
0x1271   :  { %2197 = vst.msk [vmem:[%s3243_s10 + $0xe] sm:$0x3] %vm319_vm6, %v806_v42 }
0x1278   :  { %v2198_v45 = vld [vmem:[%s3243_s10 + $0xe] sm:$0x3] }
0x1279   :  { %v812_v46 = vsel %vm156_vm11, %v810_v44, %v2198_v45  ;;  %v814_v47 = vsel %vm156_vm11, %v2198_v45, %v810_v44 }
0x127a   :  { %813 = vst.msk [vmem:[%s3243_s10] sm:$0x3] %vm319_vm6, %v812_v46 }
0x127b   :  { %2199 = vst.msk [vmem:[%s3243_s10 + $0xe] sm:$0x3] %vm319_vm6, %v814_v47 }
0x1281   :  { %v838_v48 = vld [vmem:[%s3243_s10] sm:$0x3] }
0x1282   :  { %v845_v49 = vld [vmem:[%s3243_s10 + $0xe] sm:$0x3]  ;;  %854 = vst [vmem:[#allocation1] ss:$4 sm:$0xff] %v838_v48 }
0x1283   :  { %868 = vst [vmem:[#allocation1 + $0x23] ss:$4 sm:$0xff] %v845_v49 }
0x1289   :  { %v869_v50 = vld.sshfl [vmem:[#allocation1] sm:$0xff pattern:$0x73625140] }
0x128a   :  { %v870_v51 = vld.sshfl [vmem:[#allocation1 + $0x20] sm:$0xff pattern:$0x73625140] }
0x128b   :  { %v873_v52 = vpack.c.bf16 %v870_v51, %v869_v50 }
0x128d   :  { %2220 = vmatmul.msk.bf16.vlgmr.msra.gmra.mxu2 %vm253_vm7, %v873_v52 }
0x1310   :  { %v902_v54 = vpop.f32.mrf.mxu2 }
0x1311   :  { %v903_v55 = vadd.f32 %v2284_v53, %v902_v54 }
0x1313   :  { %v909_v56 = vrot.slane %v903_v55, 2  ;;  %v910_v57 = vrot.slane %v903_v55, 4  ;;  %v911_v58 = vrot.slane %v903_v55, 6  ;;  %921 = vst [vmem:[#allocation3] sm:$0x3] %v903_v55 }
0x1315   :  { %922 = vst [vmem:[#allocation3 + $0x2] sm:$0x3] %v909_v56 }
0x1316   :  { %923 = vst [vmem:[#allocation3 + $0x4] sm:$0x3] %v910_v57 }
0x1317   :  { %924 = vst [vmem:[#allocation3 + $0x6] sm:$0x3] %v911_v58 }
0x1318   :  { %v904_v59 = vpop.f32.mrf.mxu2 }
0x1319   :  { %v905_v60 = vadd.f32 %v2284_v53, %v904_v59 }
0x131a   :  { %v933_v1 = vld [vmem:[#allocation3] sm:$0x3] }
0x131b   :  { %v912_v61 = vrot.slane %v905_v60, 2  ;;  %v913_v62 = vrot.slane %v905_v60, 4  ;;  %v914_v63 = vrot.slane %v905_v60, 6  ;;  %925 = vst [vmem:[#allocation3 + $0x8] sm:$0x3] %v905_v60 }
0x131c   :  { %v999_v33 = vld [vmem:[#allocation3 + $0x2] sm:$0x3] }
0x131d   :  { %926 = vst [vmem:[#allocation3 + $0xa] sm:$0x3] %v912_v61 }
0x131e   :  { %927 = vst [vmem:[#allocation3 + $0xc] sm:$0x3] %v913_v62  ;;  %v1068_v62 = vld [vmem:[#allocation3 + $0x4] sm:$0x3] }
0x131f   :  { %928 = vst [vmem:[#allocation3 + $0xe] sm:$0x3] %v914_v63 }
0x1324   :  { %v1069_v61 = vld [vmem:[#allocation3 + $0xa] sm:$0x3] }
0x1325   :  { %v1000_v31 = vld [vmem:[#allocation3 + $0xc] sm:$0x3]  ;;  %v1070_v63 = vsel %vm2795_vm1, %v1068_v62, %v1069_v61 }
0x1326   :  { %v934_v2 = vld [vmem:[#allocation3 + $0xe] sm:$0x3]  ;;  %v1001_v34 = vsel %vm2795_vm1, %v999_v33, %v1000_v31 }
0x1327   :  { %v935_v3 = vsel %vm2795_vm1, %v933_v1, %v934_v2 }
0x1328   :  { %v956_v4 = vadd.f32 %v953_v0, %v935_v3 }
0x132a   :  { %2350 = vtanh.f32 %v956_v4  ;;  %v957_v6 = vsub.f32 0.0, %v956_v4 }
0x132c   :  { %v958_v7 = vmul.f32 1.442695, %v957_v6 }
0x132e   :  { %2352 = vpow2.f32 %v958_v7 }
0x1330   :  { %v2351_v5 = vpop.eup %2350 }
0x1331   :  { %979 = vrot.lane.b32.xlu2 %v2351_v5, %s2655_s21 }
0x1334   :  { %v2353_v8 = vpop.eup %2352 }
0x1335   :  { %v960_v9 = vadd.f32 1.0, %v2353_v8 }
0x1337   :  { %2354 = vrcp.f32 %v960_v9  ;;  %v972_v16 = vand.u32 2147483648, %v960_v9  ;;  %vm966_vm13 = vweird.f32 %v960_v9  ;;  %v970_v17 = vand.u32 2147483647, %v960_v9 }
0x1339   :  { %v973_v19 = vor.u32 1.1754944e-38, %v972_v16  ;;  %vm971_vm15 = vcmp.eq.f32.partialorder %v970_v17, 8.507059e+37 }
0x133d   :  { %v2355_v10 = vpop.eup %2354 }
0x133e   :  { %v962_v11 = vmul.f32 %v2355_v10, %v960_v9  ;;  %vm967_vm12 = vweird.f32 %v2355_v10 }
0x133f   :  { %vm968_vm14 = vmor %vm966_vm13, %vm967_vm12 }
0x1340   :  { %v963_v12 = vsub.f32 1.0, %v962_v11 }
0x1342   :  { %v964_v14 = vmul.f32 %v2355_v10, %v963_v12 }
0x1344   :  { %v965_v15 = vadd.f32 %v2355_v10, %v964_v14 }
0x1346   :  { %v969_v18 = vsel %vm968_vm14, %v2355_v10, %v965_v15 }
0x1347   :  { %v974_v21 = vsel %vm971_vm15, %v973_v19, %v969_v18 }
0x1348   :  { %v977_v23 = vmul.f32 0.0, %v974_v21 }
0x138b   :  { %v980_v20 = vpop.permute.xlu2 %979 }
0x138c   :  { %v982_v22 = vmul.f32 %v980_v20, %v974_v21 }
0x138e   :  { %984 = vrot.lane.b32.xlu0 %v982_v22, %s2666_s3 }
0x1400   :  { %v985_v24 = vpop.permute.xlu0 %984 }
0x1401   :  { %v987_v25 = vadd.f32 %v985_v24, %v977_v23 }
0x1403   :  { %2356 = vtanh.f32 %v987_v25 }
0x1409   :  { %v2357_v26 = vpop.eup %2356 }
0x140a   :  { %990 = vrot.lane.b32.xlu1 %v2357_v26, %s2655_s21 }
0x147c   :  { %v991_v27 = vpop.permute.xlu1 %990 }
0x147d   :  { %v993_v28 = vmul.f32 %v991_v27, %v974_v21  ;;  %v1138_v27 = vld [vmem:[#allocation3 + $0x8] sm:$0x3] }
0x147f   :  { %995 = vrot.lane.b32.xlu2 %v993_v28, %s2666_s3  ;;  %v1137_v28 = vld [vmem:[#allocation3 + $0x6] sm:$0x3] }
0x14d9   :  { %v996_v30 = vpop.permute.xlu2 %995 }
0x14da   :  { %998 = vst.msk [vmem:[#allocation2] sm:$0x3] %vm319_vm6, %v996_v30  ;;  %2221 = vmatmul.msk.f32.vlgmr.msra.gmra.mxu0 %vm253_vm7, %v996_v30  ;;  %v1139_v30 = vsel %vm2795_vm1, %v1137_v28, %v1138_v27 }
0x1557   :  { %v1021_v35 = vpop.f32.mrf.mxu0 }
0x1558   :  { %v1024_v36 = vadd.f32 %v1021_v35, %v1001_v34 }
0x155a   :  { %2358 = vtanh.f32 %v1024_v36  ;;  %v1025_v38 = vsub.f32 0.0, %v1024_v36 }
0x155c   :  { %v1026_v39 = vmul.f32 1.442695, %v1025_v38 }
0x155e   :  { %2360 = vpow2.f32 %v1026_v39 }
0x1560   :  { %v2359_v37 = vpop.eup %2358 }
0x1561   :  { %1047 = vrot.lane.b32.xlu0 %v2359_v37, %s2655_s21 }
0x1564   :  { %v2361_v40 = vpop.eup %2360 }
0x1565   :  { %v1028_v41 = vadd.f32 1.0, %v2361_v40 }
0x1567   :  { %2362 = vrcp.f32 %v1028_v41  ;;  %v1040_v47 = vand.u32 2147483648, %v1028_v41  ;;  %vm1034_vm2 = vweird.f32 %v1028_v41  ;;  %v1038_v48 = vand.u32 2147483647, %v1028_v41 }
0x1569   :  { %v1041_v50 = vor.u32 1.1754944e-38, %v1040_v47  ;;  %vm1039_vm4 = vcmp.eq.f32.partialorder %v1038_v48, 8.507059e+37 }
0x156d   :  { %v2363_v42 = vpop.eup %2362 }
0x156e   :  { %v1030_v43 = vmul.f32 %v2363_v42, %v1028_v41  ;;  %vm1035_vm0 = vweird.f32 %v2363_v42 }
0x156f   :  { %vm1036_vm3 = vmor %vm1034_vm2, %vm1035_vm0 }
0x1570   :  { %v1031_v44 = vsub.f32 1.0, %v1030_v43 }
0x1572   :  { %v1032_v45 = vmul.f32 %v2363_v42, %v1031_v44 }
0x1574   :  { %v1033_v46 = vadd.f32 %v2363_v42, %v1032_v45 }
0x1576   :  { %v1037_v49 = vsel %vm1036_vm3, %v2363_v42, %v1033_v46 }
0x1577   :  { %v1042_v52 = vsel %vm1039_vm4, %v1041_v50, %v1037_v49 }
0x1578   :  { %v1045_v54 = vmul.f32 %v1042_v52, %v987_v25 }
0x15d3   :  { %v1048_v51 = vpop.permute.xlu0 %1047 }
0x15d4   :  { %v1050_v53 = vmul.f32 %v1048_v51, %v1042_v52 }
0x15d6   :  { %1052 = vrot.lane.b32.xlu1 %v1050_v53, %s2666_s3 }
0x1648   :  { %v1053_v55 = vpop.permute.xlu1 %1052 }
0x1649   :  { %v1055_v56 = vadd.f32 %v1053_v55, %v1045_v54 }
0x164b   :  { %2364 = vtanh.f32 %v1055_v56 }
0x1651   :  { %v2365_v57 = vpop.eup %2364 }
0x1652   :  { %1058 = vrot.lane.b32.xlu2 %v2365_v57, %s2655_s21 }
0x16ac   :  { %v1059_v58 = vpop.permute.xlu2 %1058 }
0x16ad   :  { %v1061_v59 = vmul.f32 %v1059_v58, %v1042_v52  ;;  %v1206_v58 = vld [vmem:[#allocation3 + $0x8] sm:$0x3] }
0x16af   :  { %1063 = vrot.lane.b32.xlu0 %v1061_v59, %s2666_s3  ;;  %v1207_v59 = vld [vmem:[#allocation3 + $0x6] sm:$0x3] }
0x1721   :  { %v1064_v60 = vpop.permute.xlu0 %1063 }
0x1722   :  { %1067 = vst.msk [vmem:[#allocation2 + $0x2] sm:$0x3] %vm319_vm6, %v1064_v60  ;;  %2222 = vmatmul.msk.f32.vlgmr.msrb.gmra.mxu1 %vm253_vm7, %v1064_v60  ;;  %v1208_v60 = vsel %vm2795_vm1, %v1206_v58, %v1207_v59 }
0x179f   :  { %v1090_v0 = vpop.f32.mrf.mxu1 }
0x17a0   :  { %v1093_v1 = vadd.f32 %v1090_v0, %v1070_v63 }
0x17a2   :  { %2366 = vtanh.f32 %v1093_v1  ;;  %v1094_v3 = vsub.f32 0.0, %v1093_v1 }
0x17a4   :  { %v1095_v4 = vmul.f32 1.442695, %v1094_v3 }
0x17a6   :  { %2368 = vpow2.f32 %v1095_v4 }
0x17a8   :  { %v2367_v2 = vpop.eup %2366 }
0x17a9   :  { %1116 = vrot.lane.b32.xlu1 %v2367_v2, %s2655_s21 }
0x17ac   :  { %v2369_v5 = vpop.eup %2368 }
0x17ad   :  { %v1097_v6 = vadd.f32 1.0, %v2369_v5 }
0x17af   :  { %2370 = vrcp.f32 %v1097_v6  ;;  %v1109_v12 = vand.u32 2147483648, %v1097_v6  ;;  %vm1103_vm8 = vweird.f32 %v1097_v6  ;;  %v1107_v14 = vand.u32 2147483647, %v1097_v6 }
0x17b1   :  { %v1110_v16 = vor.u32 1.1754944e-38, %v1109_v12  ;;  %vm1108_vm10 = vcmp.eq.f32.partialorder %v1107_v14, 8.507059e+37 }
0x17b5   :  { %v2371_v7 = vpop.eup %2370 }
0x17b6   :  { %v1099_v8 = vmul.f32 %v2371_v7, %v1097_v6  ;;  %vm1104_vm5 = vweird.f32 %v2371_v7 }
0x17b7   :  { %vm1105_vm9 = vmor %vm1103_vm8, %vm1104_vm5 }
0x17b8   :  { %v1100_v9 = vsub.f32 1.0, %v1099_v8 }
0x17ba   :  { %v1101_v10 = vmul.f32 %v2371_v7, %v1100_v9 }
0x17bc   :  { %v1102_v11 = vadd.f32 %v2371_v7, %v1101_v10 }
0x17be   :  { %v1106_v15 = vsel %vm1105_vm9, %v2371_v7, %v1102_v11 }
0x17bf   :  { %v1111_v18 = vsel %vm1108_vm10, %v1110_v16, %v1106_v15 }
0x17c0   :  { %v1114_v20 = vmul.f32 %v1111_v18, %v1055_v56 }
0x181b   :  { %v1117_v17 = vpop.permute.xlu1 %1116 }
0x181c   :  { %v1119_v19 = vmul.f32 %v1117_v17, %v1111_v18 }
0x181e   :  { %1121 = vrot.lane.b32.xlu2 %v1119_v19, %s2666_s3 }
0x1878   :  { %v1122_v21 = vpop.permute.xlu2 %1121 }
0x1879   :  { %v1124_v22 = vadd.f32 %v1122_v21, %v1114_v20 }
0x187b   :  { %2372 = vtanh.f32 %v1124_v22 }
0x1881   :  { %v2373_v23 = vpop.eup %2372 }
0x1882   :  { %1127 = vrot.lane.b32.xlu0 %v2373_v23, %s2655_s21 }
0x18f4   :  { %v1128_v24 = vpop.permute.xlu0 %1127 }
0x18f5   :  { %v1130_v25 = vmul.f32 %v1128_v24, %v1111_v18 }
0x18f7   :  { %1132 = vrot.lane.b32.xlu1 %v1130_v25, %s2666_s3 }
0x1969   :  { %v1133_v26 = vpop.permute.xlu1 %1132 }
0x196a   :  { %1136 = vst.msk [vmem:[#allocation2 + $0x4] sm:$0x3] %vm319_vm6, %v1133_v26  ;;  %2223 = vmatmul.msk.f32.vlgmr.msrb.gmra.mxu3 %vm253_vm7, %v1133_v26 }
0x19ed   :  { %v1159_v31 = vpop.f32.mrf.mxu3 }
0x19ee   :  { %v1162_v33 = vadd.f32 %v1159_v31, %v1139_v30  ;;  %v1275_v31 = vld [vmem:[#allocation3 + $0xa] sm:$0x3] }
0x19f0   :  { %2374 = vtanh.f32 %v1162_v33  ;;  %v1163_v35 = vsub.f32 0.0, %v1162_v33  ;;  %v1276_v33 = vld [vmem:[#allocation3 + $0x4] sm:$0x3] }
0x19f2   :  { %v1164_v36 = vmul.f32 1.442695, %v1163_v35 }
0x19f4   :  { %2376 = vpow2.f32 %v1164_v36 }
0x19f6   :  { %v2375_v34 = vpop.eup %2374 }
0x19f7   :  { %1185 = vrot.lane.b32.xlu2 %v2375_v34, %s2655_s21  ;;  %v1277_v34 = vsel %vm2795_vm1, %v1275_v31, %v1276_v33 }
0x19fa   :  { %v2377_v37 = vpop.eup %2376 }
0x19fb   :  { %v1166_v38 = vadd.f32 1.0, %v2377_v37 }
0x19fd   :  { %2378 = vrcp.f32 %v1166_v38  ;;  %v1178_v44 = vand.u32 2147483648, %v1166_v38  ;;  %vm1172_vm13 = vweird.f32 %v1166_v38  ;;  %v1176_v45 = vand.u32 2147483647, %v1166_v38 }
0x19ff   :  { %v1179_v47 = vor.u32 1.1754944e-38, %v1178_v44  ;;  %vm1177_vm15 = vcmp.eq.f32.partialorder %v1176_v45, 8.507059e+37 }
0x1a03   :  { %v2379_v39 = vpop.eup %2378 }
0x1a04   :  { %v1168_v40 = vmul.f32 %v2379_v39, %v1166_v38  ;;  %vm1173_vm12 = vweird.f32 %v2379_v39 }
0x1a05   :  { %vm1174_vm14 = vmor %vm1172_vm13, %vm1173_vm12 }
0x1a06   :  { %v1169_v41 = vsub.f32 1.0, %v1168_v40 }
0x1a08   :  { %v1170_v42 = vmul.f32 %v2379_v39, %v1169_v41 }
0x1a0a   :  { %v1171_v43 = vadd.f32 %v2379_v39, %v1170_v42 }
0x1a0c   :  { %v1175_v46 = vsel %vm1174_vm14, %v2379_v39, %v1171_v43 }
0x1a0d   :  { %v1180_v49 = vsel %vm1177_vm15, %v1179_v47, %v1175_v46 }
0x1a0e   :  { %v1183_v51 = vmul.f32 %v1180_v49, %v1124_v22 }
0x1a51   :  { %v1186_v48 = vpop.permute.xlu2 %1185 }
0x1a52   :  { %v1188_v50 = vmul.f32 %v1186_v48, %v1180_v49 }
0x1a54   :  { %1190 = vrot.lane.b32.xlu0 %v1188_v50, %s2666_s3 }
0x1ac6   :  { %v1191_v52 = vpop.permute.xlu0 %1190 }
0x1ac7   :  { %v1193_v53 = vadd.f32 %v1191_v52, %v1183_v51 }
0x1ac9   :  { %2380 = vtanh.f32 %v1193_v53 }
0x1acf   :  { %v2381_v54 = vpop.eup %2380 }
0x1ad0   :  { %1196 = vrot.lane.b32.xlu1 %v2381_v54, %s2655_s21 }
0x1b42   :  { %v1197_v55 = vpop.permute.xlu1 %1196 }
0x1b43   :  { %v1199_v56 = vmul.f32 %v1197_v55, %v1180_v49 }
0x1b45   :  { %1201 = vrot.lane.b32.xlu2 %v1199_v56, %s2666_s3 }
0x1b9f   :  { %v1202_v57 = vpop.permute.xlu2 %1201 }
0x1ba0   :  { %1205 = vst.msk [vmem:[#allocation2 + $0x6] sm:$0x3] %vm319_vm6, %v1202_v57  ;;  %2224 = vmatmul.msk.f32.vlgmr.msrb.gmra.mxu0 %vm253_vm7, %v1202_v57 }
0x1ba7   :  { %v1500_v24 = vld [vmem:[#allocation2 + $0x6] sm:$0x3] }
0x1c1d   :  { %v1228_v61 = vpop.f32.mrf.mxu0 }
0x1c1e   :  { %v1231_v62 = vadd.f32 %v1228_v61, %v1208_v60  ;;  %v1494_v61 = vld [vmem:[#allocation2 + $0x4] sm:$0x3] }
0x1c20   :  { %2382 = vtanh.f32 %v1231_v62  ;;  %v1232_v0 = vsub.f32 0.0, %v1231_v62 }
0x1c22   :  { %v1233_v1 = vmul.f32 1.442695, %v1232_v0 }
0x1c24   :  { %2384 = vpow2.f32 %v1233_v1 }
0x1c26   :  { %v2383_v63 = vpop.eup %2382 }
0x1c27   :  { %1254 = vrot.lane.b32.xlu0 %v2383_v63, %s2655_s21 }
0x1c2a   :  { %v2385_v2 = vpop.eup %2384 }
0x1c2b   :  { %v1235_v3 = vadd.f32 1.0, %v2385_v2 }
0x1c2d   :  { %2386 = vrcp.f32 %v1235_v3  ;;  %v1247_v9 = vand.u32 2147483648, %v1235_v3  ;;  %vm1241_vm2 = vweird.f32 %v1235_v3  ;;  %v1245_v10 = vand.u32 2147483647, %v1235_v3 }
0x1c2f   :  { %v1248_v12 = vor.u32 1.1754944e-38, %v1247_v9  ;;  %vm1246_vm4 = vcmp.eq.f32.partialorder %v1245_v10, 8.507059e+37 }
0x1c33   :  { %v2387_v4 = vpop.eup %2386 }
0x1c34   :  { %v1237_v5 = vmul.f32 %v2387_v4, %v1235_v3  ;;  %vm1242_vm0 = vweird.f32 %v2387_v4  ;;  %v1344_v3 = vld [vmem:[#allocation3 + $0xc] sm:$0x3] }
0x1c35   :  { %vm1243_vm3 = vmor %vm1241_vm2, %vm1242_vm0 }
0x1c36   :  { %v1238_v6 = vsub.f32 1.0, %v1237_v5 }
0x1c38   :  { %v1239_v7 = vmul.f32 %v2387_v4, %v1238_v6 }
0x1c3a   :  { %v1240_v8 = vadd.f32 %v2387_v4, %v1239_v7 }
0x1c3c   :  { %v1244_v11 = vsel %vm1243_vm3, %v2387_v4, %v1240_v8  ;;  %v1345_v4 = vld [vmem:[#allocation3 + $0x2] sm:$0x3] }
0x1c3d   :  { %v1249_v15 = vsel %vm1246_vm4, %v1248_v12, %v1244_v11  ;;  %v1346_v5 = vsel %vm2795_vm1, %v1344_v3, %v1345_v4 }
0x1c3e   :  { %v1252_v17 = vmul.f32 %v1249_v15, %v1193_v53 }
0x1c99   :  { %v1255_v14 = vpop.permute.xlu0 %1254 }
0x1c9a   :  { %v1257_v16 = vmul.f32 %v1255_v14, %v1249_v15 }
0x1c9c   :  { %1259 = vrot.lane.b32.xlu1 %v1257_v16, %s2666_s3 }
0x1d0e   :  { %v1260_v18 = vpop.permute.xlu1 %1259 }
0x1d0f   :  { %v1262_v19 = vadd.f32 %v1260_v18, %v1252_v17 }
0x1d11   :  { %2388 = vtanh.f32 %v1262_v19 }
0x1d17   :  { %v2389_v20 = vpop.eup %2388 }
0x1d18   :  { %1265 = vrot.lane.b32.xlu2 %v2389_v20, %s2655_s21 }
0x1d72   :  { %v1266_v21 = vpop.permute.xlu2 %1265 }
0x1d73   :  { %v1268_v22 = vmul.f32 %v1266_v21, %v1249_v15 }
0x1d75   :  { %1270 = vrot.lane.b32.xlu0 %v1268_v22, %s2666_s3 }
0x1de7   :  { %v1271_v23 = vpop.permute.xlu0 %1270 }
0x1de8   :  { %1274 = vst.msk [vmem:[#allocation2 + $0x8] sm:$0x3] %vm319_vm6, %v1271_v23  ;;  %2225 = vmatmul.msk.f32.vlgmr.msra.gmra.mxu1 %vm253_vm7, %v1271_v23 }
0x1def   :  { %v1501_v25 = vld [vmem:[#allocation2 + $0x8] sm:$0x3] }
0x1df0   :  { %v1502_v26 = vsel %vm156_vm11, %v1500_v24, %v1501_v25  ;;  %v1504_v27 = vsel %vm156_vm11, %v1501_v25, %v1500_v24 }
0x1df1   :  { %1503 = vst.msk [vmem:[#allocation2 + $0x6] sm:$0x3] %vm319_vm6, %v1502_v26 }
0x1df2   :  { %1505 = vst.msk [vmem:[#allocation2 + $0x8] sm:$0x3] %vm319_vm6, %v1504_v27 }
0x1df8   :  { %v1513_v28 = vld [vmem:[#allocation2 + $0x6] sm:$0x3] }
0x1df9   :  { %v1514_v30 = vld [vmem:[#allocation2 + $0x8] sm:$0x3]  ;;  %1532 = vst [vmem:[#allocation1 + $0x3] ss:$4 sm:$0xff] %v1513_v28 }
0x1dfa   :  { %1534 = vst [vmem:[#allocation1 + $0x20] ss:$4 sm:$0xff] %v1514_v30 }
0x1e65   :  { %v1297_v35 = vpop.f32.mrf.mxu1 }
0x1e66   :  { %v1300_v36 = vadd.f32 %v1297_v35, %v1277_v34  ;;  %v1488_v35 = vld [vmem:[#allocation2 + $0x2] sm:$0x3] }
0x1e68   :  { %2390 = vtanh.f32 %v1300_v36  ;;  %v1301_v38 = vsub.f32 0.0, %v1300_v36 }
0x1e6a   :  { %v1302_v39 = vmul.f32 1.442695, %v1301_v38 }
0x1e6c   :  { %2392 = vpow2.f32 %v1302_v39 }
0x1e6e   :  { %v2391_v37 = vpop.eup %2390 }
0x1e6f   :  { %1323 = vrot.lane.b32.xlu1 %v2391_v37, %s2655_s21 }
0x1e72   :  { %v2393_v40 = vpop.eup %2392 }
0x1e73   :  { %v1304_v41 = vadd.f32 1.0, %v2393_v40 }
0x1e75   :  { %2394 = vrcp.f32 %v1304_v41  ;;  %v1316_v47 = vand.u32 2147483648, %v1304_v41  ;;  %vm1310_vm8 = vweird.f32 %v1304_v41  ;;  %v1314_v48 = vand.u32 2147483647, %v1304_v41 }
0x1e77   :  { %v1317_v50 = vor.u32 1.1754944e-38, %v1316_v47  ;;  %vm1315_vm10 = vcmp.eq.f32.partialorder %v1314_v48, 8.507059e+37 }
0x1e7b   :  { %v2395_v42 = vpop.eup %2394 }
0x1e7c   :  { %v1306_v43 = vmul.f32 %v2395_v42, %v1304_v41  ;;  %vm1311_vm5 = vweird.f32 %v2395_v42  ;;  %v1413_v41 = vld [vmem:[#allocation3 + $0xe] sm:$0x3] }
0x1e7d   :  { %vm1312_vm9 = vmor %vm1310_vm8, %vm1311_vm5 }
0x1e7e   :  { %v1307_v44 = vsub.f32 1.0, %v1306_v43 }
0x1e80   :  { %v1308_v45 = vmul.f32 %v2395_v42, %v1307_v44 }
0x1e82   :  { %v1309_v46 = vadd.f32 %v2395_v42, %v1308_v45 }
0x1e84   :  { %v1313_v49 = vsel %vm1312_vm9, %v2395_v42, %v1309_v46  ;;  %v1414_v42 = vld [vmem:[#allocation3] sm:$0x3] }
0x1e85   :  { %v1318_v52 = vsel %vm1315_vm10, %v1317_v50, %v1313_v49  ;;  %v1415_v43 = vsel %vm2795_vm1, %v1413_v41, %v1414_v42 }
0x1e86   :  { %v1321_v54 = vmul.f32 %v1318_v52, %v1262_v19 }
0x1ee1   :  { %v1324_v51 = vpop.permute.xlu1 %1323 }
0x1ee2   :  { %v1326_v53 = vmul.f32 %v1324_v51, %v1318_v52 }
0x1ee4   :  { %1328 = vrot.lane.b32.xlu2 %v1326_v53, %s2666_s3 }
0x1f3e   :  { %v1329_v55 = vpop.permute.xlu2 %1328 }
0x1f3f   :  { %v1331_v56 = vadd.f32 %v1329_v55, %v1321_v54 }
0x1f41   :  { %2396 = vtanh.f32 %v1331_v56 }
0x1f47   :  { %v2397_v57 = vpop.eup %2396 }
0x1f48   :  { %1334 = vrot.lane.b32.xlu0 %v2397_v57, %s2655_s21 }
0x1fba   :  { %v1335_v58 = vpop.permute.xlu0 %1334 }
0x1fbb   :  { %v1337_v59 = vmul.f32 %v1335_v58, %v1318_v52 }
0x1fbd   :  { %1339 = vrot.lane.b32.xlu1 %v1337_v59, %s2666_s3 }
0x202f   :  { %v1340_v60 = vpop.permute.xlu1 %1339 }
0x2030   :  { %1343 = vst.msk [vmem:[#allocation2 + $0xa] sm:$0x3] %vm319_vm6, %v1340_v60  ;;  %2226 = vmatmul.msk.f32.vlgmr.msrb.gmra.mxu2 %vm253_vm7, %v1340_v60 }
0x2037   :  { %v1495_v62 = vld [vmem:[#allocation2 + $0xa] sm:$0x3] }
0x2038   :  { %v1496_v63 = vsel %vm156_vm11, %v1494_v61, %v1495_v62  ;;  %v1498_v0 = vsel %vm156_vm11, %v1495_v62, %v1494_v61 }
0x2039   :  { %1497 = vst.msk [vmem:[#allocation2 + $0x4] sm:$0x3] %vm319_vm6, %v1496_v63 }
0x203a   :  { %1499 = vst.msk [vmem:[#allocation2 + $0xa] sm:$0x3] %vm319_vm6, %v1498_v0 }
0x2040   :  { %v1512_v1 = vld [vmem:[#allocation2 + $0x4] sm:$0x3] }
0x2041   :  { %v1515_v2 = vld [vmem:[#allocation2 + $0xa] sm:$0x3]  ;;  %1530 = vst [vmem:[#allocation1 + $0x2] ss:$4 sm:$0xff] %v1512_v1 }
0x2042   :  { %1536 = vst [vmem:[#allocation1 + $0x21] ss:$4 sm:$0xff] %v1515_v2 }
0x20b3   :  { %v1366_v6 = vpop.f32.mrf.mxu2 }
0x20b4   :  { %v1369_v7 = vadd.f32 %v1366_v6, %v1346_v5  ;;  %v2269_v5 = vld [vmem:[#allocation11 + $0x8] sm:$0xff]  ;;  %v2268_v6 = vld [vmem:[#allocation11] sm:$0xff] }
0x20b5   :  { %1571 = vmatpush.bf16.msra.mxu0 %v2269_v5 }
0x20b6   :  { %2398 = vtanh.f32 %v1369_v7  ;;  %v1370_v9 = vsub.f32 0.0, %v1369_v7  ;;  %v1604_v7 = vld [vmem:[#allocation12 + $0x18] sm:$0xff] }
0x20b7   :  { %1620 = vmatpush.msrb.mxu1 %v1604_v7  ;;  %1688 = vmatpush.msra.mxu2 %v1604_v7 }
0x20b8   :  { %v1371_v10 = vmul.f32 1.442695, %v1370_v9  ;;  %v1602_v9 = vld [vmem:[#allocation12 + $0x8] sm:$0xff]  ;;  %1756 = vmatpush.msrb.mxu3 %v1604_v7 }
0x20b9   :  { %1572 = vmatpush.bf16.msra.mxu0 %v2268_v6 }
0x20ba   :  { %2400 = vpow2.f32 %v1371_v10 }
0x20bc   :  { %v2399_v8 = vpop.eup %2398 }
0x20bd   :  { %1392 = vrot.lane.b32.xlu2 %v2399_v8, %s2655_s21  ;;  %v1603_v8 = vld [vmem:[#allocation12 + $0x10] sm:$0xff]  ;;  %2028 = vmatpush.msrb.mxu0 %v1604_v7 }
0x20be   :  { %1621 = vmatpush.msrb.mxu1 %v1603_v8  ;;  %1689 = vmatpush.msra.mxu2 %v1603_v8 }
0x20bf   :  { %1757 = vmatpush.msrb.mxu3 %v1603_v8  ;;  %2029 = vmatpush.msrb.mxu0 %v1603_v8 }
0x20c0   :  { %v2401_v11 = vpop.eup %2400  ;;  %1622 = vmatpush.msrb.mxu1 %v1602_v9  ;;  %1690 = vmatpush.msra.mxu2 %v1602_v9 }
0x20c1   :  { %v1373_v12 = vadd.f32 1.0, %v2401_v11  ;;  %v1601_v11 = vld [vmem:[#allocation12] sm:$0xff]  ;;  %1758 = vmatpush.msrb.mxu3 %v1602_v9  ;;  %2030 = vmatpush.msrb.mxu0 %v1602_v9 }
0x20c2   :  { %1623 = vmatpush.msrb.mxu1 %v1601_v11  ;;  %1691 = vmatpush.msra.mxu2 %v1601_v11 }
0x20c3   :  { %2402 = vrcp.f32 %v1373_v12  ;;  %v1385_v19 = vand.u32 2147483648, %v1373_v12  ;;  %vm1379_vm13 = vweird.f32 %v1373_v12  ;;  %v1383_v20 = vand.u32 2147483647, %v1373_v12  ;;  %1624 = vmatmul.f32.vlgmr.msrb.gmra.mxu1 %v2665_v13  ;;  %1759 = vmatpush.msrb.mxu3 %v1601_v11 }
0x20c4   :  { %1824 = vmatpush.msra.mxu1 %v1604_v7  ;;  %1892 = vmatpush.msrb.mxu2 %v1604_v7 }
0x20c5   :  { %v1386_v22 = vor.u32 1.1754944e-38, %v1385_v19  ;;  %vm1384_vm15 = vcmp.eq.f32.partialorder %v1383_v20, 8.507059e+37  ;;  %2031 = vmatpush.msrb.mxu0 %v1601_v11 }
0x20c6   :  { %1825 = vmatpush.msra.mxu1 %v1603_v8  ;;  %1893 = vmatpush.msrb.mxu2 %v1603_v8 }
0x20c8   :  { %1826 = vmatpush.msra.mxu1 %v1602_v9  ;;  %1894 = vmatpush.msrb.mxu2 %v1602_v9 }
0x20c9   :  { %v2403_v14 = vpop.eup %2402 }
0x20ca   :  { %v1375_v15 = vmul.f32 %v2403_v14, %v1373_v12  ;;  %vm1380_vm12 = vweird.f32 %v2403_v14  ;;  %v1482_v12 = vld [vmem:[#allocation2] sm:$0x3]  ;;  %1827 = vmatpush.msra.mxu1 %v1601_v11  ;;  %1895 = vmatpush.msrb.mxu2 %v1601_v11 }
0x20cb   :  { %vm1381_vm14 = vmor %vm1379_vm13, %vm1380_vm12 }
0x20cc   :  { %v1376_v16 = vsub.f32 1.0, %v1375_v15  ;;  %2096 = vmatpush.msrb.mxu1 %v1604_v7 }
0x20ce   :  { %v1377_v17 = vmul.f32 %v2403_v14, %v1376_v16  ;;  %2097 = vmatpush.msrb.mxu1 %v1603_v8 }
0x20d0   :  { %v1378_v18 = vadd.f32 %v2403_v14, %v1377_v17  ;;  %2098 = vmatpush.msrb.mxu1 %v1602_v9 }
0x20d2   :  { %v1382_v21 = vsel %vm1381_vm14, %v2403_v14, %v1378_v18  ;;  %2099 = vmatpush.msrb.mxu1 %v1601_v11 }
0x20d3   :  { %v1387_v24 = vsel %vm1384_vm15, %v1386_v22, %v1382_v21  ;;  %v2285_v21 = vld [vmem:[#allocation14] ss:$0 sm:$0xff] }
0x20d4   :  { %v1390_v26 = vmul.f32 %v1387_v24, %v1331_v56 }
0x2117   :  { %v1393_v23 = vpop.permute.xlu2 %1392 }
0x2118   :  { %v1395_v25 = vmul.f32 %v1393_v23, %v1387_v24 }
0x211a   :  { %1397 = vrot.lane.b32.xlu0 %v1395_v25, %s2666_s3 }
0x218c   :  { %v1398_v27 = vpop.permute.xlu0 %1397 }
0x218d   :  { %v1400_v28 = vadd.f32 %v1398_v27, %v1390_v26 }
0x218f   :  { %2404 = vtanh.f32 %v1400_v28 }
0x2195   :  { %v2405_v30 = vpop.eup %2404 }
0x2196   :  { %1403 = vrot.lane.b32.xlu1 %v2405_v30, %s2655_s21 }
0x2208   :  { %v1404_v31 = vpop.permute.xlu1 %1403 }
0x2209   :  { %v1406_v33 = vmul.f32 %v1404_v31, %v1387_v24 }
0x220b   :  { %1408 = vrot.lane.b32.xlu2 %v1406_v33, %s2666_s3 }
0x2265   :  { %v1409_v34 = vpop.permute.xlu2 %1408 }
0x2266   :  { %1412 = vst.msk [vmem:[#allocation2 + $0xc] sm:$0x3] %vm319_vm6, %v1409_v34  ;;  %2227 = vmatmul.msk.f32.vlgmr.msra.gmra.mxu3 %vm253_vm7, %v1409_v34  ;;  %v1625_v34 = vpop.f32.mrf.mxu1 }
0x2267   :  { %1960 = vmatpush.msra.mxu3 %v1604_v7 }
0x2269   :  { %1961 = vmatpush.msra.mxu3 %v1603_v8 }
0x226b   :  { %1962 = vmatpush.msra.mxu3 %v1602_v9 }
0x226d   :  { %v1489_v36 = vld [vmem:[#allocation2 + $0xc] sm:$0x3]  ;;  %1963 = vmatpush.msra.mxu3 %v1601_v11 }
0x226e   :  { %v1490_v37 = vsel %vm156_vm11, %v1488_v35, %v1489_v36  ;;  %v1492_v38 = vsel %vm156_vm11, %v1489_v36, %v1488_v35 }
0x226f   :  { %1491 = vst.msk [vmem:[#allocation2 + $0x2] sm:$0x3] %vm319_vm6, %v1490_v37 }
0x2270   :  { %1493 = vst.msk [vmem:[#allocation2 + $0xc] sm:$0x3] %vm319_vm6, %v1492_v38 }
0x2276   :  { %v1511_v39 = vld [vmem:[#allocation2 + $0x2] sm:$0x3] }
0x2277   :  { %v1516_v40 = vld [vmem:[#allocation2 + $0xc] sm:$0x3]  ;;  %1528 = vst [vmem:[#allocation1 + $0x1] ss:$4 sm:$0xff] %v1511_v39 }
0x2278   :  { %1538 = vst [vmem:[#allocation1 + $0x22] ss:$4 sm:$0xff] %v1516_v40 }
0x22e9   :  { %v1435_v44 = vpop.f32.mrf.mxu3 }
0x22ea   :  { %v1438_v45 = vadd.f32 %v1435_v44, %v1415_v43 }
0x22ec   :  { %2406 = vtanh.f32 %v1438_v45  ;;  %v1439_v47 = vsub.f32 0.0, %v1438_v45 }
0x22ee   :  { %v1440_v48 = vmul.f32 1.442695, %v1439_v47 }
0x22f0   :  { %2408 = vpow2.f32 %v1440_v48 }
0x22f2   :  { %v2407_v46 = vpop.eup %2406 }
0x22f3   :  { %1461 = vrot.lane.b32.xlu0 %v2407_v46, %s2655_s21 }
0x22f6   :  { %v2409_v49 = vpop.eup %2408 }
0x22f7   :  { %v1442_v50 = vadd.f32 1.0, %v2409_v49 }
0x22f9   :  { %2410 = vrcp.f32 %v1442_v50  ;;  %v1454_v56 = vand.u32 2147483648, %v1442_v50  ;;  %vm1448_vm2 = vweird.f32 %v1442_v50  ;;  %v1452_v57 = vand.u32 2147483647, %v1442_v50 }
0x22fb   :  { %v1455_v59 = vor.u32 1.1754944e-38, %v1454_v56  ;;  %vm1453_vm4 = vcmp.eq.f32.partialorder %v1452_v57, 8.507059e+37 }
0x22ff   :  { %v2411_v51 = vpop.eup %2410 }
0x2300   :  { %v1444_v52 = vmul.f32 %v2411_v51, %v1442_v50  ;;  %vm1449_vm0 = vweird.f32 %v2411_v51 }
0x2301   :  { %vm1450_vm3 = vmor %vm1448_vm2, %vm1449_vm0 }
0x2302   :  { %v1445_v53 = vsub.f32 1.0, %v1444_v52 }
0x2304   :  { %v1446_v54 = vmul.f32 %v2411_v51, %v1445_v53 }
0x2306   :  { %v1447_v55 = vadd.f32 %v2411_v51, %v1446_v54 }
0x2308   :  { %v1451_v58 = vsel %vm1450_vm3, %v2411_v51, %v1447_v55 }
0x2309   :  { %v1456_v61 = vsel %vm1453_vm4, %v1455_v59, %v1451_v58 }
0x230a   :  { %v1459_v63 = vmul.f32 %v1456_v61, %v1400_v28 }
0x2365   :  { %v1462_v60 = vpop.permute.xlu0 %1461 }
0x2366   :  { %v1464_v62 = vmul.f32 %v1462_v60, %v1456_v61 }
0x2368   :  { %1466 = vrot.lane.b32.xlu1 %v1464_v62, %s2666_s3 }
0x23da   :  { %v1467_v0 = vpop.permute.xlu1 %1466 }
0x23db   :  { %v1469_v1 = vadd.f32 %v1467_v0, %v1459_v63 }
0x23dd   :  { %2412 = vtanh.f32 %v1469_v1 }
0x23e3   :  { %v2413_v2 = vpop.eup %2412 }
0x23e4   :  { %1472 = vrot.lane.b32.xlu2 %v2413_v2, %s2655_s21 }
0x243e   :  { %v1473_v3 = vpop.permute.xlu2 %1472 }
0x243f   :  { %v1475_v4 = vmul.f32 %v1473_v3, %v1456_v61 }
0x2441   :  { %1477 = vrot.lane.b32.xlu0 %v1475_v4, %s2666_s3 }
0x24b3   :  { %v1478_v10 = vpop.permute.xlu0 %1477 }
0x24b4   :  { %1481 = vst.msk [vmem:[#allocation2 + $0xe] sm:$0x3] %vm319_vm6, %v1478_v10 }
0x24bb   :  { %v1483_v14 = vld [vmem:[#allocation2 + $0xe] sm:$0x3] }
0x24bc   :  { %v1484_v15 = vsel %vm156_vm11, %v1482_v12, %v1483_v14  ;;  %v1486_v16 = vsel %vm156_vm11, %v1483_v14, %v1482_v12 }
0x24bd   :  { %1485 = vst.msk [vmem:[#allocation2] sm:$0x3] %vm319_vm6, %v1484_v15 }
0x24be   :  { %1487 = vst.msk [vmem:[#allocation2 + $0xe] sm:$0x3] %vm319_vm6, %v1486_v16 }
0x24c4   :  { %v1510_v13 = vld [vmem:[#allocation2] sm:$0x3] }
0x24c5   :  { %v1517_v17 = vld [vmem:[#allocation2 + $0xe] sm:$0x3]  ;;  %1526 = vst [vmem:[#allocation1] ss:$4 sm:$0xff] %v1510_v13 }
0x24c6   :  { %1540 = vst [vmem:[#allocation1 + $0x23] ss:$4 sm:$0xff] %v1517_v17 }
0x24cc   :  { %v1541_v18 = vld.sshfl [vmem:[#allocation1] sm:$0xff pattern:$0x73625140] }
0x24cd   :  { %v1542_v19 = vld.sshfl [vmem:[#allocation1 + $0x20] sm:$0xff pattern:$0x73625140] }
0x24ce   :  { %v1545_v20 = vpack.c.bf16 %v1542_v19, %v1541_v18 }
0x24d0   :  { %2236 = vmatmul.msk.bf16.vlgmr.msra.gmra.mxu0 %vm253_vm7, %v1545_v20 }
0x254d   :  { %v1574_v22 = vpop.f32.mrf.mxu0 }
0x254e   :  { %v1575_v23 = vadd.f32 %v2285_v21, %v1574_v22 }
0x2550   :  { %v1581_v24 = vrot.slane %v1575_v23, 2  ;;  %v1582_v25 = vrot.slane %v1575_v23, 4  ;;  %v1583_v26 = vrot.slane %v1575_v23, 6  ;;  %1593 = vst [vmem:[#allocation3] sm:$0x3] %v1575_v23 }
0x2552   :  { %1594 = vst [vmem:[#allocation3 + $0x2] sm:$0x3] %v1581_v24 }
0x2553   :  { %1595 = vst [vmem:[#allocation3 + $0x4] sm:$0x3] %v1582_v25 }
0x2554   :  { %1596 = vst [vmem:[#allocation3 + $0x6] sm:$0x3] %v1583_v26 }
0x2555   :  { %v1576_v27 = vpop.f32.mrf.mxu0 }
0x2556   :  { %v1577_v28 = vadd.f32 %v2285_v21, %v1576_v27 }
0x2557   :  { %v1605_v35 = vld [vmem:[#allocation3] sm:$0x3] }
0x2558   :  { %v1584_v30 = vrot.slane %v1577_v28, 2  ;;  %v1585_v31 = vrot.slane %v1577_v28, 4  ;;  %v1586_v33 = vrot.slane %v1577_v28, 6  ;;  %1597 = vst [vmem:[#allocation3 + $0x8] sm:$0x3] %v1577_v28 }
0x2559   :  { %v1671_v0 = vld [vmem:[#allocation3 + $0x2] sm:$0x3] }
0x255a   :  { %1598 = vst [vmem:[#allocation3 + $0xa] sm:$0x3] %v1584_v30  ;;  %v1739_v30 = vld [vmem:[#allocation3 + $0x4] sm:$0x3] }
0x255b   :  { %1599 = vst [vmem:[#allocation3 + $0xc] sm:$0x3] %v1585_v31 }
0x255c   :  { %1600 = vst [vmem:[#allocation3 + $0xe] sm:$0x3] %v1586_v33 }
0x2561   :  { %v1740_v28 = vld [vmem:[#allocation3 + $0xa] sm:$0x3] }
0x2562   :  { %v1672_v63 = vld [vmem:[#allocation3 + $0xc] sm:$0x3]  ;;  %v1741_v31 = vsel %vm2795_vm1, %v1739_v30, %v1740_v28 }
0x2563   :  { %v1606_v36 = vld [vmem:[#allocation3 + $0xe] sm:$0x3]  ;;  %v1673_v1 = vsel %vm2795_vm1, %v1671_v0, %v1672_v63 }
0x2564   :  { %v1607_v37 = vsel %vm2795_vm1, %v1605_v35, %v1606_v36 }
0x2565   :  { %v1628_v38 = vadd.f32 %v1625_v34, %v1607_v37 }
0x2567   :  { %2414 = vtanh.f32 %v1628_v38  ;;  %v1629_v40 = vsub.f32 0.0, %v1628_v38 }
0x2569   :  { %v1630_v41 = vmul.f32 1.442695, %v1629_v40 }
0x256b   :  { %2416 = vpow2.f32 %v1630_v41 }
0x256d   :  { %v2415_v39 = vpop.eup %2414 }
0x256e   :  { %1651 = vrot.lane.b32.xlu1 %v2415_v39, %s2655_s21 }
0x2571   :  { %v2417_v42 = vpop.eup %2416 }
0x2572   :  { %v1632_v43 = vadd.f32 1.0, %v2417_v42 }
0x2574   :  { %2418 = vrcp.f32 %v1632_v43  ;;  %v1644_v49 = vand.u32 2147483648, %v1632_v43  ;;  %vm1638_vm8 = vweird.f32 %v1632_v43  ;;  %v1642_v50 = vand.u32 2147483647, %v1632_v43 }
0x2576   :  { %v1645_v52 = vor.u32 1.1754944e-38, %v1644_v49  ;;  %vm1643_vm10 = vcmp.eq.f32.partialorder %v1642_v50, 8.507059e+37 }
0x257a   :  { %v2419_v44 = vpop.eup %2418 }
0x257b   :  { %v1634_v45 = vmul.f32 %v2419_v44, %v1632_v43  ;;  %vm1639_vm5 = vweird.f32 %v2419_v44 }
0x257c   :  { %vm1640_vm9 = vmor %vm1638_vm8, %vm1639_vm5 }
0x257d   :  { %v1635_v46 = vsub.f32 1.0, %v1634_v45 }
0x257f   :  { %v1636_v47 = vmul.f32 %v2419_v44, %v1635_v46 }
0x2581   :  { %v1637_v48 = vadd.f32 %v2419_v44, %v1636_v47 }
0x2583   :  { %v1641_v51 = vsel %vm1640_vm9, %v2419_v44, %v1637_v48 }
0x2584   :  { %v1646_v54 = vsel %vm1643_vm10, %v1645_v52, %v1641_v51 }
0x2585   :  { %v1649_v56 = vmul.f32 0.0, %v1646_v54 }
0x25e0   :  { %v1652_v53 = vpop.permute.xlu1 %1651 }
0x25e1   :  { %v1654_v55 = vmul.f32 %v1652_v53, %v1646_v54 }
0x25e3   :  { %1656 = vrot.lane.b32.xlu2 %v1654_v55, %s2666_s3 }
0x263d   :  { %v1657_v57 = vpop.permute.xlu2 %1656 }
0x263e   :  { %v1659_v58 = vadd.f32 %v1657_v57, %v1649_v56 }
0x2640   :  { %2420 = vtanh.f32 %v1659_v58 }
0x2646   :  { %v2421_v59 = vpop.eup %2420 }
0x2647   :  { %1662 = vrot.lane.b32.xlu0 %v2421_v59, %s2655_s21  ;;  %v1808_v59 = vld [vmem:[#allocation3 + $0x8] sm:$0x3] }
0x26b9   :  { %v1663_v60 = vpop.permute.xlu0 %1662 }
0x26ba   :  { %v1665_v61 = vmul.f32 %v1663_v60, %v1646_v54  ;;  %v1807_v60 = vld [vmem:[#allocation3 + $0x6] sm:$0x3] }
0x26bc   :  { %1667 = vrot.lane.b32.xlu1 %v1665_v61, %s2666_s3  ;;  %v1809_v61 = vsel %vm2795_vm1, %v1807_v60, %v1808_v59  ;;  %v1943_v59 = vld [vmem:[#allocation3 + $0xa] sm:$0x3]  ;;  %v1944_v60 = vld [vmem:[#allocation3 + $0x4] sm:$0x3] }
0x272e   :  { %v1668_v62 = vpop.permute.xlu1 %1667 }
0x272f   :  { %1670 = vst.msk [vmem:[%s3243_s10] sm:$0x3] %vm319_vm6, %v1668_v62  ;;  %2237 = vmatmul.msk.f32.vlgmr.msra.gmra.mxu2 %vm253_vm7, %v1668_v62 }
0x27b2   :  { %v1693_v2 = vpop.f32.mrf.mxu2 }
0x27b3   :  { %v1696_v3 = vadd.f32 %v1693_v2, %v1673_v1 }
0x27b5   :  { %2422 = vtanh.f32 %v1696_v3  ;;  %v1697_v5 = vsub.f32 0.0, %v1696_v3 }
0x27b7   :  { %v1698_v6 = vmul.f32 1.442695, %v1697_v5 }
0x27b9   :  { %2424 = vpow2.f32 %v1698_v6 }
0x27bb   :  { %v2423_v4 = vpop.eup %2422 }
0x27bc   :  { %1719 = vrot.lane.b32.xlu2 %v2423_v4, %s2655_s21 }
0x27bf   :  { %v2425_v7 = vpop.eup %2424 }
0x27c0   :  { %v1700_v8 = vadd.f32 1.0, %v2425_v7 }
0x27c2   :  { %2426 = vrcp.f32 %v1700_v8  ;;  %v1712_v15 = vand.u32 2147483648, %v1700_v8  ;;  %vm1706_vm13 = vweird.f32 %v1700_v8  ;;  %v1710_v16 = vand.u32 2147483647, %v1700_v8 }
0x27c4   :  { %v1713_v17 = vor.u32 1.1754944e-38, %v1712_v15  ;;  %vm1711_vm15 = vcmp.eq.f32.partialorder %v1710_v16, 8.507059e+37 }
0x27c8   :  { %v2427_v9 = vpop.eup %2426 }
0x27c9   :  { %v1702_v10 = vmul.f32 %v2427_v9, %v1700_v8  ;;  %vm1707_vm12 = vweird.f32 %v2427_v9 }
0x27ca   :  { %vm1708_vm14 = vmor %vm1706_vm13, %vm1707_vm12 }
0x27cb   :  { %v1703_v11 = vsub.f32 1.0, %v1702_v10 }
0x27cd   :  { %v1704_v12 = vmul.f32 %v2427_v9, %v1703_v11 }
0x27cf   :  { %v1705_v14 = vadd.f32 %v2427_v9, %v1704_v12 }
0x27d1   :  { %v1709_v13 = vsel %vm1708_vm14, %v2427_v9, %v1705_v14 }
0x27d2   :  { %v1714_v19 = vsel %vm1711_vm15, %v1713_v17, %v1709_v13 }
0x27d3   :  { %v1717_v21 = vmul.f32 %v1714_v19, %v1659_v58 }
0x2816   :  { %v1720_v18 = vpop.permute.xlu2 %1719 }
0x2817   :  { %v1722_v20 = vmul.f32 %v1720_v18, %v1714_v19 }
0x2819   :  { %1724 = vrot.lane.b32.xlu0 %v1722_v20, %s2666_s3 }
0x288b   :  { %v1725_v22 = vpop.permute.xlu0 %1724 }
0x288c   :  { %v1727_v23 = vadd.f32 %v1725_v22, %v1717_v21 }
0x288e   :  { %2428 = vtanh.f32 %v1727_v23 }
0x2894   :  { %v2429_v24 = vpop.eup %2428 }
0x2895   :  { %1730 = vrot.lane.b32.xlu1 %v2429_v24, %s2655_s21  ;;  %v1875_v24 = vld [vmem:[#allocation3 + $0x8] sm:$0x3] }
0x2907   :  { %v1731_v25 = vpop.permute.xlu1 %1730 }
0x2908   :  { %v1733_v26 = vmul.f32 %v1731_v25, %v1714_v19  ;;  %v1876_v25 = vld [vmem:[#allocation3 + $0x6] sm:$0x3] }
0x290a   :  { %1735 = vrot.lane.b32.xlu2 %v1733_v26, %s2666_s3  ;;  %v1877_v26 = vsel %vm2795_vm1, %v1875_v24, %v1876_v25 }
0x2964   :  { %v1736_v27 = vpop.permute.xlu2 %1735 }
0x2965   :  { %2238 = vst.msk [vmem:[%s3243_s10 + $0x2] sm:$0x3] %vm319_vm6, %v1736_v27  ;;  %2239 = vmatmul.msk.f32.vlgmr.msrb.gmra.mxu3 %vm253_vm7, %v1736_v27 }
0x29e8   :  { %v1761_v33 = vpop.f32.mrf.mxu3 }
0x29e9   :  { %v1764_v34 = vadd.f32 %v1761_v33, %v1741_v31 }
0x29eb   :  { %2430 = vtanh.f32 %v1764_v34  ;;  %v1765_v36 = vsub.f32 0.0, %v1764_v34 }
0x29ed   :  { %v1766_v37 = vmul.f32 1.442695, %v1765_v36 }
0x29ef   :  { %2432 = vpow2.f32 %v1766_v37 }
0x29f1   :  { %v2431_v35 = vpop.eup %2430 }
0x29f2   :  { %1787 = vrot.lane.b32.xlu0 %v2431_v35, %s2655_s21 }
0x29f5   :  { %v2433_v38 = vpop.eup %2432 }
0x29f6   :  { %v1768_v39 = vadd.f32 1.0, %v2433_v38 }
0x29f8   :  { %2434 = vrcp.f32 %v1768_v39  ;;  %v1780_v45 = vand.u32 2147483648, %v1768_v39  ;;  %vm1774_vm2 = vweird.f32 %v1768_v39  ;;  %v1778_v46 = vand.u32 2147483647, %v1768_v39 }
0x29fa   :  { %v1781_v48 = vor.u32 1.1754944e-38, %v1780_v45  ;;  %vm1779_vm4 = vcmp.eq.f32.partialorder %v1778_v46, 8.507059e+37 }
0x29fe   :  { %v2435_v40 = vpop.eup %2434 }
0x29ff   :  { %v1770_v41 = vmul.f32 %v2435_v40, %v1768_v39  ;;  %vm1775_vm0 = vweird.f32 %v2435_v40 }
0x2a00   :  { %vm1776_vm3 = vmor %vm1774_vm2, %vm1775_vm0 }
0x2a01   :  { %v1771_v42 = vsub.f32 1.0, %v1770_v41 }
0x2a03   :  { %v1772_v43 = vmul.f32 %v2435_v40, %v1771_v42 }
0x2a05   :  { %v1773_v44 = vadd.f32 %v2435_v40, %v1772_v43 }
0x2a07   :  { %v1777_v47 = vsel %vm1776_vm3, %v2435_v40, %v1773_v44 }
0x2a08   :  { %v1782_v50 = vsel %vm1779_vm4, %v1781_v48, %v1777_v47 }
0x2a09   :  { %v1785_v52 = vmul.f32 %v1782_v50, %v1727_v23 }
0x2a64   :  { %v1788_v49 = vpop.permute.xlu0 %1787 }
0x2a65   :  { %v1790_v51 = vmul.f32 %v1788_v49, %v1782_v50 }
0x2a67   :  { %1792 = vrot.lane.b32.xlu1 %v1790_v51, %s2666_s3 }
0x2ad9   :  { %v1793_v53 = vpop.permute.xlu1 %1792 }
0x2ada   :  { %v1795_v54 = vadd.f32 %v1793_v53, %v1785_v52 }
0x2adc   :  { %2436 = vtanh.f32 %v1795_v54 }
0x2ae2   :  { %v2437_v55 = vpop.eup %2436 }
0x2ae3   :  { %1798 = vrot.lane.b32.xlu2 %v2437_v55, %s2655_s21 }
0x2b3d   :  { %v1799_v56 = vpop.permute.xlu2 %1798 }
0x2b3e   :  { %v1801_v57 = vmul.f32 %v1799_v56, %v1782_v50 }
0x2b40   :  { %1803 = vrot.lane.b32.xlu0 %v1801_v57, %s2666_s3 }
0x2bb2   :  { %v1804_v58 = vpop.permute.xlu0 %1803 }
0x2bb3   :  { %2240 = vst.msk [vmem:[%s3243_s10 + $0x4] sm:$0x3] %vm319_vm6, %v1804_v58  ;;  %2241 = vmatmul.msk.f32.vlgmr.msra.gmra.mxu1 %vm253_vm7, %v1804_v58 }
0x2bba   :  { %v2257_v24 = vld [vmem:[%s3243_s10 + $0x4] sm:$0x3] }
0x2c30   :  { %v1829_v62 = vpop.f32.mrf.mxu1 }
0x2c31   :  { %v1832_v63 = vadd.f32 %v1829_v62, %v1809_v61  ;;  %v1945_v61 = vsel %vm2795_vm1, %v1943_v59, %v1944_v60  ;;  %v2253_v59 = vld [vmem:[%s3243_s10 + $0x2] sm:$0x3] }
0x2c33   :  { %2438 = vtanh.f32 %v1832_v63  ;;  %v1833_v1 = vsub.f32 0.0, %v1832_v63 }
0x2c35   :  { %v1834_v2 = vmul.f32 1.442695, %v1833_v1 }
0x2c37   :  { %2440 = vpow2.f32 %v1834_v2 }
0x2c39   :  { %v2439_v0 = vpop.eup %2438 }
0x2c3a   :  { %1855 = vrot.lane.b32.xlu1 %v2439_v0, %s2655_s21 }
0x2c3d   :  { %v2441_v3 = vpop.eup %2440 }
0x2c3e   :  { %v1836_v4 = vadd.f32 1.0, %v2441_v3 }
0x2c40   :  { %2442 = vrcp.f32 %v1836_v4  ;;  %v1848_v10 = vand.u32 2147483648, %v1836_v4  ;;  %vm1842_vm8 = vweird.f32 %v1836_v4  ;;  %v1846_v11 = vand.u32 2147483647, %v1836_v4 }
0x2c42   :  { %v1849_v14 = vor.u32 1.1754944e-38, %v1848_v10  ;;  %vm1847_vm10 = vcmp.eq.f32.partialorder %v1846_v11, 8.507059e+37 }
0x2c46   :  { %v2443_v5 = vpop.eup %2442 }
0x2c47   :  { %v1838_v6 = vmul.f32 %v2443_v5, %v1836_v4  ;;  %vm1843_vm5 = vweird.f32 %v2443_v5 }
0x2c48   :  { %vm1844_vm9 = vmor %vm1842_vm8, %vm1843_vm5 }
0x2c49   :  { %v1839_v7 = vsub.f32 1.0, %v1838_v6 }
0x2c4b   :  { %v1840_v8 = vmul.f32 %v2443_v5, %v1839_v7 }
0x2c4d   :  { %v1841_v9 = vadd.f32 %v2443_v5, %v1840_v8 }
0x2c4f   :  { %v1845_v12 = vsel %vm1844_vm9, %v2443_v5, %v1841_v9 }
0x2c50   :  { %v1850_v16 = vsel %vm1847_vm10, %v1849_v14, %v1845_v12 }
0x2c51   :  { %v1853_v17 = vmul.f32 %v1850_v16, %v1795_v54 }
0x2cac   :  { %v1856_v15 = vpop.permute.xlu1 %1855 }
0x2cad   :  { %v1858_v13 = vmul.f32 %v1856_v15, %v1850_v16 }
0x2caf   :  { %1860 = vrot.lane.b32.xlu2 %v1858_v13, %s2666_s3 }
0x2d09   :  { %v1861_v18 = vpop.permute.xlu2 %1860 }
0x2d0a   :  { %v1863_v19 = vadd.f32 %v1861_v18, %v1853_v17 }
0x2d0c   :  { %2444 = vtanh.f32 %v1863_v19 }
0x2d12   :  { %v2445_v20 = vpop.eup %2444 }
0x2d13   :  { %1866 = vrot.lane.b32.xlu0 %v2445_v20, %s2655_s21 }
0x2d85   :  { %v1867_v21 = vpop.permute.xlu0 %1866 }
0x2d86   :  { %v1869_v22 = vmul.f32 %v1867_v21, %v1850_v16 }
0x2d88   :  { %1871 = vrot.lane.b32.xlu1 %v1869_v22, %s2666_s3 }
0x2dfa   :  { %v1872_v23 = vpop.permute.xlu1 %1871 }
0x2dfb   :  { %2242 = vst.msk [vmem:[%s3243_s10 + $0x6] sm:$0x3] %vm319_vm6, %v1872_v23  ;;  %2243 = vmatmul.msk.f32.vlgmr.msrb.gmra.mxu2 %vm253_vm7, %v1872_v23 }
0x2e02   :  { %v2261_v55 = vld [vmem:[%s3243_s10 + $0x6] sm:$0x3] }
0x2e7e   :  { %v1897_v27 = vpop.f32.mrf.mxu2 }
0x2e7f   :  { %v1900_v28 = vadd.f32 %v1897_v27, %v1877_v26 }
0x2e81   :  { %2446 = vtanh.f32 %v1900_v28  ;;  %v1901_v31 = vsub.f32 0.0, %v1900_v28  ;;  %v2011_v28 = vld [vmem:[#allocation3 + $0xc] sm:$0x3] }
0x2e83   :  { %v1902_v33 = vmul.f32 1.442695, %v1901_v31 }
0x2e85   :  { %2448 = vpow2.f32 %v1902_v33 }
0x2e87   :  { %v2447_v30 = vpop.eup %2446 }
0x2e88   :  { %1923 = vrot.lane.b32.xlu2 %v2447_v30, %s2655_s21  ;;  %v2012_v30 = vld [vmem:[#allocation3 + $0x2] sm:$0x3] }
0x2e89   :  { %v2013_v31 = vsel %vm2795_vm1, %v2011_v28, %v2012_v30 }
0x2e8b   :  { %v2449_v34 = vpop.eup %2448 }
0x2e8c   :  { %v1904_v35 = vadd.f32 1.0, %v2449_v34 }
0x2e8e   :  { %2450 = vrcp.f32 %v1904_v35  ;;  %v1916_v41 = vand.u32 2147483648, %v1904_v35  ;;  %vm1910_vm13 = vweird.f32 %v1904_v35  ;;  %v1914_v42 = vand.u32 2147483647, %v1904_v35 }
0x2e90   :  { %v1917_v44 = vor.u32 1.1754944e-38, %v1916_v41  ;;  %vm1915_vm15 = vcmp.eq.f32.partialorder %v1914_v42, 8.507059e+37 }
0x2e94   :  { %v2451_v36 = vpop.eup %2450 }
0x2e95   :  { %v1906_v37 = vmul.f32 %v2451_v36, %v1904_v35  ;;  %vm1911_vm12 = vweird.f32 %v2451_v36 }
0x2e96   :  { %vm1912_vm14 = vmor %vm1910_vm13, %vm1911_vm12 }
0x2e97   :  { %v1907_v38 = vsub.f32 1.0, %v1906_v37 }
0x2e99   :  { %v1908_v39 = vmul.f32 %v2451_v36, %v1907_v38 }
0x2e9b   :  { %v1909_v40 = vadd.f32 %v2451_v36, %v1908_v39 }
0x2e9d   :  { %v1913_v43 = vsel %vm1912_vm14, %v2451_v36, %v1909_v40 }
0x2e9e   :  { %v1918_v46 = vsel %vm1915_vm15, %v1917_v44, %v1913_v43 }
0x2e9f   :  { %v1921_v48 = vmul.f32 %v1918_v46, %v1863_v19 }
0x2ee2   :  { %v1924_v45 = vpop.permute.xlu2 %1923 }
0x2ee3   :  { %v1926_v47 = vmul.f32 %v1924_v45, %v1918_v46 }
0x2ee5   :  { %1928 = vrot.lane.b32.xlu0 %v1926_v47, %s2666_s3 }
0x2f57   :  { %v1929_v49 = vpop.permute.xlu0 %1928 }
0x2f58   :  { %v1931_v50 = vadd.f32 %v1929_v49, %v1921_v48 }
0x2f5a   :  { %2452 = vtanh.f32 %v1931_v50 }
0x2f60   :  { %v2453_v51 = vpop.eup %2452 }
0x2f61   :  { %1934 = vrot.lane.b32.xlu1 %v2453_v51, %s2655_s21 }
0x2fd3   :  { %v1935_v52 = vpop.permute.xlu1 %1934 }
0x2fd4   :  { %v1937_v53 = vmul.f32 %v1935_v52, %v1918_v46 }
0x2fd6   :  { %1939 = vrot.lane.b32.xlu2 %v1937_v53, %s2666_s3 }
0x3030   :  { %v1940_v54 = vpop.permute.xlu2 %1939 }
0x3031   :  { %2244 = vst.msk [vmem:[%s3243_s10 + $0x8] sm:$0x3] %vm319_vm6, %v1940_v54  ;;  %2245 = vmatmul.msk.f32.vlgmr.msra.gmra.mxu3 %vm253_vm7, %v1940_v54 }
0x3038   :  { %v2262_v56 = vld [vmem:[%s3243_s10 + $0x8] sm:$0x3] }
0x3039   :  { %v2167_v57 = vsel %vm156_vm11, %v2261_v55, %v2262_v56  ;;  %v2169_v58 = vsel %vm156_vm11, %v2262_v56, %v2261_v55 }
0x303a   :  { %2263 = vst.msk [vmem:[%s3243_s10 + $0x6] sm:$0x3] %vm319_vm6, %v2167_v57 }
0x303b   :  { %2264 = vst.msk [vmem:[%s3243_s10 + $0x8] sm:$0x3] %vm319_vm6, %v2169_v58 }
0x30b4   :  { %v1965_v62 = vpop.f32.mrf.mxu3 }
0x30b5   :  { %v1968_v63 = vadd.f32 %v1965_v62, %v1945_v61 }
0x30b7   :  { %2454 = vtanh.f32 %v1968_v63  ;;  %v1969_v1 = vsub.f32 0.0, %v1968_v63  ;;  %v2079_v63 = vld [vmem:[#allocation3 + $0xe] sm:$0x3] }
0x30b9   :  { %v1970_v2 = vmul.f32 1.442695, %v1969_v1 }
0x30bb   :  { %2456 = vpow2.f32 %v1970_v2 }
0x30bd   :  { %v2455_v0 = vpop.eup %2454 }
0x30be   :  { %1991 = vrot.lane.b32.xlu0 %v2455_v0, %s2655_s21  ;;  %v2080_v0 = vld [vmem:[#allocation3] sm:$0x3] }
0x30bf   :  { %v2081_v1 = vsel %vm2795_vm1, %v2079_v63, %v2080_v0 }
0x30c1   :  { %v2457_v3 = vpop.eup %2456 }
0x30c2   :  { %v1972_v4 = vadd.f32 1.0, %v2457_v3 }
0x30c4   :  { %2458 = vrcp.f32 %v1972_v4  ;;  %v1984_v10 = vand.u32 2147483648, %v1972_v4  ;;  %vm1978_vm2 = vweird.f32 %v1972_v4  ;;  %v1982_v11 = vand.u32 2147483647, %v1972_v4 }
0x30c6   :  { %v1985_v14 = vor.u32 1.1754944e-38, %v1984_v10  ;;  %vm1983_vm4 = vcmp.eq.f32.partialorder %v1982_v11, 8.507059e+37 }
0x30ca   :  { %v2459_v5 = vpop.eup %2458 }
0x30cb   :  { %v1974_v6 = vmul.f32 %v2459_v5, %v1972_v4  ;;  %vm1979_vm0 = vweird.f32 %v2459_v5 }
0x30cc   :  { %vm1980_vm3 = vmor %vm1978_vm2, %vm1979_vm0 }
0x30cd   :  { %v1975_v7 = vsub.f32 1.0, %v1974_v6 }
0x30cf   :  { %v1976_v8 = vmul.f32 %v2459_v5, %v1975_v7 }
0x30d1   :  { %v1977_v9 = vadd.f32 %v2459_v5, %v1976_v8 }
0x30d3   :  { %v1981_v12 = vsel %vm1980_vm3, %v2459_v5, %v1977_v9 }
0x30d4   :  { %v1986_v16 = vsel %vm1983_vm4, %v1985_v14, %v1981_v12 }
0x30d5   :  { %v1989_v17 = vmul.f32 %v1986_v16, %v1931_v50 }
0x3130   :  { %v1992_v15 = vpop.permute.xlu0 %1991 }
0x3131   :  { %v1994_v13 = vmul.f32 %v1992_v15, %v1986_v16 }
0x3133   :  { %1996 = vrot.lane.b32.xlu1 %v1994_v13, %s2666_s3 }
0x31a5   :  { %v1997_v18 = vpop.permute.xlu1 %1996 }
0x31a6   :  { %v1999_v19 = vadd.f32 %v1997_v18, %v1989_v17 }
0x31a8   :  { %2460 = vtanh.f32 %v1999_v19 }
0x31ae   :  { %v2461_v20 = vpop.eup %2460 }
0x31af   :  { %2002 = vrot.lane.b32.xlu2 %v2461_v20, %s2655_s21 }
0x3209   :  { %v2003_v21 = vpop.permute.xlu2 %2002 }
0x320a   :  { %v2005_v22 = vmul.f32 %v2003_v21, %v1986_v16 }
0x320c   :  { %2007 = vrot.lane.b32.xlu0 %v2005_v22, %s2666_s3 }
0x327e   :  { %v2008_v23 = vpop.permute.xlu0 %2007 }
0x327f   :  { %2246 = vst.msk [vmem:[%s3243_s10 + $0xa] sm:$0x3] %vm319_vm6, %v2008_v23  ;;  %2247 = vmatmul.msk.f32.vlgmr.msrb.gmra.mxu0 %vm253_vm7, %v2008_v23 }
0x3286   :  { %v2258_v25 = vld [vmem:[%s3243_s10 + $0xa] sm:$0x3] }
0x3287   :  { %v2161_v26 = vsel %vm156_vm11, %v2257_v24, %v2258_v25  ;;  %v2163_v27 = vsel %vm156_vm11, %v2258_v25, %v2257_v24 }
0x3288   :  { %2259 = vst.msk [vmem:[%s3243_s10 + $0x4] sm:$0x3] %vm319_vm6, %v2161_v26 }
0x3289   :  { %2260 = vst.msk [vmem:[%s3243_s10 + $0xa] sm:$0x3] %vm319_vm6, %v2163_v27  ;;  %v2147_v27 = vld [vmem:[%s3243_s10] sm:$0x3] }
0x32fc   :  { %v2033_v33 = vpop.f32.mrf.mxu0 }
0x32fd   :  { %v2036_v34 = vadd.f32 %v2033_v33, %v2013_v31 }
0x32ff   :  { %2462 = vtanh.f32 %v2036_v34  ;;  %v2037_v36 = vsub.f32 0.0, %v2036_v34 }
0x3301   :  { %v2038_v37 = vmul.f32 1.442695, %v2037_v36 }
0x3303   :  { %2464 = vpow2.f32 %v2038_v37 }
0x3305   :  { %v2463_v35 = vpop.eup %2462 }
0x3306   :  { %2059 = vrot.lane.b32.xlu1 %v2463_v35, %s2655_s21 }
0x3309   :  { %v2465_v38 = vpop.eup %2464 }
0x330a   :  { %v2040_v39 = vadd.f32 1.0, %v2465_v38 }
0x330c   :  { %2466 = vrcp.f32 %v2040_v39  ;;  %v2052_v45 = vand.u32 2147483648, %v2040_v39  ;;  %vm2046_vm8 = vweird.f32 %v2040_v39  ;;  %v2050_v46 = vand.u32 2147483647, %v2040_v39 }
0x330e   :  { %v2053_v48 = vor.u32 1.1754944e-38, %v2052_v45  ;;  %vm2051_vm10 = vcmp.eq.f32.partialorder %v2050_v46, 8.507059e+37 }
0x3312   :  { %v2467_v40 = vpop.eup %2466 }
0x3313   :  { %v2042_v41 = vmul.f32 %v2467_v40, %v2040_v39  ;;  %vm2047_vm5 = vweird.f32 %v2467_v40 }
0x3314   :  { %vm2048_vm9 = vmor %vm2046_vm8, %vm2047_vm5 }
0x3315   :  { %v2043_v42 = vsub.f32 1.0, %v2042_v41 }
0x3317   :  { %v2044_v43 = vmul.f32 %v2467_v40, %v2043_v42 }
0x3319   :  { %v2045_v44 = vadd.f32 %v2467_v40, %v2044_v43 }
0x331b   :  { %v2049_v47 = vsel %vm2048_vm9, %v2467_v40, %v2045_v44 }
0x331c   :  { %v2054_v50 = vsel %vm2051_vm10, %v2053_v48, %v2049_v47 }
0x331d   :  { %v2057_v52 = vmul.f32 %v2054_v50, %v1999_v19 }
0x3378   :  { %v2060_v49 = vpop.permute.xlu1 %2059 }
0x3379   :  { %v2062_v51 = vmul.f32 %v2060_v49, %v2054_v50 }
0x337b   :  { %2064 = vrot.lane.b32.xlu2 %v2062_v51, %s2666_s3 }
0x33d5   :  { %v2065_v53 = vpop.permute.xlu2 %2064 }
0x33d6   :  { %v2067_v54 = vadd.f32 %v2065_v53, %v2057_v52 }
0x33d8   :  { %2468 = vtanh.f32 %v2067_v54 }
0x33de   :  { %v2469_v55 = vpop.eup %2468 }
0x33df   :  { %2070 = vrot.lane.b32.xlu0 %v2469_v55, %s2655_s21 }
0x3451   :  { %v2071_v56 = vpop.permute.xlu0 %2070 }
0x3452   :  { %v2073_v57 = vmul.f32 %v2071_v56, %v2054_v50 }
0x3454   :  { %2075 = vrot.lane.b32.xlu1 %v2073_v57, %s2666_s3 }
0x34c6   :  { %v2076_v58 = vpop.permute.xlu1 %2075 }
0x34c7   :  { %2248 = vst.msk [vmem:[%s3243_s10 + $0xc] sm:$0x3] %vm319_vm6, %v2076_v58  ;;  %2249 = vmatmul.msk.f32.vlgmr.msrb.gmra.mxu1 %vm253_vm7, %v2076_v58 }
0x34ce   :  { %v2254_v60 = vld [vmem:[%s3243_s10 + $0xc] sm:$0x3] }
0x34cf   :  { %v2155_v61 = vsel %vm156_vm11, %v2253_v59, %v2254_v60  ;;  %v2157_v62 = vsel %vm156_vm11, %v2254_v60, %v2253_v59 }
0x34d0   :  { %2255 = vst.msk [vmem:[%s3243_s10 + $0x2] sm:$0x3] %vm319_vm6, %v2155_v61 }
0x34d1   :  { %2256 = vst.msk [vmem:[%s3243_s10 + $0xc] sm:$0x3] %vm319_vm6, %v2157_v62 }
0x3544   :  { %v2101_v2 = vpop.f32.mrf.mxu1 }
0x3545   :  { %v2104_v3 = vadd.f32 %v2101_v2, %v2081_v1 }
0x3547   :  { %2470 = vtanh.f32 %v2104_v3  ;;  %v2105_v5 = vsub.f32 0.0, %v2104_v3 }
0x3549   :  { %v2106_v6 = vmul.f32 1.442695, %v2105_v5 }
0x354b   :  { %2472 = vpow2.f32 %v2106_v6 }
0x354d   :  { %v2471_v4 = vpop.eup %2470 }
0x354e   :  { %2127 = vrot.lane.b32.xlu2 %v2471_v4, %s2655_s21 }
0x3551   :  { %v2473_v7 = vpop.eup %2472 }
0x3552   :  { %v2108_v8 = vadd.f32 1.0, %v2473_v7 }
0x3554   :  { %2474 = vrcp.f32 %v2108_v8  ;;  %v2120_v32 = vand.u32 2147483648, %v2108_v8  ;;  %vm2114_vm1 = vweird.f32 %v2108_v8  ;;  %v2118_v15 = vand.u32 2147483647, %v2108_v8 }
0x3556   :  { %v2121_v13 = vor.u32 1.1754944e-38, %v2120_v32  ;;  %vm2119_vm13 = vcmp.eq.f32.partialorder %v2118_v15, 8.507059e+37 }
0x355a   :  { %v2475_v9 = vpop.eup %2474 }
0x355b   :  { %v2110_v10 = vmul.f32 %v2475_v9, %v2108_v8  ;;  %vm2115_vm7 = vweird.f32 %v2475_v9 }
0x355c   :  { %vm2116_vm12 = vmor %vm2114_vm1, %vm2115_vm7 }
0x355d   :  { %v2111_v11 = vsub.f32 1.0, %v2110_v10 }
0x355f   :  { %v2112_v12 = vmul.f32 %v2475_v9, %v2111_v11 }
0x3561   :  { %v2113_v14 = vadd.f32 %v2475_v9, %v2112_v12 }
0x3563   :  { %v2117_v16 = vsel %vm2116_vm12, %v2475_v9, %v2113_v14 }
0x3564   :  { %v2122_v18 = vsel %vm2119_vm13, %v2121_v13, %v2117_v16 }
0x3565   :  { %v2125_v20 = vmul.f32 %v2122_v18, %v2067_v54 }
0x35a8   :  { %v2128_v17 = vpop.permute.xlu2 %2127 }
0x35a9   :  { %v2130_v19 = vmul.f32 %v2128_v17, %v2122_v18 }
0x35ab   :  { %2132 = vrot.lane.b32.xlu0 %v2130_v19, %s2666_s3 }
0x361d   :  { %v2133_v21 = vpop.permute.xlu0 %2132 }
0x361e   :  { %v2135_v22 = vadd.f32 %v2133_v21, %v2125_v20 }
0x3620   :  { %2476 = vtanh.f32 %v2135_v22 }
0x3626   :  { %v2477_v23 = vpop.eup %2476 }
0x3627   :  { %2138 = vrot.lane.b32.xlu1 %v2477_v23, %s2655_s21 }
0x3699   :  { %v2139_v24 = vpop.permute.xlu1 %2138 }
0x369a   :  { %v2141_v25 = vmul.f32 %v2139_v24, %v2122_v18 }
0x369c   :  { %2143 = vrot.lane.b32.xlu2 %v2141_v25, %s2666_s3 }
0x36f6   :  { %v2144_v26 = vpop.permute.xlu2 %2143 }
0x36f7   :  { %2250 = vst.msk [vmem:[%s3243_s10 + $0xe] sm:$0x3] %vm319_vm6, %v2144_v26 }
0x36fe   :  { %v2251_v28 = vld [vmem:[%s3243_s10 + $0xe] sm:$0x3] }
0x36ff   :  { %v2149_v30 = vsel %vm156_vm11, %v2147_v27, %v2251_v28  ;;  %v2151_v31 = vsel %vm156_vm11, %v2251_v28, %v2147_v27 }
0x3700   :  { %2150 = vst.msk [vmem:[%s3243_s10] sm:$0x3] %vm319_vm6, %v2149_v30 }
0x3701   :  { %2252 = vst.msk [vmem:[%s3243_s10 + $0xe] sm:$0x3] %vm319_vm6, %v2151_v31 }
0x3702   :  { %2175 = vsyncpa [#allocation5], 1 }
0x3703   :  { %2176 = vsyncpa [#allocation7], 1 }
0x3704   :  { %2177 = vsyncpa [#allocation10], 1 }
0x3705   :  { %2178 = vsyncpa [#allocation13], 1 }

// kernel: trfm_seq2seq_forward.3
= control target key start
LH: loop header
LB: loop body
LE: loop exit
PB: predicated region body
PF: predicated region fallthrough
CT: control target
= control target key end

     0   :  { %s6403_s0 = inlined_call_operand.vmem [shape: f32[8,2,32], index: 0, kind: input, shape index: {}]   ;;  %s6404_s1 = inlined_call_operand.hbm [shape: bf16[2,32,96], index: 1, kind: input, shape index: {}]   ;;  %s6405_s2 = inlined_call_operand.vmem [shape: f32[2,1,96], index: 2, kind: input, shape index: {}]   ;;  %s6406_s3 = inlined_call_operand.hbm [shape: bf16[2,32,32], index: 3, kind: input, shape index: {}]   ;;  %s6407_s4 = inlined_call_operand.vmem [shape: f32[2,1,32], index: 4, kind: input, shape index: {}]   ;;  %s6408_s5 = inlined_call_operand.vmem [shape: f32[2,1,32], index: 5, kind: input, shape index: {}]   ;;  %s6409_s6 = inlined_call_operand.hbm [shape: f32[2,1,32], index: 6, kind: input, shape index: {}]   ;;  %s6410_s7 = inlined_call_operand.hbm [shape: bf16[2,32,32], index: 7, kind: input, shape index: {}]   ;;  %s6411_s8 = inlined_call_operand.hbm [shape: f32[2,1,32], index: 8, kind: input, shape index: {}]   ;;  %s6412_s9 = inlined_call_operand.hbm [shape: bf16[2,32,32], index: 9, kind: input, shape index: {}]   ;;  %s6413_s10 = inlined_call_operand.hbm [shape: f32[2,1,32], index: 10, kind: input, shape index: {}]   ;;  %s6414_s11 = inlined_call_operand.hbm [shape: f32[2,1,32], index: 11, kind: input, shape index: {}]   ;;  %s6415_s12 = inlined_call_operand.hbm [shape: f32[2,1,32], index: 12, kind: input, shape index: {}]   ;;  %s6416_s13 = inlined_call_operand.hbm [shape: f32[1,32], index: 13, kind: input, shape index: {}]   ;;  %s6417_s14 = inlined_call_operand.hbm [shape: f32[1,32], index: 14, kind: input, shape index: {}]   ;;  %s6418_s15 = inlined_call_operand.vmem [shape: f32[8,2,32], index: 15, kind: output, shape index: {}]  }
   0x1   :  { %6424 = sst [smem:[#allocation25_spill]] %s6404_s1 }
   0x2   :  { %6425 = sst [smem:[#allocation26_spill]] %s6406_s3 }
   0x3   :  { %6426 = sst [smem:[#allocation27_spill]] %s6410_s7 }
   0x4   :  { %6427 = sst [smem:[#allocation28_spill]] %s6412_s9 }
   0x5   :  { %6428 = sst [smem:[#allocation29_spill]] %s6414_s11 }
   0x6   :  { %20 = vsyncpa [#allocation3], 0 }
   0x7   :  { %21 = vsyncpa [#allocation5], 0 }
   0x8   :  { %22 = vsyncpa [#allocation8], 0 }
   0x9   :  { %23 = vsyncpa [#allocation11], 0 }
   0xa   :  { %24 = vsyncpa [#allocation14], 0 }
   0xb   :  { %25 = vsyncpa [#allocation17], 0  ;;  %s5330_s18 = smov 0  }
   0xc LB: > { %s6419_s19 = sadd.s32 4294967295, %s5220_s18   ;;  %p4316_p0 = scmp.ge.s32.totalorder %s5220_s18, 1  ;;  %s5220_s18 = sphi %s5330_s18, %s31_s18  }
   0xd   : > { %p382_p1 = scmp.lt.s32.totalorder %s5220_s18, 3  ;;  %p5340_p2 = scmp.eq.s32.totalorder %s6419_s19, 0 }
   0xe   : > { %s6430_s3 = sld [smem:[#allocation26_spill]]  ;;  %s5222_s28 = smov [#allocation4]  }
   0xf   : > { %p5347_p3 = pnand %p4316_p0, %p382_p1  ;;  %s6432_s7 = sld [smem:[#allocation27_spill]] }
  0x10   : > { %s412_s29 = sshll.u32 %s5222_s28, 4  ;;  %s5223_s16 = smov [#allocation7]   ;;  %s413_s29 = int_to_ptr.vmem [resolvable:$true] %s412_s29 }
  0x11   : > { %p4610_p4 = pneg %p5347_p3  ;;  %s446_s17 = sshll.u32 %s5223_s16, 4  ;;  %s447_s17 = int_to_ptr.vmem [resolvable:$true] %s446_s17 }
  0x12   : > { %s6434_s9 = sld [smem:[#allocation28_spill]]  ;;  %s6420_s26 = smov 64  }
  0x13   : > { %p5358_p5 = pnand %p5340_p2, %p4610_p4  ;;  %s6421_s19 = smov 4  }
  0x14   : > { %s410_s23 = sshll.u32 %s6430_s3, 4  ;;  %s5226_s28 = smov [#allocation10]   ;;  %s411_s23 = int_to_ptr.hbm [resolvable:$true] %s410_s23 }
  0x15   : > { %s444_s27 = sshll.u32 %s6432_s7, 4  ;;  %s474_s16 = sshll.u32 %s5226_s28, 4  ;;  %s445_s27 = int_to_ptr.hbm [resolvable:$true] %s444_s27  ;;  %s475_s16 = int_to_ptr.vmem [resolvable:$true] %s474_s16 }
  0x16   : > { %4616 = dma.hbm_to_vmem [thread:$0]  (!%p5358_p5), %s411_s23, 512, %s413_s29, [#allocation5], %s6420_s26, %s6420_s26, %s6421_s19  }
  0x17   : > { %4622 = dma.hbm_to_vmem [thread:$0]  (!%p5358_p5), %s445_s27, 512, %s447_s17, [#allocation8], %s6420_s26, %s6420_s26, %s6421_s19  }
  0x18   : > { %s472_s25 = sshll.u32 %s6434_s9, 4  ;;  %s6435_s11 = sld [smem:[#allocation29_spill]]  ;;  %s473_s25 = int_to_ptr.hbm [resolvable:$true] %s472_s25 }
  0x19   : > { %4628 = dma.hbm_to_vmem [thread:$0]  (!%p5358_p5), %s473_s25, 512, %s475_s16, [#allocation11], %s6420_s26, %s6420_s26, %s6421_s19  }
  0x1a   : > { %s5227_s23 = smov [#allocation13]   ;;  %s529_s17 = sshll.u32 %s6416_s13, 4  ;;  %s530_s17 = int_to_ptr.hbm [resolvable:$true] %s529_s17 }
  0x1b   : > { %s502_s29 = sshll.u32 %s5227_s23, 4  ;;  %s6422_s28 = smov 16   ;;  %s503_s29 = int_to_ptr.vmem [resolvable:$true] %s502_s29 }
  0x1c   : > { %s5229_s9 = smov 1   ;;  %s5230_s25 = smov [#allocation16]  }
  0x1d   : > { %s531_s16 = sshll.u32 %s5230_s25, 4  ;;  %s6436_s1 = sld [smem:[#allocation25_spill]]  ;;  %s532_s16 = int_to_ptr.vmem [resolvable:$true] %s531_s16 }
  0x1e   : > { %s500_s3 = sshll.u32 %s6435_s11, 4  ;;  %s430_s26 = sshll.u32 %s6409_s6, 4  ;;  %s501_s3 = int_to_ptr.hbm [resolvable:$true] %s500_s3  ;;  %s431_s26 = int_to_ptr.hbm [resolvable:$true] %s430_s26 }
  0x1f   : > { %4634 = dma.hbm_to_vmem [thread:$0]  (!%p5358_p5), %s501_s3, 32, %s503_s29, [#allocation14], %s6422_s28, %s6422_s28, %s5229_s9  }
  0x20   : > { %4640 = dma.hbm_to_vmem [thread:$0]  (!%p5358_p5), %s530_s17, 16, %s532_s16, [#allocation17]  }
  0x21   : > { %s5231_s19 = smov [#allocation2]   ;;  %s6437_s3 = smov 4  }
  0x22   : > { %s395_s11 = sshll.u32 %s5231_s19, 4  ;;  %s6438_s29 = smov 64   ;;  %s396_s11 = int_to_ptr.vmem [resolvable:$true] %s395_s11 }
  0x23   : > { %s393_s23 = sshll.u32 %s6436_s1, 4  ;;  %s5232_s25 = smov [#allocation6]   ;;  %s394_s23 = int_to_ptr.hbm [resolvable:$true] %s393_s23 }
  0x24   : > { %4613 = dma.hbm_to_vmem [thread:$0]  (!%p5358_p5), %s394_s23, 512, %s396_s11, [#allocation3], %s6438_s29, %s6438_s29, %s6437_s3  }
  0x25   : > { %s432_s21 = sshll.u32 %s5232_s25, 4  ;;  %s458_s17 = sshll.u32 %s6411_s8, 4  ;;  %s433_s21 = int_to_ptr.vmem [resolvable:$true] %s432_s21  ;;  %s459_s17 = int_to_ptr.hbm [resolvable:$true] %s458_s17 }
  0x26   : > { %s6439_s16 = smov 16   ;;  %s486_s27 = sshll.u32 %s6413_s10, 4  ;;  %s487_s27 = int_to_ptr.hbm [resolvable:$true] %s486_s27 }
  0x27   : > { %4619 = dma.hbm_to_vmem [thread:$0]  (!%p5358_p5), %s431_s26, 32, %s433_s21, [#allocation5], %s6439_s16, %s6439_s16, %s5229_s9  }
  0x28   : > { %s5233_s1 = smov [#allocation9]   ;;  %s5234_s28 = smov [#allocation12]  }
  0x29   : > { %s460_s11 = sshll.u32 %s5233_s1, 4  ;;  %s488_s23 = sshll.u32 %s5234_s28, 4  ;;  %s461_s11 = int_to_ptr.vmem [resolvable:$true] %s460_s11  ;;  %s489_s23 = int_to_ptr.vmem [resolvable:$true] %s488_s23 }
  0x2a   : > { %4625 = dma.hbm_to_vmem [thread:$0]  (!%p5358_p5), %s459_s17, 32, %s461_s11, [#allocation8], %s6439_s16, %s6439_s16, %s5229_s9  }
  0x2b   : > { %s514_s26 = sshll.u32 %s6415_s12, 4  ;;  %s541_s21 = sshll.u32 %s6417_s14, 4  ;;  %s515_s26 = int_to_ptr.hbm [resolvable:$true] %s514_s26  ;;  %s542_s21 = int_to_ptr.hbm [resolvable:$true] %s541_s21 }
  0x2c   : > { %4631 = dma.hbm_to_vmem [thread:$0]  (!%p5358_p5), %s487_s27, 32, %s489_s23, [#allocation11], %s6439_s16, %s6439_s16, %s5229_s9  }
  0x2d   : > { %s5235_s22 = smov [#allocation15]   ;;  %s5236_s19 = smov [#allocation18]  }
  0x2e   : > { %s516_s17 = sshll.u32 %s5235_s22, 4  ;;  %s543_s7 = sshll.u32 %s5236_s19, 4  ;;  %s517_s17 = int_to_ptr.vmem [resolvable:$true] %s516_s17  ;;  %s544_s7 = int_to_ptr.vmem [resolvable:$true] %s543_s7 }
  0x2f   : > { %4637 = dma.hbm_to_vmem [thread:$0]  (!%p5358_p5), %s515_s26, 32, %s517_s17, [#allocation14], %s6439_s16, %s6439_s16, %s5229_s9  }
  0x30   : > { %4643 = dma.hbm_to_vmem [thread:$0]  (!%p5358_p5), %s542_s21, 16, %s544_s7, [#allocation17]  }
  0x31   : > { %565 = sbr.rel (%p5347_p3) target bundleno = 4628 (0x1214), region = 80 }
  0x36   : > { %5195 = dma.done.wait (%p5340_p2), [#allocation3], 512  }
  0x37   : > { %5197 = vsyncadd (%p5340_p2), [#allocation3], 4294966784 }
  0x38   : > { %5199 = dma.done.wait (%p5340_p2), [#allocation5], 544  }
  0x39   : > { %5201 = vsyncadd (%p5340_p2), [#allocation5], 4294966752 }
  0x3a   : > { %5203 = dma.done.wait (%p5340_p2), [#allocation8], 544  }
  0x3b   : > { %5205 = vsyncadd (%p5340_p2), [#allocation8], 4294966752 }
  0x3c   : > { %5207 = dma.done.wait (%p5340_p2), [#allocation11], 544  }
  0x3d   : > { %5209 = vsyncadd (%p5340_p2), [#allocation11], 4294966752 }
  0x3e   : > { %5211 = dma.done.wait (%p5340_p2), [#allocation14], 64  }
  0x3f   : > { %5213 = vsyncadd (%p5340_p2), [#allocation14], 4294967232 }
  0x40   : > { %5215 = dma.done.wait (%p5340_p2), [#allocation17], 32  }
  0x41   : > { %5217 = vsyncadd (%p5340_p2), [#allocation17], 4294967264  ;;  %s6440_s9 = sadd.s32 4294967295, %s5220_s18   ;;  %v4551_v0 = vld [vmem:[#allocation2 + $0x8] sm:$0xff]  ;;  %v4550_v2 = vld [vmem:[#allocation2] sm:$0xff]  ;;  %vm727_vm0 = vcmask 261120  }
  0x42   : > { %s4341_s24 = sshll.u32 %s6440_s9, 2  ;;  %737 = vmatpush.bf16.msra.mxu0 %v4551_v0  ;;  %v4702_v8 = vld [vmem:[%s6405_s2] ss:$0 sm:$0xff]  ;;  %s5237_s23 = smov 112   ;;  %vm776_vm1 = vcmask 64512   ;;  %vm1237_vm2 = vcmask 9216  }
  0x43   : > { %p665_p6 = scmp.lt.s32.totalorder %s4341_s24, 7  ;;  %s5238_s3 = smov 120   ;;  %vm1422_vm3 = vcmask 1041408   ;;  %vm1418_vm4 = vcmask 15360   ;;  %vm1937_vm5 = vcmask 195584   ;;  %vm1932_vm6 = vcmask 130048  }
  0x44   : > { %s5239_s29 = smov 104   ;;  %s5240_s26 = smov 96  }
  0x45   : > { %s6442_s24 = smov (!%p665_p6, %s4341_s24), 7  ;;  %s5241_s1 = smov 64  }
  0x46   : > { %s4342_s30 = sshll.u32 %s6442_s24, 1  ;;  %738 = vmatpush.bf16.msra.mxu0 %v4550_v2  ;;  %s5242_s25 = smov 8  }
  0x47   : > { %s668_s11 = scalar_lea.vmem %s6403_s0, %s4342_s30  ;;  %s5243_s21 = smov 16  }
  0x48   : > { %v5474_v1 = vld [vmem:[%s668_s11] sm:$0x3]  ;;  %v5476_v3 = vld [vmem:[%s668_s11 + $0x2] sm:$0x3]  ;;  %v5478_v4 = vld [vmem:[%s668_s11 + $0x4] sm:$0x3] }
  0x49   : > { %v5480_v5 = vld [vmem:[%s668_s11 + $0x6] sm:$0x3]  ;;  %701 = vst [vmem:[#allocation1] ss:$4 sm:$0xff] %v5474_v1  ;;  %s5244_s22 = smov 24  }
  0x4a   : > { %703 = vst [vmem:[#allocation1 + $0x1] ss:$4 sm:$0xff] %v5476_v3 }
  0x4b   : > { %705 = vst [vmem:[#allocation1 + $0x2] ss:$4 sm:$0xff] %v5478_v4 }
  0x4c   : > { %707 = vst [vmem:[#allocation1 + $0x3] ss:$4 sm:$0xff] %v5480_v5 }
  0x53   : > { %v708_v6 = vld.sshfl [vmem:[#allocation1] sm:$0xff pattern:$0x73625140] }
  0x54   : > { %v710_v7 = vpack.c.bf16 %v708_v6, %v708_v6 }
  0x56   : > { %4353 = vmatmul.msk.bf16.vlgmr.msra.gmra.mxu0 %vm727_vm0, %v710_v7 }
  0xd3   : > { %v740_v9 = vpop.f32.mrf.mxu0 }
  0xd4   : > { %v5490_v10 = vadd.f32 %v4702_v8, %v740_v9 }
  0xd6   : > { %772 = vst [vmem:[#allocation1] ss:$4 sm:$0xff] %v5490_v10  ;;  %756 = vrot.lane.b32.xlu2 %v5490_v10, %s5237_s23  ;;  %748 = vrot.lane.b32.xlu0 %v5490_v10, %s5238_s3  ;;  %v5498_v11 = vrot.slane %v5490_v10, 4  ;;  %v5503_v13 = vrot.slane %v5490_v10, 2  ;;  %v5511_v15 = vrot.slane %v5490_v10, 6 }
  0xd8   : > { %752 = vrot.lane.b32.xlu1 %v5498_v11, %s5238_s3 }
  0xdb   : > { %v742_v12 = vpop.f32.mrf.mxu0 }
  0xdd   : > { %v773_v14 = vld.sshfl [vmem:[#allocation1] sm:$0xff pattern:$0x73625140] }
  0xde   : > { %758 = vrot.lane.b32.xlu2 %v5503_v13, %s5237_s23  ;;  %801 = vst [vmem:[#allocation1] ss:$4 sm:$0xff] %v5503_v13  ;;  %750 = vrot.lane.b32.xlu0 %v5503_v13, %s5238_s3 }
  0xe0   : > { %754 = vrot.lane.b32.xlu1 %v5511_v15, %s5238_s3 }
  0xe5   : > { %v802_v16 = vld.sshfl [vmem:[#allocation1] sm:$0xff pattern:$0x73625140] }
  0xe6   : > { %829 = vst [vmem:[#allocation1] ss:$4 sm:$0xff] %v5498_v11  ;;  %764 = vrot.lane.b32.xlu2 %v5490_v10, %s5239_s29  ;;  %760 = vrot.lane.b32.xlu0 %v5498_v11, %s5237_s23 }
  0xe8   : > { %762 = vrot.lane.b32.xlu1 %v5511_v15, %s5237_s23 }
  0xed   : > { %v830_v17 = vld.sshfl [vmem:[#allocation1] sm:$0xff pattern:$0x73625140] }
  0xee   : > { %857 = vst [vmem:[#allocation1] ss:$4 sm:$0xff] %v5511_v15  ;;  %770 = vrot.lane.b32.xlu2 %v5511_v15, %s5239_s29  ;;  %766 = vrot.lane.b32.xlu0 %v5503_v13, %s5239_s29 }
  0xf0   : > { %768 = vrot.lane.b32.xlu1 %v5498_v11, %s5239_s29 }
  0xf5   : > { %v858_v18 = vld.sshfl [vmem:[#allocation1] sm:$0xff pattern:$0x73625140] }
  0xf6   : > { %774 = vrot.lane.b32.xlu0 %v773_v14, %s5240_s26  ;;  %831 = vrot.lane.b32.xlu2 %v830_v17, %s5240_s26 }
  0xf8   : > { %803 = vrot.lane.b32.xlu1 %v802_v16, %s5240_s26 }
 0x100   : > { %859 = vrot.lane.b32.xlu1 %v858_v18, %s5240_s26 }
 0x130   : > { %v5533_v19 = vpop.permute.xlu2 %756 }
 0x138   : > { %v5535_v20 = vpop.permute.xlu2 %758 }
 0x140   : > { %v5537_v21 = vpop.permute.xlu2 %764 }
 0x148   : > { %v5539_v22 = vpop.permute.xlu0 %748  ;;  %v5541_v23 = vpop.permute.xlu2 %770 }
 0x149   : > { %885 = vst [vmem:[#allocation1] ss:$4 sm:$0xff] %v5539_v22 }
 0x14a   : > { %v5544_v24 = vpop.permute.xlu1 %752 }
 0x150   : > { %v886_v25 = vld.sshfl [vmem:[#allocation1] sm:$0xff pattern:$0x73625140]  ;;  %v5546_v26 = vpop.permute.xlu0 %750  ;;  %v832_v27 = vpop.permute.xlu2 %831 }
 0x151   : > { %913 = vst [vmem:[#allocation1] ss:$4 sm:$0xff] %v5546_v26  ;;  %4358 = vmatpush.xpose.msk.msra.mxu3 %vm776_vm1, %v832_v27  ;;  %887 = vrot.lane.b32.xlu0 %v886_v25, %s5240_s26 }
 0x152   : > { %v5551_v28 = vpop.permute.xlu1 %754 }
 0x154   : > { %4359 = vmatmul.msk.f32.vlgmr.msra.gmra.mxu3 %vm776_vm1, %v5498_v11 }
 0x158   : > { %v914_v29 = vld.sshfl [vmem:[#allocation1] sm:$0xff pattern:$0x73625140]  ;;  %v5555_v30 = vpop.permute.xlu0 %760 }
 0x159   : > { %941 = vst [vmem:[#allocation1] ss:$4 sm:$0xff] %v5544_v24  ;;  %915 = vrot.lane.b32.xlu2 %v914_v29, %s5240_s26 }
 0x15a   : > { %v5559_v31 = vpop.permute.xlu1 %762 }
 0x160   : > { %v942_v32 = vld.sshfl [vmem:[#allocation1] sm:$0xff pattern:$0x73625140]  ;;  %v5561_v33 = vpop.permute.xlu0 %766 }
 0x161   : > { %969 = vst [vmem:[#allocation1] ss:$4 sm:$0xff] %v5551_v28 }
 0x162   : > { %v5564_v34 = vpop.permute.xlu1 %768 }
 0x168   : > { %v970_v35 = vld.sshfl [vmem:[#allocation1] sm:$0xff pattern:$0x73625140]  ;;  %v775_v36 = vpop.permute.xlu0 %774 }
 0x169   : > { %997 = vst [vmem:[#allocation1] ss:$4 sm:$0xff] %v5533_v19  ;;  %4354 = vmatpush.xpose.msk.msra.mxu2 %vm776_vm1, %v775_v36  ;;  %971 = vrot.lane.b32.xlu0 %v970_v35, %s5240_s26 }
 0x16a   : > { %v804_v37 = vpop.permute.xlu1 %803 }
 0x16c   : > { %4355 = vmatmul.msk.f32.vlgmr.msra.gmra.mxu2 %vm776_vm1, %v5490_v10 }
 0x16d   : > { %4356 = vmatpush.xpose.msk.msrb.mxu2 %vm776_vm1, %v804_v37 }
 0x170   : > { %v998_v38 = vld.sshfl [vmem:[#allocation1] sm:$0xff pattern:$0x73625140] }
 0x171   : > { %1025 = vst [vmem:[#allocation1] ss:$4 sm:$0xff] %v5535_v20  ;;  %943 = vrot.lane.b32.xlu0 %v942_v32, %s5240_s26  ;;  %999 = vrot.lane.b32.xlu1 %v998_v38, %s5240_s26 }
 0x172   : > { %v860_v39 = vpop.permute.xlu1 %859 }
 0x173   : > { %4360 = vmatpush.xpose.msk.msra.mxu1 %vm776_vm1, %v860_v39 }
 0x174   : > { %4357 = vmatmul.msk.f32.vlgmr.msrb.gmra.mxu2 %vm776_vm1, %v5503_v13 }
 0x176   : > { %4361 = vmatmul.msk.f32.vlgmr.msra.gmra.mxu1 %vm776_vm1, %v5511_v15 }
 0x178   : > { %v1026_v40 = vld.sshfl [vmem:[#allocation1] sm:$0xff pattern:$0x73625140] }
 0x179   : > { %1053 = vst [vmem:[#allocation1] ss:$4 sm:$0xff] %v5555_v30  ;;  %1027 = vrot.lane.b32.xlu0 %v1026_v40, %s5240_s26 }
 0x180   : > { %v1054_v41 = vld.sshfl [vmem:[#allocation1] sm:$0xff pattern:$0x73625140] }
 0x181   : > { %1081 = vst [vmem:[#allocation1] ss:$4 sm:$0xff] %v5559_v31 }
 0x188   : > { %v1082_v42 = vld.sshfl [vmem:[#allocation1] sm:$0xff pattern:$0x73625140] }
 0x189   : > { %1109 = vst [vmem:[#allocation1] ss:$4 sm:$0xff] %v5537_v21  ;;  %1083 = vrot.lane.b32.xlu2 %v1082_v42, %s5240_s26 }
 0x190   : > { %v1110_v43 = vld.sshfl [vmem:[#allocation1] sm:$0xff pattern:$0x73625140] }
 0x191   : > { %1137 = vst [vmem:[#allocation1] ss:$4 sm:$0xff] %v5561_v33  ;;  %1111 = vrot.lane.b32.xlu1 %v1110_v43, %s5240_s26 }
 0x198   : > { %v1138_v44 = vld.sshfl [vmem:[#allocation1] sm:$0xff pattern:$0x73625140] }
 0x199   : > { %1165 = vst [vmem:[#allocation1] ss:$4 sm:$0xff] %v5564_v34  ;;  %1055 = vrot.lane.b32.xlu1 %v1054_v41, %s5240_s26 }
 0x1a0   : > { %v1166_v45 = vld.sshfl [vmem:[#allocation1] sm:$0xff pattern:$0x73625140] }
 0x1a1   : > { %1193 = vst [vmem:[#allocation1] ss:$4 sm:$0xff] %v5541_v23  ;;  %1167 = vrot.lane.b32.xlu0 %v1166_v45, %s5240_s26 }
 0x1a8   : > { %v1194_v46 = vld.sshfl [vmem:[#allocation1] sm:$0xff pattern:$0x73625140] }
 0x1a9   : > { %1414 = vst [vmem:[#allocation1] ss:$4 sm:$0xff] %v5490_v10  ;;  %1195 = vrot.lane.b32.xlu2 %v1194_v46, %s5240_s26 }
 0x1b0   : > { %v1415_v47 = vld.sshfl [vmem:[#allocation1] sm:$0xff pattern:$0x73625140] }
 0x1b1   : > { %1445 = vst [vmem:[#allocation1] ss:$4 sm:$0xff] %v5503_v13  ;;  %1139 = vrot.lane.b32.xlu2 %v1138_v44, %s5240_s26  ;;  %1416 = vrot.lane.b32.xlu1 %v1415_v47, %s5241_s1 }
 0x1b3   : > { %v916_v48 = vpop.permute.xlu2 %915 }
 0x1b4   : > { %4364 = vmatpush.xpose.msk.msrb.mxu3 %vm776_vm1, %v916_v48 }
 0x1b7   : > { %4365 = vmatmul.msk.f32.vlgmr.msrb.gmra.mxu3 %vm776_vm1, %v5546_v26 }
 0x1b8   : > { %v1446_v49 = vld.sshfl [vmem:[#allocation1] sm:$0xff pattern:$0x73625140] }
 0x1b9   : > { %1474 = vst [vmem:[#allocation1] ss:$4 sm:$0xff] %v5498_v11  ;;  %1447 = vrot.lane.b32.xlu0 %v1446_v49, %s5241_s1 }
 0x1c0   : > { %v1475_v50 = vld.sshfl [vmem:[#allocation1] sm:$0xff pattern:$0x73625140] }
 0x1c1   : > { %1503 = vst [vmem:[#allocation1] ss:$4 sm:$0xff] %v5511_v15  ;;  %1476 = vrot.lane.b32.xlu1 %v1475_v50, %s5241_s1 }
 0x1c3   : > { %v888_v51 = vpop.permute.xlu0 %887 }
 0x1c4   : > { %4362 = vmatpush.xpose.msk.msra.mxu2 %vm776_vm1, %v888_v51 }
 0x1c7   : > { %4363 = vmatmul.msk.f32.vlgmr.msra.gmra.mxu2 %vm776_vm1, %v5539_v22 }
 0x1c8   : > { %v1504_v52 = vld.sshfl [vmem:[#allocation1] sm:$0xff pattern:$0x73625140] }
 0x1c9   : > { %1532 = vst [vmem:[#allocation1] ss:$4 sm:$0xff] %v5539_v22  ;;  %1505 = vrot.lane.b32.xlu2 %v1504_v52, %s5241_s1 }
 0x1d0   : > { %v1533_v53 = vld.sshfl [vmem:[#allocation1] sm:$0xff pattern:$0x73625140] }
 0x1d1   : > { %1561 = vst [vmem:[#allocation1] ss:$4 sm:$0xff] %v5546_v26  ;;  %1534 = vrot.lane.b32.xlu0 %v1533_v53, %s5241_s1 }
 0x1d7   : > { %v854_v10 = vpop.f32.mrf.mxu3 }
 0x1d8   : > { %v1562_v54 = vld.sshfl [vmem:[#allocation1] sm:$0xff pattern:$0x73625140]  ;;  %v5643_v14 = vmul.f32 0.35355338, %v854_v10 }
 0x1d9   : > { %1590 = vst [vmem:[#allocation1] ss:$4 sm:$0xff] %v5544_v24  ;;  %1563 = vrot.lane.b32.xlu1 %v1562_v54, %s5241_s1 }
 0x1da   : > { %v1244_v16 = vsel %vm1237_vm2, %v5643_v14, -inf }
 0x1db   : > { %v972_v55 = vpop.permute.xlu0 %971 }
 0x1dc   : > { %4368 = vmatpush.xpose.msk.msrb.mxu2 %vm776_vm1, %v972_v55 }
 0x1df   : > { %4369 = vmatmul.msk.f32.vlgmr.msrb.gmra.mxu2 %vm776_vm1, %v5551_v28 }
 0x1e0   : > { %v1591_v56 = vld.sshfl [vmem:[#allocation1] sm:$0xff pattern:$0x73625140] }
 0x1e1   : > { %1619 = vst [vmem:[#allocation1] ss:$4 sm:$0xff] %v5551_v28  ;;  %1592 = vrot.lane.b32.xlu2 %v1591_v56, %s5241_s1 }
 0x1e3   : > { %v944_v57 = vpop.permute.xlu0 %943  ;;  %v1000_v58 = vpop.permute.xlu1 %999 }
 0x1e4   : > { %v1084_v59 = vpop.permute.xlu2 %1083  ;;  %4366 = vmatpush.xpose.msk.msrb.mxu1 %vm776_vm1, %v944_v57  ;;  %4370 = vmatpush.xpose.msk.msra.mxu3 %vm776_vm1, %v1000_v58 }
 0x1e5   : > { %4376 = vmatpush.xpose.msk.msra.mxu2 %vm776_vm1, %v1084_v59 }
 0x1e7   : > { %4367 = vmatmul.msk.f32.vlgmr.msrb.gmra.mxu1 %vm776_vm1, %v5544_v24  ;;  %4371 = vmatmul.msk.f32.vlgmr.msra.gmra.mxu3 %vm776_vm1, %v5533_v19 }
 0x1e8   : > { %v1620_v60 = vld.sshfl [vmem:[#allocation1] sm:$0xff pattern:$0x73625140]  ;;  %4377 = vmatmul.msk.f32.vlgmr.msra.gmra.mxu2 %vm776_vm1, %v5559_v31 }
 0x1e9   : > { %1648 = vst [vmem:[#allocation1] ss:$4 sm:$0xff] %v5533_v19 }
 0x1eb   : > { %v1028_v61 = vpop.permute.xlu0 %1027 }
 0x1ec   : > { %4372 = vmatpush.xpose.msk.msrb.mxu0 %vm776_vm1, %v1028_v61 }
 0x1ef   : > { %v798_v62 = vpop.f32.mrf.mxu2  ;;  %4373 = vmatmul.msk.f32.vlgmr.msrb.gmra.mxu0 %vm776_vm1, %v5535_v20 }
 0x1f0   : > { %v1649_v63 = vld.sshfl [vmem:[#allocation1] sm:$0xff pattern:$0x73625140]  ;;  %v5636_v8 = vmul.f32 0.35355338, %v798_v62 }
 0x1f1   : > { %1677 = vst [vmem:[#allocation1] ss:$4 sm:$0xff] %v5535_v20 }
 0x1f2   : > { %v1238_v11 = vsel %vm1237_vm2, %v5636_v8, -inf }
 0x1f3   : > { %v882_v17 = vpop.f32.mrf.mxu1 }
 0x1f4   : > { %v5654_v20 = vmul.f32 0.35355338, %v882_v17 }
 0x1f6   : > { %v1247_v22 = vsel %vm1237_vm2, %v5654_v20, -inf }
 0x1f7   : > { %v826_v0 = vpop.f32.mrf.mxu2 }
 0x1f8   : > { %v1678_v2 = vld.sshfl [vmem:[#allocation1] sm:$0xff pattern:$0x73625140]  ;;  %v5631_v6 = vmul.f32 0.35355338, %v826_v0 }
 0x1f9   : > { %1706 = vst [vmem:[#allocation1] ss:$4 sm:$0xff] %v5555_v30 }
 0x1fa   : > { %v1241_v7 = vsel %vm1237_vm2, %v5631_v6, -inf }
 0x1fb   : > { %1242 = vmax.xlane.f32.xlu0 %v1241_v7 }
 0x200   : > { %v1707_v9 = vld.sshfl [vmem:[#allocation1] sm:$0xff pattern:$0x73625140] }
 0x201   : > { %1735 = vst [vmem:[#allocation1] ss:$4 sm:$0xff] %v5559_v31 }
 0x203   : > { %v1112_v12 = vpop.permute.xlu1 %1111  ;;  %v1196_v13 = vpop.permute.xlu2 %1195  ;;  %1239 = vmax.xlane.f32.xlu1 %v1238_v11 }
 0x204   : > { %4378 = vmatpush.xpose.msk.msrb.mxu3 %vm776_vm1, %v1112_v12  ;;  %4384 = vmatpush.xpose.msk.msrb.mxu2 %vm776_vm1, %v1196_v13 }
 0x207   : > { %4379 = vmatmul.msk.f32.vlgmr.msrb.gmra.mxu3 %vm776_vm1, %v5537_v21  ;;  %4385 = vmatmul.msk.f32.vlgmr.msrb.gmra.mxu2 %vm776_vm1, %v5541_v23 }
 0x208   : > { %v1736_v15 = vld.sshfl [vmem:[#allocation1] sm:$0xff pattern:$0x73625140] }
 0x209   : > { %1764 = vst [vmem:[#allocation1] ss:$4 sm:$0xff] %v5537_v21 }
 0x20a   : > { %1245 = vmax.xlane.f32.xlu2 %v1244_v16 }
 0x20b   : > { %v1056_v18 = vpop.permute.xlu1 %1055  ;;  %v1140_v19 = vpop.permute.xlu2 %1139 }
 0x20c   : > { %4374 = vmatpush.xpose.msk.msra.mxu1 %vm776_vm1, %v1056_v18  ;;  %4380 = vmatpush.xpose.msk.msra.mxu0 %vm776_vm1, %v1140_v19 }
 0x20f   : > { %4375 = vmatmul.msk.f32.vlgmr.msra.gmra.mxu1 %vm776_vm1, %v5555_v30  ;;  %4381 = vmatmul.msk.f32.vlgmr.msra.gmra.mxu0 %vm776_vm1, %v5561_v33 }
 0x210   : > { %v5660_v21 = vld.sshfl [vmem:[#allocation1] sm:$0xff pattern:$0x73625140]  ;;  %1621 = vrot.lane.b32.xlu0 %v1620_v60, %s5241_s1 }
 0x211   : > { %1793 = vst [vmem:[#allocation1] ss:$4 sm:$0xff] %v5561_v33 }
 0x212   : > { %1248 = vmax.xlane.f32.xlu2 %v1247_v22 }
 0x213   : > { %v1168_v24 = vpop.permute.xlu0 %1167 }
 0x214   : > { %4382 = vmatpush.xpose.msk.msrb.mxu1 %vm776_vm1, %v1168_v24 }
 0x217   : > { %4383 = vmatmul.msk.f32.vlgmr.msrb.gmra.mxu1 %vm776_vm1, %v5564_v34 }
 0x218   : > { %v5669_v25 = vld.sshfl [vmem:[#allocation1] sm:$0xff pattern:$0x73625140]  ;;  %1737 = vrot.lane.b32.xlu0 %v1736_v15, %s5241_s1 }
 0x219   : > { %1822 = vst [vmem:[#allocation1] ss:$4 sm:$0xff] %v5564_v34 }
 0x21c   : > { %1679 = vrot.lane.b32.xlu1 %v1678_v2, %s5241_s1 }
 0x220   : > { %v5674_v26 = vld.sshfl [vmem:[#allocation1] sm:$0xff pattern:$0x73625140] }
 0x221   : > { %1851 = vst [vmem:[#allocation1] ss:$4 sm:$0xff] %v5541_v23 }
 0x223   : > { %v1417_v27 = vpop.permute.xlu1 %1416  ;;  %v1506_v28 = vpop.permute.xlu2 %1505 }
 0x224   : > { %4386 = vmatpush.msk.msra.mxu3 %vm1422_vm3, %v1417_v27  ;;  %4392 = vmatpush.msk.msra.mxu2 %vm1422_vm3, %v1506_v28 }
 0x22a   : > { %1650 = vrot.lane.b32.xlu2 %v1649_v63, %s5241_s1 }
 0x22b   : > { %v1448_v29 = vpop.permute.xlu0 %1447 }
 0x22c   : > { %4388 = vmatpush.msk.msrb.mxu0 %vm1422_vm3, %v1448_v29 }
 0x232   : > { %1708 = vrot.lane.b32.xlu2 %v1707_v9, %s5241_s1 }
 0x233   : > { %v1477_v30 = vpop.permute.xlu1 %1476 }
 0x234   : > { %4390 = vmatpush.msk.msra.mxu1 %vm1422_vm3, %v1477_v30 }
 0x23a   : > { %v938_v31 = vpop.f32.mrf.mxu3 }
 0x23b   : > { %v1593_v32 = vpop.permute.xlu2 %1592  ;;  %v5684_v23 = vmul.f32 0.35355338, %v938_v31 }
 0x23c   : > { %4398 = vmatpush.msk.msrb.mxu1 %vm1422_vm3, %v1593_v32 }
 0x23d   : > { %v1253_v33 = vsel %vm1237_vm2, %v5684_v23, -inf }
 0x242   : > { %1254 = vmax.xlane.f32.xlu0 %v1253_v33 }
 0x243   : > { %v1535_v34 = vpop.permute.xlu0 %1534 }
 0x244   : > { %4394 = vmatpush.msk.msrb.mxu3 %vm1422_vm3, %v1535_v34 }
 0x24a   : > { %v910_v35 = vpop.f32.mrf.mxu2 }
 0x24b   : > { %v5689_v36 = vmul.f32 0.35355338, %v910_v35  ;;  %v1564_v37 = vpop.permute.xlu1 %1563 }
 0x24c   : > { %4396 = vmatpush.msk.msra.mxu0 %vm1422_vm3, %v1564_v37 }
 0x24d   : > { %v1250_v38 = vsel %vm1237_vm2, %v5689_v36, -inf }
 0x24e   : > { %1251 = vmax.xlane.f32.xlu1 %v1250_v38 }
 0x262   : > { %v994_v39 = vpop.f32.mrf.mxu2 }
 0x263   : > { %v5694_v40 = vmul.f32 0.35355338, %v994_v39 }
 0x264   : > { %v966_v41 = vpop.f32.mrf.mxu1 }
 0x265   : > { %v5696_v42 = vmul.f32 0.35355338, %v966_v41  ;;  %v1259_v43 = vsel %vm1237_vm2, %v5694_v40, -inf }
 0x266   : > { %1260 = vmax.xlane.f32.xlu2 %v1259_v43 }
 0x267   : > { %v1256_v44 = vsel %vm1237_vm2, %v5696_v42, -inf }
 0x268   : > { %1257 = vmax.xlane.f32.xlu1 %v1256_v44 }
 0x26a   : > { %v1022_v59 = vpop.f32.mrf.mxu3 }
 0x26b   : > { %v1106_v53 = vpop.f32.mrf.mxu2  ;;  %v5735_v19 = vmul.f32 0.35355338, %v1022_v59 }
 0x26c   : > { %v5709_v56 = vmul.f32 0.35355338, %v1106_v53  ;;  %v1050_v9 = vpop.f32.mrf.mxu0 }
 0x26d   : > { %v5727_v13 = vmul.f32 0.35355338, %v1050_v9  ;;  %v1262_v27 = vsel %vm1237_vm2, %v5735_v19, -inf }
 0x26e   : > { %v1243_v45 = vpop.xlane.xlu0 %1242  ;;  %v1271_v62 = vsel %vm1237_vm2, %v5709_v56, -inf }
 0x26f   : > { %v1287_v46 = vsub.f32 %v5631_v6, %v1243_v45  ;;  %v1265_v16 = vsel %vm1237_vm2, %v5727_v13, -inf }
 0x271   : > { %v1304_v47 = vmul.f32 1.442695, %v1287_v46 }
 0x273   : > { %4720 = vpow2.f32 %v1304_v47 }
 0x276   : > { %v1240_v48 = vpop.xlane.xlu1 %1239 }
 0x277   : > { %v1286_v49 = vsub.f32 %v5636_v8, %v1240_v48 }
 0x279   : > { %v5704_v50 = vpop.eup %4720  ;;  %v1302_v51 = vmul.f32 1.442695, %v1286_v49 }
 0x27a   : > { %v1337_v52 = vsel %vm1237_vm2, %v5704_v50, 0.0 }
 0x27b   : > { %4722 = vpow2.f32 %v1302_v51  ;;  %1338 = vadd.xlane.f32.xlu0 %v1337_v52 }
 0x27d   : > { %v1246_v54 = vpop.xlane.xlu2 %1245 }
 0x27e   : > { %v1288_v55 = vsub.f32 %v5643_v14, %v1246_v54 }
 0x280   : > { %v1306_v57 = vmul.f32 1.442695, %v1288_v55 }
 0x281   : > { %v5711_v58 = vpop.eup %4722 }
 0x282   : > { %4724 = vpow2.f32 %v1306_v57  ;;  %v1622_v60 = vpop.permute.xlu0 %1621  ;;  %v1334_v61 = vsel %vm1237_vm2, %v5711_v58, 0.0 }
 0x283   : > { %4400 = vmatpush.msk.msrb.mxu2 %vm1422_vm3, %v1622_v60  ;;  %1335 = vadd.xlane.f32.xlu1 %v1334_v61 }
 0x284   : > { %1272 = vmax.xlane.f32.xlu0 %v1271_v62 }
 0x285   : > { %v1249_v63 = vpop.xlane.xlu2 %1248 }
 0x286   : > { %v1289_v0 = vsub.f32 %v5654_v20, %v1249_v63 }
 0x288   : > { %v5719_v2 = vpop.eup %4724  ;;  %v1308_v6 = vmul.f32 1.442695, %v1289_v0 }
 0x289   : > { %v1340_v7 = vsel %vm1237_vm2, %v5719_v2, 0.0 }
 0x28a   : > { %4726 = vpow2.f32 %v1308_v6  ;;  %v1134_v8 = vpop.f32.mrf.mxu3  ;;  %v1218_v17 = vpop.f32.mrf.mxu2 }
 0x28b   : > { %v5723_v10 = vmul.f32 0.35355338, %v1134_v8  ;;  %1341 = vadd.xlane.f32.xlu1 %v1340_v7  ;;  %v5739_v22 = vmul.f32 0.35355338, %v1218_v17  ;;  %v5755_v34 = vpop.permute.xlu0 %1737 }
 0x28c   : > { %v1078_v11 = vpop.f32.mrf.mxu1  ;;  %v1162_v31 = vpop.f32.mrf.mxu0 }
 0x28d   : > { %v1274_v12 = vsel %vm1237_vm2, %v5723_v10, -inf  ;;  %v1283_v28 = vsel %vm1237_vm2, %v5739_v22, -inf  ;;  %v5747_v29 = vmul.f32 0.35355338, %v1078_v11  ;;  %v5751_v32 = vmul.f32 0.35355338, %v1162_v31  ;;  %v1651_v47 = vpop.permute.xlu2 %1650 }
 0x28e   : > { %1275 = vmax.xlane.f32.xlu0 %v1274_v12  ;;  %v1680_v39 = vpop.permute.xlu1 %1679 }
 0x28f   : > { %v1268_v30 = vsel %vm1237_vm2, %v5747_v29, -inf  ;;  %v1277_v33 = vsel %vm1237_vm2, %v5751_v32, -inf }
 0x290   : > { %v5729_v14 = vpop.eup %4726 }
 0x291   : > { %v1343_v15 = vsel %vm1237_vm2, %v5729_v14, 0.0 }
 0x292   : > { %1344 = vadd.xlane.f32.xlu2 %v1343_v15 }
 0x293   : > { %1266 = vmax.xlane.f32.xlu1 %v1265_v16 }
 0x294   : > { %v1190_v18 = vpop.f32.mrf.mxu1 }
 0x295   : > { %v5737_v20 = vmul.f32 0.35355338, %v1190_v18 }
 0x297   : > { %v1280_v24 = vsel %vm1237_vm2, %v5737_v20, -inf }
 0x298   : > { %1281 = vmax.xlane.f32.xlu0 %v1280_v24 }
 0x29a   : > { %1263 = vmax.xlane.f32.xlu2 %v1262_v27 }
 0x29b   : > { %1284 = vmax.xlane.f32.xlu1 %v1283_v28 }
 0x2a2   : > { %1269 = vmax.xlane.f32.xlu2 %v1268_v30 }
 0x2aa   : > { %1278 = vmax.xlane.f32.xlu2 %v1277_v33 }
 0x2b4   : > { %1766 = vrot.lane.b32.xlu1 %v5660_v21, %s5241_s1 }
 0x2b5   : > { %v1255_v35 = vpop.xlane.xlu0 %1254 }
 0x2b6   : > { %v1291_v37 = vsub.f32 %v5684_v23, %v1255_v35  ;;  %v1709_v23 = vpop.permute.xlu2 %1708 }
 0x2b8   : > { %v1312_v38 = vmul.f32 1.442695, %v1291_v37 }
 0x2ba   : > { %4728 = vpow2.f32 %v1312_v38 }
 0x2c0   : > { %v5760_v41 = vpop.eup %4728 }
 0x2c1   : > { %v1252_v43 = vpop.xlane.xlu1 %1251  ;;  %v1349_v44 = vsel %vm1237_vm2, %v5760_v41, 0.0 }
 0x2c2   : > { %v1290_v45 = vsub.f32 %v5689_v36, %v1252_v43  ;;  %1350 = vadd.xlane.f32.xlu0 %v1349_v44 }
 0x2c4   : > { %v1310_v46 = vmul.f32 1.442695, %v1290_v45 }
 0x2c6   : > { %4730 = vpow2.f32 %v1310_v46 }
 0x2cc   : > { %v5765_v48 = vpop.eup %4730 }
 0x2cd   : > { %v1346_v21 = vsel %vm1237_vm2, %v5765_v48, 0.0 }
 0x2ce   : > { %1347 = vadd.xlane.f32.xlu2 %v1346_v21 }
 0x2d9   : > { %v1261_v49 = vpop.xlane.xlu2 %1260 }
 0x2da   : > { %v1293_v53 = vsub.f32 %v5694_v40, %v1261_v49 }
 0x2db   : > { %v1258_v51 = vpop.xlane.xlu1 %1257 }
 0x2dc   : > { %v1292_v52 = vsub.f32 %v5696_v42, %v1258_v51  ;;  %v1316_v36 = vmul.f32 1.442695, %v1293_v53 }
 0x2de   : > { %v1314_v54 = vmul.f32 1.442695, %v1292_v52 }
 0x2e0   : > { %4732 = vpow2.f32 %v1314_v54 }
 0x2e1   : > { %4734 = vpow2.f32 %v1316_v36 }
 0x2e6   : > { %v5771_v55 = vpop.eup %4732 }
 0x2e7   : > { %v1352_v57 = vsel %vm1237_vm2, %v5771_v55, 0.0  ;;  %v5775_v59 = vpop.eup %4734 }
 0x2e8   : > { %1353 = vadd.xlane.f32.xlu0 %v1352_v57  ;;  %v1355_v61 = vsel %vm1237_vm2, %v5775_v59, 0.0 }
 0x2ee   : > { %v1339_v60 = vpop.xlane.xlu0 %1338 }
 0x2ef   : > { %4736 = vrcp.f32 %v1339_v60  ;;  %v1852_v60 = vld.sshfl [vmem:[#allocation1] sm:$0xff pattern:$0x73625140] }
 0x2f0   : > { %1356 = vadd.xlane.f32.xlu0 %v1355_v61 }
 0x2f5   : > { %v4737_v42 = vpop.eup %4736 }
 0x2f6   : > { %v1399_v40 = vmul.f32 %v4737_v42, %v5704_v50  ;;  %v1336_v62 = vpop.xlane.xlu1 %1335 }
 0x2f7   : > { %4738 = vrcp.f32 %v1336_v62  ;;  %v1273_v63 = vpop.xlane.xlu0 %1272 }
 0x2f8   : > { %v1297_v0 = vsub.f32 %v5709_v56, %v1273_v63  ;;  %4389 = vmatmul.msk.f32.vlgmr.msrb.gmra.mxu0 %vm1418_vm4, %v1399_v40 }
 0x2f9   : > { %4404 = vmatpush.msk.msrb.mxu0 %vm1422_vm3, %v1680_v39 }
 0x2fa   : > { %v1324_v6 = vmul.f32 1.442695, %v1297_v0 }
 0x2fc   : > { %4740 = vpow2.f32 %v1324_v6 }
 0x2fd   : > { %v4739_v7 = vpop.eup %4738 }
 0x2fe   : > { %v1398_v8 = vmul.f32 %v4739_v7, %v5711_v58  ;;  %v1342_v9 = vpop.xlane.xlu1 %1341 }
 0x2ff   : > { %4742 = vrcp.f32 %v1342_v9 }
 0x300   : > { %4387 = vmatmul.msk.f32.vlgmr.msra.gmra.mxu3 %vm1418_vm4, %v1398_v8 }
 0x301   : > { %4402 = vmatpush.msk.msra.mxu3 %vm1422_vm3, %v1651_v47  ;;  %v1276_v50 = vpop.xlane.xlu0 %1275 }
 0x302   : > { %v5786_v11 = vpop.eup %4740  ;;  %v1298_v56 = vsub.f32 %v5723_v10, %v1276_v50 }
 0x303   : > { %v1367_v12 = vsel %vm1237_vm2, %v5786_v11, 0.0 }
 0x304   : > { %v1326_v15 = vmul.f32 1.442695, %v1298_v56  ;;  %1368 = vadd.xlane.f32.xlu1 %v1367_v12 }
 0x305   : > { %v4743_v16 = vpop.eup %4742  ;;  %v1345_v17 = vpop.xlane.xlu2 %1344 }
 0x306   : > { %v1400_v58 = vmul.f32 %v4743_v16, %v5719_v2  ;;  %4744 = vpow2.f32 %v1326_v15  ;;  %v1267_v18 = vpop.xlane.xlu1 %1266 }
 0x307   : > { %4746 = vrcp.f32 %v1345_v17  ;;  %v1295_v24 = vsub.f32 %v5727_v13, %v1267_v18 }
 0x308   : > { %4391 = vmatmul.msk.f32.vlgmr.msra.gmra.mxu1 %vm1418_vm4, %v1400_v58 }
 0x309   : > { %v1320_v27 = vmul.f32 1.442695, %v1295_v24  ;;  %4406 = vmatpush.msk.msra.mxu1 %vm1422_vm3, %v1709_v23 }
 0x30b   : > { %4748 = vpow2.f32 %v1320_v27  ;;  %v1282_v10 = vpop.xlane.xlu0 %1281 }
 0x30c   : > { %v5795_v28 = vpop.eup %4744  ;;  %v1300_v30 = vsub.f32 %v5737_v20, %v1282_v10 }
 0x30d   : > { %v4747_v31 = vpop.eup %4746  ;;  %v1264_v33 = vpop.xlane.xlu2 %1263  ;;  %v1370_v2 = vsel %vm1237_vm2, %v5795_v28, 0.0 }
 0x30e   : > { %v1401_v35 = vmul.f32 %v4747_v31, %v5729_v14  ;;  %v1330_v37 = vmul.f32 1.442695, %v1300_v30  ;;  %v1294_v13 = vsub.f32 %v5735_v19, %v1264_v33  ;;  %v1285_v38 = vpop.xlane.xlu1 %1284  ;;  %1371 = vadd.xlane.f32.xlu1 %v1370_v2 }
 0x30f   : > { %v1301_v20 = vsub.f32 %v5739_v22, %v1285_v38 }
 0x310   : > { %v1318_v39 = vmul.f32 1.442695, %v1294_v13  ;;  %4393 = vmatmul.msk.f32.vlgmr.msra.gmra.mxu2 %vm1418_vm4, %v1401_v35  ;;  %4750 = vpow2.f32 %v1330_v37 }
 0x311   : > { %v5803_v43 = vpop.eup %4748  ;;  %4408 = vmatpush.msk.msra.mxu2 %vm1422_vm3, %v5755_v34  ;;  %v1332_v44 = vmul.f32 1.442695, %v1301_v20 }
 0x312   : > { %4752 = vpow2.f32 %v1318_v39  ;;  %v1361_v14 = vsel %vm1237_vm2, %v5803_v43, 0.0 }
 0x313   : > { %1362 = vadd.xlane.f32.xlu0 %v1361_v14  ;;  %4754 = vpow2.f32 %v1332_v44 }
 0x315   : > { %v1270_v19 = vpop.xlane.xlu2 %1269 }
 0x316   : > { %v1296_v45 = vsub.f32 %v5747_v29, %v1270_v19  ;;  %v5811_v46 = vpop.eup %4750 }
 0x317   : > { %v1376_v34 = vsel %vm1237_vm2, %v5811_v46, 0.0 }
 0x318   : > { %v5813_v47 = vpop.eup %4752  ;;  %v1322_v21 = vmul.f32 1.442695, %v1296_v45 }
 0x319   : > { %v1358_v22 = vsel %vm1237_vm2, %v5813_v47, 0.0  ;;  %v5820_v51 = vpop.eup %4754 }
 0x31a   : > { %4756 = vpow2.f32 %v1322_v21  ;;  %1359 = vadd.xlane.f32.xlu2 %v1358_v22  ;;  %v1379_v54 = vsel %vm1237_vm2, %v5820_v51, 0.0 }
 0x31b   : > { %1377 = vadd.xlane.f32.xlu0 %v1376_v34 }
 0x31d   : > { %v1279_v23 = vpop.xlane.xlu2 %1278 }
 0x31e   : > { %v1299_v49 = vsub.f32 %v5751_v32, %v1279_v23 }
 0x320   : > { %v4757_v29 = vpop.eup %4756  ;;  %v1328_v52 = vmul.f32 1.442695, %v1299_v49 }
 0x321   : > { %v1364_v53 = vsel %vm1237_vm2, %v4757_v29, 0.0 }
 0x322   : > { %4758 = vpow2.f32 %v1328_v52  ;;  %1365 = vadd.xlane.f32.xlu2 %v1364_v53 }
 0x323   : > { %1380 = vadd.xlane.f32.xlu0 %v1379_v54 }
 0x326   : > { %v1767_v63 = vpop.permute.xlu1 %1766 }
 0x327   : > { %1795 = vrot.lane.b32.xlu1 %v5669_v25, %s5241_s1 }
 0x328   : > { %v5827_v36 = vpop.eup %4758 }
 0x329   : > { %v1373_v32 = vsel %vm1237_vm2, %v5827_v36, 0.0 }
 0x32a   : > { %1374 = vadd.xlane.f32.xlu2 %v1373_v32 }
 0x335   : > { %v1351_v57 = vpop.xlane.xlu0 %1350 }
 0x336   : > { %4760 = vrcp.f32 %v1351_v57 }
 0x337   : > { %1853 = vrot.lane.b32.xlu0 %v1852_v60, %s5241_s1 }
 0x33c   : > { %v4761_v61 = vpop.eup %4760 }
 0x33d   : > { %v1403_v42 = vmul.f32 %v4761_v61, %v5760_v41  ;;  %v4553_v61 = vld [vmem:[#allocation4 + $0x8] sm:$0xff] }
 0x33f   : > { %4397 = vmatmul.msk.f32.vlgmr.msra.gmra.mxu0 %vm1418_vm4, %v1403_v42 }
 0x341   : > { %v1348_v40 = vpop.xlane.xlu2 %1347 }
 0x342   : > { %4762 = vrcp.f32 %v1348_v40  ;;  %1824 = vrot.lane.b32.xlu2 %v5674_v26, %s5241_s1  ;;  %v4552_v40 = vld [vmem:[#allocation4] sm:$0xff] }
 0x348   : > { %v4763_v25 = vpop.eup %4762 }
 0x349   : > { %v1402_v62 = vmul.f32 %v4763_v25, %v5765_v48 }
 0x34b   : > { %4395 = vmatmul.msk.f32.vlgmr.msrb.gmra.mxu3 %vm1418_vm4, %v1402_v62 }
 0x34c   : > { %4410 = vmatpush.msk.msrb.mxu3 %vm1422_vm3, %v1767_v63 }
 0x35b   : > { %v1354_v0 = vpop.xlane.xlu0 %1353 }
 0x35c   : > { %4764 = vrcp.f32 %v1354_v0 }
 0x362   : > { %v4765_v6 = vpop.eup %4764 }
 0x363   : > { %v1404_v41 = vmul.f32 %v4765_v6, %v5771_v55  ;;  %v1357_v7 = vpop.xlane.xlu0 %1356 }
 0x364   : > { %4766 = vrcp.f32 %v1357_v7 }
 0x365   : > { %4399 = vmatmul.msk.f32.vlgmr.msrb.gmra.mxu1 %vm1418_vm4, %v1404_v41 }
 0x36a   : > { %v4767_v8 = vpop.eup %4766 }
 0x36b   : > { %v1405_v26 = vmul.f32 %v4767_v8, %v5775_v59 }
 0x36d   : > { %4401 = vmatmul.msk.f32.vlgmr.msrb.gmra.mxu2 %vm1418_vm4, %v1405_v26 }
 0x375   : > { %v1471_v20 = vpop.f32.mrf.mxu0 }
 0x377   : > { %v1369_v48 = vpop.xlane.xlu1 %1368 }
 0x378   : > { %4768 = vrcp.f32 %v1369_v48 }
 0x37e   : > { %v4769_v9 = vpop.eup %4768 }
 0x37f   : > { %v1409_v50 = vmul.f32 %v4769_v9, %v5786_v11 }
 0x381   : > { %4409 = vmatmul.msk.f32.vlgmr.msra.gmra.mxu2 %vm1418_vm4, %v1409_v50  ;;  %v1372_v16 = vpop.xlane.xlu1 %1371 }
 0x383   : > { %v1442_v44 = vpop.f32.mrf.mxu3 }
 0x385   : > { %v1500_v45 = vpop.f32.mrf.mxu1 }
 0x386   : > { %v1363_v56 = vpop.xlane.xlu0 %1362 }
 0x387   : > { %4770 = vrcp.f32 %v1363_v56 }
 0x38d   : > { %v4771_v12 = vpop.eup %4770  ;;  %v1360_v55 = vpop.xlane.xlu2 %1359 }
 0x38e   : > { %v1407_v15 = vmul.f32 %v4771_v12, %v5803_v43  ;;  %4772 = vrcp.f32 %v1360_v55  ;;  %v1378_v59 = vpop.xlane.xlu0 %1377 }
 0x38f   : > { %4774 = vrcp.f32 %v1372_v16 }
 0x390   : > { %4405 = vmatmul.msk.f32.vlgmr.msrb.gmra.mxu0 %vm1418_vm4, %v1407_v15 }
 0x394   : > { %v4773_v17 = vpop.eup %4772 }
 0x395   : > { %v1406_v58 = vmul.f32 %v4773_v17, %v5813_v47  ;;  %v1366_v18 = vpop.xlane.xlu2 %1365  ;;  %v4775_v24 = vpop.eup %4774 }
 0x396   : > { %4776 = vrcp.f32 %v1366_v18  ;;  %v1410_v10 = vmul.f32 %v4775_v24, %v5795_v28  ;;  %v1381_v31 = vpop.xlane.xlu0 %1380  ;;  %v1529_v47 = vpop.f32.mrf.mxu2  ;;  %v4703_v18 = vld [vmem:[%s6407_s4] ss:$0 sm:$0xff] }
 0x397   : > { %4403 = vmatmul.msk.f32.vlgmr.msra.gmra.mxu3 %vm1418_vm4, %v1406_v58  ;;  %4778 = vrcp.f32 %v1378_v59 }
 0x398   : > { %1981 = vmatpush.bf16.msra.mxu3 %v4553_v61 }
 0x399   : > { %v1796_v11 = vpop.permute.xlu1 %1795 }
 0x39a   : > { %4412 = vmatpush.msk.msra.mxu0 %vm1422_vm3, %v1796_v11 }
 0x39c   : > { %v4777_v27 = vpop.eup %4776  ;;  %1982 = vmatpush.bf16.msra.mxu3 %v4552_v40 }
 0x39d   : > { %v1408_v30 = vmul.f32 %v4777_v27, %v4757_v29  ;;  %v1375_v33 = vpop.xlane.xlu2 %1374  ;;  %v4779_v2 = vpop.eup %4778 }
 0x39e   : > { %4780 = vrcp.f32 %v1375_v33  ;;  %v1412_v37 = vmul.f32 %v4779_v2, %v5811_v46 }
 0x39f   : > { %4407 = vmatmul.msk.f32.vlgmr.msra.gmra.mxu1 %vm1418_vm4, %v1408_v30  ;;  %4411 = vmatmul.msk.f32.vlgmr.msrb.gmra.mxu3 %vm1418_vm4, %v1410_v10  ;;  %4782 = vrcp.f32 %v1381_v31 }
 0x3a4   : > { %v4781_v35 = vpop.eup %4780 }
 0x3a5   : > { %v1411_v13 = vmul.f32 %v4781_v35, %v5827_v36  ;;  %v1825_v38 = vpop.permute.xlu2 %1824  ;;  %v4783_v39 = vpop.eup %4782 }
 0x3a6   : > { %4414 = vmatpush.msk.msrb.mxu1 %vm1422_vm3, %v1825_v38  ;;  %v1413_v28 = vmul.f32 %v4783_v39, %v5820_v51  ;;  %v5245_v39 = vmov 32.0  }
 0x3a7   : > { %4413 = vmatmul.msk.f32.vlgmr.msra.gmra.mxu0 %vm1418_vm4, %v1411_v13  ;;  %4415 = vmatmul.msk.f32.vlgmr.msrb.gmra.mxu1 %vm1418_vm4, %v1412_v37  ;;  %4784 = vrcp.f32 %v5245_v39 }
 0x3a9   : > { %v1854_v43 = vpop.permute.xlu0 %1853 }
 0x3aa   : > { %4416 = vmatpush.msk.msrb.mxu2 %vm1422_vm3, %v1854_v43 }
 0x3ab   : > { %4417 = vmatmul.msk.f32.vlgmr.msrb.gmra.mxu2 %vm1418_vm4, %v1413_v28 }
 0x3ad   : > { %v4785_v28 = vpop.eup %4784 }
 0x3ae   : > { %v2018_v43 = vmul.f32 32.0, %v4785_v28  ;;  %vm2022_vm7 = vweird.f32 %v4785_v28 }
 0x3bc   : > { %v1587_v14 = vpop.f32.mrf.mxu0 }
 0x3bd   : > { %1886 = vrot.lane.b32.xlu2 %v1587_v14, %s5242_s25  ;;  %v5246_v14 = vmov 269488144  }
 0x3ce   : > { %v1558_v19 = vpop.f32.mrf.mxu3 }
 0x3cf   : > { %1884 = vrot.lane.b32.xlu1 %v1558_v19, %s5242_s25  ;;  %v5248_v19 = vmov 1414812756  }
 0x3e2   : > { %v1616_v46 = vpop.f32.mrf.mxu1 }
 0x3e3   : > { %1888 = vrot.lane.b32.xlu1 %v1616_v46, %s5242_s25  ;;  %v5249_v46 = vmov 1987475062  }
 0x3f0   : > { %v1645_v21 = vpop.f32.mrf.mxu2 }
 0x3f1   : > { %1890 = vrot.lane.b32.xlu0 %v1645_v21, %s5242_s25 }
 0x404   : > { %v1761_v49 = vpop.f32.mrf.mxu2 }
 0x40d   : > { %v1703_v22 = vpop.f32.mrf.mxu0 }
 0x40e   : > { %1902 = vrot.lane.b32.xlu1 %v1703_v22, %s5243_s21 }
 0x417   : > { %v1887_v54 = vpop.permute.xlu2 %1886 }
 0x418   : > { %v1929_v48 = vsel %vm776_vm1, %v1471_v20, %v1887_v54 }
 0x41a   : > { %v1674_v34 = vpop.f32.mrf.mxu3 }
 0x41b   : > { %1900 = vrot.lane.b32.xlu2 %v1674_v34, %s5243_s21 }
 0x41c   : > { %v1732_v23 = vpop.f32.mrf.mxu1 }
 0x41d   : > { %1904 = vrot.lane.b32.xlu0 %v1732_v23, %s5243_s21 }
 0x422   : > { %v1790_v51 = vpop.f32.mrf.mxu3 }
 0x423   : > { %1916 = vrot.lane.b32.xlu1 %v1790_v51, %s5244_s22  ;;  %1906 = vrot.lane.b32.xlu2 %v1761_v49, %s5243_s21 }
 0x424   : > { %v1819_v29 = vpop.f32.mrf.mxu0  ;;  %v1848_v52 = vpop.f32.mrf.mxu1 }
 0x425   : > { %1918 = vrot.lane.b32.xlu0 %v1819_v29, %s5244_s22 }
 0x42b   : > { %1920 = vrot.lane.b32.xlu2 %v1848_v52, %s5244_s22 }
 0x42e   : > { %v1877_v53 = vpop.f32.mrf.mxu2 }
 0x42f   : > { %1922 = vrot.lane.b32.xlu1 %v1877_v53, %s5244_s22 }
 0x441   : > { %v1885_v32 = vpop.permute.xlu1 %1884 }
 0x442   : > { %v1928_v7 = vsel %vm776_vm1, %v1442_v44, %v1885_v32 }
 0x455   : > { %v1889_v57 = vpop.permute.xlu1 %1888 }
 0x456   : > { %v1930_v62 = vsel %vm776_vm1, %v1500_v45, %v1889_v57  ;;  %v2035_v45 = vunpack.c.l.s4 %v5248_v19  ;;  %v4556_v19 = vld [vmem:[#allocation10] sm:$0xff] }
 0x458   : > { %v5900_v23 = vunpack.c.0.s8 %v2035_v45  ;;  %v4706_v45 = vld [vmem:[#allocation9] ss:$0 sm:$0xff] }
 0x463   : > { %v1891_v42 = vpop.permute.xlu0 %1890 }
 0x464   : > { %v1931_v55 = vsel %vm776_vm1, %v1529_v47, %v1891_v42  ;;  %v2039_v47 = vunpack.c.l.s4 %v5249_v46 }
 0x466   : > { %v5902_v49 = vunpack.c.0.s8 %v2039_v47 }
 0x475   : > { %v1901_v36 = vpop.permute.xlu2 %1900 }
 0x476   : > { %v1933_v8 = vsel %vm1932_vm6, %v1928_v7, %v1901_v36 }
 0x47d   : > { %v1907_v60 = vpop.permute.xlu2 %1906 }
 0x47e   : > { %v1936_v15 = vsel %vm1932_vm6, %v1931_v55, %v1907_v60 }
 0x480   : > { %v1903_v25 = vpop.permute.xlu1 %1902 }
 0x481   : > { %v1934_v50 = vsel %vm1932_vm6, %v1929_v48, %v1903_v25 }
 0x485   : > { %v1921_v0 = vpop.permute.xlu2 %1920 }
 0x48f   : > { %v1905_v63 = vpop.permute.xlu0 %1904 }
 0x490   : > { %v1935_v6 = vsel %vm1932_vm6, %v1930_v62, %v1905_v63 }
 0x491   : > { %v1940_v41 = vsel %vm1937_vm5, %v1935_v6, %v1921_v0 }
 0x492   : > { %1950 = vst [vmem:[#allocation1 + $0x2] ss:$4 sm:$0xff] %v1940_v41 }
 0x495   : > { %v1917_v26 = vpop.permute.xlu1 %1916 }
 0x496   : > { %v1938_v9 = vsel %vm1937_vm5, %v1933_v8, %v1917_v26  ;;  %v4555_v8 = vld [vmem:[#allocation7 + $0x8] sm:$0xff]  ;;  %v4554_v26 = vld [vmem:[#allocation7] sm:$0xff] }
 0x497   : > { %1946 = vst [vmem:[#allocation1] ss:$4 sm:$0xff] %v1938_v9  ;;  %v1919_v56 = vpop.permute.xlu0 %1918  ;;  %2172 = vmatpush.bf16.msrb.mxu0 %v4555_v8 }
 0x498   : > { %v1939_v12 = vsel %vm1937_vm5, %v1934_v50, %v1919_v56 }
 0x499   : > { %1948 = vst [vmem:[#allocation1 + $0x1] ss:$4 sm:$0xff] %v1939_v12  ;;  %v4704_v12 = vld [vmem:[%s6408_s5] ss:$0 sm:$0xff] }
 0x49b   : > { %2173 = vmatpush.bf16.msrb.mxu0 %v4554_v26 }
 0x4a1   : > { %v1923_v16 = vpop.permute.xlu1 %1922 }
 0x4a2   : > { %v1941_v59 = vsel %vm1937_vm5, %v1936_v15, %v1923_v16  ;;  %v4705_v15 = vld [vmem:[#allocation6] ss:$0 sm:$0xff] }
 0x4a3   : > { %1952 = vst [vmem:[#allocation1 + $0x3] ss:$4 sm:$0xff] %v1941_v59  ;;  %v2110_v59 = vrot.slane %v4704_v12, 2 }
 0x4aa   : > { %v1953_v17 = vld.sshfl [vmem:[#allocation1] sm:$0xff pattern:$0x73625140] }
 0x4ab   : > { %v1955_v58 = vpack.c.bf16 %v1953_v17, %v1953_v17  ;;  %v2111_v17 = vrot.slane %v4704_v12, 4 }
 0x4ad   : > { %4426 = vmatmul.msk.bf16.vlgmr.msra.gmra.mxu3 %vm727_vm0, %v1955_v58  ;;  %v2112_v58 = vrot.slane %v4704_v12, 6 }
 0x530   : > { %v1984_v11 = vpop.f32.mrf.mxu3 }
 0x531   : > { %v1985_v24 = vadd.f32 %v4703_v18, %v1984_v11 }
 0x533   : > { %v1989_v27 = vrot.slane %v1985_v24, 2  ;;  %v1990_v10 = vrot.slane %v1985_v24, 4  ;;  %v1991_v30 = vrot.slane %v1985_v24, 6  ;;  %v1995_v31 = vadd.f32 %v1985_v24, %v5474_v1 }
 0x534   : > { %v2019_v1 = vsub.f32 1.0, %v2018_v43 }
 0x535   : > { %v1996_v33 = vadd.f32 %v1989_v27, %v5476_v3  ;;  %v1997_v2 = vadd.f32 %v1990_v10, %v5478_v4  ;;  %v1998_v35 = vadd.f32 %v1991_v30, %v5480_v5  ;;  %2005 = vst [vmem:[#allocation1] ss:$4 sm:$0xff] %v1995_v31  ;;  %v2027_v4 = vunpack.c.l.s4 %v5246_v14 }
 0x536   : > { %v2020_v20 = vmul.f32 %v4785_v28, %v2019_v1  ;;  %v5247_v5 = vmov 842150450   ;;  %v2123_v30 = vrot.slane %v4705_v15, 2 }
 0x537   : > { %2007 = vst [vmem:[#allocation1 + $0x1] ss:$4 sm:$0xff] %v1996_v33  ;;  %v2031_v44 = vunpack.c.l.s4 %v5247_v5  ;;  %v5896_v22 = vunpack.c.0.s8 %v2027_v4 }
 0x538   : > { %2009 = vst [vmem:[#allocation1 + $0x2] ss:$4 sm:$0xff] %v1997_v2  ;;  %v1986_v37 = vpop.f32.mrf.mxu3  ;;  %v2021_v3 = vadd.f32 %v4785_v28, %v2020_v20 }
 0x539   : > { %2011 = vst [vmem:[#allocation1 + $0x3] ss:$4 sm:$0xff] %v1998_v35  ;;  %v5898_v34 = vunpack.c.0.s8 %v2031_v44  ;;  %v4557_v44 = vld [vmem:[#allocation10 + $0x8] sm:$0xff] }
 0x53a   : > { %v5894_v21 = vsel %vm2022_vm7, %v4785_v28, %v2021_v3  ;;  %2206 = vmatpush.bf16.msra.mxu1 %v4557_v44 }
 0x53e   : > { %2207 = vmatpush.bf16.msra.mxu1 %v4556_v19 }
 0x540   : > { %v2012_v13 = vld.sshfl [vmem:[#allocation1] sm:$0xff pattern:$0x73625140] }
 0x541   : > { %v2014_v38 = vsel %vm727_vm0, %v2012_v13, 0.0  ;;  %v2125_v13 = vrot.slane %v4705_v15, 6 }
 0x542   : > { %2015 = vadd.xlane.f32.xlu0 %v2014_v38 }
 0x5b5   : > { %v2016_v51 = vpop.xlane.xlu0 %2015 }
 0x5b6   : > { %v2024_v29 = vmul.f32 %v5894_v21, %v2016_v51 }
 0x5b8   : > { %v2029_v52 = vperm.slane %v2024_v29, %v5896_v22  ;;  %v2033_v53 = vperm.slane %v2024_v29, %v5898_v34  ;;  %v2037_v54 = vperm.slane %v2024_v29, %v5900_v23  ;;  %v2041_v36 = vperm.slane %v2024_v29, %v5902_v49 }
 0x5ba   : > { %v2046_v32 = vsub.f32 %v1995_v31, %v2029_v52  ;;  %v2047_v57 = vsub.f32 %v1996_v33, %v2033_v53  ;;  %v2048_v60 = vsub.f32 %v1997_v2, %v2037_v54  ;;  %v2049_v61 = vsub.f32 %v1998_v35, %v2041_v36  ;;  %v4707_v53 = vld [vmem:[#allocation12] ss:$0 sm:$0xff] }
 0x5bb   : > { %v2124_v31 = vrot.slane %v4705_v15, 4 }
 0x5bc   : > { %v2050_v42 = vmul.f32 %v2046_v32, %v2046_v32  ;;  %v2051_v40 = vmul.f32 %v2047_v57, %v2047_v57  ;;  %v2052_v25 = vmul.f32 %v2048_v60, %v2048_v60  ;;  %v2053_v62 = vmul.f32 %v2049_v61, %v2049_v61 }
 0x5be   : > { %2058 = vst [vmem:[#allocation1] ss:$4 sm:$0xff] %v2050_v42 }
 0x5bf   : > { %2060 = vst [vmem:[#allocation1 + $0x1] ss:$4 sm:$0xff] %v2051_v40 }
 0x5c0   : > { %2062 = vst [vmem:[#allocation1 + $0x2] ss:$4 sm:$0xff] %v2052_v25 }
 0x5c1   : > { %2064 = vst [vmem:[#allocation1 + $0x3] ss:$4 sm:$0xff] %v2053_v62 }
 0x5c8   : > { %v2065_v63 = vld.sshfl [vmem:[#allocation1] sm:$0xff pattern:$0x73625140] }
 0x5c9   : > { %v2067_v0 = vsel %vm727_vm0, %v2065_v63, 0.0 }
 0x5ca   : > { %2068 = vadd.xlane.f32.xlu2 %v2067_v0 }
 0x63d   : > { %v2069_v6 = vpop.xlane.xlu2 %2068 }
 0x63e   : > { %v2070_v41 = vmul.f32 %v2069_v6, %v5894_v21 }
 0x640   : > { %v2071_v7 = vadd.f32 1e-05, %v2070_v41 }
 0x642   : > { %4786 = vrsqrt.f32 %v2071_v7  ;;  %vm2078_vm9 = vweird.f32 %v2071_v7 }
 0x648   : > { %v4787_v48 = vpop.eup %4786 }
 0x649   : > { %v2073_v9 = vmul.f32 %v4787_v48, %v2071_v7  ;;  %vm2079_vm8 = vweird.f32 %v4787_v48 }
 0x64a   : > { %vm2080_vm10 = vmor %vm2078_vm9, %vm2079_vm8 }
 0x64b   : > { %v2074_v50 = vmul.f32 %v4787_v48, %v2073_v9 }
 0x64d   : > { %v2075_v56 = vmul.f32 0.5, %v2074_v50 }
 0x64f   : > { %v2076_v55 = vsub.f32 1.5, %v2075_v56 }
 0x651   : > { %v2077_v16 = vmul.f32 %v4787_v48, %v2076_v55 }
 0x653   : > { %v2081_v18 = vsel %vm2080_vm10, %v4787_v48, %v2077_v16 }
 0x654   : > { %v2086_v11 = vperm.slane %v2081_v18, %v5896_v22  ;;  %v2090_v24 = vperm.slane %v2081_v18, %v5898_v34  ;;  %v2094_v27 = vperm.slane %v2081_v18, %v5900_v23  ;;  %v2098_v10 = vperm.slane %v2081_v18, %v5902_v49 }
 0x656   : > { %v2103_v33 = vmul.f32 %v2086_v11, %v2046_v32  ;;  %v2104_v2 = vmul.f32 %v2090_v24, %v2047_v57  ;;  %v2105_v35 = vmul.f32 %v2094_v27, %v2048_v60  ;;  %v2106_v37 = vmul.f32 %v2098_v10, %v2049_v61  ;;  %v4559_v27 = vld [vmem:[#allocation2 + $0x18] sm:$0xff]  ;;  %v4558_v10 = vld [vmem:[#allocation2 + $0x10] sm:$0xff] }
 0x657   : > { %2411 = vmatpush.bf16.msra.mxu2 %v4559_v27 }
 0x658   : > { %v2116_v38 = vmul.f32 %v4704_v12, %v2103_v33  ;;  %v2117_v39 = vmul.f32 %v2110_v59, %v2104_v2  ;;  %v2118_v28 = vmul.f32 %v2111_v17, %v2105_v35  ;;  %v2119_v43 = vmul.f32 %v2112_v58, %v2106_v37  ;;  %v4708_v35 = vld [vmem:[#allocation13] ss:$0 sm:$0xff] }
 0x65a   : > { %v2129_v1 = vadd.f32 %v4705_v15, %v2116_v38  ;;  %v2130_v20 = vadd.f32 %v2123_v30, %v2117_v39  ;;  %v2131_v3 = vadd.f32 %v2124_v31, %v2118_v28  ;;  %v2132_v14 = vadd.f32 %v2125_v13, %v2119_v43  ;;  %v4709_v13 = vld [vmem:[#allocation15] ss:$0 sm:$0xff] }
 0x65b   : > { %2412 = vmatpush.bf16.msra.mxu2 %v4558_v10  ;;  %v2328_v39 = vrot.slane %v4708_v35, 2  ;;  %v2329_v28 = vrot.slane %v4708_v35, 4  ;;  %v2330_v43 = vrot.slane %v4708_v35, 6  ;;  %v2342_v44 = vrot.slane %v4709_v13, 4 }
 0x65c   : > { %2137 = vst [vmem:[#allocation1] ss:$4 sm:$0xff] %v2129_v1 }
 0x65d   : > { %2139 = vst [vmem:[#allocation1 + $0x1] ss:$4 sm:$0xff] %v2130_v20 }
 0x65e   : > { %2141 = vst [vmem:[#allocation1 + $0x2] ss:$4 sm:$0xff] %v2131_v3 }
 0x65f   : > { %2143 = vst [vmem:[#allocation1 + $0x3] ss:$4 sm:$0xff] %v2132_v14 }
 0x666   : > { %v2144_v4 = vld.sshfl [vmem:[#allocation1] sm:$0xff pattern:$0x73625140] }
 0x667   : > { %v2146_v5 = vpack.c.bf16 %v2144_v4, %v2144_v4 }
 0x669   : > { %4435 = vmatmul.msk.bf16.vlgmr.msrb.gmra.mxu0 %vm727_vm0, %v2146_v5  ;;  %v2341_v5 = vrot.slane %v4709_v13, 2 }
 0x6e6   : > { %v2175_v46 = vpop.f32.mrf.mxu0 }
 0x6e7   : > { %v2176_v47 = vadd.f32 %v4706_v45, %v2175_v46 }
 0x6e9   : > { %v2179_v51 = vmax.f32 %v2176_v47, 0.0 }
 0x6eb   : > { %v2180_v29 = vpack.c.bf16 %v2179_v51, %v2179_v51  ;;  %v2343_v51 = vrot.slane %v4709_v13, 6 }
 0x6ed   : > { %4444 = vmatmul.msk.bf16.vlgmr.msra.gmra.mxu1 %vm727_vm0, %v2180_v29 }
 0x6ee   : > { %v2177_v52 = vpop.f32.mrf.mxu0 }
 0x76a   : > { %v2209_v54 = vpop.f32.mrf.mxu1 }
 0x76b   : > { %v2210_v36 = vadd.f32 %v4707_v53, %v2209_v54 }
 0x76d   : > { %v2214_v32 = vrot.slane %v2210_v36, 2  ;;  %v2215_v57 = vrot.slane %v2210_v36, 4  ;;  %v2216_v60 = vrot.slane %v2210_v36, 6  ;;  %v2220_v61 = vadd.f32 %v2210_v36, %v2129_v1 }
 0x76f   : > { %v2221_v42 = vadd.f32 %v2214_v32, %v2130_v20  ;;  %v2222_v40 = vadd.f32 %v2215_v57, %v2131_v3  ;;  %v2223_v25 = vadd.f32 %v2216_v60, %v2132_v14  ;;  %2230 = vst [vmem:[#allocation1] ss:$4 sm:$0xff] %v2220_v61 }
 0x771   : > { %2232 = vst [vmem:[#allocation1 + $0x1] ss:$4 sm:$0xff] %v2221_v42 }
 0x772   : > { %2234 = vst [vmem:[#allocation1 + $0x2] ss:$4 sm:$0xff] %v2222_v40  ;;  %v2211_v62 = vpop.f32.mrf.mxu1 }
 0x773   : > { %2236 = vst [vmem:[#allocation1 + $0x3] ss:$4 sm:$0xff] %v2223_v25 }
 0x77a   : > { %v2237_v63 = vld.sshfl [vmem:[#allocation1] sm:$0xff pattern:$0x73625140] }
 0x77b   : > { %v2239_v0 = vsel %vm727_vm0, %v2237_v63, 0.0 }
 0x77c   : > { %2240 = vadd.xlane.f32.xlu1 %v2239_v0 }
 0x7ef   : > { %v2241_v6 = vpop.xlane.xlu1 %2240 }
 0x7f0   : > { %v2242_v41 = vmul.f32 %v2241_v6, %v5894_v21 }
 0x7f2   : > { %v2247_v7 = vperm.slane %v2242_v41, %v5896_v22  ;;  %v2251_v8 = vperm.slane %v2242_v41, %v5898_v34  ;;  %v2255_v26 = vperm.slane %v2242_v41, %v5900_v23  ;;  %v2259_v48 = vperm.slane %v2242_v41, %v5902_v49 }
 0x7f4   : > { %v2264_v9 = vsub.f32 %v2220_v61, %v2247_v7  ;;  %v2265_v50 = vsub.f32 %v2221_v42, %v2251_v8  ;;  %v2266_v56 = vsub.f32 %v2222_v40, %v2255_v26  ;;  %v2267_v12 = vsub.f32 %v2223_v25, %v2259_v48  ;;  %v4710_v40 = vld [vmem:[%s6405_s2 + $0x1] ss:$0 sm:$0xff] }
 0x7f6   : > { %v2268_v55 = vmul.f32 %v2264_v9, %v2264_v9  ;;  %v2269_v15 = vmul.f32 %v2265_v50, %v2265_v50  ;;  %v2270_v16 = vmul.f32 %v2266_v56, %v2266_v56  ;;  %v2271_v59 = vmul.f32 %v2267_v12, %v2267_v12 }
 0x7f8   : > { %2276 = vst [vmem:[#allocation1] ss:$4 sm:$0xff] %v2268_v55 }
 0x7f9   : > { %2278 = vst [vmem:[#allocation1 + $0x1] ss:$4 sm:$0xff] %v2269_v15 }
 0x7fa   : > { %2280 = vst [vmem:[#allocation1 + $0x2] ss:$4 sm:$0xff] %v2270_v16 }
 0x7fb   : > { %2282 = vst [vmem:[#allocation1 + $0x3] ss:$4 sm:$0xff] %v2271_v59 }
 0x802   : > { %v2283_v17 = vld.sshfl [vmem:[#allocation1] sm:$0xff pattern:$0x73625140] }
 0x803   : > { %v2285_v58 = vsel %vm727_vm0, %v2283_v17, 0.0 }
 0x804   : > { %2286 = vadd.xlane.f32.xlu0 %v2285_v58 }
 0x877   : > { %v2287_v18 = vpop.xlane.xlu0 %2286 }
 0x878   : > { %v2288_v11 = vmul.f32 %v2287_v18, %v5894_v21 }
 0x87a   : > { %v2289_v24 = vadd.f32 1e-05, %v2288_v11 }
 0x87c   : > { %4788 = vrsqrt.f32 %v2289_v24  ;;  %vm2296_vm12 = vweird.f32 %v2289_v24 }
 0x882   : > { %v4789_v30 = vpop.eup %4788 }
 0x883   : > { %v2291_v31 = vmul.f32 %v4789_v30, %v2289_v24  ;;  %vm2297_vm11 = vweird.f32 %v4789_v30 }
 0x884   : > { %vm2298_vm13 = vmor %vm2296_vm12, %vm2297_vm11 }
 0x885   : > { %v2292_v33 = vmul.f32 %v4789_v30, %v2291_v31 }
 0x887   : > { %v2293_v2 = vmul.f32 0.5, %v2292_v33 }
 0x889   : > { %v2294_v37 = vsub.f32 1.5, %v2293_v2 }
 0x88b   : > { %v2295_v38 = vmul.f32 %v4789_v30, %v2294_v37 }
 0x88d   : > { %v2299_v1 = vsel %vm2298_vm13, %v4789_v30, %v2295_v38 }
 0x88e   : > { %v2304_v20 = vperm.slane %v2299_v1, %v5896_v22  ;;  %v2308_v3 = vperm.slane %v2299_v1, %v5898_v34  ;;  %v2312_v14 = vperm.slane %v2299_v1, %v5900_v23  ;;  %v2316_v4 = vperm.slane %v2299_v1, %v5902_v49 }
 0x890   : > { %v2321_v19 = vmul.f32 %v2304_v20, %v2264_v9  ;;  %v2322_v45 = vmul.f32 %v2308_v3, %v2265_v50  ;;  %v2323_v46 = vmul.f32 %v2312_v14, %v2266_v56  ;;  %v2324_v47 = vmul.f32 %v2316_v4, %v2267_v12 }
 0x892   : > { %v2334_v29 = vmul.f32 %v4708_v35, %v2321_v19  ;;  %v2335_v52 = vmul.f32 %v2328_v39, %v2322_v45  ;;  %v2336_v53 = vmul.f32 %v2329_v28, %v2323_v46  ;;  %v2337_v54 = vmul.f32 %v2330_v43, %v2324_v47 }
 0x894   : > { %v5932_v36 = vadd.f32 %v4709_v13, %v2334_v29  ;;  %v5934_v32 = vadd.f32 %v2341_v5, %v2335_v52  ;;  %v5936_v57 = vadd.f32 %v2342_v44, %v2336_v53  ;;  %v5938_v60 = vadd.f32 %v2343_v51, %v2337_v54 }
 0x896   : > { %2375 = vst [vmem:[#allocation1] ss:$4 sm:$0xff] %v5932_v36 }
 0x897   : > { %2377 = vst [vmem:[#allocation1 + $0x1] ss:$4 sm:$0xff] %v5934_v32 }
 0x898   : > { %2379 = vst [vmem:[#allocation1 + $0x2] ss:$4 sm:$0xff] %v5936_v57 }
 0x899   : > { %2381 = vst [vmem:[#allocation1 + $0x3] ss:$4 sm:$0xff] %v5938_v60 }
 0x8a0   : > { %v2382_v61 = vld.sshfl [vmem:[#allocation1] sm:$0xff pattern:$0x73625140] }
 0x8a1   : > { %v2384_v42 = vpack.c.bf16 %v2382_v61, %v2382_v61 }
 0x8a3   : > { %4454 = vmatmul.msk.bf16.vlgmr.msra.gmra.mxu2 %vm727_vm0, %v2384_v42 }
 0x926   : > { %v2414_v25 = vpop.f32.mrf.mxu2 }
 0x927   : > { %v5948_v62 = vadd.f32 %v4710_v40, %v2414_v25 }
 0x929   : > { %2446 = vst [vmem:[#allocation1] ss:$4 sm:$0xff] %v5948_v62  ;;  %2422 = vrot.lane.b32.xlu2 %v5948_v62, %s5238_s3  ;;  %v5954_v63 = vrot.slane %v5948_v62, 4  ;;  %v5957_v0 = vrot.slane %v5948_v62, 2  ;;  %v5964_v41 = vrot.slane %v5948_v62, 6 }
 0x92b   : > { %2426 = vrot.lane.b32.xlu0 %v5954_v63, %s5238_s3  ;;  %2424 = vrot.lane.b32.xlu1 %v5957_v0, %s5238_s3 }
 0x92e   : > { %v2416_v6 = vpop.f32.mrf.mxu2 }
 0x930   : > { %v2447_v7 = vld.sshfl [vmem:[#allocation1] sm:$0xff pattern:$0x73625140] }
 0x931   : > { %2474 = vst [vmem:[#allocation1] ss:$4 sm:$0xff] %v5957_v0  ;;  %2428 = vrot.lane.b32.xlu2 %v5964_v41, %s5238_s3 }
 0x933   : > { %2430 = vrot.lane.b32.xlu0 %v5948_v62, %s5237_s23  ;;  %2432 = vrot.lane.b32.xlu1 %v5957_v0, %s5237_s23 }
 0x938   : > { %v2475_v8 = vld.sshfl [vmem:[#allocation1] sm:$0xff pattern:$0x73625140] }
 0x939   : > { %2502 = vst [vmem:[#allocation1] ss:$4 sm:$0xff] %v5954_v63  ;;  %2434 = vrot.lane.b32.xlu2 %v5954_v63, %s5237_s23 }
 0x93b   : > { %2436 = vrot.lane.b32.xlu0 %v5964_v41, %s5237_s23  ;;  %2438 = vrot.lane.b32.xlu1 %v5948_v62, %s5239_s29 }
 0x940   : > { %v2503_v26 = vld.sshfl [vmem:[#allocation1] sm:$0xff pattern:$0x73625140] }
 0x941   : > { %2440 = vrot.lane.b32.xlu2 %v5957_v0, %s5239_s29  ;;  %2530 = vst [vmem:[#allocation1] ss:$4 sm:$0xff] %v5964_v41 }
 0x943   : > { %2442 = vrot.lane.b32.xlu0 %v5954_v63, %s5239_s29  ;;  %2444 = vrot.lane.b32.xlu1 %v5964_v41, %s5239_s29 }
 0x948   : > { %v2531_v48 = vld.sshfl [vmem:[#allocation1] sm:$0xff pattern:$0x73625140] }
 0x949   : > { %2448 = vrot.lane.b32.xlu2 %v2447_v7, %s5240_s26 }
 0x94b   : > { %2504 = vrot.lane.b32.xlu1 %v2503_v26, %s5240_s26  ;;  %2532 = vrot.lane.b32.xlu0 %v2531_v48, %s5240_s26 }
 0x953   : > { %2476 = vrot.lane.b32.xlu0 %v2475_v8, %s5240_s26 }
 0x983   : > { %v5991_v9 = vpop.permute.xlu2 %2422 }
 0x984   : > { %2558 = vst [vmem:[#allocation1] ss:$4 sm:$0xff] %v5991_v9 }
 0x98b   : > { %v2559_v50 = vld.sshfl [vmem:[#allocation1] sm:$0xff pattern:$0x73625140]  ;;  %v5994_v56 = vpop.permute.xlu2 %2428 }
 0x98c   : > { %2560 = vrot.lane.b32.xlu1 %v2559_v50, %s5240_s26 }
 0x993   : > { %v5997_v12 = vpop.permute.xlu2 %2434 }
 0x99b   : > { %v5999_v55 = vpop.permute.xlu2 %2440 }
 0x99d   : > { %v6001_v15 = vpop.permute.xlu0 %2426  ;;  %v6003_v16 = vpop.permute.xlu1 %2424 }
 0x99e   : > { %2586 = vst [vmem:[#allocation1] ss:$4 sm:$0xff] %v6003_v16 }
 0x9a3   : > { %v2449_v59 = vpop.permute.xlu2 %2448 }
 0x9a4   : > { %4455 = vmatpush.xpose.msk.msrb.mxu3 %vm776_vm1, %v2449_v59 }
 0x9a5   : > { %v2587_v17 = vld.sshfl [vmem:[#allocation1] sm:$0xff pattern:$0x73625140]  ;;  %v6007_v58 = vpop.permute.xlu0 %2430  ;;  %v6009_v18 = vpop.permute.xlu1 %2432 }
 0x9a6   : > { %2614 = vst [vmem:[#allocation1] ss:$4 sm:$0xff] %v6001_v15  ;;  %2588 = vrot.lane.b32.xlu1 %v2587_v17, %s5240_s26 }
 0x9a7   : > { %4456 = vmatmul.msk.f32.vlgmr.msrb.gmra.mxu3 %vm776_vm1, %v5948_v62 }
 0x9ad   : > { %v2615_v11 = vld.sshfl [vmem:[#allocation1] sm:$0xff pattern:$0x73625140]  ;;  %v6015_v24 = vpop.permute.xlu0 %2436  ;;  %v6017_v27 = vpop.permute.xlu1 %2438 }
 0x9ae   : > { %2642 = vst [vmem:[#allocation1] ss:$4 sm:$0xff] %v5994_v56  ;;  %2616 = vrot.lane.b32.xlu2 %v2615_v11, %s5240_s26 }
 0x9b5   : > { %v2643_v10 = vld.sshfl [vmem:[#allocation1] sm:$0xff pattern:$0x73625140]  ;;  %v6021_v30 = vpop.permute.xlu0 %2442  ;;  %v6023_v31 = vpop.permute.xlu1 %2444 }
 0x9b6   : > { %2670 = vst [vmem:[#allocation1] ss:$4 sm:$0xff] %v6007_v58  ;;  %2644 = vrot.lane.b32.xlu2 %v2643_v10, %s5240_s26 }
 0x9bd   : > { %v2671_v33 = vld.sshfl [vmem:[#allocation1] sm:$0xff pattern:$0x73625140]  ;;  %v2505_v2 = vpop.permute.xlu1 %2504  ;;  %v2533_v35 = vpop.permute.xlu0 %2532 }
 0x9be   : > { %2698 = vst [vmem:[#allocation1] ss:$4 sm:$0xff] %v6009_v18  ;;  %4459 = vmatpush.xpose.msk.msrb.mxu1 %vm776_vm1, %v2505_v2  ;;  %4461 = vmatpush.xpose.msk.msrb.mxu2 %vm776_vm1, %v2533_v35 }
 0x9bf   : > { %2672 = vrot.lane.b32.xlu2 %v2671_v33, %s5240_s26 }
 0x9c1   : > { %4460 = vmatmul.msk.f32.vlgmr.msrb.gmra.mxu1 %vm776_vm1, %v5954_v63  ;;  %4462 = vmatmul.msk.f32.vlgmr.msrb.gmra.mxu2 %vm776_vm1, %v5964_v41 }
 0x9c5   : > { %v2699_v37 = vld.sshfl [vmem:[#allocation1] sm:$0xff pattern:$0x73625140]  ;;  %v2477_v13 = vpop.permute.xlu0 %2476 }
 0x9c6   : > { %2726 = vst [vmem:[#allocation1] ss:$4 sm:$0xff] %v5997_v12  ;;  %4457 = vmatpush.xpose.msk.msra.mxu0 %vm776_vm1, %v2477_v13 }
 0x9c7   : > { %2700 = vrot.lane.b32.xlu2 %v2699_v37, %s5240_s26 }
 0x9c9   : > { %4458 = vmatmul.msk.f32.vlgmr.msra.gmra.mxu0 %vm776_vm1, %v5957_v0 }
 0x9cd   : > { %v2727_v38 = vld.sshfl [vmem:[#allocation1] sm:$0xff pattern:$0x73625140] }
 0x9ce   : > { %2754 = vst [vmem:[#allocation1] ss:$4 sm:$0xff] %v6015_v24 }
 0x9d5   : > { %v2755_v39 = vld.sshfl [vmem:[#allocation1] sm:$0xff pattern:$0x73625140] }
 0x9d6   : > { %2756 = vrot.lane.b32.xlu0 %v2755_v39, %s5240_s26  ;;  %2782 = vst [vmem:[#allocation1] ss:$4 sm:$0xff] %v6017_v27 }
 0x9dd   : > { %v2783_v28 = vld.sshfl [vmem:[#allocation1] sm:$0xff pattern:$0x73625140] }
 0x9de   : > { %2784 = vrot.lane.b32.xlu0 %v2783_v28, %s5240_s26  ;;  %2810 = vst [vmem:[#allocation1] ss:$4 sm:$0xff] %v5999_v55 }
 0x9e5   : > { %v2811_v43 = vld.sshfl [vmem:[#allocation1] sm:$0xff pattern:$0x73625140] }
 0x9e6   : > { %2728 = vrot.lane.b32.xlu0 %v2727_v38, %s5240_s26  ;;  %2838 = vst [vmem:[#allocation1] ss:$4 sm:$0xff] %v6021_v30 }
 0x9ed   : > { %v2839_v1 = vld.sshfl [vmem:[#allocation1] sm:$0xff pattern:$0x73625140] }
 0x9ee   : > { %2840 = vrot.lane.b32.xlu2 %v2839_v1, %s5240_s26  ;;  %2866 = vst [vmem:[#allocation1] ss:$4 sm:$0xff] %v6023_v31 }
 0x9f5   : > { %v2867_v20 = vld.sshfl [vmem:[#allocation1] sm:$0xff pattern:$0x73625140] }
 0x9f6   : > { %2868 = vrot.lane.b32.xlu1 %v2867_v20, %s5240_s26  ;;  %3086 = vst [vmem:[#allocation1] ss:$4 sm:$0xff] %v5948_v62 }
 0x9fd   : > { %v3087_v3 = vld.sshfl [vmem:[#allocation1] sm:$0xff pattern:$0x73625140] }
 0x9fe   : > { %v2561_v14 = vpop.permute.xlu1 %2560  ;;  %2812 = vrot.lane.b32.xlu1 %v2811_v43, %s5240_s26  ;;  %3088 = vrot.lane.b32.xlu2 %v3087_v3, %s5241_s1  ;;  %3115 = vst [vmem:[#allocation1] ss:$4 sm:$0xff] %v5957_v0  ;;  %s674_s26 = scalar_lea.vmem %s6418_s15, %s4342_s30 }
 0x9ff   : > { %4463 = vmatpush.xpose.msk.msra.mxu3 %vm776_vm1, %v2561_v14 }
 0xa02   : > { %4464 = vmatmul.msk.f32.vlgmr.msra.gmra.mxu3 %vm776_vm1, %v5991_v9 }
 0xa05   : > { %v3116_v4 = vld.sshfl [vmem:[#allocation1] sm:$0xff pattern:$0x73625140] }
 0xa06   : > { %3117 = vrot.lane.b32.xlu0 %v3116_v4, %s5241_s1  ;;  %3144 = vst [vmem:[#allocation1] ss:$4 sm:$0xff] %v5954_v63 }
 0xa08   : > { %v2617_v5 = vpop.permute.xlu2 %2616 }
 0xa09   : > { %4467 = vmatpush.xpose.msk.msra.mxu1 %vm776_vm1, %v2617_v5 }
 0xa0c   : > { %4468 = vmatmul.msk.f32.vlgmr.msra.gmra.mxu1 %vm776_vm1, %v6001_v15 }
 0xa0d   : > { %v3145_v44 = vld.sshfl [vmem:[#allocation1] sm:$0xff pattern:$0x73625140] }
 0xa0e   : > { %3146 = vrot.lane.b32.xlu2 %v3145_v44, %s5241_s1  ;;  %3173 = vst [vmem:[#allocation1] ss:$4 sm:$0xff] %v5964_v41 }
 0xa10   : > { %v2645_v19 = vpop.permute.xlu2 %2644 }
 0xa11   : > { %4469 = vmatpush.xpose.msk.msra.mxu2 %vm776_vm1, %v2645_v19 }
 0xa14   : > { %4470 = vmatmul.msk.f32.vlgmr.msra.gmra.mxu2 %vm776_vm1, %v5994_v56 }
 0xa15   : > { %v3174_v45 = vld.sshfl [vmem:[#allocation1] sm:$0xff pattern:$0x73625140] }
 0xa16   : > { %3175 = vrot.lane.b32.xlu1 %v3174_v45, %s5241_s1  ;;  %3202 = vst [vmem:[#allocation1] ss:$4 sm:$0xff] %v5991_v9 }
 0xa18   : > { %v2589_v46 = vpop.permute.xlu1 %2588 }
 0xa19   : > { %v2673_v47 = vpop.permute.xlu2 %2672  ;;  %4465 = vmatpush.xpose.msk.msrb.mxu0 %vm776_vm1, %v2589_v46 }
 0xa1a   : > { %4471 = vmatpush.xpose.msk.msrb.mxu3 %vm776_vm1, %v2673_v47 }
 0xa1c   : > { %4466 = vmatmul.msk.f32.vlgmr.msrb.gmra.mxu0 %vm776_vm1, %v6003_v16 }
 0xa1d   : > { %4472 = vmatmul.msk.f32.vlgmr.msrb.gmra.mxu3 %vm776_vm1, %v6007_v58  ;;  %v3203_v51 = vld.sshfl [vmem:[#allocation1] sm:$0xff pattern:$0x73625140] }
 0xa1e   : > { %3204 = vrot.lane.b32.xlu0 %v3203_v51, %s5241_s1  ;;  %3231 = vst [vmem:[#allocation1] ss:$4 sm:$0xff] %v6003_v16 }
 0xa21   : > { %v2701_v29 = vpop.permute.xlu2 %2700 }
 0xa22   : > { %4473 = vmatpush.xpose.msk.msra.mxu0 %vm776_vm1, %v2701_v29 }
 0xa25   : > { %4474 = vmatmul.msk.f32.vlgmr.msra.gmra.mxu0 %vm776_vm1, %v6009_v18  ;;  %v3232_v52 = vld.sshfl [vmem:[#allocation1] sm:$0xff pattern:$0x73625140] }
 0xa26   : > { %3233 = vrot.lane.b32.xlu2 %v3232_v52, %s5241_s1  ;;  %3260 = vst [vmem:[#allocation1] ss:$4 sm:$0xff] %v6001_v15 }
 0xa2a   : > { %v2471_v42 = vpop.f32.mrf.mxu3 }
 0xa2b   : > { %v6087_v40 = vmul.f32 0.35355338, %v2471_v42 }
 0xa2d   : > { %v3261_v53 = vld.sshfl [vmem:[#allocation1] sm:$0xff pattern:$0x73625140]  ;;  %v2910_v63 = vsel %vm1237_vm2, %v6087_v40, -inf }
 0xa2e   : > { %3262 = vrot.lane.b32.xlu1 %v3261_v53, %s5241_s1  ;;  %3289 = vst [vmem:[#allocation1] ss:$4 sm:$0xff] %v5994_v56 }
 0xa35   : > { %v3290_v54 = vld.sshfl [vmem:[#allocation1] sm:$0xff pattern:$0x73625140] }
 0xa36   : > { %3318 = vst [vmem:[#allocation1] ss:$4 sm:$0xff] %v6007_v58 }
 0xa3d   : > { %v3319_v61 = vld.sshfl [vmem:[#allocation1] sm:$0xff pattern:$0x73625140] }
 0xa3e   : > { %3320 = vrot.lane.b32.xlu1 %v3319_v61, %s5241_s1  ;;  %3347 = vst [vmem:[#allocation1] ss:$4 sm:$0xff] %v6009_v18  ;;  %v2527_v0 = vpop.f32.mrf.mxu1 }
 0xa3f   : > { %v6095_v7 = vmul.f32 0.35355338, %v2527_v0 }
 0xa41   : > { %v2916_v48 = vsel %vm1237_vm2, %v6095_v7, -inf }
 0xa44   : > { %v2555_v17 = vpop.f32.mrf.mxu2 }
 0xa45   : > { %v3348_v25 = vld.sshfl [vmem:[#allocation1] sm:$0xff pattern:$0x73625140]  ;;  %v6116_v58 = vmul.f32 0.35355338, %v2555_v17 }
 0xa46   : > { %3376 = vst [vmem:[#allocation1] ss:$4 sm:$0xff] %v5997_v12  ;;  %v2499_v62 = vpop.f32.mrf.mxu0 }
 0xa47   : > { %v6093_v41 = vmul.f32 0.35355338, %v2499_v62 }
 0xa48   : > { %v2757_v6 = vpop.permute.xlu0 %2756  ;;  %2911 = vmax.xlane.f32.xlu0 %v2910_v63  ;;  %v2841_v9 = vpop.permute.xlu2 %2840 }
 0xa49   : > { %4477 = vmatpush.xpose.msk.msrb.mxu2 %vm776_vm1, %v2757_v6  ;;  %v2913_v26 = vsel %vm1237_vm2, %v6093_v41, -inf }
 0xa4c   : > { %4478 = vmatmul.msk.f32.vlgmr.msrb.gmra.mxu2 %vm776_vm1, %v6015_v24 }
 0xa4d   : > { %v3377_v8 = vld.sshfl [vmem:[#allocation1] sm:$0xff pattern:$0x73625140] }
 0xa4e   : > { %3405 = vst [vmem:[#allocation1] ss:$4 sm:$0xff] %v6015_v24 }
 0xa4f   : > { %2914 = vmax.xlane.f32.xlu2 %v2913_v26 }
 0xa50   : > { %v2785_v50 = vpop.permute.xlu0 %2784  ;;  %2917 = vmax.xlane.f32.xlu0 %v2916_v48 }
 0xa51   : > { %4479 = vmatpush.xpose.msk.msra.mxu3 %vm776_vm1, %v2785_v50 }
 0xa54   : > { %4480 = vmatmul.msk.f32.vlgmr.msra.gmra.mxu3 %vm776_vm1, %v6017_v27 }
 0xa55   : > { %v3406_v56 = vld.sshfl [vmem:[#allocation1] sm:$0xff pattern:$0x73625140] }
 0xa56   : > { %3434 = vst [vmem:[#allocation1] ss:$4 sm:$0xff] %v6017_v27 }
 0xa58   : > { %v2729_v15 = vpop.permute.xlu0 %2728  ;;  %v3089_v16 = vpop.permute.xlu2 %3088 }
 0xa59   : > { %4475 = vmatpush.xpose.msk.msrb.mxu1 %vm776_vm1, %v2729_v15  ;;  %4487 = vmatpush.msk.msrb.mxu3 %vm1422_vm3, %v3089_v16 }
 0xa5c   : > { %4476 = vmatmul.msk.f32.vlgmr.msrb.gmra.mxu1 %vm776_vm1, %v5997_v12  ;;  %v2919_v12 = vsel %vm1237_vm2, %v6116_v58, -inf }
 0xa5d   : > { %4483 = vmatpush.xpose.msk.msra.mxu1 %vm776_vm1, %v2841_v9  ;;  %v6113_v59 = vld.sshfl [vmem:[#allocation1] sm:$0xff pattern:$0x73625140] }
 0xa5e   : > { %3463 = vst [vmem:[#allocation1] ss:$4 sm:$0xff] %v5999_v55 }
 0xa64   : > { %4484 = vmatmul.msk.f32.vlgmr.msra.gmra.mxu1 %vm776_vm1, %v6021_v30  ;;  %3291 = vrot.lane.b32.xlu0 %v3290_v54, %s5241_s1 }
 0xa65   : > { %v6121_v18 = vld.sshfl [vmem:[#allocation1] sm:$0xff pattern:$0x73625140] }
 0xa66   : > { %3492 = vst [vmem:[#allocation1] ss:$4 sm:$0xff] %v6021_v30 }
 0xa67   : > { %3349 = vrot.lane.b32.xlu2 %v3348_v25, %s5241_s1 }
 0xa68   : > { %v2869_v11 = vpop.permute.xlu1 %2868  ;;  %v3147_v24 = vpop.permute.xlu2 %3146  ;;  %2920 = vmax.xlane.f32.xlu1 %v2919_v12 }
 0xa69   : > { %4485 = vmatpush.xpose.msk.msra.mxu2 %vm776_vm1, %v2869_v11  ;;  %4491 = vmatpush.msk.msrb.mxu1 %vm1422_vm3, %v3147_v24 }
 0xa6c   : > { %4486 = vmatmul.msk.f32.vlgmr.msra.gmra.mxu2 %vm776_vm1, %v6023_v31  ;;  %3407 = vrot.lane.b32.xlu0 %v3406_v56, %s5241_s1 }
 0xa6d   : > { %v6132_v27 = vld.sshfl [vmem:[#allocation1] sm:$0xff pattern:$0x73625140] }
 0xa6e   : > { %3521 = vst [vmem:[#allocation1] ss:$4 sm:$0xff] %v6023_v31 }
 0xa70   : > { %v2813_v10 = vpop.permute.xlu1 %2812 }
 0xa71   : > { %4481 = vmatpush.xpose.msk.msrb.mxu0 %vm776_vm1, %v2813_v10 }
 0xa74   : > { %4482 = vmatmul.msk.f32.vlgmr.msrb.gmra.mxu0 %vm776_vm1, %v5999_v55 }
 0xa78   : > { %v3118_v30 = vpop.permute.xlu0 %3117 }
 0xa79   : > { %4489 = vmatpush.msk.msra.mxu0 %vm1422_vm3, %v3118_v30 }
 0xa80   : > { %v3234_v33 = vpop.permute.xlu2 %3233 }
 0xa81   : > { %4497 = vmatpush.msk.msrb.mxu0 %vm1422_vm3, %v3234_v33  ;;  %3378 = vrot.lane.b32.xlu1 %v3377_v8, %s5241_s1 }
 0xa85   : > { %v2583_v2 = vpop.f32.mrf.mxu3 }
 0xa86   : > { %v6142_v37 = vmul.f32 0.35355338, %v2583_v2 }
 0xa88   : > { %v3176_v35 = vpop.permute.xlu1 %3175  ;;  %v2922_v31 = vsel %vm1237_vm2, %v6142_v37, -inf }
 0xa89   : > { %4493 = vmatpush.msk.msrb.mxu2 %vm1422_vm3, %v3176_v35  ;;  %v2639_v13 = vpop.f32.mrf.mxu1 }
 0xa8a   : > { %v6147_v55 = vmul.f32 0.35355338, %v2639_v13 }
 0xa8c   : > { %v2928_v39 = vsel %vm1237_vm2, %v6147_v55, -inf }
 0xa90   : > { %v3205_v38 = vpop.permute.xlu0 %3204  ;;  %2923 = vmax.xlane.f32.xlu2 %v2922_v31 }
 0xa91   : > { %4495 = vmatpush.msk.msra.mxu3 %vm1422_vm3, %v3205_v38 }
 0xa97   : > { %v2667_v3 = vpop.f32.mrf.mxu2 }
 0xa98   : > { %2929 = vmax.xlane.f32.xlu2 %v2928_v39  ;;  %v6156_v14 = vmul.f32 0.35355338, %v2667_v3 }
 0xa99   : > { %v2611_v28 = vpop.f32.mrf.mxu0 }
 0xa9a   : > { %v6151_v43 = vmul.f32 0.35355338, %v2611_v28  ;;  %v2931_v4 = vsel %vm1237_vm2, %v6156_v14, -inf }
 0xa9c   : > { %v2925_v1 = vsel %vm1237_vm2, %v6151_v43, -inf }
 0xa9d   : > { %2926 = vmax.xlane.f32.xlu0 %v2925_v1 }
 0xaa0   : > { %v3263_v20 = vpop.permute.xlu1 %3262  ;;  %v2695_v5 = vpop.f32.mrf.mxu3 }
 0xaa1   : > { %4499 = vmatpush.msk.msra.mxu1 %vm1422_vm3, %v3263_v20  ;;  %v6160_v44 = vmul.f32 0.35355338, %v2695_v5 }
 0xaa3   : > { %v2934_v19 = vsel %vm1237_vm2, %v6160_v44, -inf }
 0xaab   : > { %2932 = vmax.xlane.f32.xlu1 %v2931_v4 }
 0xab0   : > { %v6183_v26 = vpop.permute.xlu1 %3320 }
 0xab3   : > { %2935 = vmax.xlane.f32.xlu1 %v2934_v19 }
 0xabb   : > { %v2912_v45 = vpop.xlane.xlu0 %2911 }
 0xabc   : > { %v2958_v46 = vsub.f32 %v6087_v40, %v2912_v45 }
 0xabe   : > { %v2974_v47 = vmul.f32 1.442695, %v2958_v46 }
 0xac0   : > { %4790 = vpow2.f32 %v2974_v47 }
 0xac2   : > { %v2915_v51 = vpop.xlane.xlu2 %2914 }
 0xac3   : > { %v2959_v29 = vsub.f32 %v6093_v41, %v2915_v51  ;;  %v2918_v52 = vpop.xlane.xlu0 %2917  ;;  %v2723_v41 = vpop.f32.mrf.mxu0 }
 0xac4   : > { %v2960_v53 = vsub.f32 %v6095_v7, %v2918_v52  ;;  %v6181_v8 = vmul.f32 0.35355338, %v2723_v41 }
 0xac5   : > { %v2976_v54 = vmul.f32 1.442695, %v2959_v29 }
 0xac6   : > { %v6167_v61 = vpop.eup %4790  ;;  %v2978_v42 = vmul.f32 1.442695, %v2960_v53  ;;  %v2937_v56 = vsel %vm1237_vm2, %v6181_v8, -inf }
 0xac7   : > { %4792 = vpow2.f32 %v2976_v54  ;;  %v3006_v25 = vsel %vm1237_vm2, %v6167_v61, 0.0 }
 0xac8   : > { %4794 = vpow2.f32 %v2978_v42  ;;  %3007 = vadd.xlane.f32.xlu2 %v3006_v25 }
 0xaca   : > { %v3350_v3 = vpop.permute.xlu2 %3349 }
 0xacd   : > { %v6171_v62 = vpop.eup %4792 }
 0xace   : > { %v6173_v40 = vpop.eup %4794  ;;  %v3009_v63 = vsel %vm1237_vm2, %v6171_v62, 0.0 }
 0xacf   : > { %v2779_v0 = vpop.f32.mrf.mxu2  ;;  %3010 = vadd.xlane.f32.xlu0 %v3009_v63  ;;  %v3012_v6 = vsel %vm1237_vm2, %v6173_v40, 0.0 }
 0xad0   : > { %3013 = vadd.xlane.f32.xlu2 %v3012_v6  ;;  %v6179_v7 = vmul.f32 0.35355338, %v2779_v0 }
 0xad2   : > { %v2943_v9 = vsel %vm1237_vm2, %v6179_v7, -inf }
 0xad6   : > { %v3292_v48 = vpop.permute.xlu0 %3291 }
 0xad7   : > { %v2807_v50 = vpop.f32.mrf.mxu3  ;;  %4501 = vmatpush.msk.msra.mxu2 %vm1422_vm3, %v3292_v48  ;;  %2944 = vmax.xlane.f32.xlu0 %v2943_v9 }
 0xad8   : > { %2938 = vmax.xlane.f32.xlu2 %v2937_v56  ;;  %v6190_v16 = vmul.f32 0.35355338, %v2807_v50 }
 0xad9   : > { %v2751_v15 = vpop.f32.mrf.mxu1 }
 0xada   : > { %v2946_v24 = vsel %vm1237_vm2, %v6190_v16, -inf }
 0xadb   : > { %v2921_v17 = vpop.xlane.xlu1 %2920 }
 0xadc   : > { %v2961_v12 = vsub.f32 %v6116_v58, %v2921_v17  ;;  %v6203_v58 = vmul.f32 0.35355338, %v2751_v15 }
 0xade   : > { %v2980_v11 = vmul.f32 1.442695, %v2961_v12  ;;  %v2940_v13 = vsel %vm1237_vm2, %v6203_v58, -inf  ;;  %v6216_v45 = vpop.permute.xlu0 %3407 }
 0xadf   : > { %2947 = vmax.xlane.f32.xlu0 %v2946_v24 }
 0xae0   : > { %4796 = vpow2.f32 %v2980_v11 }
 0xae1   : > { %v2863_v10 = vpop.f32.mrf.mxu1 }
 0xae2   : > { %v6195_v30 = vmul.f32 0.35355338, %v2863_v10 }
 0xae4   : > { %v2952_v2 = vsel %vm1237_vm2, %v6195_v30, -inf }
 0xae6   : > { %v6197_v33 = vpop.eup %4796 }
 0xae7   : > { %2953 = vmax.xlane.f32.xlu0 %v2952_v2  ;;  %v3015_v35 = vsel %vm1237_vm2, %v6197_v33, 0.0 }
 0xae8   : > { %3016 = vadd.xlane.f32.xlu1 %v3015_v35 }
 0xaef   : > { %v2891_v31 = vpop.f32.mrf.mxu2 }
 0xaf0   : > { %v6207_v38 = vmul.f32 0.35355338, %v2891_v31  ;;  %2941 = vmax.xlane.f32.xlu1 %v2940_v13 }
 0xaf1   : > { %v2835_v39 = vpop.f32.mrf.mxu0 }
 0xaf2   : > { %v2955_v28 = vsel %vm1237_vm2, %v6207_v38, -inf  ;;  %v6211_v1 = vmul.f32 0.35355338, %v2835_v39 }
 0xaf3   : > { %2956 = vmax.xlane.f32.xlu2 %v2955_v28  ;;  %v3379_v54 = vpop.permute.xlu1 %3378 }
 0xaf4   : > { %v2949_v20 = vsel %vm1237_vm2, %v6211_v1, -inf }
 0xaf8   : > { %2950 = vmax.xlane.f32.xlu1 %v2949_v20 }
 0xb03   : > { %v2924_v4 = vpop.xlane.xlu2 %2923 }
 0xb04   : > { %v2962_v5 = vsub.f32 %v6142_v37, %v2924_v4 }
 0xb06   : > { %v2982_v19 = vmul.f32 1.442695, %v2962_v5 }
 0xb08   : > { %4798 = vpow2.f32 %v2982_v19 }
 0xb0b   : > { %3436 = vrot.lane.b32.xlu2 %v6113_v59, %s5241_s1  ;;  %v2930_v51 = vpop.xlane.xlu2 %2929 }
 0xb0c   : > { %v2964_v53 = vsub.f32 %v6147_v55, %v2930_v51 }
 0xb0e   : > { %v6220_v46 = vpop.eup %4798  ;;  %v2986_v42 = vmul.f32 1.442695, %v2964_v53 }
 0xb0f   : > { %v3018_v47 = vsel %vm1237_vm2, %v6220_v46, 0.0 }
 0xb10   : > { %3019 = vadd.xlane.f32.xlu1 %v3018_v47  ;;  %v2927_v29 = vpop.xlane.xlu0 %2926 }
 0xb11   : > { %v2963_v52 = vsub.f32 %v6151_v43, %v2927_v29 }
 0xb13   : > { %v2984_v37 = vmul.f32 1.442695, %v2963_v52 }
 0xb15   : > { %4800 = vpow2.f32 %v2984_v37 }
 0xb16   : > { %4802 = vpow2.f32 %v2986_v42 }
 0xb1b   : > { %v6226_v25 = vpop.eup %4800 }
 0xb1c   : > { %v3021_v59 = vsel %vm1237_vm2, %v6226_v25, 0.0  ;;  %v6231_v6 = vpop.eup %4802 }
 0xb1d   : > { %3022 = vadd.xlane.f32.xlu0 %v3021_v59  ;;  %v3024_v55 = vsel %vm1237_vm2, %v6231_v6, 0.0 }
 0xb1e   : > { %v2933_v63 = vpop.xlane.xlu1 %2932 }
 0xb1f   : > { %v2965_v0 = vsub.f32 %v6156_v14, %v2933_v63 }
 0xb21   : > { %v2988_v41 = vmul.f32 1.442695, %v2965_v0 }
 0xb23   : > { %4804 = vpow2.f32 %v2988_v41 }
 0xb25   : > { %3025 = vadd.xlane.f32.xlu0 %v3024_v55 }
 0xb26   : > { %v2936_v43 = vpop.xlane.xlu1 %2935 }
 0xb27   : > { %v2966_v48 = vsub.f32 %v6160_v44, %v2936_v43 }
 0xb29   : > { %v6236_v9 = vpop.eup %4804  ;;  %v2990_v50 = vmul.f32 1.442695, %v2966_v48 }
 0xb2a   : > { %v3027_v56 = vsel %vm1237_vm2, %v6236_v9, 0.0 }
 0xb2b   : > { %4806 = vpow2.f32 %v2990_v50 }
 0xb2d   : > { %3028 = vadd.xlane.f32.xlu0 %v3027_v56 }
 0xb31   : > { %v6240_v14 = vpop.eup %4806 }
 0xb32   : > { %v3030_v15 = vsel %vm1237_vm2, %v6240_v14, 0.0 }
 0xb33   : > { %3031 = vadd.xlane.f32.xlu1 %v3030_v15 }
 0xb3b   : > { %v3008_v17 = vpop.xlane.xlu2 %3007 }
 0xb3c   : > { %4808 = vrcp.f32 %v3008_v17  ;;  %v3522_v17 = vld.sshfl [vmem:[#allocation1] sm:$0xff pattern:$0x73625140] }
 0xb42   : > { %v4809_v12 = vpop.eup %4808  ;;  %v3011_v11 = vpop.xlane.xlu0 %3010 }
 0xb43   : > { %v3070_v44 = vmul.f32 %v4809_v12, %v6167_v61  ;;  %4810 = vrcp.f32 %v3011_v11  ;;  %v3014_v24 = vpop.xlane.xlu2 %3013 }
 0xb44   : > { %4812 = vrcp.f32 %v3014_v24 }
 0xb45   : > { %4488 = vmatmul.msk.f32.vlgmr.msrb.gmra.mxu3 %vm1418_vm4, %v3070_v44 }
 0xb46   : > { %4503 = vmatpush.msk.msrb.mxu3 %vm1422_vm3, %v6183_v26 }
 0xb49   : > { %v4811_v10 = vpop.eup %4810 }
 0xb4a   : > { %v4813_v2 = vpop.eup %4812  ;;  %v3071_v35 = vmul.f32 %v4811_v10, %v6171_v62  ;;  %v2945_v31 = vpop.xlane.xlu0 %2944 }
 0xb4b   : > { %v3072_v13 = vmul.f32 %v4813_v2, %v6173_v40  ;;  %v2969_v39 = vsub.f32 %v6179_v7, %v2945_v31  ;;  %v2939_v28 = vpop.xlane.xlu2 %2938 }
 0xb4c   : > { %v2967_v61 = vsub.f32 %v6181_v8, %v2939_v28  ;;  %4490 = vmatmul.msk.f32.vlgmr.msra.gmra.mxu0 %vm1418_vm4, %v3071_v35 }
 0xb4d   : > { %v2996_v20 = vmul.f32 1.442695, %v2969_v39  ;;  %4505 = vmatpush.msk.msra.mxu0 %vm1422_vm3, %v3350_v3  ;;  %4492 = vmatmul.msk.f32.vlgmr.msrb.gmra.mxu1 %vm1418_vm4, %v3072_v13 }
 0xb4e   : > { %v2992_v26 = vmul.f32 1.442695, %v2967_v61  ;;  %4507 = vmatpush.msk.msrb.mxu1 %vm1422_vm3, %v3379_v54 }
 0xb4f   : > { %4814 = vpow2.f32 %v2996_v20 }
 0xb50   : > { %4816 = vpow2.f32 %v2992_v26 }
 0xb52   : > { %v2948_v62 = vpop.xlane.xlu0 %2947 }
 0xb53   : > { %v2970_v40 = vsub.f32 %v6190_v16, %v2948_v62 }
 0xb55   : > { %v6257_v4 = vpop.eup %4814  ;;  %v2998_v7 = vmul.f32 1.442695, %v2970_v40 }
 0xb56   : > { %v6259_v5 = vpop.eup %4816  ;;  %v3039_v8 = vsel %vm1237_vm2, %v6257_v4, 0.0 }
 0xb57   : > { %4818 = vpow2.f32 %v2998_v7  ;;  %3040 = vadd.xlane.f32.xlu2 %v3039_v8  ;;  %v3033_v3 = vsel %vm1237_vm2, %v6259_v5, 0.0 }
 0xb58   : > { %3034 = vadd.xlane.f32.xlu0 %v3033_v3 }
 0xb5a   : > { %v2954_v19 = vpop.xlane.xlu0 %2953 }
 0xb5b   : > { %v2972_v47 = vsub.f32 %v6195_v30, %v2954_v19  ;;  %v3017_v51 = vpop.xlane.xlu1 %3016 }
 0xb5c   : > { %4820 = vrcp.f32 %v3017_v51 }
 0xb5d   : > { %v6266_v16 = vpop.eup %4818  ;;  %v3002_v29 = vmul.f32 1.442695, %v2972_v47 }
 0xb5e   : > { %v3042_v52 = vsel %vm1237_vm2, %v6266_v16, 0.0 }
 0xb5f   : > { %4822 = vpow2.f32 %v3002_v29  ;;  %3043 = vadd.xlane.f32.xlu2 %v3042_v52 }
 0xb62   : > { %v4821_v53 = vpop.eup %4820 }
 0xb63   : > { %v3073_v37 = vmul.f32 %v4821_v53, %v6197_v33  ;;  %v2942_v54 = vpop.xlane.xlu1 %2941 }
 0xb64   : > { %v2968_v42 = vsub.f32 %v6203_v58, %v2942_v54 }
 0xb65   : > { %v6272_v59 = vpop.eup %4822  ;;  %4494 = vmatmul.msk.f32.vlgmr.msrb.gmra.mxu2 %vm1418_vm4, %v3073_v37 }
 0xb66   : > { %v2994_v30 = vmul.f32 1.442695, %v2968_v42  ;;  %4509 = vmatpush.msk.msrb.mxu2 %vm1422_vm3, %v6216_v45  ;;  %v2957_v63 = vpop.xlane.xlu2 %2956  ;;  %v3048_v0 = vsel %vm1237_vm2, %v6272_v59, 0.0 }
 0xb67   : > { %v2973_v41 = vsub.f32 %v6207_v38, %v2957_v63  ;;  %3049 = vadd.xlane.f32.xlu0 %v3048_v0 }
 0xb68   : > { %4824 = vpow2.f32 %v2994_v30 }
 0xb69   : > { %v3004_v33 = vmul.f32 1.442695, %v2973_v41 }
 0xb6b   : > { %4826 = vpow2.f32 %v3004_v33  ;;  %v2951_v55 = vpop.xlane.xlu1 %2950 }
 0xb6c   : > { %v2971_v58 = vsub.f32 %v6211_v1, %v2951_v55 }
 0xb6e   : > { %v6281_v43 = vpop.eup %4824  ;;  %v3000_v48 = vmul.f32 1.442695, %v2971_v58  ;;  %v3437_v44 = vpop.permute.xlu2 %3436 }
 0xb6f   : > { %v3036_v50 = vsel %vm1237_vm2, %v6281_v43, 0.0 }
 0xb70   : > { %4828 = vpow2.f32 %v3000_v48  ;;  %3037 = vadd.xlane.f32.xlu1 %v3036_v50 }
 0xb71   : > { %v6285_v45 = vpop.eup %4826 }
 0xb72   : > { %v3051_v38 = vsel %vm1237_vm2, %v6285_v45, 0.0 }
 0xb73   : > { %3052 = vadd.xlane.f32.xlu0 %v3051_v38 }
 0xb76   : > { %v4829_v56 = vpop.eup %4828 }
 0xb77   : > { %3465 = vrot.lane.b32.xlu2 %v6121_v18, %s5241_s1  ;;  %v3045_v1 = vsel %vm1237_vm2, %v4829_v56, 0.0 }
 0xb78   : > { %3046 = vadd.xlane.f32.xlu1 %v3045_v1 }
 0xb83   : > { %v3020_v15 = vpop.xlane.xlu1 %3019 }
 0xb84   : > { %4830 = vrcp.f32 %v3020_v15 }
 0xb87   : > { %3523 = vrot.lane.b32.xlu0 %v3522_v17, %s5241_s1 }
 0xb8a   : > { %v4831_v12 = vpop.eup %4830 }
 0xb8b   : > { %v3074_v11 = vmul.f32 %v4831_v12, %v6220_v46 }
 0xb8d   : > { %4496 = vmatmul.msk.f32.vlgmr.msra.gmra.mxu3 %vm1418_vm4, %v3074_v11 }
 0xb8e   : > { %4511 = vmatpush.msk.msra.mxu3 %vm1422_vm3, %v3437_v44 }
 0xb90   : > { %v3023_v24 = vpop.xlane.xlu0 %3022 }
 0xb91   : > { %4832 = vrcp.f32 %v3023_v24  ;;  %3494 = vrot.lane.b32.xlu1 %v6132_v27, %s5241_s1 }
 0xb97   : > { %v4833_v18 = vpop.eup %4832 }
 0xb98   : > { %v3075_v10 = vmul.f32 %v4833_v18, %v6226_v25  ;;  %v3026_v2 = vpop.xlane.xlu0 %3025 }
 0xb99   : > { %4834 = vrcp.f32 %v3026_v2 }
 0xb9a   : > { %4498 = vmatmul.msk.f32.vlgmr.msrb.gmra.mxu0 %vm1418_vm4, %v3075_v10 }
 0xb9f   : > { %v4835_v35 = vpop.eup %4834 }
 0xba0   : > { %v3076_v46 = vmul.f32 %v4835_v35, %v6231_v6  ;;  %v3029_v31 = vpop.xlane.xlu0 %3028 }
 0xba1   : > { %4836 = vrcp.f32 %v3029_v31 }
 0xba2   : > { %4500 = vmatmul.msk.f32.vlgmr.msra.gmra.mxu1 %vm1418_vm4, %v3076_v46 }
 0xba6   : > { %v3032_v13 = vpop.xlane.xlu1 %3031 }
 0xba7   : > { %v4837_v39 = vpop.eup %4836  ;;  %4838 = vrcp.f32 %v3032_v13 }
 0xba8   : > { %v3077_v28 = vmul.f32 %v4837_v39, %v6236_v9  ;;  %v4561_v39 = vld [vmem:[#allocation4 + $0x18] sm:$0xff] }
 0xbaa   : > { %4502 = vmatmul.msk.f32.vlgmr.msra.gmra.mxu2 %vm1418_vm4, %v3077_v28 }
 0xbad   : > { %v4839_v27 = vpop.eup %4838 }
 0xbae   : > { %v3078_v25 = vmul.f32 %v4839_v27, %v6240_v14 }
 0xbb0   : > { %4504 = vmatmul.msk.f32.vlgmr.msrb.gmra.mxu3 %vm1418_vm4, %v3078_v25 }
 0xbb1   : > { %3650 = vmatpush.bf16.msrb.mxu3 %v4561_v39 }
 0xbc8   : > { %v3112_v63 = vpop.f32.mrf.mxu3 }
 0xbc9   : > { %v3141_v0 = vpop.f32.mrf.mxu0 }
 0xbca   : > { %v3041_v61 = vpop.xlane.xlu2 %3040  ;;  %v3170_v33 = vpop.f32.mrf.mxu1 }
 0xbcb   : > { %4840 = vrcp.f32 %v3041_v61  ;;  %v3035_v20 = vpop.xlane.xlu0 %3034  ;;  %v4560_v61 = vld [vmem:[#allocation4 + $0x10] sm:$0xff] }
 0xbcc   : > { %4842 = vrcp.f32 %v3035_v20  ;;  %3651 = vmatpush.bf16.msrb.mxu3 %v4560_v61 }
 0xbd1   : > { %v4841_v6 = vpop.eup %4840 }
 0xbd2   : > { %v4843_v26 = vpop.eup %4842  ;;  %v3081_v62 = vmul.f32 %v4841_v6, %v6257_v4  ;;  %v3044_v40 = vpop.xlane.xlu2 %3043 }
 0xbd3   : > { %v3079_v7 = vmul.f32 %v4843_v26, %v6259_v5  ;;  %4844 = vrcp.f32 %v3044_v40 }
 0xbd4   : > { %4510 = vmatmul.msk.f32.vlgmr.msrb.gmra.mxu2 %vm1418_vm4, %v3081_v62 }
 0xbd5   : > { %4506 = vmatmul.msk.f32.vlgmr.msra.gmra.mxu0 %vm1418_vm4, %v3079_v7 }
 0xbd9   : > { %v4845_v9 = vpop.eup %4844 }
 0xbda   : > { %v3082_v14 = vmul.f32 %v4845_v9, %v6266_v16  ;;  %v3466_v8 = vpop.permute.xlu2 %3465  ;;  %v3050_v19 = vpop.xlane.xlu0 %3049 }
 0xbdb   : > { %4513 = vmatpush.msk.msrb.mxu0 %vm1422_vm3, %v3466_v8 }
 0xbdc   : > { %4512 = vmatmul.msk.f32.vlgmr.msra.gmra.mxu3 %vm1418_vm4, %v3082_v14 }
 0xbe3   : > { %v3038_v3 = vpop.xlane.xlu1 %3037 }
 0xbe4   : > { %4846 = vrcp.f32 %v3038_v3 }
 0xbe6   : > { %v3053_v51 = vpop.xlane.xlu0 %3052 }
 0xbea   : > { %v4847_v4 = vpop.eup %4846 }
 0xbeb   : > { %v3080_v47 = vmul.f32 %v4847_v4, %v6281_v43  ;;  %v3047_v5 = vpop.xlane.xlu1 %3046  ;;  %v3199_v43 = vpop.f32.mrf.mxu2 }
 0xbec   : > { %4848 = vrcp.f32 %v3047_v5 }
 0xbed   : > { %4508 = vmatmul.msk.f32.vlgmr.msrb.gmra.mxu1 %vm1418_vm4, %v3080_v47  ;;  %4850 = vrcp.f32 %v3053_v51  ;;  %v4711_v47 = vld [vmem:[%s6407_s4 + $0x1] ss:$0 sm:$0xff] }
 0xbee   : > { %4852 = vrcp.f32 %v3050_v19 }
 0xbf2   : > { %v4849_v29 = vpop.eup %4848 }
 0xbf3   : > { %v3083_v52 = vmul.f32 %v4849_v29, %v4829_v56  ;;  %v4851_v16 = vpop.eup %4850 }
 0xbf4   : > { %v3085_v53 = vmul.f32 %v4851_v16, %v6285_v45  ;;  %v4853_v54 = vpop.eup %4852 }
 0xbf5   : > { %4514 = vmatmul.msk.f32.vlgmr.msrb.gmra.mxu0 %vm1418_vm4, %v3083_v52  ;;  %v3084_v42 = vmul.f32 %v4853_v54, %v6272_v59 }
 0xbf9   : > { %v3524_v37 = vpop.permute.xlu0 %3523 }
 0xbfa   : > { %4517 = vmatpush.msk.msra.mxu2 %vm1422_vm3, %v3524_v37 }
 0xbfb   : > { %4518 = vmatmul.msk.f32.vlgmr.msra.gmra.mxu2 %vm1418_vm4, %v3085_v53 }
 0xc03   : > { %v3495_v30 = vpop.permute.xlu1 %3494 }
 0xc04   : > { %4515 = vmatpush.msk.msra.mxu1 %vm1422_vm3, %v3495_v30 }
 0xc05   : > { %4516 = vmatmul.msk.f32.vlgmr.msra.gmra.mxu1 %vm1418_vm4, %v3084_v42 }
 0xc10   : > { %v3228_v41 = vpop.f32.mrf.mxu3 }
 0xc11   : > { %3554 = vrot.lane.b32.xlu2 %v3228_v41, %s5242_s25 }
 0xc17   : > { %v3257_v55 = vpop.f32.mrf.mxu0 }
 0xc18   : > { %3556 = vrot.lane.b32.xlu1 %v3257_v55, %s5242_s25 }
 0xc1f   : > { %v3286_v58 = vpop.f32.mrf.mxu1 }
 0xc20   : > { %3558 = vrot.lane.b32.xlu2 %v3286_v58, %s5242_s25 }
 0xc2d   : > { %v3315_v48 = vpop.f32.mrf.mxu2 }
 0xc2e   : > { %3560 = vrot.lane.b32.xlu0 %v3315_v48, %s5242_s25 }
 0xc33   : > { %v3344_v59 = vpop.f32.mrf.mxu3 }
 0xc34   : > { %3570 = vrot.lane.b32.xlu1 %v3344_v59, %s5243_s21 }
 0xc52   : > { %v3373_v50 = vpop.f32.mrf.mxu0 }
 0xc53   : > { %3572 = vrot.lane.b32.xlu2 %v3373_v50, %s5243_s21 }
 0xc57   : > { %v3431_v45 = vpop.f32.mrf.mxu2 }
 0xc58   : > { %3576 = vrot.lane.b32.xlu1 %v3431_v45, %s5243_s21 }
 0xc5f   : > { %v3460_v38 = vpop.f32.mrf.mxu3 }
 0xc60   : > { %3586 = vrot.lane.b32.xlu2 %v3460_v38, %s5244_s22 }
 0xc6a   : > { %v3402_v56 = vpop.f32.mrf.mxu1 }
 0xc6b   : > { %3574 = vrot.lane.b32.xlu0 %v3402_v56, %s5243_s21  ;;  %v3555_v12 = vpop.permute.xlu2 %3554 }
 0xc6c   : > { %v3598_v10 = vsel %vm776_vm1, %v3112_v63, %v3555_v12  ;;  %v4563_v12 = vld [vmem:[#allocation7 + $0x18] sm:$0xff] }
 0xc6d   : > { %3837 = vmatpush.bf16.msra.mxu0 %v4563_v12 }
 0xc72   : > { %v3489_v1 = vpop.f32.mrf.mxu0 }
 0xc73   : > { %3588 = vrot.lane.b32.xlu0 %v3489_v1, %s5244_s22 }
 0xc7a   : > { %v3559_v11 = vpop.permute.xlu2 %3558 }
 0xc7b   : > { %v3600_v9 = vsel %vm776_vm1, %v3170_v33, %v3559_v11 }
 0xc7e   : > { %v3547_v15 = vpop.f32.mrf.mxu2 }
 0xc7f   : > { %3592 = vrot.lane.b32.xlu2 %v3547_v15, %s5244_s22 }
 0xc82   : > { %v3518_v17 = vpop.f32.mrf.mxu1 }
 0xc83   : > { %3590 = vrot.lane.b32.xlu1 %v3518_v17, %s5244_s22 }
 0xc8a   : > { %v3557_v44 = vpop.permute.xlu1 %3556 }
 0xc8b   : > { %v3599_v26 = vsel %vm776_vm1, %v3141_v0, %v3557_v44  ;;  %v4562_v44 = vld [vmem:[#allocation7 + $0x10] sm:$0xff] }
 0xc8c   : > { %3838 = vmatpush.bf16.msra.mxu0 %v4562_v44 }
 0xca0   : > { %v3561_v31 = vpop.permute.xlu0 %3560 }
 0xca1   : > { %v3601_v28 = vsel %vm776_vm1, %v3199_v43, %v3561_v31  ;;  %v4713_v31 = vld [vmem:[#allocation6 + $0x1] ss:$0 sm:$0xff] }
 0xca6   : > { %v3571_v18 = vpop.permute.xlu1 %3570 }
 0xca7   : > { %v3602_v2 = vsel %vm1932_vm6, %v3598_v10, %v3571_v18 }
 0xcad   : > { %v3573_v24 = vpop.permute.xlu2 %3572 }
 0xcae   : > { %v3603_v62 = vsel %vm1932_vm6, %v3599_v26, %v3573_v24 }
 0xcba   : > { %v3587_v35 = vpop.permute.xlu2 %3586 }
 0xcbb   : > { %v3606_v46 = vsel %vm1937_vm5, %v3602_v2, %v3587_v35  ;;  %v4712_v35 = vld [vmem:[%s6408_s5 + $0x1] ss:$0 sm:$0xff] }
 0xcbc   : > { %3614 = vst [vmem:[#allocation1] ss:$4 sm:$0xff] %v3606_v46  ;;  %v3774_v39 = vrot.slane %v4712_v35, 2 }
 0xcca   : > { %v3577_v13 = vpop.permute.xlu1 %3576 }
 0xccb   : > { %v3605_v27 = vsel %vm1932_vm6, %v3601_v28, %v3577_v13  ;;  %v3775_v28 = vrot.slane %v4712_v35, 4 }
 0xcd9   : > { %v3593_v25 = vpop.permute.xlu2 %3592 }
 0xcda   : > { %v3609_v20 = vsel %vm1937_vm5, %v3605_v27, %v3593_v25  ;;  %v3776_v27 = vrot.slane %v4712_v35, 6 }
 0xcdb   : > { %3620 = vst [vmem:[#allocation1 + $0x3] ss:$4 sm:$0xff] %v3609_v20 }
 0xcdd   : > { %v3575_v6 = vpop.permute.xlu0 %3574 }
 0xcde   : > { %v3604_v14 = vsel %vm1932_vm6, %v3600_v9, %v3575_v6 }
 0xce5   : > { %v3589_v40 = vpop.permute.xlu0 %3588 }
 0xce6   : > { %v3607_v7 = vsel %vm1937_vm5, %v3603_v62, %v3589_v40  ;;  %v3787_v62 = vrot.slane %v4713_v31, 2  ;;  %v3788_v40 = vrot.slane %v4713_v31, 4 }
 0xce7   : > { %3616 = vst [vmem:[#allocation1 + $0x1] ss:$4 sm:$0xff] %v3607_v7 }
 0xcf5   : > { %v3591_v8 = vpop.permute.xlu1 %3590 }
 0xcf6   : > { %v3608_v3 = vsel %vm1937_vm5, %v3604_v14, %v3591_v8 }
 0xcf7   : > { %3618 = vst [vmem:[#allocation1 + $0x2] ss:$4 sm:$0xff] %v3608_v3  ;;  %v3789_v3 = vrot.slane %v4713_v31, 6 }
 0xcfe   : > { %v3621_v19 = vld.sshfl [vmem:[#allocation1] sm:$0xff pattern:$0x73625140] }
 0xcff   : > { %v3623_v4 = vpack.c.bf16 %v3621_v19, %v3621_v19 }
 0xd01   : > { %4528 = vmatmul.msk.bf16.vlgmr.msrb.gmra.mxu3 %vm727_vm0, %v3623_v4 }
 0xd84   : > { %v3653_v5 = vpop.f32.mrf.mxu3 }
 0xd85   : > { %v3654_v51 = vadd.f32 %v4711_v47, %v3653_v5 }
 0xd87   : > { %v3658_v29 = vrot.slane %v3654_v51, 2  ;;  %v3659_v52 = vrot.slane %v3654_v51, 4  ;;  %v3660_v16 = vrot.slane %v3654_v51, 6  ;;  %v3664_v53 = vadd.f32 %v3654_v51, %v5932_v36 }
 0xd89   : > { %v3665_v37 = vadd.f32 %v3658_v29, %v5934_v32  ;;  %v3666_v54 = vadd.f32 %v3659_v52, %v5936_v57  ;;  %v3667_v42 = vadd.f32 %v3660_v16, %v5938_v60  ;;  %3676 = vst [vmem:[#allocation1] ss:$4 sm:$0xff] %v3664_v53 }
 0xd8b   : > { %3678 = vst [vmem:[#allocation1 + $0x1] ss:$4 sm:$0xff] %v3665_v37 }
 0xd8c   : > { %3680 = vst [vmem:[#allocation1 + $0x2] ss:$4 sm:$0xff] %v3666_v54  ;;  %v3655_v30 = vpop.f32.mrf.mxu3 }
 0xd8d   : > { %3682 = vst [vmem:[#allocation1 + $0x3] ss:$4 sm:$0xff] %v3667_v42  ;;  %v4714_v30 = vld [vmem:[#allocation9 + $0x1] ss:$0 sm:$0xff] }
 0xd94   : > { %v3683_v63 = vld.sshfl [vmem:[#allocation1] sm:$0xff pattern:$0x73625140] }
 0xd95   : > { %v3685_v0 = vsel %vm727_vm0, %v3683_v63, 0.0 }
 0xd96   : > { %3686 = vadd.xlane.f32.xlu0 %v3685_v0 }
 0xe09   : > { %v3687_v41 = vpop.xlane.xlu0 %3686 }
 0xe0a   : > { %v3688_v33 = vmul.f32 %v3687_v41, %v5894_v21 }
 0xe0c   : > { %v3693_v36 = vperm.slane %v3688_v33, %v5896_v22  ;;  %v3697_v32 = vperm.slane %v3688_v33, %v5898_v34  ;;  %v3701_v57 = vperm.slane %v3688_v33, %v5900_v23  ;;  %v3705_v60 = vperm.slane %v3688_v33, %v5902_v49 }
 0xe0e   : > { %v3710_v55 = vsub.f32 %v3664_v53, %v3693_v36  ;;  %v3711_v58 = vsub.f32 %v3665_v37, %v3697_v32  ;;  %v3712_v43 = vsub.f32 %v3666_v54, %v3701_v57  ;;  %v3713_v48 = vsub.f32 %v3667_v42, %v3705_v60  ;;  %v4565_v54 = vld [vmem:[#allocation10 + $0x18] sm:$0xff]  ;;  %v4564_v42 = vld [vmem:[#allocation10 + $0x10] sm:$0xff]  ;;  %v4715_v32 = vld [vmem:[#allocation12 + $0x1] ss:$0 sm:$0xff] }
 0xe0f   : > { %3872 = vmatpush.bf16.msrb.mxu1 %v4565_v54 }
 0xe10   : > { %v3714_v59 = vmul.f32 %v3710_v55, %v3710_v55  ;;  %v3715_v50 = vmul.f32 %v3711_v58, %v3711_v58  ;;  %v3716_v45 = vmul.f32 %v3712_v43, %v3712_v43  ;;  %v3717_v38 = vmul.f32 %v3713_v48, %v3713_v48 }
 0xe12   : > { %3722 = vst [vmem:[#allocation1] ss:$4 sm:$0xff] %v3714_v59 }
 0xe13   : > { %3724 = vst [vmem:[#allocation1 + $0x1] ss:$4 sm:$0xff] %v3715_v50  ;;  %3873 = vmatpush.bf16.msrb.mxu1 %v4564_v42 }
 0xe14   : > { %3726 = vst [vmem:[#allocation1 + $0x2] ss:$4 sm:$0xff] %v3716_v45 }
 0xe15   : > { %3728 = vst [vmem:[#allocation1 + $0x3] ss:$4 sm:$0xff] %v3717_v38 }
 0xe1c   : > { %v3729_v56 = vld.sshfl [vmem:[#allocation1] sm:$0xff pattern:$0x73625140] }
 0xe1d   : > { %v3731_v1 = vsel %vm727_vm0, %v3729_v56, 0.0 }
 0xe1e   : > { %3732 = vadd.xlane.f32.xlu1 %v3731_v1 }
 0xe91   : > { %v3733_v15 = vpop.xlane.xlu1 %3732 }
 0xe92   : > { %v3734_v17 = vmul.f32 %v3733_v15, %v5894_v21 }
 0xe94   : > { %v3735_v11 = vadd.f32 1e-05, %v3734_v17 }
 0xe96   : > { %4854 = vrsqrt.f32 %v3735_v11  ;;  %vm3742_vm15 = vweird.f32 %v3735_v11 }
 0xe9c   : > { %v4855_v24 = vpop.eup %4854 }
 0xe9d   : > { %v3737_v18 = vmul.f32 %v4855_v24, %v3735_v11  ;;  %vm3743_vm14 = vweird.f32 %v4855_v24 }
 0xe9e   : > { %vm3744_vm1 = vmor %vm3742_vm15, %vm3743_vm14 }
 0xe9f   : > { %v3738_v10 = vmul.f32 %v4855_v24, %v3737_v18 }
 0xea1   : > { %v3739_v2 = vmul.f32 0.5, %v3738_v10 }
 0xea3   : > { %v3740_v46 = vsub.f32 1.5, %v3739_v2 }
 0xea5   : > { %v3741_v13 = vmul.f32 %v4855_v24, %v3740_v46 }
 0xea7   : > { %v3745_v25 = vsel %vm3744_vm1, %v4855_v24, %v3741_v13 }
 0xea8   : > { %v3750_v61 = vperm.slane %v3745_v25, %v5896_v22  ;;  %v3754_v20 = vperm.slane %v3745_v25, %v5898_v34  ;;  %v3758_v6 = vperm.slane %v3745_v25, %v5900_v23  ;;  %v3762_v26 = vperm.slane %v3745_v25, %v5902_v49 }
 0xeaa   : > { %v3767_v7 = vmul.f32 %v3750_v61, %v3710_v55  ;;  %v3768_v9 = vmul.f32 %v3754_v20, %v3711_v58  ;;  %v3769_v14 = vmul.f32 %v3758_v6, %v3712_v43  ;;  %v3770_v8 = vmul.f32 %v3762_v26, %v3713_v48 }
 0xeac   : > { %v3780_v19 = vmul.f32 %v4712_v35, %v3767_v7  ;;  %v3781_v4 = vmul.f32 %v3774_v39, %v3768_v9  ;;  %v3782_v47 = vmul.f32 %v3775_v28, %v3769_v14  ;;  %v3783_v5 = vmul.f32 %v3776_v27, %v3770_v8  ;;  %v4716_v7 = vld [vmem:[#allocation13 + $0x1] ss:$0 sm:$0xff]  ;;  %v4717_v14 = vld [vmem:[#allocation15 + $0x1] ss:$0 sm:$0xff] }
 0xeae   : > { %v3793_v51 = vadd.f32 %v4713_v31, %v3780_v19  ;;  %v3794_v29 = vadd.f32 %v3787_v62, %v3781_v4  ;;  %v3795_v52 = vadd.f32 %v3788_v40, %v3782_v47  ;;  %v3796_v16 = vadd.f32 %v3789_v3, %v3783_v5 }
 0xeaf   : > { %v3996_v3 = vrot.slane %v4716_v7, 2  ;;  %v3997_v19 = vrot.slane %v4716_v7, 4  ;;  %v3998_v4 = vrot.slane %v4716_v7, 6 }
 0xeb0   : > { %3801 = vst [vmem:[#allocation1] ss:$4 sm:$0xff] %v3793_v51 }
 0xeb1   : > { %3803 = vst [vmem:[#allocation1 + $0x1] ss:$4 sm:$0xff] %v3794_v29 }
 0xeb2   : > { %3805 = vst [vmem:[#allocation1 + $0x2] ss:$4 sm:$0xff] %v3795_v52 }
 0xeb3   : > { %3807 = vst [vmem:[#allocation1 + $0x3] ss:$4 sm:$0xff] %v3796_v16 }
 0xeba   : > { %v3808_v53 = vld.sshfl [vmem:[#allocation1] sm:$0xff pattern:$0x73625140] }
 0xebb   : > { %v3810_v37 = vpack.c.bf16 %v3808_v53, %v3808_v53  ;;  %v4010_v53 = vrot.slane %v4717_v14, 4 }
 0xebd   : > { %4538 = vmatmul.msk.bf16.vlgmr.msra.gmra.mxu0 %vm727_vm0, %v3810_v37 }
 0xf3a   : > { %v3840_v63 = vpop.f32.mrf.mxu0 }
 0xf3b   : > { %v3841_v0 = vadd.f32 %v4714_v30, %v3840_v63  ;;  %v4011_v63 = vrot.slane %v4717_v14, 6 }
 0xf3d   : > { %v3844_v41 = vmax.f32 %v3841_v0, 0.0 }
 0xf3f   : > { %v3845_v33 = vpack.c.bf16 %v3844_v41, %v3844_v41 }
 0xf41   : > { %4547 = vmatmul.msk.bf16.vlgmr.msrb.gmra.mxu1 %vm727_vm0, %v3845_v33 }
 0xf42   : > { %v3842_v36 = vpop.f32.mrf.mxu0 }
 0xfbe   : > { %v3875_v57 = vpop.f32.mrf.mxu1 }
 0xfbf   : > { %v3876_v60 = vadd.f32 %v4715_v32, %v3875_v57 }
 0xfc1   : > { %v3880_v55 = vrot.slane %v3876_v60, 2  ;;  %v3881_v58 = vrot.slane %v3876_v60, 4  ;;  %v3882_v43 = vrot.slane %v3876_v60, 6  ;;  %v3886_v48 = vadd.f32 %v3876_v60, %v3793_v51 }
 0xfc3   : > { %v3887_v59 = vadd.f32 %v3880_v55, %v3794_v29  ;;  %v3888_v50 = vadd.f32 %v3881_v58, %v3795_v52  ;;  %v3889_v45 = vadd.f32 %v3882_v43, %v3796_v16  ;;  %3898 = vst [vmem:[#allocation1] ss:$4 sm:$0xff] %v3886_v48  ;;  %v4009_v16 = vrot.slane %v4717_v14, 2 }
 0xfc5   : > { %3900 = vst [vmem:[#allocation1 + $0x1] ss:$4 sm:$0xff] %v3887_v59 }
 0xfc6   : > { %3902 = vst [vmem:[#allocation1 + $0x2] ss:$4 sm:$0xff] %v3888_v50  ;;  %v3877_v38 = vpop.f32.mrf.mxu1 }
 0xfc7   : > { %3904 = vst [vmem:[#allocation1 + $0x3] ss:$4 sm:$0xff] %v3889_v45 }
 0xfce   : > { %v3905_v56 = vld.sshfl [vmem:[#allocation1] sm:$0xff pattern:$0x73625140] }
 0xfcf   : > { %v3907_v1 = vsel %vm727_vm0, %v3905_v56, 0.0 }
 0xfd0   : > { %3908 = vadd.xlane.f32.xlu2 %v3907_v1 }
0x1043   : > { %v3909_v15 = vpop.xlane.xlu2 %3908 }
0x1044   : > { %v3910_v17 = vmul.f32 %v3909_v15, %v5894_v21 }
0x1046   : > { %v3915_v12 = vperm.slane %v3910_v17, %v5896_v22  ;;  %v3919_v11 = vperm.slane %v3910_v17, %v5898_v34  ;;  %v3923_v44 = vperm.slane %v3910_v17, %v5900_v23  ;;  %v3927_v24 = vperm.slane %v3910_v17, %v5902_v49 }
0x1048   : > { %v3932_v18 = vsub.f32 %v3886_v48, %v3915_v12  ;;  %v3933_v10 = vsub.f32 %v3887_v59, %v3919_v11  ;;  %v3934_v2 = vsub.f32 %v3888_v50, %v3923_v44  ;;  %v3935_v35 = vsub.f32 %v3889_v45, %v3927_v24 }
0x104a   : > { %v3936_v46 = vmul.f32 %v3932_v18, %v3932_v18  ;;  %v3937_v31 = vmul.f32 %v3933_v10, %v3933_v10  ;;  %v3938_v13 = vmul.f32 %v3934_v2, %v3934_v2  ;;  %v3939_v39 = vmul.f32 %v3935_v35, %v3935_v35 }
0x104c   : > { %3944 = vst [vmem:[#allocation1] ss:$4 sm:$0xff] %v3936_v46 }
0x104d   : > { %3946 = vst [vmem:[#allocation1 + $0x1] ss:$4 sm:$0xff] %v3937_v31 }
0x104e   : > { %3948 = vst [vmem:[#allocation1 + $0x2] ss:$4 sm:$0xff] %v3938_v13 }
0x104f   : > { %3950 = vst [vmem:[#allocation1 + $0x3] ss:$4 sm:$0xff] %v3939_v39 }
0x1056   : > { %v3951_v28 = vld.sshfl [vmem:[#allocation1] sm:$0xff pattern:$0x73625140] }
0x1057   : > { %v3953_v27 = vsel %vm727_vm0, %v3951_v28, 0.0 }
0x1058   : > { %3954 = vadd.xlane.f32.xlu0 %v3953_v27 }
0x10cb   : > { %v3955_v25 = vpop.xlane.xlu0 %3954 }
0x10cc   : > { %v3956_v61 = vmul.f32 %v3955_v25, %v5894_v21  ;;  %v4718_v25 = vld [vmem:[#allocation16] ss:$0 sm:$0xff] }
0x10ce   : > { %v3957_v20 = vadd.f32 1e-05, %v3956_v61 }
0x10d0   : > { %4856 = vrsqrt.f32 %v3957_v20  ;;  %vm3964_vm3 = vweird.f32 %v3957_v20 }
0x10d6   : > { %v4857_v6 = vpop.eup %4856 }
0x10d7   : > { %v3959_v26 = vmul.f32 %v4857_v6, %v3957_v20  ;;  %vm3965_vm2 = vweird.f32 %v4857_v6  ;;  %v4719_v20 = vld [vmem:[#allocation18] ss:$0 sm:$0xff] }
0x10d8   : > { %vm3966_vm4 = vmor %vm3964_vm3, %vm3965_vm2 }
0x10d9   : > { %v3960_v62 = vmul.f32 %v4857_v6, %v3959_v26  ;;  %v4123_v26 = vrot.slane %v4718_v25, 2 }
0x10db   : > { %v3961_v40 = vmul.f32 0.5, %v3960_v62  ;;  %v4124_v62 = vrot.slane %v4718_v25, 4 }
0x10dd   : > { %v3962_v9 = vsub.f32 1.5, %v3961_v40 }
0x10df   : > { %v3963_v8 = vmul.f32 %v4857_v6, %v3962_v9 }
0x10e1   : > { %v3967_v47 = vsel %vm3966_vm4, %v4857_v6, %v3963_v8  ;;  %v4125_v8 = vrot.slane %v4718_v25, 6 }
0x10e2   : > { %v3972_v5 = vperm.slane %v3967_v47, %v5896_v22  ;;  %v3976_v51 = vperm.slane %v3967_v47, %v5898_v34  ;;  %v3980_v29 = vperm.slane %v3967_v47, %v5900_v23  ;;  %v3984_v52 = vperm.slane %v3967_v47, %v5902_v49 }
0x10e4   : > { %v3989_v37 = vmul.f32 %v3972_v5, %v3932_v18  ;;  %v3990_v54 = vmul.f32 %v3976_v51, %v3933_v10  ;;  %v3991_v42 = vmul.f32 %v3980_v29, %v3934_v2  ;;  %v3992_v30 = vmul.f32 %v3984_v52, %v3935_v35 }
0x10e5   : > { %v4137_v51 = vrot.slane %v4719_v20, 4 }
0x10e6   : > { %v4002_v0 = vmul.f32 %v4716_v7, %v3989_v37  ;;  %v4003_v41 = vmul.f32 %v3996_v3, %v3990_v54  ;;  %v4004_v33 = vmul.f32 %v3997_v19, %v3991_v42  ;;  %v4005_v36 = vmul.f32 %v3998_v4, %v3992_v30 }
0x10e7   : > { %v4136_v3 = vrot.slane %v4719_v20, 2 }
0x10e8   : > { %v4015_v32 = vadd.f32 %v4717_v14, %v4002_v0  ;;  %v4016_v57 = vadd.f32 %v4009_v16, %v4003_v41  ;;  %v4017_v60 = vadd.f32 %v4010_v53, %v4004_v33  ;;  %v4018_v55 = vadd.f32 %v4011_v63, %v4005_v36 }
0x10ea   : > { %4025 = vst [vmem:[#allocation1] ss:$4 sm:$0xff] %v4015_v32 }
0x10eb   : > { %4027 = vst [vmem:[#allocation1 + $0x1] ss:$4 sm:$0xff] %v4016_v57 }
0x10ec   : > { %4029 = vst [vmem:[#allocation1 + $0x2] ss:$4 sm:$0xff] %v4017_v60 }
0x10ed   : > { %4031 = vst [vmem:[#allocation1 + $0x3] ss:$4 sm:$0xff] %v4018_v55 }
0x10f4   : > { %v4032_v58 = vld.sshfl [vmem:[#allocation1] sm:$0xff pattern:$0x73625140] }
0x10f5   : > { %v4034_v43 = vsel %vm727_vm0, %v4032_v58, 0.0 }
0x10f6   : > { %4035 = vadd.xlane.f32.xlu1 %v4034_v43 }
0x1169   : > { %v4036_v48 = vpop.xlane.xlu1 %4035 }
0x116a   : > { %v4037_v59 = vmul.f32 %v4036_v48, %v5894_v21 }
0x116c   : > { %v4042_v50 = vperm.slane %v4037_v59, %v5896_v22  ;;  %v4046_v45 = vperm.slane %v4037_v59, %v5898_v34  ;;  %v4050_v38 = vperm.slane %v4037_v59, %v5900_v23  ;;  %v4054_v56 = vperm.slane %v4037_v59, %v5902_v49 }
0x116e   : > { %v4059_v1 = vsub.f32 %v4015_v32, %v4042_v50  ;;  %v4060_v15 = vsub.f32 %v4016_v57, %v4046_v45  ;;  %v4061_v17 = vsub.f32 %v4017_v60, %v4050_v38  ;;  %v4062_v12 = vsub.f32 %v4018_v55, %v4054_v56 }
0x1170   : > { %v4063_v11 = vmul.f32 %v4059_v1, %v4059_v1  ;;  %v4064_v44 = vmul.f32 %v4060_v15, %v4060_v15  ;;  %v4065_v24 = vmul.f32 %v4061_v17, %v4061_v17  ;;  %v4066_v18 = vmul.f32 %v4062_v12, %v4062_v12 }
0x1172   : > { %4071 = vst [vmem:[#allocation1] ss:$4 sm:$0xff] %v4063_v11 }
0x1173   : > { %4073 = vst [vmem:[#allocation1 + $0x1] ss:$4 sm:$0xff] %v4064_v44 }
0x1174   : > { %4075 = vst [vmem:[#allocation1 + $0x2] ss:$4 sm:$0xff] %v4065_v24 }
0x1175   : > { %4077 = vst [vmem:[#allocation1 + $0x3] ss:$4 sm:$0xff] %v4066_v18 }
0x117c   : > { %v4078_v10 = vld.sshfl [vmem:[#allocation1] sm:$0xff pattern:$0x73625140] }
0x117d   : > { %v4080_v2 = vsel %vm727_vm0, %v4078_v10, 0.0  ;;  %vm4146_vm0 = vcmask 254976  }
0x117e   : > { %4081 = vadd.xlane.f32.xlu2 %v4080_v2 }
0x11f1   : > { %v4082_v35 = vpop.xlane.xlu2 %4081 }
0x11f2   : > { %v4083_v46 = vmul.f32 %v4082_v35, %v5894_v21 }
0x11f4   : > { %v4084_v31 = vadd.f32 1e-05, %v4083_v46 }
0x11f6   : > { %4858 = vrsqrt.f32 %v4084_v31  ;;  %vm4091_vm6 = vweird.f32 %v4084_v31 }
0x11fc   : > { %v4859_v13 = vpop.eup %4858 }
0x11fd   : > { %v4086_v39 = vmul.f32 %v4859_v13, %v4084_v31  ;;  %vm4092_vm5 = vweird.f32 %v4859_v13 }
0x11fe   : > { %vm4093_vm7 = vmor %vm4091_vm6, %vm4092_vm5 }
0x11ff   : > { %v4087_v28 = vmul.f32 %v4859_v13, %v4086_v39 }
0x1201   : > { %v4088_v27 = vmul.f32 0.5, %v4087_v28 }
0x1203   : > { %v4089_v61 = vsub.f32 1.5, %v4088_v27 }
0x1205   : > { %v4090_v6 = vmul.f32 %v4859_v13, %v4089_v61 }
0x1207   : > { %v4094_v40 = vsel %vm4093_vm7, %v4859_v13, %v4090_v6 }
0x1208   : > { %v4099_v7 = vperm.slane %v4094_v40, %v5896_v22  ;;  %v4103_v21 = vperm.slane %v4094_v40, %v5898_v34  ;;  %v4107_v9 = vperm.slane %v4094_v40, %v5900_v23  ;;  %v4111_v14 = vperm.slane %v4094_v40, %v5902_v49 }
0x1209   : > { %v4138_v22 = vrot.slane %v4719_v20, 6 }
0x120a   : > { %v4116_v19 = vmul.f32 %v4099_v7, %v4059_v1  ;;  %v4117_v4 = vmul.f32 %v4103_v21, %v4060_v15  ;;  %v4118_v47 = vmul.f32 %v4107_v9, %v4061_v17  ;;  %v4119_v5 = vmul.f32 %v4111_v14, %v4062_v12 }
0x120c   : > { %v4129_v29 = vmul.f32 %v4718_v25, %v4116_v19  ;;  %v4130_v52 = vmul.f32 %v4123_v26, %v4117_v4  ;;  %v4131_v16 = vmul.f32 %v4124_v62, %v4118_v47  ;;  %v4132_v34 = vmul.f32 %v4125_v8, %v4119_v5 }
0x120e   : > { %v4142_v23 = vadd.f32 %v4719_v20, %v4129_v29  ;;  %v4143_v49 = vadd.f32 %v4136_v3, %v4130_v52  ;;  %v4144_v53 = vadd.f32 %v4137_v51, %v4131_v16  ;;  %v4145_v37 = vadd.f32 %v4138_v22, %v4132_v34 }
0x1210   : > { %4147 = vst.msk [vmem:[%s674_s26] sm:$0x3] %vm4146_vm0, %v4142_v23 }
0x1211   : > { %4148 = vst.msk [vmem:[%s674_s26 + $0x2] sm:$0x3] %vm4146_vm0, %v4143_v49 }
0x1212   : > { %4149 = vst.msk [vmem:[%s674_s26 + $0x4] sm:$0x3] %vm4146_vm0, %v4144_v53 }
0x1213   : > { %4150 = vst.msk [vmem:[%s674_s26 + $0x6] sm:$0x3] %vm4146_vm0, %v4145_v37 }
0x1214 PF: > { %s31_s18 = sadd.s32 1, %s5220_s18  }
0x1215   : > { %p28_p7 = scmp.ge.s32.totalorder %s31_s18, 4  }
0x1217   :  { %30 = sbr.rel (!%p28_p7) target bundleno = 12 (0xc), region = 215 }
0x121c   :  { %4173 = vsyncpa [#allocation3], 1 }
0x121d   :  { %4175 = vsyncpa [#allocation3 + $0x1], 1 }
0x121e   :  { %4176 = vsyncpa [#allocation5], 1 }
0x121f   :  { %4177 = vsyncpa [#allocation8], 1 }
0x1220   :  { %4178 = vsyncpa [#allocation11], 1 }
0x1221   :  { %4179 = vsyncpa [#allocation14], 1 }
0x1222   :  { %4180 = vsyncpa [#allocation17], 1 }

</bundles_post_ra>
